<compile_context>
chip_gen: v7x
topology: tpu7x:2x2x1
jax: 0.10.0
libtpu: 0.0.40
codegen_flags: <defaults>
</compile_context>

<pallas_src>
import functools

import numpy as np
import jax
import jax.numpy as jnp
from jax import lax
from jax.experimental import pallas as pl
from jax.experimental.pallas import tpu as pltpu


# -----------------------------------------------------------------------------
# In-kernel helper: fused ResBlock (conv1 -> ReLU -> conv2 + skip) on the VPU
# -----------------------------------------------------------------------------
def _resblock(xp2, interior, w1_ref, b1_ref, w2_ref, b2_ref, H, W):
    """xp2: (H+4, W+4) input padded by 2; interior: (H+2, W+2) bool mask.

    Returns the (H, W) ResBlock output.  conv1 is evaluated on the padded
    (H+2, W+2) domain; the masked 1-pixel border is exactly conv2's zero
    padding of the conv1 output.
    """
    Hp, Wp = H + 2, W + 2
    acc2 = jnp.zeros((H, W), jnp.float32)
    for c in range(8):
        # conv1, channel c (1 -> 8): 9 shifted multiply-adds
        acc1 = jnp.zeros((Hp, Wp), jnp.float32)
        for dy in range(3):
            for dx in range(3):
                tap = w1_ref[c * 9 + dy * 3 + dx]
                acc1 = acc1 + tap * xp2[dy:dy + Hp, dx:dx + Wp]
        h1p = jnp.where(interior, jnp.maximum(acc1 + b1_ref[c], 0.0), 0.0)
        # conv2 contribution of channel c (8 -> 1): 9 shifted multiply-adds
        for dy in range(3):
            for dx in range(3):
                tap = w2_ref[c * 9 + dy * 3 + dx]
                acc2 = acc2 + tap * h1p[dy:dy + H, dx:dx + W]
    # bias + identity skip (skip sliced from the padded tile, no extra input)
    return acc2 + b2_ref[0] + xp2[2:2 + H, 2:2 + W]


# -----------------------------------------------------------------------------
# Pallas kernel: full Block.forward for one batch element per grid step
# -----------------------------------------------------------------------------
def _block_kernel(op_ref, cp_ref, w1_ref, b1_ref, w2_ref, b2_ref,
                  bh_ref, bwt_ref, out_ref, loss_ref, acc_ref, *, inv_n):
    # op_ref / cp_ref: (H+4, W+4)  padded input1 ("other") / input2 ("color")
    # w1_ref: (72,) SMEM   conv1 weights, flattened (8,1,3,3)
    # b1_ref: (8,)  SMEM
    # w2_ref: (72,) SMEM   conv2 weights, flattened (1,8,3,3)
    # b2_ref: (1,)  SMEM
    # bh_ref: (H, H) band matrix (vertical blur);  bwt_ref: (W, W) = Bw^T
    # out_ref: (H, W) fused image;  loss_ref: (1,1) SMEM;  acc_ref: (1,) SMEM
    i = pl.program_id(0)
    H, W = out_ref.shape
    Hp, Wp = H + 2, W + 2

    op = op_ref[...]
    cp = cp_ref[...]

    # interior mask, shared by both ResBlock evaluations
    ii = lax.broadcasted_iota(jnp.int32, (Hp, Wp), 0)
    jj = lax.broadcasted_iota(jnp.int32, (Hp, Wp), 1)
    interior = jnp.logical_and(jnp.logical_and(ii >= 1, ii <= H),
                               jnp.logical_and(jj >= 1, jj <= W))

    t1 = _resblock(op, interior, w1_ref, b1_ref, w2_ref, b2_ref, H, W)
    t2 = _resblock(cp, interior, w1_ref, b1_ref, w2_ref, b2_ref, H, W)

    x1 = op[2:2 + H, 2:2 + W]      # input1
    x2 = cp[2:2 + H, 2:2 + W]      # input2

    # k1 = t1^2/(t1^2+t2^2); k2 = t2^2/(t1^2+t2^2)   (one divide, reused)
    t1s = t1 * t1
    t2s = t2 * t2
    inv = 1.0 / (t1s + t2s)
    k1 = t1s * inv
    k2 = t2s * inv
    fused = k1 * x1 + k2 * x2
    out_ref[...] = fused

    # --- SSIM (window=11, sigma=1.5, zero padding) as two 2-D matmuls/blur ---
    bh = bh_ref[...]
    bwt = bwt_ref[...]

    def blur(img):                 # (H, W) -> (H, W)
        tmp = jnp.dot(bh, img, preferred_element_type=jnp.float32)
        return jnp.dot(tmp, bwt, preferred_element_type=jnp.float32)

    c1 = 0.01 ** 2
    c2 = 0.03 ** 2

    # blur terms of the fused image are shared by both SSIM terms
    mu_f = blur(fused)
    mu_f_sq = mu_f * mu_f
    sigma_f = blur(fused * fused) - mu_f_sq

    def ssim_mean(b):
        mu_b = blur(b)
        mu_b_sq = mu_b * mu_b
        mu_fb = mu_f * mu_b
        sigma_b = blur(b * b) - mu_b_sq
        sigma_fb = blur(fused * b) - mu_fb
        num = (2.0 * mu_fb + c1) * (2.0 * sigma_fb + c2)
        den = (mu_f_sq + mu_b_sq + c1) * (sigma_f + sigma_b + c2)
        return jnp.mean(num / den)

    # loss = ssim(fused, color) + ssim(fused, other), batch-averaged
    step_loss = (ssim_mean(x2) + ssim_mean(x1)) * inv_n

    @pl.when(i == 0)
    def _():
        acc_ref[0] = 0.0

    acc_ref[0] += step_loss
    loss_ref[0, 0] = acc_ref[0]    # last grid step leaves the total


def block_forward_pallas(other, color, w1, b1, w2, b2, bh, bwt):
    """other/color: (N, H, W) float32 -> (fused (N, H, W), loss scalar)."""
    n, h, w = other.shape
    op = jnp.pad(other, ((0, 0), (2, 2), (2, 2)))   # (N, H+4, W+4)
    cp = jnp.pad(color, ((0, 0), (2, 2), (2, 2)))

    smem = pl.BlockSpec(memory_space=pltpu.MemorySpace.SMEM)
    img_pad_spec = pl.BlockSpec((None, h + 4, w + 4), lambda i: (i, 0, 0))
    kern = functools.partial(_block_kernel, inv_n=1.0 / n)

    fused, loss = pl.pallas_call(
        kern,
        out_shape=(jax.ShapeDtypeStruct((n, h, w), jnp.float32),
                   jax.ShapeDtypeStruct((1, 1), jnp.float32)),
        grid=(n,),
        in_specs=[img_pad_spec, img_pad_spec,
                  smem, smem, smem, smem,
                  pl.BlockSpec((h, h), lambda i: (0, 0)),
                  pl.BlockSpec((w, w), lambda i: (0, 0))],
        out_specs=(pl.BlockSpec((None, h, w), lambda i: (i, 0, 0)),
                   smem),
        scratch_shapes=[pltpu.SMEM((1,), jnp.float32)],
        compiler_params=pltpu.CompilerParams(
            dimension_semantics=("arbitrary",)),
    )(op, cp,
      w1.reshape(-1).astype(jnp.float32), b1.astype(jnp.float32),
      w2.reshape(-1).astype(jnp.float32), b2.astype(jnp.float32),
      bh, bwt)
    return fused, loss[0, 0]


# -----------------------------------------------------------------------------
# JAX glue: Gaussian band matrices, full MODEL forward
# -----------------------------------------------------------------------------
def gaussian_1d(size=11, sigma=1.5):
    coords = np.arange(size, dtype=np.float64) - size // 2
    g = np.exp(-(coords ** 2) / (2.0 * sigma ** 2))
    return (g / g.sum()).astype(np.float32)


def band_matrix(length, g):
    """B[i, j] = g[j - i + pad], so (B @ x) is the zero-padded 1-D blur."""
    size = len(g)
    pad = size // 2
    b = np.zeros((length, length), dtype=np.float32)
    for i in range(length):
        for k in range(size):
            j = i + k - pad
            if 0 <= j < length:
                b[i, j] = g[k]
    return b


@jax.jit
def model_forward(other, color, w1, b1, w2, b2, bh, bwt):
    """MODEL.forward(other, color) -> (loss_ssim, output) in NCHW."""
    fused, loss = block_forward_pallas(other[:, 0], color[:, 0],
                                       w1, b1, w2, b2, bh, bwt)
    output = fused[:, None, :, :]          # back to NCHW
    return loss, output


if __name__ == "__main__":
    N, C, H, W = 2, 1, 16, 16

    key = jax.random.PRNGKey(0)
    k_in1, k_in2, k_w1, k_b1, k_w2, k_b2 = jax.random.split(key, 6)
    other = jax.random.uniform(k_in1, (N, C, H, W), jnp.float32)
    color = jax.random.uniform(k_in2, (N, C, H, W), jnp.float32)

    # deterministic parameter init (ResBlock: conv1 1->8, conv2 8->1)
    w1 = 0.1 * jax.random.normal(k_w1, (8, 1, 3, 3), jnp.float32)
    b1 = 0.1 * jax.random.normal(k_b1, (8,), jnp.float32)
    w2 = 0.1 * jax.random.normal(k_w2, (1, 8, 3, 3), jnp.float32)
    b2 = 0.1 * jax.random.normal(k_b2, (1,), jnp.float32)

    # SSIM Gaussian blur as banded matrices (window=11, sigma=1.5, pad=5)
    g = gaussian_1d(11, 1.5)
    bh = jnp.asarray(band_matrix(H, g))
    bwt = jnp.asarray(band_matrix(W, g).T)

    loss, output = model_forward(other, color, w1, b1, w2, b2, bh, bwt)
    jax.block_until_ready((loss, output))

    assert output.shape == (N, C, H, W)
    assert loss.shape == ()
    print("KERNEL_OK")
</pallas_src>

<mosaic_0001>
module attributes {stable_mosaic.version = 11 : i64} {
  func.func @_block_kernel(%arg0: i32, %arg1: memref<1x20x20xf32, #tpu.memory_space<vmem>>, %arg2: memref<1x20x20xf32, #tpu.memory_space<vmem>>, %arg3: memref<72xf32, #tpu.memory_space<smem>>, %arg4: memref<8xf32, #tpu.memory_space<smem>>, %arg5: memref<72xf32, #tpu.memory_space<smem>>, %arg6: memref<1xf32, #tpu.memory_space<smem>>, %arg7: memref<16x16xf32, #tpu.memory_space<vmem>>, %arg8: memref<16x16xf32, #tpu.memory_space<vmem>>, %arg9: memref<1x16x16xf32, #tpu.memory_space<vmem>>, %arg10: memref<1x1xf32, #tpu.memory_space<smem>>, %arg11: memref<1xf32, #tpu.memory_space<smem>>) attributes {dimension_semantics = [#tpu.dimension_semantics<arbitrary>], iteration_bounds = array<i64: 2>, scalar_prefetch = 0 : i64, scratch_operands = 1 : i64, tpu.core_type = #tpu.core_type<tc>, window_params = [{transform_indices = @transform_0, window_bounds = array<i64: 1, 20, 20>}, {transform_indices = @transform_1, window_bounds = array<i64: 1, 20, 20>}, {transform_indices = @transform_2, window_bounds = array<i64: 72>}, {transform_indices = @transform_3, window_bounds = array<i64: 8>}, {transform_indices = @transform_4, window_bounds = array<i64: 72>}, {transform_indices = @transform_5, window_bounds = array<i64: 1>}, {pipeline_mode = #tpu.pipeline_mode<synchronous>, transform_indices = @transform_6, window_bounds = array<i64: 16, 16>}, {pipeline_mode = #tpu.pipeline_mode<synchronous>, transform_indices = @transform_7, window_bounds = array<i64: 16, 16>}, {transform_indices = @transform_8, window_bounds = array<i64: 1, 16, 16>}, {transform_indices = @transform_9, window_bounds = array<i64: 1, 1>}]} {
    %c0 = arith.constant 0 : index
    %c0_0 = arith.constant 0 : index
    %c0_1 = arith.constant 0 : index
    %0 = vector.load %arg1[%c0, %c0_0, %c0_1] : memref<1x20x20xf32, #tpu.memory_space<vmem>>, vector<1x20x20xf32>
    %1 = vector.shape_cast %0 : vector<1x20x20xf32> to vector<20x20xf32>
    %c0_2 = arith.constant 0 : index
    %c0_3 = arith.constant 0 : index
    %c0_4 = arith.constant 0 : index
    %2 = vector.load %arg2[%c0_2, %c0_3, %c0_4] : memref<1x20x20xf32, #tpu.memory_space<vmem>>, vector<1x20x20xf32>
    %3 = vector.shape_cast %2 : vector<1x20x20xf32> to vector<20x20xf32>
    %4 = tpu.iota {dimensions = array<i32: 0>} : vector<18x18xi32>
    %5 = tpu.iota {dimensions = array<i32: 1>} : vector<18x18xi32>
    %c1_i32 = arith.constant 1 : i32
    %6 = vector.broadcast %c1_i32 : i32 to vector<18x18xi32>
    %7 = arith.cmpi sge, %4, %6 : vector<18x18xi32>
    %c16_i32 = arith.constant 16 : i32
    %8 = vector.broadcast %c16_i32 : i32 to vector<18x18xi32>
    %9 = arith.cmpi sle, %4, %8 : vector<18x18xi32>
    %10 = arith.andi %7, %9 : vector<18x18xi1>
    %c1_i32_5 = arith.constant 1 : i32
    %11 = vector.broadcast %c1_i32_5 : i32 to vector<18x18xi32>
    %12 = arith.cmpi sge, %5, %11 : vector<18x18xi32>
    %c16_i32_6 = arith.constant 16 : i32
    %13 = vector.broadcast %c16_i32_6 : i32 to vector<18x18xi32>
    %14 = arith.cmpi sle, %5, %13 : vector<18x18xi32>
    %15 = arith.andi %12, %14 : vector<18x18xi1>
    %16 = arith.andi %10, %15 : vector<18x18xi1>
    %cst = arith.constant 0.000000e+00 : f32
    %17 = vector.broadcast %cst : f32 to vector<16x16xf32>
    %cst_7 = arith.constant 0.000000e+00 : f32
    %18 = vector.broadcast %cst_7 : f32 to vector<18x18xf32>
    %c0_8 = arith.constant 0 : index
    %19 = memref.load %arg3[%c0_8] : memref<72xf32, #tpu.memory_space<smem>>
    %20 = vector.extract_strided_slice %1 {offsets = [0, 0], sizes = [18, 18], strides = [1, 1]} : vector<20x20xf32> to vector<18x18xf32>
    %21 = vector.broadcast %19 : f32 to vector<18x18xf32>
    %22 = arith.mulf %21, %20 : vector<18x18xf32>
    %23 = arith.addf %18, %22 : vector<18x18xf32>
    %c1 = arith.constant 1 : index
    %24 = memref.load %arg3[%c1] : memref<72xf32, #tpu.memory_space<smem>>
    %25 = vector.extract_strided_slice %1 {offsets = [0, 1], sizes = [18, 18], strides = [1, 1]} : vector<20x20xf32> to vector<18x18xf32>
    %26 = vector.broadcast %24 : f32 to vector<18x18xf32>
    %27 = arith.mulf %26, %25 : vector<18x18xf32>
    %28 = arith.addf %23, %27 : vector<18x18xf32>
    %c2 = arith.constant 2 : index
    %29 = memref.load %arg3[%c2] : memref<72xf32, #tpu.memory_space<smem>>
    %30 = vector.extract_strided_slice %1 {offsets = [0, 2], sizes = [18, 18], strides = [1, 1]} : vector<20x20xf32> to vector<18x18xf32>
    %31 = vector.broadcast %29 : f32 to vector<18x18xf32>
    %32 = arith.mulf %31, %30 : vector<18x18xf32>
    %33 = arith.addf %28, %32 : vector<18x18xf32>
    %c3 = arith.constant 3 : index
    %34 = memref.load %arg3[%c3] : memref<72xf32, #tpu.memory_space<smem>>
    %35 = vector.extract_strided_slice %1 {offsets = [1, 0], sizes = [18, 18], strides = [1, 1]} : vector<20x20xf32> to vector<18x18xf32>
    %36 = vector.broadcast %34 : f32 to vector<18x18xf32>
    %37 = arith.mulf %36, %35 : vector<18x18xf32>
    %38 = arith.addf %33, %37 : vector<18x18xf32>
    %c4 = arith.constant 4 : index
    %39 = memref.load %arg3[%c4] : memref<72xf32, #tpu.memory_space<smem>>
    %40 = vector.extract_strided_slice %1 {offsets = [1, 1], sizes = [18, 18], strides = [1, 1]} : vector<20x20xf32> to vector<18x18xf32>
    %41 = vector.broadcast %39 : f32 to vector<18x18xf32>
    %42 = arith.mulf %41, %40 : vector<18x18xf32>
    %43 = arith.addf %38, %42 : vector<18x18xf32>
    %c5 = arith.constant 5 : index
    %44 = memref.load %arg3[%c5] : memref<72xf32, #tpu.memory_space<smem>>
    %45 = vector.extract_strided_slice %1 {offsets = [1, 2], sizes = [18, 18], strides = [1, 1]} : vector<20x20xf32> to vector<18x18xf32>
    %46 = vector.broadcast %44 : f32 to vector<18x18xf32>
    %47 = arith.mulf %46, %45 : vector<18x18xf32>
    %48 = arith.addf %43, %47 : vector<18x18xf32>
    %c6 = arith.constant 6 : index
    %49 = memref.load %arg3[%c6] : memref<72xf32, #tpu.memory_space<smem>>
    %50 = vector.extract_strided_slice %1 {offsets = [2, 0], sizes = [18, 18], strides = [1, 1]} : vector<20x20xf32> to vector<18x18xf32>
    %51 = vector.broadcast %49 : f32 to vector<18x18xf32>
    %52 = arith.mulf %51, %50 : vector<18x18xf32>
    %53 = arith.addf %48, %52 : vector<18x18xf32>
    %c7 = arith.constant 7 : index
    %54 = memref.load %arg3[%c7] : memref<72xf32, #tpu.memory_space<smem>>
    %55 = vector.extract_strided_slice %1 {offsets = [2, 1], sizes = [18, 18], strides = [1, 1]} : vector<20x20xf32> to vector<18x18xf32>
    %56 = vector.broadcast %54 : f32 to vector<18x18xf32>
    %57 = arith.mulf %56, %55 : vector<18x18xf32>
    %58 = arith.addf %53, %57 : vector<18x18xf32>
    %c8 = arith.constant 8 : index
    %59 = memref.load %arg3[%c8] : memref<72xf32, #tpu.memory_space<smem>>
    %60 = vector.extract_strided_slice %1 {offsets = [2, 2], sizes = [18, 18], strides = [1, 1]} : vector<20x20xf32> to vector<18x18xf32>
    %61 = vector.broadcast %59 : f32 to vector<18x18xf32>
    %62 = arith.mulf %61, %60 : vector<18x18xf32>
    %63 = arith.addf %58, %62 : vector<18x18xf32>
    %c0_9 = arith.constant 0 : index
    %64 = memref.load %arg4[%c0_9] : memref<8xf32, #tpu.memory_space<smem>>
    %65 = vector.broadcast %64 : f32 to vector<18x18xf32>
    %66 = arith.addf %63, %65 : vector<18x18xf32>
    %cst_10 = arith.constant 0.000000e+00 : f32
    %67 = vector.broadcast %cst_10 : f32 to vector<18x18xf32>
    %68 = arith.maximumf %66, %67 : vector<18x18xf32>
    %cst_11 = arith.constant 0.000000e+00 : f32
    %69 = vector.broadcast %cst_11 : f32 to vector<18x18xf32>
    %70 = arith.select %16, %68, %69 : vector<18x18xi1>, vector<18x18xf32>
    %c0_12 = arith.constant 0 : index
    %71 = memref.load %arg5[%c0_12] : memref<72xf32, #tpu.memory_space<smem>>
    %72 = vector.extract_strided_slice %70 {offsets = [0, 0], sizes = [16, 16], strides = [1, 1]} : vector<18x18xf32> to vector<16x16xf32>
    %73 = vector.broadcast %71 : f32 to vector<16x16xf32>
    %74 = arith.mulf %73, %72 : vector<16x16xf32>
    %75 = arith.addf %17, %74 : vector<16x16xf32>
    %c1_13 = arith.constant 1 : index
    %76 = memref.load %arg5[%c1_13] : memref<72xf32, #tpu.memory_space<smem>>
    %77 = vector.extract_strided_slice %70 {offsets = [0, 1], sizes = [16, 16], strides = [1, 1]} : vector<18x18xf32> to vector<16x16xf32>
    %78 = vector.broadcast %76 : f32 to vector<16x16xf32>
    %79 = arith.mulf %78, %77 : vector<16x16xf32>
    %80 = arith.addf %75, %79 : vector<16x16xf32>
    %c2_14 = arith.constant 2 : index
    %81 = memref.load %arg5[%c2_14] : memref<72xf32, #tpu.memory_space<smem>>
    %82 = vector.extract_strided_slice %70 {offsets = [0, 2], sizes = [16, 16], strides = [1, 1]} : vector<18x18xf32> to vector<16x16xf32>
    %83 = vector.broadcast %81 : f32 to vector<16x16xf32>
    %84 = arith.mulf %83, %82 : vector<16x16xf32>
    %85 = arith.addf %80, %84 : vector<16x16xf32>
    %c3_15 = arith.constant 3 : index
    %86 = memref.load %arg5[%c3_15] : memref<72xf32, #tpu.memory_space<smem>>
    %87 = vector.extract_strided_slice %70 {offsets = [1, 0], sizes = [16, 16], strides = [1, 1]} : vector<18x18xf32> to vector<16x16xf32>
    %88 = vector.broadcast %86 : f32 to vector<16x16xf32>
    %89 = arith.mulf %88, %87 : vector<16x16xf32>
    %90 = arith.addf %85, %89 : vector<16x16xf32>
    %c4_16 = arith.constant 4 : index
    %91 = memref.load %arg5[%c4_16] : memref<72xf32, #tpu.memory_space<smem>>
    %92 = vector.extract_strided_slice %70 {offsets = [1, 1], sizes = [16, 16], strides = [1, 1]} : vector<18x18xf32> to vector<16x16xf32>
    %93 = vector.broadcast %91 : f32 to vector<16x16xf32>
    %94 = arith.mulf %93, %92 : vector<16x16xf32>
    %95 = arith.addf %90, %94 : vector<16x16xf32>
    %c5_17 = arith.constant 5 : index
    %96 = memref.load %arg5[%c5_17] : memref<72xf32, #tpu.memory_space<smem>>
    %97 = vector.extract_strided_slice %70 {offsets = [1, 2], sizes = [16, 16], strides = [1, 1]} : vector<18x18xf32> to vector<16x16xf32>
    %98 = vector.broadcast %96 : f32 to vector<16x16xf32>
    %99 = arith.mulf %98, %97 : vector<16x16xf32>
    %100 = arith.addf %95, %99 : vector<16x16xf32>
    %c6_18 = arith.constant 6 : index
    %101 = memref.load %arg5[%c6_18] : memref<72xf32, #tpu.memory_space<smem>>
    %102 = vector.extract_strided_slice %70 {offsets = [2, 0], sizes = [16, 16], strides = [1, 1]} : vector<18x18xf32> to vector<16x16xf32>
    %103 = vector.broadcast %101 : f32 to vector<16x16xf32>
    %104 = arith.mulf %103, %102 : vector<16x16xf32>
    %105 = arith.addf %100, %104 : vector<16x16xf32>
    %c7_19 = arith.constant 7 : index
    %106 = memref.load %arg5[%c7_19] : memref<72xf32, #tpu.memory_space<smem>>
    %107 = vector.extract_strided_slice %70 {offsets = [2, 1], sizes = [16, 16], strides = [1, 1]} : vector<18x18xf32> to vector<16x16xf32>
    %108 = vector.broadcast %106 : f32 to vector<16x16xf32>
    %109 = arith.mulf %108, %107 : vector<16x16xf32>
    %110 = arith.addf %105, %109 : vector<16x16xf32>
    %c8_20 = arith.constant 8 : index
    %111 = memref.load %arg5[%c8_20] : memref<72xf32, #tpu.memory_space<smem>>
    %112 = vector.extract_strided_slice %70 {offsets = [2, 2], sizes = [16, 16], strides = [1, 1]} : vector<18x18xf32> to vector<16x16xf32>
    %113 = vector.broadcast %111 : f32 to vector<16x16xf32>
    %114 = arith.mulf %113, %112 : vector<16x16xf32>
    %115 = arith.addf %110, %114 : vector<16x16xf32>
    %cst_21 = arith.constant 0.000000e+00 : f32
    %116 = vector.broadcast %cst_21 : f32 to vector<18x18xf32>
    %c9 = arith.constant 9 : index
    %117 = memref.load %arg3[%c9] : memref<72xf32, #tpu.memory_space<smem>>
    %118 = vector.extract_strided_slice %1 {offsets = [0, 0], sizes = [18, 18], strides = [1, 1]} : vector<20x20xf32> to vector<18x18xf32>
    %119 = vector.broadcast %117 : f32 to vector<18x18xf32>
    %120 = arith.mulf %119, %118 : vector<18x18xf32>
    %121 = arith.addf %116, %120 : vector<18x18xf32>
    %c10 = arith.constant 10 : index
    %122 = memref.load %arg3[%c10] : memref<72xf32, #tpu.memory_space<smem>>
    %123 = vector.extract_strided_slice %1 {offsets = [0, 1], sizes = [18, 18], strides = [1, 1]} : vector<20x20xf32> to vector<18x18xf32>
    %124 = vector.broadcast %122 : f32 to vector<18x18xf32>
    %125 = arith.mulf %124, %123 : vector<18x18xf32>
    %126 = arith.addf %121, %125 : vector<18x18xf32>
    %c11 = arith.constant 11 : index
    %127 = memref.load %arg3[%c11] : memref<72xf32, #tpu.memory_space<smem>>
    %128 = vector.extract_strided_slice %1 {offsets = [0, 2], sizes = [18, 18], strides = [1, 1]} : vector<20x20xf32> to vector<18x18xf32>
    %129 = vector.broadcast %127 : f32 to vector<18x18xf32>
    %130 = arith.mulf %129, %128 : vector<18x18xf32>
    %131 = arith.addf %126, %130 : vector<18x18xf32>
    %c12 = arith.constant 12 : index
    %132 = memref.load %arg3[%c12] : memref<72xf32, #tpu.memory_space<smem>>
    %133 = vector.extract_strided_slice %1 {offsets = [1, 0], sizes = [18, 18], strides = [1, 1]} : vector<20x20xf32> to vector<18x18xf32>
    %134 = vector.broadcast %132 : f32 to vector<18x18xf32>
    %135 = arith.mulf %134, %133 : vector<18x18xf32>
    %136 = arith.addf %131, %135 : vector<18x18xf32>
    %c13 = arith.constant 13 : index
    %137 = memref.load %arg3[%c13] : memref<72xf32, #tpu.memory_space<smem>>
    %138 = vector.extract_strided_slice %1 {offsets = [1, 1], sizes = [18, 18], strides = [1, 1]} : vector<20x20xf32> to vector<18x18xf32>
    %139 = vector.broadcast %137 : f32 to vector<18x18xf32>
    %140 = arith.mulf %139, %138 : vector<18x18xf32>
    %141 = arith.addf %136, %140 : vector<18x18xf32>
    %c14 = arith.constant 14 : index
    %142 = memref.load %arg3[%c14] : memref<72xf32, #tpu.memory_space<smem>>
    %143 = vector.extract_strided_slice %1 {offsets = [1, 2], sizes = [18, 18], strides = [1, 1]} : vector<20x20xf32> to vector<18x18xf32>
    %144 = vector.broadcast %142 : f32 to vector<18x18xf32>
    %145 = arith.mulf %144, %143 : vector<18x18xf32>
    %146 = arith.addf %141, %145 : vector<18x18xf32>
    %c15 = arith.constant 15 : index
    %147 = memref.load %arg3[%c15] : memref<72xf32, #tpu.memory_space<smem>>
    %148 = vector.extract_strided_slice %1 {offsets = [2, 0], sizes = [18, 18], strides = [1, 1]} : vector<20x20xf32> to vector<18x18xf32>
    %149 = vector.broadcast %147 : f32 to vector<18x18xf32>
    %150 = arith.mulf %149, %148 : vector<18x18xf32>
    %151 = arith.addf %146, %150 : vector<18x18xf32>
    %c16 = arith.constant 16 : index
    %152 = memref.load %arg3[%c16] : memref<72xf32, #tpu.memory_space<smem>>
    %153 = vector.extract_strided_slice %1 {offsets = [2, 1], sizes = [18, 18], strides = [1, 1]} : vector<20x20xf32> to vector<18x18xf32>
    %154 = vector.broadcast %152 : f32 to vector<18x18xf32>
    %155 = arith.mulf %154, %153 : vector<18x18xf32>
    %156 = arith.addf %151, %155 : vector<18x18xf32>
    %c17 = arith.constant 17 : index
    %157 = memref.load %arg3[%c17] : memref<72xf32, #tpu.memory_space<smem>>
    %158 = vector.extract_strided_slice %1 {offsets = [2, 2], sizes = [18, 18], strides = [1, 1]} : vector<20x20xf32> to vector<18x18xf32>
    %159 = vector.broadcast %157 : f32 to vector<18x18xf32>
    %160 = arith.mulf %159, %158 : vector<18x18xf32>
    %161 = arith.addf %156, %160 : vector<18x18xf32>
    %c1_22 = arith.constant 1 : index
    %162 = memref.load %arg4[%c1_22] : memref<8xf32, #tpu.memory_space<smem>>
    %163 = vector.broadcast %162 : f32 to vector<18x18xf32>
    %164 = arith.addf %161, %163 : vector<18x18xf32>
    %cst_23 = arith.constant 0.000000e+00 : f32
    %165 = vector.broadcast %cst_23 : f32 to vector<18x18xf32>
    %166 = arith.maximumf %164, %165 : vector<18x18xf32>
    %cst_24 = arith.constant 0.000000e+00 : f32
    %167 = vector.broadcast %cst_24 : f32 to vector<18x18xf32>
    %168 = arith.select %16, %166, %167 : vector<18x18xi1>, vector<18x18xf32>
    %c9_25 = arith.constant 9 : index
    %169 = memref.load %arg5[%c9_25] : memref<72xf32, #tpu.memory_space<smem>>
    %170 = vector.extract_strided_slice %168 {offsets = [0, 0], sizes = [16, 16], strides = [1, 1]} : vector<18x18xf32> to vector<16x16xf32>
    %171 = vector.broadcast %169 : f32 to vector<16x16xf32>
    %172 = arith.mulf %171, %170 : vector<16x16xf32>
    %173 = arith.addf %115, %172 : vector<16x16xf32>
    %c10_26 = arith.constant 10 : index
    %174 = memref.load %arg5[%c10_26] : memref<72xf32, #tpu.memory_space<smem>>
    %175 = vector.extract_strided_slice %168 {offsets = [0, 1], sizes = [16, 16], strides = [1, 1]} : vector<18x18xf32> to vector<16x16xf32>
    %176 = vector.broadcast %174 : f32 to vector<16x16xf32>
    %177 = arith.mulf %176, %175 : vector<16x16xf32>
    %178 = arith.addf %173, %177 : vector<16x16xf32>
    %c11_27 = arith.constant 11 : index
    %179 = memref.load %arg5[%c11_27] : memref<72xf32, #tpu.memory_space<smem>>
    %180 = vector.extract_strided_slice %168 {offsets = [0, 2], sizes = [16, 16], strides = [1, 1]} : vector<18x18xf32> to vector<16x16xf32>
    %181 = vector.broadcast %179 : f32 to vector<16x16xf32>
    %182 = arith.mulf %181, %180 : vector<16x16xf32>
    %183 = arith.addf %178, %182 : vector<16x16xf32>
    %c12_28 = arith.constant 12 : index
    %184 = memref.load %arg5[%c12_28] : memref<72xf32, #tpu.memory_space<smem>>
    %185 = vector.extract_strided_slice %168 {offsets = [1, 0], sizes = [16, 16], strides = [1, 1]} : vector<18x18xf32> to vector<16x16xf32>
    %186 = vector.broadcast %184 : f32 to vector<16x16xf32>
    %187 = arith.mulf %186, %185 : vector<16x16xf32>
    %188 = arith.addf %183, %187 : vector<16x16xf32>
    %c13_29 = arith.constant 13 : index
    %189 = memref.load %arg5[%c13_29] : memref<72xf32, #tpu.memory_space<smem>>
    %190 = vector.extract_strided_slice %168 {offsets = [1, 1], sizes = [16, 16], strides = [1, 1]} : vector<18x18xf32> to vector<16x16xf32>
    %191 = vector.broadcast %189 : f32 to vector<16x16xf32>
    %192 = arith.mulf %191, %190 : vector<16x16xf32>
    %193 = arith.addf %188, %192 : vector<16x16xf32>
    %c14_30 = arith.constant 14 : index
    %194 = memref.load %arg5[%c14_30] : memref<72xf32, #tpu.memory_space<smem>>
    %195 = vector.extract_strided_slice %168 {offsets = [1, 2], sizes = [16, 16], strides = [1, 1]} : vector<18x18xf32> to vector<16x16xf32>
    %196 = vector.broadcast %194 : f32 to vector<16x16xf32>
    %197 = arith.mulf %196, %195 : vector<16x16xf32>
    %198 = arith.addf %193, %197 : vector<16x16xf32>
    %c15_31 = arith.constant 15 : index
    %199 = memref.load %arg5[%c15_31] : memref<72xf32, #tpu.memory_space<smem>>
    %200 = vector.extract_strided_slice %168 {offsets = [2, 0], sizes = [16, 16], strides = [1, 1]} : vector<18x18xf32> to vector<16x16xf32>
    %201 = vector.broadcast %199 : f32 to vector<16x16xf32>
    %202 = arith.mulf %201, %200 : vector<16x16xf32>
    %203 = arith.addf %198, %202 : vector<16x16xf32>
    %c16_32 = arith.constant 16 : index
    %204 = memref.load %arg5[%c16_32] : memref<72xf32, #tpu.memory_space<smem>>
    %205 = vector.extract_strided_slice %168 {offsets = [2, 1], sizes = [16, 16], strides = [1, 1]} : vector<18x18xf32> to vector<16x16xf32>
    %206 = vector.broadcast %204 : f32 to vector<16x16xf32>
    %207 = arith.mulf %206, %205 : vector<16x16xf32>
    %208 = arith.addf %203, %207 : vector<16x16xf32>
    %c17_33 = arith.constant 17 : index
    %209 = memref.load %arg5[%c17_33] : memref<72xf32, #tpu.memory_space<smem>>
    %210 = vector.extract_strided_slice %168 {offsets = [2, 2], sizes = [16, 16], strides = [1, 1]} : vector<18x18xf32> to vector<16x16xf32>
    %211 = vector.broadcast %209 : f32 to vector<16x16xf32>
    %212 = arith.mulf %211, %210 : vector<16x16xf32>
    %213 = arith.addf %208, %212 : vector<16x16xf32>
    %cst_34 = arith.constant 0.000000e+00 : f32
    %214 = vector.broadcast %cst_34 : f32 to vector<18x18xf32>
    %c18 = arith.constant 18 : index
    %215 = memref.load %arg3[%c18] : memref<72xf32, #tpu.memory_space<smem>>
    %216 = vector.extract_strided_slice %1 {offsets = [0, 0], sizes = [18, 18], strides = [1, 1]} : vector<20x20xf32> to vector<18x18xf32>
    %217 = vector.broadcast %215 : f32 to vector<18x18xf32>
    %218 = arith.mulf %217, %216 : vector<18x18xf32>
    %219 = arith.addf %214, %218 : vector<18x18xf32>
    %c19 = arith.constant 19 : index
    %220 = memref.load %arg3[%c19] : memref<72xf32, #tpu.memory_space<smem>>
    %221 = vector.extract_strided_slice %1 {offsets = [0, 1], sizes = [18, 18], strides = [1, 1]} : vector<20x20xf32> to vector<18x18xf32>
    %222 = vector.broadcast %220 : f32 to vector<18x18xf32>
    %223 = arith.mulf %222, %221 : vector<18x18xf32>
    %224 = arith.addf %219, %223 : vector<18x18xf32>
    %c20 = arith.constant 20 : index
    %225 = memref.load %arg3[%c20] : memref<72xf32, #tpu.memory_space<smem>>
    %226 = vector.extract_strided_slice %1 {offsets = [0, 2], sizes = [18, 18], strides = [1, 1]} : vector<20x20xf32> to vector<18x18xf32>
    %227 = vector.broadcast %225 : f32 to vector<18x18xf32>
    %228 = arith.mulf %227, %226 : vector<18x18xf32>
    %229 = arith.addf %224, %228 : vector<18x18xf32>
    %c21 = arith.constant 21 : index
    %230 = memref.load %arg3[%c21] : memref<72xf32, #tpu.memory_space<smem>>
    %231 = vector.extract_strided_slice %1 {offsets = [1, 0], sizes = [18, 18], strides = [1, 1]} : vector<20x20xf32> to vector<18x18xf32>
    %232 = vector.broadcast %230 : f32 to vector<18x18xf32>
    %233 = arith.mulf %232, %231 : vector<18x18xf32>
    %234 = arith.addf %229, %233 : vector<18x18xf32>
    %c22 = arith.constant 22 : index
    %235 = memref.load %arg3[%c22] : memref<72xf32, #tpu.memory_space<smem>>
    %236 = vector.extract_strided_slice %1 {offsets = [1, 1], sizes = [18, 18], strides = [1, 1]} : vector<20x20xf32> to vector<18x18xf32>
    %237 = vector.broadcast %235 : f32 to vector<18x18xf32>
    %238 = arith.mulf %237, %236 : vector<18x18xf32>
    %239 = arith.addf %234, %238 : vector<18x18xf32>
    %c23 = arith.constant 23 : index
    %240 = memref.load %arg3[%c23] : memref<72xf32, #tpu.memory_space<smem>>
    %241 = vector.extract_strided_slice %1 {offsets = [1, 2], sizes = [18, 18], strides = [1, 1]} : vector<20x20xf32> to vector<18x18xf32>
    %242 = vector.broadcast %240 : f32 to vector<18x18xf32>
    %243 = arith.mulf %242, %241 : vector<18x18xf32>
    %244 = arith.addf %239, %243 : vector<18x18xf32>
    %c24 = arith.constant 24 : index
    %245 = memref.load %arg3[%c24] : memref<72xf32, #tpu.memory_space<smem>>
    %246 = vector.extract_strided_slice %1 {offsets = [2, 0], sizes = [18, 18], strides = [1, 1]} : vector<20x20xf32> to vector<18x18xf32>
    %247 = vector.broadcast %245 : f32 to vector<18x18xf32>
    %248 = arith.mulf %247, %246 : vector<18x18xf32>
    %249 = arith.addf %244, %248 : vector<18x18xf32>
    %c25 = arith.constant 25 : index
    %250 = memref.load %arg3[%c25] : memref<72xf32, #tpu.memory_space<smem>>
    %251 = vector.extract_strided_slice %1 {offsets = [2, 1], sizes = [18, 18], strides = [1, 1]} : vector<20x20xf32> to vector<18x18xf32>
    %252 = vector.broadcast %250 : f32 to vector<18x18xf32>
    %253 = arith.mulf %252, %251 : vector<18x18xf32>
    %254 = arith.addf %249, %253 : vector<18x18xf32>
    %c26 = arith.constant 26 : index
    %255 = memref.load %arg3[%c26] : memref<72xf32, #tpu.memory_space<smem>>
    %256 = vector.extract_strided_slice %1 {offsets = [2, 2], sizes = [18, 18], strides = [1, 1]} : vector<20x20xf32> to vector<18x18xf32>
    %257 = vector.broadcast %255 : f32 to vector<18x18xf32>
    %258 = arith.mulf %257, %256 : vector<18x18xf32>
    %259 = arith.addf %254, %258 : vector<18x18xf32>
    %c2_35 = arith.constant 2 : index
    %260 = memref.load %arg4[%c2_35] : memref<8xf32, #tpu.memory_space<smem>>
    %261 = vector.broadcast %260 : f32 to vector<18x18xf32>
    %262 = arith.addf %259, %261 : vector<18x18xf32>
    %cst_36 = arith.constant 0.000000e+00 : f32
    %263 = vector.broadcast %cst_36 : f32 to vector<18x18xf32>
    %264 = arith.maximumf %262, %263 : vector<18x18xf32>
    %cst_37 = arith.constant 0.000000e+00 : f32
    %265 = vector.broadcast %cst_37 : f32 to vector<18x18xf32>
    %266 = arith.select %16, %264, %265 : vector<18x18xi1>, vector<18x18xf32>
    %c18_38 = arith.constant 18 : index
    %267 = memref.load %arg5[%c18_38] : memref<72xf32, #tpu.memory_space<smem>>
    %268 = vector.extract_strided_slice %266 {offsets = [0, 0], sizes = [16, 16], strides = [1, 1]} : vector<18x18xf32> to vector<16x16xf32>
    %269 = vector.broadcast %267 : f32 to vector<16x16xf32>
    %270 = arith.mulf %269, %268 : vector<16x16xf32>
    %271 = arith.addf %213, %270 : vector<16x16xf32>
    %c19_39 = arith.constant 19 : index
    %272 = memref.load %arg5[%c19_39] : memref<72xf32, #tpu.memory_space<smem>>
    %273 = vector.extract_strided_slice %266 {offsets = [0, 1], sizes = [16, 16], strides = [1, 1]} : vector<18x18xf32> to vector<16x16xf32>
    %274 = vector.broadcast %272 : f32 to vector<16x16xf32>
    %275 = arith.mulf %274, %273 : vector<16x16xf32>
    %276 = arith.addf %271, %275 : vector<16x16xf32>
    %c20_40 = arith.constant 20 : index
    %277 = memref.load %arg5[%c20_40] : memref<72xf32, #tpu.memory_space<smem>>
    %278 = vector.extract_strided_slice %266 {offsets = [0, 2], sizes = [16, 16], strides = [1, 1]} : vector<18x18xf32> to vector<16x16xf32>
    %279 = vector.broadcast %277 : f32 to vector<16x16xf32>
    %280 = arith.mulf %279, %278 : vector<16x16xf32>
    %281 = arith.addf %276, %280 : vector<16x16xf32>
    %c21_41 = arith.constant 21 : index
    %282 = memref.load %arg5[%c21_41] : memref<72xf32, #tpu.memory_space<smem>>
    %283 = vector.extract_strided_slice %266 {offsets = [1, 0], sizes = [16, 16], strides = [1, 1]} : vector<18x18xf32> to vector<16x16xf32>
    %284 = vector.broadcast %282 : f32 to vector<16x16xf32>
    %285 = arith.mulf %284, %283 : vector<16x16xf32>
    %286 = arith.addf %281, %285 : vector<16x16xf32>
    %c22_42 = arith.constant 22 : index
    %287 = memref.load %arg5[%c22_42] : memref<72xf32, #tpu.memory_space<smem>>
    %288 = vector.extract_strided_slice %266 {offsets = [1, 1], sizes = [16, 16], strides = [1, 1]} : vector<18x18xf32> to vector<16x16xf32>
    %289 = vector.broadcast %287 : f32 to vector<16x16xf32>
    %290 = arith.mulf %289, %288 : vector<16x16xf32>
    %291 = arith.addf %286, %290 : vector<16x16xf32>
    %c23_43 = arith.constant 23 : index
    %292 = memref.load %arg5[%c23_43] : memref<72xf32, #tpu.memory_space<smem>>
    %293 = vector.extract_strided_slice %266 {offsets = [1, 2], sizes = [16, 16], strides = [1, 1]} : vector<18x18xf32> to vector<16x16xf32>
    %294 = vector.broadcast %292 : f32 to vector<16x16xf32>
    %295 = arith.mulf %294, %293 : vector<16x16xf32>
    %296 = arith.addf %291, %295 : vector<16x16xf32>
    %c24_44 = arith.constant 24 : index
    %297 = memref.load %arg5[%c24_44] : memref<72xf32, #tpu.memory_space<smem>>
    %298 = vector.extract_strided_slice %266 {offsets = [2, 0], sizes = [16, 16], strides = [1, 1]} : vector<18x18xf32> to vector<16x16xf32>
    %299 = vector.broadcast %297 : f32 to vector<16x16xf32>
    %300 = arith.mulf %299, %298 : vector<16x16xf32>
    %301 = arith.addf %296, %300 : vector<16x16xf32>
    %c25_45 = arith.constant 25 : index
    %302 = memref.load %arg5[%c25_45] : memref<72xf32, #tpu.memory_space<smem>>
    %303 = vector.extract_strided_slice %266 {offsets = [2, 1], sizes = [16, 16], strides = [1, 1]} : vector<18x18xf32> to vector<16x16xf32>
    %304 = vector.broadcast %302 : f32 to vector<16x16xf32>
    %305 = arith.mulf %304, %303 : vector<16x16xf32>
    %306 = arith.addf %301, %305 : vector<16x16xf32>
    %c26_46 = arith.constant 26 : index
    %307 = memref.load %arg5[%c26_46] : memref<72xf32, #tpu.memory_space<smem>>
    %308 = vector.extract_strided_slice %266 {offsets = [2, 2], sizes = [16, 16], strides = [1, 1]} : vector<18x18xf32> to vector<16x16xf32>
    %309 = vector.broadcast %307 : f32 to vector<16x16xf32>
    %310 = arith.mulf %309, %308 : vector<16x16xf32>
    %311 = arith.addf %306, %310 : vector<16x16xf32>
    %cst_47 = arith.constant 0.000000e+00 : f32
    %312 = vector.broadcast %cst_47 : f32 to vector<18x18xf32>
    %c27 = arith.constant 27 : index
    %313 = memref.load %arg3[%c27] : memref<72xf32, #tpu.memory_space<smem>>
    %314 = vector.extract_strided_slice %1 {offsets = [0, 0], sizes = [18, 18], strides = [1, 1]} : vector<20x20xf32> to vector<18x18xf32>
    %315 = vector.broadcast %313 : f32 to vector<18x18xf32>
    %316 = arith.mulf %315, %314 : vector<18x18xf32>
    %317 = arith.addf %312, %316 : vector<18x18xf32>
    %c28 = arith.constant 28 : index
    %318 = memref.load %arg3[%c28] : memref<72xf32, #tpu.memory_space<smem>>
    %319 = vector.extract_strided_slice %1 {offsets = [0, 1], sizes = [18, 18], strides = [1, 1]} : vector<20x20xf32> to vector<18x18xf32>
    %320 = vector.broadcast %318 : f32 to vector<18x18xf32>
    %321 = arith.mulf %320, %319 : vector<18x18xf32>
    %322 = arith.addf %317, %321 : vector<18x18xf32>
    %c29 = arith.constant 29 : index
    %323 = memref.load %arg3[%c29] : memref<72xf32, #tpu.memory_space<smem>>
    %324 = vector.extract_strided_slice %1 {offsets = [0, 2], sizes = [18, 18], strides = [1, 1]} : vector<20x20xf32> to vector<18x18xf32>
    %325 = vector.broadcast %323 : f32 to vector<18x18xf32>
    %326 = arith.mulf %325, %324 : vector<18x18xf32>
    %327 = arith.addf %322, %326 : vector<18x18xf32>
    %c30 = arith.constant 30 : index
    %328 = memref.load %arg3[%c30] : memref<72xf32, #tpu.memory_space<smem>>
    %329 = vector.extract_strided_slice %1 {offsets = [1, 0], sizes = [18, 18], strides = [1, 1]} : vector<20x20xf32> to vector<18x18xf32>
    %330 = vector.broadcast %328 : f32 to vector<18x18xf32>
    %331 = arith.mulf %330, %329 : vector<18x18xf32>
    %332 = arith.addf %327, %331 : vector<18x18xf32>
    %c31 = arith.constant 31 : index
    %333 = memref.load %arg3[%c31] : memref<72xf32, #tpu.memory_space<smem>>
    %334 = vector.extract_strided_slice %1 {offsets = [1, 1], sizes = [18, 18], strides = [1, 1]} : vector<20x20xf32> to vector<18x18xf32>
    %335 = vector.broadcast %333 : f32 to vector<18x18xf32>
    %336 = arith.mulf %335, %334 : vector<18x18xf32>
    %337 = arith.addf %332, %336 : vector<18x18xf32>
    %c32 = arith.constant 32 : index
    %338 = memref.load %arg3[%c32] : memref<72xf32, #tpu.memory_space<smem>>
    %339 = vector.extract_strided_slice %1 {offsets = [1, 2], sizes = [18, 18], strides = [1, 1]} : vector<20x20xf32> to vector<18x18xf32>
    %340 = vector.broadcast %338 : f32 to vector<18x18xf32>
    %341 = arith.mulf %340, %339 : vector<18x18xf32>
    %342 = arith.addf %337, %341 : vector<18x18xf32>
    %c33 = arith.constant 33 : index
    %343 = memref.load %arg3[%c33] : memref<72xf32, #tpu.memory_space<smem>>
    %344 = vector.extract_strided_slice %1 {offsets = [2, 0], sizes = [18, 18], strides = [1, 1]} : vector<20x20xf32> to vector<18x18xf32>
    %345 = vector.broadcast %343 : f32 to vector<18x18xf32>
    %346 = arith.mulf %345, %344 : vector<18x18xf32>
    %347 = arith.addf %342, %346 : vector<18x18xf32>
    %c34 = arith.constant 34 : index
    %348 = memref.load %arg3[%c34] : memref<72xf32, #tpu.memory_space<smem>>
    %349 = vector.extract_strided_slice %1 {offsets = [2, 1], sizes = [18, 18], strides = [1, 1]} : vector<20x20xf32> to vector<18x18xf32>
    %350 = vector.broadcast %348 : f32 to vector<18x18xf32>
    %351 = arith.mulf %350, %349 : vector<18x18xf32>
    %352 = arith.addf %347, %351 : vector<18x18xf32>
    %c35 = arith.constant 35 : index
    %353 = memref.load %arg3[%c35] : memref<72xf32, #tpu.memory_space<smem>>
    %354 = vector.extract_strided_slice %1 {offsets = [2, 2], sizes = [18, 18], strides = [1, 1]} : vector<20x20xf32> to vector<18x18xf32>
    %355 = vector.broadcast %353 : f32 to vector<18x18xf32>
    %356 = arith.mulf %355, %354 : vector<18x18xf32>
    %357 = arith.addf %352, %356 : vector<18x18xf32>
    %c3_48 = arith.constant 3 : index
    %358 = memref.load %arg4[%c3_48] : memref<8xf32, #tpu.memory_space<smem>>
    %359 = vector.broadcast %358 : f32 to vector<18x18xf32>
    %360 = arith.addf %357, %359 : vector<18x18xf32>
    %cst_49 = arith.constant 0.000000e+00 : f32
    %361 = vector.broadcast %cst_49 : f32 to vector<18x18xf32>
    %362 = arith.maximumf %360, %361 : vector<18x18xf32>
    %cst_50 = arith.constant 0.000000e+00 : f32
    %363 = vector.broadcast %cst_50 : f32 to vector<18x18xf32>
    %364 = arith.select %16, %362, %363 : vector<18x18xi1>, vector<18x18xf32>
    %c27_51 = arith.constant 27 : index
    %365 = memref.load %arg5[%c27_51] : memref<72xf32, #tpu.memory_space<smem>>
    %366 = vector.extract_strided_slice %364 {offsets = [0, 0], sizes = [16, 16], strides = [1, 1]} : vector<18x18xf32> to vector<16x16xf32>
    %367 = vector.broadcast %365 : f32 to vector<16x16xf32>
    %368 = arith.mulf %367, %366 : vector<16x16xf32>
    %369 = arith.addf %311, %368 : vector<16x16xf32>
    %c28_52 = arith.constant 28 : index
    %370 = memref.load %arg5[%c28_52] : memref<72xf32, #tpu.memory_space<smem>>
    %371 = vector.extract_strided_slice %364 {offsets = [0, 1], sizes = [16, 16], strides = [1, 1]} : vector<18x18xf32> to vector<16x16xf32>
    %372 = vector.broadcast %370 : f32 to vector<16x16xf32>
    %373 = arith.mulf %372, %371 : vector<16x16xf32>
    %374 = arith.addf %369, %373 : vector<16x16xf32>
    %c29_53 = arith.constant 29 : index
    %375 = memref.load %arg5[%c29_53] : memref<72xf32, #tpu.memory_space<smem>>
    %376 = vector.extract_strided_slice %364 {offsets = [0, 2], sizes = [16, 16], strides = [1, 1]} : vector<18x18xf32> to vector<16x16xf32>
    %377 = vector.broadcast %375 : f32 to vector<16x16xf32>
    %378 = arith.mulf %377, %376 : vector<16x16xf32>
    %379 = arith.addf %374, %378 : vector<16x16xf32>
    %c30_54 = arith.constant 30 : index
    %380 = memref.load %arg5[%c30_54] : memref<72xf32, #tpu.memory_space<smem>>
    %381 = vector.extract_strided_slice %364 {offsets = [1, 0], sizes = [16, 16], strides = [1, 1]} : vector<18x18xf32> to vector<16x16xf32>
    %382 = vector.broadcast %380 : f32 to vector<16x16xf32>
    %383 = arith.mulf %382, %381 : vector<16x16xf32>
    %384 = arith.addf %379, %383 : vector<16x16xf32>
    %c31_55 = arith.constant 31 : index
    %385 = memref.load %arg5[%c31_55] : memref<72xf32, #tpu.memory_space<smem>>
    %386 = vector.extract_strided_slice %364 {offsets = [1, 1], sizes = [16, 16], strides = [1, 1]} : vector<18x18xf32> to vector<16x16xf32>
    %387 = vector.broadcast %385 : f32 to vector<16x16xf32>
    %388 = arith.mulf %387, %386 : vector<16x16xf32>
    %389 = arith.addf %384, %388 : vector<16x16xf32>
    %c32_56 = arith.constant 32 : index
    %390 = memref.load %arg5[%c32_56] : memref<72xf32, #tpu.memory_space<smem>>
    %391 = vector.extract_strided_slice %364 {offsets = [1, 2], sizes = [16, 16], strides = [1, 1]} : vector<18x18xf32> to vector<16x16xf32>
    %392 = vector.broadcast %390 : f32 to vector<16x16xf32>
    %393 = arith.mulf %392, %391 : vector<16x16xf32>
    %394 = arith.addf %389, %393 : vector<16x16xf32>
    %c33_57 = arith.constant 33 : index
    %395 = memref.load %arg5[%c33_57] : memref<72xf32, #tpu.memory_space<smem>>
    %396 = vector.extract_strided_slice %364 {offsets = [2, 0], sizes = [16, 16], strides = [1, 1]} : vector<18x18xf32> to vector<16x16xf32>
    %397 = vector.broadcast %395 : f32 to vector<16x16xf32>
    %398 = arith.mulf %397, %396 : vector<16x16xf32>
    %399 = arith.addf %394, %398 : vector<16x16xf32>
    %c34_58 = arith.constant 34 : index
    %400 = memref.load %arg5[%c34_58] : memref<72xf32, #tpu.memory_space<smem>>
    %401 = vector.extract_strided_slice %364 {offsets = [2, 1], sizes = [16, 16], strides = [1, 1]} : vector<18x18xf32> to vector<16x16xf32>
    %402 = vector.broadcast %400 : f32 to vector<16x16xf32>
    %403 = arith.mulf %402, %401 : vector<16x16xf32>
    %404 = arith.addf %399, %403 : vector<16x16xf32>
    %c35_59 = arith.constant 35 : index
    %405 = memref.load %arg5[%c35_59] : memref<72xf32, #tpu.memory_space<smem>>
    %406 = vector.extract_strided_slice %364 {offsets = [2, 2], sizes = [16, 16], strides = [1, 1]} : vector<18x18xf32> to vector<16x16xf32>
    %407 = vector.broadcast %405 : f32 to vector<16x16xf32>
    %408 = arith.mulf %407, %406 : vector<16x16xf32>
    %409 = arith.addf %404, %408 : vector<16x16xf32>
    %cst_60 = arith.constant 0.000000e+00 : f32
    %410 = vector.broadcast %cst_60 : f32 to vector<18x18xf32>
    %c36 = arith.constant 36 : index
    %411 = memref.load %arg3[%c36] : memref<72xf32, #tpu.memory_space<smem>>
    %412 = vector.extract_strided_slice %1 {offsets = [0, 0], sizes = [18, 18], strides = [1, 1]} : vector<20x20xf32> to vector<18x18xf32>
    %413 = vector.broadcast %411 : f32 to vector<18x18xf32>
    %414 = arith.mulf %413, %412 : vector<18x18xf32>
    %415 = arith.addf %410, %414 : vector<18x18xf32>
    %c37 = arith.constant 37 : index
    %416 = memref.load %arg3[%c37] : memref<72xf32, #tpu.memory_space<smem>>
    %417 = vector.extract_strided_slice %1 {offsets = [0, 1], sizes = [18, 18], strides = [1, 1]} : vector<20x20xf32> to vector<18x18xf32>
    %418 = vector.broadcast %416 : f32 to vector<18x18xf32>
    %419 = arith.mulf %418, %417 : vector<18x18xf32>
    %420 = arith.addf %415, %419 : vector<18x18xf32>
    %c38 = arith.constant 38 : index
    %421 = memref.load %arg3[%c38] : memref<72xf32, #tpu.memory_space<smem>>
    %422 = vector.extract_strided_slice %1 {offsets = [0, 2], sizes = [18, 18], strides = [1, 1]} : vector<20x20xf32> to vector<18x18xf32>
    %423 = vector.broadcast %421 : f32 to vector<18x18xf32>
    %424 = arith.mulf %423, %422 : vector<18x18xf32>
    %425 = arith.addf %420, %424 : vector<18x18xf32>
    %c39 = arith.constant 39 : index
    %426 = memref.load %arg3[%c39] : memref<72xf32, #tpu.memory_space<smem>>
    %427 = vector.extract_strided_slice %1 {offsets = [1, 0], sizes = [18, 18], strides = [1, 1]} : vector<20x20xf32> to vector<18x18xf32>
    %428 = vector.broadcast %426 : f32 to vector<18x18xf32>
    %429 = arith.mulf %428, %427 : vector<18x18xf32>
    %430 = arith.addf %425, %429 : vector<18x18xf32>
    %c40 = arith.constant 40 : index
    %431 = memref.load %arg3[%c40] : memref<72xf32, #tpu.memory_space<smem>>
    %432 = vector.extract_strided_slice %1 {offsets = [1, 1], sizes = [18, 18], strides = [1, 1]} : vector<20x20xf32> to vector<18x18xf32>
    %433 = vector.broadcast %431 : f32 to vector<18x18xf32>
    %434 = arith.mulf %433, %432 : vector<18x18xf32>
    %435 = arith.addf %430, %434 : vector<18x18xf32>
    %c41 = arith.constant 41 : index
    %436 = memref.load %arg3[%c41] : memref<72xf32, #tpu.memory_space<smem>>
    %437 = vector.extract_strided_slice %1 {offsets = [1, 2], sizes = [18, 18], strides = [1, 1]} : vector<20x20xf32> to vector<18x18xf32>
    %438 = vector.broadcast %436 : f32 to vector<18x18xf32>
    %439 = arith.mulf %438, %437 : vector<18x18xf32>
    %440 = arith.addf %435, %439 : vector<18x18xf32>
    %c42 = arith.constant 42 : index
    %441 = memref.load %arg3[%c42] : memref<72xf32, #tpu.memory_space<smem>>
    %442 = vector.extract_strided_slice %1 {offsets = [2, 0], sizes = [18, 18], strides = [1, 1]} : vector<20x20xf32> to vector<18x18xf32>
    %443 = vector.broadcast %441 : f32 to vector<18x18xf32>
    %444 = arith.mulf %443, %442 : vector<18x18xf32>
    %445 = arith.addf %440, %444 : vector<18x18xf32>
    %c43 = arith.constant 43 : index
    %446 = memref.load %arg3[%c43] : memref<72xf32, #tpu.memory_space<smem>>
    %447 = vector.extract_strided_slice %1 {offsets = [2, 1], sizes = [18, 18], strides = [1, 1]} : vector<20x20xf32> to vector<18x18xf32>
    %448 = vector.broadcast %446 : f32 to vector<18x18xf32>
    %449 = arith.mulf %448, %447 : vector<18x18xf32>
    %450 = arith.addf %445, %449 : vector<18x18xf32>
    %c44 = arith.constant 44 : index
    %451 = memref.load %arg3[%c44] : memref<72xf32, #tpu.memory_space<smem>>
    %452 = vector.extract_strided_slice %1 {offsets = [2, 2], sizes = [18, 18], strides = [1, 1]} : vector<20x20xf32> to vector<18x18xf32>
    %453 = vector.broadcast %451 : f32 to vector<18x18xf32>
    %454 = arith.mulf %453, %452 : vector<18x18xf32>
    %455 = arith.addf %450, %454 : vector<18x18xf32>
    %c4_61 = arith.constant 4 : index
    %456 = memref.load %arg4[%c4_61] : memref<8xf32, #tpu.memory_space<smem>>
    %457 = vector.broadcast %456 : f32 to vector<18x18xf32>
    %458 = arith.addf %455, %457 : vector<18x18xf32>
    %cst_62 = arith.constant 0.000000e+00 : f32
    %459 = vector.broadcast %cst_62 : f32 to vector<18x18xf32>
    %460 = arith.maximumf %458, %459 : vector<18x18xf32>
    %cst_63 = arith.constant 0.000000e+00 : f32
    %461 = vector.broadcast %cst_63 : f32 to vector<18x18xf32>
    %462 = arith.select %16, %460, %461 : vector<18x18xi1>, vector<18x18xf32>
    %c36_64 = arith.constant 36 : index
    %463 = memref.load %arg5[%c36_64] : memref<72xf32, #tpu.memory_space<smem>>
    %464 = vector.extract_strided_slice %462 {offsets = [0, 0], sizes = [16, 16], strides = [1, 1]} : vector<18x18xf32> to vector<16x16xf32>
    %465 = vector.broadcast %463 : f32 to vector<16x16xf32>
    %466 = arith.mulf %465, %464 : vector<16x16xf32>
    %467 = arith.addf %409, %466 : vector<16x16xf32>
    %c37_65 = arith.constant 37 : index
    %468 = memref.load %arg5[%c37_65] : memref<72xf32, #tpu.memory_space<smem>>
    %469 = vector.extract_strided_slice %462 {offsets = [0, 1], sizes = [16, 16], strides = [1, 1]} : vector<18x18xf32> to vector<16x16xf32>
    %470 = vector.broadcast %468 : f32 to vector<16x16xf32>
    %471 = arith.mulf %470, %469 : vector<16x16xf32>
    %472 = arith.addf %467, %471 : vector<16x16xf32>
    %c38_66 = arith.constant 38 : index
    %473 = memref.load %arg5[%c38_66] : memref<72xf32, #tpu.memory_space<smem>>
    %474 = vector.extract_strided_slice %462 {offsets = [0, 2], sizes = [16, 16], strides = [1, 1]} : vector<18x18xf32> to vector<16x16xf32>
    %475 = vector.broadcast %473 : f32 to vector<16x16xf32>
    %476 = arith.mulf %475, %474 : vector<16x16xf32>
    %477 = arith.addf %472, %476 : vector<16x16xf32>
    %c39_67 = arith.constant 39 : index
    %478 = memref.load %arg5[%c39_67] : memref<72xf32, #tpu.memory_space<smem>>
    %479 = vector.extract_strided_slice %462 {offsets = [1, 0], sizes = [16, 16], strides = [1, 1]} : vector<18x18xf32> to vector<16x16xf32>
    %480 = vector.broadcast %478 : f32 to vector<16x16xf32>
    %481 = arith.mulf %480, %479 : vector<16x16xf32>
    %482 = arith.addf %477, %481 : vector<16x16xf32>
    %c40_68 = arith.constant 40 : index
    %483 = memref.load %arg5[%c40_68] : memref<72xf32, #tpu.memory_space<smem>>
    %484 = vector.extract_strided_slice %462 {offsets = [1, 1], sizes = [16, 16], strides = [1, 1]} : vector<18x18xf32> to vector<16x16xf32>
    %485 = vector.broadcast %483 : f32 to vector<16x16xf32>
    %486 = arith.mulf %485, %484 : vector<16x16xf32>
    %487 = arith.addf %482, %486 : vector<16x16xf32>
    %c41_69 = arith.constant 41 : index
    %488 = memref.load %arg5[%c41_69] : memref<72xf32, #tpu.memory_space<smem>>
    %489 = vector.extract_strided_slice %462 {offsets = [1, 2], sizes = [16, 16], strides = [1, 1]} : vector<18x18xf32> to vector<16x16xf32>
    %490 = vector.broadcast %488 : f32 to vector<16x16xf32>
    %491 = arith.mulf %490, %489 : vector<16x16xf32>
    %492 = arith.addf %487, %491 : vector<16x16xf32>
    %c42_70 = arith.constant 42 : index
    %493 = memref.load %arg5[%c42_70] : memref<72xf32, #tpu.memory_space<smem>>
    %494 = vector.extract_strided_slice %462 {offsets = [2, 0], sizes = [16, 16], strides = [1, 1]} : vector<18x18xf32> to vector<16x16xf32>
    %495 = vector.broadcast %493 : f32 to vector<16x16xf32>
    %496 = arith.mulf %495, %494 : vector<16x16xf32>
    %497 = arith.addf %492, %496 : vector<16x16xf32>
    %c43_71 = arith.constant 43 : index
    %498 = memref.load %arg5[%c43_71] : memref<72xf32, #tpu.memory_space<smem>>
    %499 = vector.extract_strided_slice %462 {offsets = [2, 1], sizes = [16, 16], strides = [1, 1]} : vector<18x18xf32> to vector<16x16xf32>
    %500 = vector.broadcast %498 : f32 to vector<16x16xf32>
    %501 = arith.mulf %500, %499 : vector<16x16xf32>
    %502 = arith.addf %497, %501 : vector<16x16xf32>
    %c44_72 = arith.constant 44 : index
    %503 = memref.load %arg5[%c44_72] : memref<72xf32, #tpu.memory_space<smem>>
    %504 = vector.extract_strided_slice %462 {offsets = [2, 2], sizes = [16, 16], strides = [1, 1]} : vector<18x18xf32> to vector<16x16xf32>
    %505 = vector.broadcast %503 : f32 to vector<16x16xf32>
    %506 = arith.mulf %505, %504 : vector<16x16xf32>
    %507 = arith.addf %502, %506 : vector<16x16xf32>
    %cst_73 = arith.constant 0.000000e+00 : f32
    %508 = vector.broadcast %cst_73 : f32 to vector<18x18xf32>
    %c45 = arith.constant 45 : index
    %509 = memref.load %arg3[%c45] : memref<72xf32, #tpu.memory_space<smem>>
    %510 = vector.extract_strided_slice %1 {offsets = [0, 0], sizes = [18, 18], strides = [1, 1]} : vector<20x20xf32> to vector<18x18xf32>
    %511 = vector.broadcast %509 : f32 to vector<18x18xf32>
    %512 = arith.mulf %511, %510 : vector<18x18xf32>
    %513 = arith.addf %508, %512 : vector<18x18xf32>
    %c46 = arith.constant 46 : index
    %514 = memref.load %arg3[%c46] : memref<72xf32, #tpu.memory_space<smem>>
    %515 = vector.extract_strided_slice %1 {offsets = [0, 1], sizes = [18, 18], strides = [1, 1]} : vector<20x20xf32> to vector<18x18xf32>
    %516 = vector.broadcast %514 : f32 to vector<18x18xf32>
    %517 = arith.mulf %516, %515 : vector<18x18xf32>
    %518 = arith.addf %513, %517 : vector<18x18xf32>
    %c47 = arith.constant 47 : index
    %519 = memref.load %arg3[%c47] : memref<72xf32, #tpu.memory_space<smem>>
    %520 = vector.extract_strided_slice %1 {offsets = [0, 2], sizes = [18, 18], strides = [1, 1]} : vector<20x20xf32> to vector<18x18xf32>
    %521 = vector.broadcast %519 : f32 to vector<18x18xf32>
    %522 = arith.mulf %521, %520 : vector<18x18xf32>
    %523 = arith.addf %518, %522 : vector<18x18xf32>
    %c48 = arith.constant 48 : index
    %524 = memref.load %arg3[%c48] : memref<72xf32, #tpu.memory_space<smem>>
    %525 = vector.extract_strided_slice %1 {offsets = [1, 0], sizes = [18, 18], strides = [1, 1]} : vector<20x20xf32> to vector<18x18xf32>
    %526 = vector.broadcast %524 : f32 to vector<18x18xf32>
    %527 = arith.mulf %526, %525 : vector<18x18xf32>
    %528 = arith.addf %523, %527 : vector<18x18xf32>
    %c49 = arith.constant 49 : index
    %529 = memref.load %arg3[%c49] : memref<72xf32, #tpu.memory_space<smem>>
    %530 = vector.extract_strided_slice %1 {offsets = [1, 1], sizes = [18, 18], strides = [1, 1]} : vector<20x20xf32> to vector<18x18xf32>
    %531 = vector.broadcast %529 : f32 to vector<18x18xf32>
    %532 = arith.mulf %531, %530 : vector<18x18xf32>
    %533 = arith.addf %528, %532 : vector<18x18xf32>
    %c50 = arith.constant 50 : index
    %534 = memref.load %arg3[%c50] : memref<72xf32, #tpu.memory_space<smem>>
    %535 = vector.extract_strided_slice %1 {offsets = [1, 2], sizes = [18, 18], strides = [1, 1]} : vector<20x20xf32> to vector<18x18xf32>
    %536 = vector.broadcast %534 : f32 to vector<18x18xf32>
    %537 = arith.mulf %536, %535 : vector<18x18xf32>
    %538 = arith.addf %533, %537 : vector<18x18xf32>
    %c51 = arith.constant 51 : index
    %539 = memref.load %arg3[%c51] : memref<72xf32, #tpu.memory_space<smem>>
    %540 = vector.extract_strided_slice %1 {offsets = [2, 0], sizes = [18, 18], strides = [1, 1]} : vector<20x20xf32> to vector<18x18xf32>
    %541 = vector.broadcast %539 : f32 to vector<18x18xf32>
    %542 = arith.mulf %541, %540 : vector<18x18xf32>
    %543 = arith.addf %538, %542 : vector<18x18xf32>
    %c52 = arith.constant 52 : index
    %544 = memref.load %arg3[%c52] : memref<72xf32, #tpu.memory_space<smem>>
    %545 = vector.extract_strided_slice %1 {offsets = [2, 1], sizes = [18, 18], strides = [1, 1]} : vector<20x20xf32> to vector<18x18xf32>
    %546 = vector.broadcast %544 : f32 to vector<18x18xf32>
    %547 = arith.mulf %546, %545 : vector<18x18xf32>
    %548 = arith.addf %543, %547 : vector<18x18xf32>
    %c53 = arith.constant 53 : index
    %549 = memref.load %arg3[%c53] : memref<72xf32, #tpu.memory_space<smem>>
    %550 = vector.extract_strided_slice %1 {offsets = [2, 2], sizes = [18, 18], strides = [1, 1]} : vector<20x20xf32> to vector<18x18xf32>
    %551 = vector.broadcast %549 : f32 to vector<18x18xf32>
    %552 = arith.mulf %551, %550 : vector<18x18xf32>
    %553 = arith.addf %548, %552 : vector<18x18xf32>
    %c5_74 = arith.constant 5 : index
    %554 = memref.load %arg4[%c5_74] : memref<8xf32, #tpu.memory_space<smem>>
    %555 = vector.broadcast %554 : f32 to vector<18x18xf32>
    %556 = arith.addf %553, %555 : vector<18x18xf32>
    %cst_75 = arith.constant 0.000000e+00 : f32
    %557 = vector.broadcast %cst_75 : f32 to vector<18x18xf32>
    %558 = arith.maximumf %556, %557 : vector<18x18xf32>
    %cst_76 = arith.constant 0.000000e+00 : f32
    %559 = vector.broadcast %cst_76 : f32 to vector<18x18xf32>
    %560 = arith.select %16, %558, %559 : vector<18x18xi1>, vector<18x18xf32>
    %c45_77 = arith.constant 45 : index
    %561 = memref.load %arg5[%c45_77] : memref<72xf32, #tpu.memory_space<smem>>
    %562 = vector.extract_strided_slice %560 {offsets = [0, 0], sizes = [16, 16], strides = [1, 1]} : vector<18x18xf32> to vector<16x16xf32>
    %563 = vector.broadcast %561 : f32 to vector<16x16xf32>
    %564 = arith.mulf %563, %562 : vector<16x16xf32>
    %565 = arith.addf %507, %564 : vector<16x16xf32>
    %c46_78 = arith.constant 46 : index
    %566 = memref.load %arg5[%c46_78] : memref<72xf32, #tpu.memory_space<smem>>
    %567 = vector.extract_strided_slice %560 {offsets = [0, 1], sizes = [16, 16], strides = [1, 1]} : vector<18x18xf32> to vector<16x16xf32>
    %568 = vector.broadcast %566 : f32 to vector<16x16xf32>
    %569 = arith.mulf %568, %567 : vector<16x16xf32>
    %570 = arith.addf %565, %569 : vector<16x16xf32>
    %c47_79 = arith.constant 47 : index
    %571 = memref.load %arg5[%c47_79] : memref<72xf32, #tpu.memory_space<smem>>
    %572 = vector.extract_strided_slice %560 {offsets = [0, 2], sizes = [16, 16], strides = [1, 1]} : vector<18x18xf32> to vector<16x16xf32>
    %573 = vector.broadcast %571 : f32 to vector<16x16xf32>
    %574 = arith.mulf %573, %572 : vector<16x16xf32>
    %575 = arith.addf %570, %574 : vector<16x16xf32>
    %c48_80 = arith.constant 48 : index
    %576 = memref.load %arg5[%c48_80] : memref<72xf32, #tpu.memory_space<smem>>
    %577 = vector.extract_strided_slice %560 {offsets = [1, 0], sizes = [16, 16], strides = [1, 1]} : vector<18x18xf32> to vector<16x16xf32>
    %578 = vector.broadcast %576 : f32 to vector<16x16xf32>
    %579 = arith.mulf %578, %577 : vector<16x16xf32>
    %580 = arith.addf %575, %579 : vector<16x16xf32>
    %c49_81 = arith.constant 49 : index
    %581 = memref.load %arg5[%c49_81] : memref<72xf32, #tpu.memory_space<smem>>
    %582 = vector.extract_strided_slice %560 {offsets = [1, 1], sizes = [16, 16], strides = [1, 1]} : vector<18x18xf32> to vector<16x16xf32>
    %583 = vector.broadcast %581 : f32 to vector<16x16xf32>
    %584 = arith.mulf %583, %582 : vector<16x16xf32>
    %585 = arith.addf %580, %584 : vector<16x16xf32>
    %c50_82 = arith.constant 50 : index
    %586 = memref.load %arg5[%c50_82] : memref<72xf32, #tpu.memory_space<smem>>
    %587 = vector.extract_strided_slice %560 {offsets = [1, 2], sizes = [16, 16], strides = [1, 1]} : vector<18x18xf32> to vector<16x16xf32>
    %588 = vector.broadcast %586 : f32 to vector<16x16xf32>
    %589 = arith.mulf %588, %587 : vector<16x16xf32>
    %590 = arith.addf %585, %589 : vector<16x16xf32>
    %c51_83 = arith.constant 51 : index
    %591 = memref.load %arg5[%c51_83] : memref<72xf32, #tpu.memory_space<smem>>
    %592 = vector.extract_strided_slice %560 {offsets = [2, 0], sizes = [16, 16], strides = [1, 1]} : vector<18x18xf32> to vector<16x16xf32>
    %593 = vector.broadcast %591 : f32 to vector<16x16xf32>
    %594 = arith.mulf %593, %592 : vector<16x16xf32>
    %595 = arith.addf %590, %594 : vector<16x16xf32>
    %c52_84 = arith.constant 52 : index
    %596 = memref.load %arg5[%c52_84] : memref<72xf32, #tpu.memory_space<smem>>
    %597 = vector.extract_strided_slice %560 {offsets = [2, 1], sizes = [16, 16], strides = [1, 1]} : vector<18x18xf32> to vector<16x16xf32>
    %598 = vector.broadcast %596 : f32 to vector<16x16xf32>
    %599 = arith.mulf %598, %597 : vector<16x16xf32>
    %600 = arith.addf %595, %599 : vector<16x16xf32>
    %c53_85 = arith.constant 53 : index
    %601 = memref.load %arg5[%c53_85] : memref<72xf32, #tpu.memory_space<smem>>
    %602 = vector.extract_strided_slice %560 {offsets = [2, 2], sizes = [16, 16], strides = [1, 1]} : vector<18x18xf32> to vector<16x16xf32>
    %603 = vector.broadcast %601 : f32 to vector<16x16xf32>
    %604 = arith.mulf %603, %602 : vector<16x16xf32>
    %605 = arith.addf %600, %604 : vector<16x16xf32>
    %cst_86 = arith.constant 0.000000e+00 : f32
    %606 = vector.broadcast %cst_86 : f32 to vector<18x18xf32>
    %c54 = arith.constant 54 : index
    %607 = memref.load %arg3[%c54] : memref<72xf32, #tpu.memory_space<smem>>
    %608 = vector.extract_strided_slice %1 {offsets = [0, 0], sizes = [18, 18], strides = [1, 1]} : vector<20x20xf32> to vector<18x18xf32>
    %609 = vector.broadcast %607 : f32 to vector<18x18xf32>
    %610 = arith.mulf %609, %608 : vector<18x18xf32>
    %611 = arith.addf %606, %610 : vector<18x18xf32>
    %c55 = arith.constant 55 : index
    %612 = memref.load %arg3[%c55] : memref<72xf32, #tpu.memory_space<smem>>
    %613 = vector.extract_strided_slice %1 {offsets = [0, 1], sizes = [18, 18], strides = [1, 1]} : vector<20x20xf32> to vector<18x18xf32>
    %614 = vector.broadcast %612 : f32 to vector<18x18xf32>
    %615 = arith.mulf %614, %613 : vector<18x18xf32>
    %616 = arith.addf %611, %615 : vector<18x18xf32>
    %c56 = arith.constant 56 : index
    %617 = memref.load %arg3[%c56] : memref<72xf32, #tpu.memory_space<smem>>
    %618 = vector.extract_strided_slice %1 {offsets = [0, 2], sizes = [18, 18], strides = [1, 1]} : vector<20x20xf32> to vector<18x18xf32>
    %619 = vector.broadcast %617 : f32 to vector<18x18xf32>
    %620 = arith.mulf %619, %618 : vector<18x18xf32>
    %621 = arith.addf %616, %620 : vector<18x18xf32>
    %c57 = arith.constant 57 : index
    %622 = memref.load %arg3[%c57] : memref<72xf32, #tpu.memory_space<smem>>
    %623 = vector.extract_strided_slice %1 {offsets = [1, 0], sizes = [18, 18], strides = [1, 1]} : vector<20x20xf32> to vector<18x18xf32>
    %624 = vector.broadcast %622 : f32 to vector<18x18xf32>
    %625 = arith.mulf %624, %623 : vector<18x18xf32>
    %626 = arith.addf %621, %625 : vector<18x18xf32>
    %c58 = arith.constant 58 : index
    %627 = memref.load %arg3[%c58] : memref<72xf32, #tpu.memory_space<smem>>
    %628 = vector.extract_strided_slice %1 {offsets = [1, 1], sizes = [18, 18], strides = [1, 1]} : vector<20x20xf32> to vector<18x18xf32>
    %629 = vector.broadcast %627 : f32 to vector<18x18xf32>
    %630 = arith.mulf %629, %628 : vector<18x18xf32>
    %631 = arith.addf %626, %630 : vector<18x18xf32>
    %c59 = arith.constant 59 : index
    %632 = memref.load %arg3[%c59] : memref<72xf32, #tpu.memory_space<smem>>
    %633 = vector.extract_strided_slice %1 {offsets = [1, 2], sizes = [18, 18], strides = [1, 1]} : vector<20x20xf32> to vector<18x18xf32>
    %634 = vector.broadcast %632 : f32 to vector<18x18xf32>
    %635 = arith.mulf %634, %633 : vector<18x18xf32>
    %636 = arith.addf %631, %635 : vector<18x18xf32>
    %c60 = arith.constant 60 : index
    %637 = memref.load %arg3[%c60] : memref<72xf32, #tpu.memory_space<smem>>
    %638 = vector.extract_strided_slice %1 {offsets = [2, 0], sizes = [18, 18], strides = [1, 1]} : vector<20x20xf32> to vector<18x18xf32>
    %639 = vector.broadcast %637 : f32 to vector<18x18xf32>
    %640 = arith.mulf %639, %638 : vector<18x18xf32>
    %641 = arith.addf %636, %640 : vector<18x18xf32>
    %c61 = arith.constant 61 : index
    %642 = memref.load %arg3[%c61] : memref<72xf32, #tpu.memory_space<smem>>
    %643 = vector.extract_strided_slice %1 {offsets = [2, 1], sizes = [18, 18], strides = [1, 1]} : vector<20x20xf32> to vector<18x18xf32>
    %644 = vector.broadcast %642 : f32 to vector<18x18xf32>
    %645 = arith.mulf %644, %643 : vector<18x18xf32>
    %646 = arith.addf %641, %645 : vector<18x18xf32>
    %c62 = arith.constant 62 : index
    %647 = memref.load %arg3[%c62] : memref<72xf32, #tpu.memory_space<smem>>
    %648 = vector.extract_strided_slice %1 {offsets = [2, 2], sizes = [18, 18], strides = [1, 1]} : vector<20x20xf32> to vector<18x18xf32>
    %649 = vector.broadcast %647 : f32 to vector<18x18xf32>
    %650 = arith.mulf %649, %648 : vector<18x18xf32>
    %651 = arith.addf %646, %650 : vector<18x18xf32>
    %c6_87 = arith.constant 6 : index
    %652 = memref.load %arg4[%c6_87] : memref<8xf32, #tpu.memory_space<smem>>
    %653 = vector.broadcast %652 : f32 to vector<18x18xf32>
    %654 = arith.addf %651, %653 : vector<18x18xf32>
    %cst_88 = arith.constant 0.000000e+00 : f32
    %655 = vector.broadcast %cst_88 : f32 to vector<18x18xf32>
    %656 = arith.maximumf %654, %655 : vector<18x18xf32>
    %cst_89 = arith.constant 0.000000e+00 : f32
    %657 = vector.broadcast %cst_89 : f32 to vector<18x18xf32>
    %658 = arith.select %16, %656, %657 : vector<18x18xi1>, vector<18x18xf32>
    %c54_90 = arith.constant 54 : index
    %659 = memref.load %arg5[%c54_90] : memref<72xf32, #tpu.memory_space<smem>>
    %660 = vector.extract_strided_slice %658 {offsets = [0, 0], sizes = [16, 16], strides = [1, 1]} : vector<18x18xf32> to vector<16x16xf32>
    %661 = vector.broadcast %659 : f32 to vector<16x16xf32>
    %662 = arith.mulf %661, %660 : vector<16x16xf32>
    %663 = arith.addf %605, %662 : vector<16x16xf32>
    %c55_91 = arith.constant 55 : index
    %664 = memref.load %arg5[%c55_91] : memref<72xf32, #tpu.memory_space<smem>>
    %665 = vector.extract_strided_slice %658 {offsets = [0, 1], sizes = [16, 16], strides = [1, 1]} : vector<18x18xf32> to vector<16x16xf32>
    %666 = vector.broadcast %664 : f32 to vector<16x16xf32>
    %667 = arith.mulf %666, %665 : vector<16x16xf32>
    %668 = arith.addf %663, %667 : vector<16x16xf32>
    %c56_92 = arith.constant 56 : index
    %669 = memref.load %arg5[%c56_92] : memref<72xf32, #tpu.memory_space<smem>>
    %670 = vector.extract_strided_slice %658 {offsets = [0, 2], sizes = [16, 16], strides = [1, 1]} : vector<18x18xf32> to vector<16x16xf32>
    %671 = vector.broadcast %669 : f32 to vector<16x16xf32>
    %672 = arith.mulf %671, %670 : vector<16x16xf32>
    %673 = arith.addf %668, %672 : vector<16x16xf32>
    %c57_93 = arith.constant 57 : index
    %674 = memref.load %arg5[%c57_93] : memref<72xf32, #tpu.memory_space<smem>>
    %675 = vector.extract_strided_slice %658 {offsets = [1, 0], sizes = [16, 16], strides = [1, 1]} : vector<18x18xf32> to vector<16x16xf32>
    %676 = vector.broadcast %674 : f32 to vector<16x16xf32>
    %677 = arith.mulf %676, %675 : vector<16x16xf32>
    %678 = arith.addf %673, %677 : vector<16x16xf32>
    %c58_94 = arith.constant 58 : index
    %679 = memref.load %arg5[%c58_94] : memref<72xf32, #tpu.memory_space<smem>>
    %680 = vector.extract_strided_slice %658 {offsets = [1, 1], sizes = [16, 16], strides = [1, 1]} : vector<18x18xf32> to vector<16x16xf32>
    %681 = vector.broadcast %679 : f32 to vector<16x16xf32>
    %682 = arith.mulf %681, %680 : vector<16x16xf32>
    %683 = arith.addf %678, %682 : vector<16x16xf32>
    %c59_95 = arith.constant 59 : index
    %684 = memref.load %arg5[%c59_95] : memref<72xf32, #tpu.memory_space<smem>>
    %685 = vector.extract_strided_slice %658 {offsets = [1, 2], sizes = [16, 16], strides = [1, 1]} : vector<18x18xf32> to vector<16x16xf32>
    %686 = vector.broadcast %684 : f32 to vector<16x16xf32>
    %687 = arith.mulf %686, %685 : vector<16x16xf32>
    %688 = arith.addf %683, %687 : vector<16x16xf32>
    %c60_96 = arith.constant 60 : index
    %689 = memref.load %arg5[%c60_96] : memref<72xf32, #tpu.memory_space<smem>>
    %690 = vector.extract_strided_slice %658 {offsets = [2, 0], sizes = [16, 16], strides = [1, 1]} : vector<18x18xf32> to vector<16x16xf32>
    %691 = vector.broadcast %689 : f32 to vector<16x16xf32>
    %692 = arith.mulf %691, %690 : vector<16x16xf32>
    %693 = arith.addf %688, %692 : vector<16x16xf32>
    %c61_97 = arith.constant 61 : index
    %694 = memref.load %arg5[%c61_97] : memref<72xf32, #tpu.memory_space<smem>>
    %695 = vector.extract_strided_slice %658 {offsets = [2, 1], sizes = [16, 16], strides = [1, 1]} : vector<18x18xf32> to vector<16x16xf32>
    %696 = vector.broadcast %694 : f32 to vector<16x16xf32>
    %697 = arith.mulf %696, %695 : vector<16x16xf32>
    %698 = arith.addf %693, %697 : vector<16x16xf32>
    %c62_98 = arith.constant 62 : index
    %699 = memref.load %arg5[%c62_98] : memref<72xf32, #tpu.memory_space<smem>>
    %700 = vector.extract_strided_slice %658 {offsets = [2, 2], sizes = [16, 16], strides = [1, 1]} : vector<18x18xf32> to vector<16x16xf32>
    %701 = vector.broadcast %699 : f32 to vector<16x16xf32>
    %702 = arith.mulf %701, %700 : vector<16x16xf32>
    %703 = arith.addf %698, %702 : vector<16x16xf32>
    %cst_99 = arith.constant 0.000000e+00 : f32
    %704 = vector.broadcast %cst_99 : f32 to vector<18x18xf32>
    %c63 = arith.constant 63 : index
    %705 = memref.load %arg3[%c63] : memref<72xf32, #tpu.memory_space<smem>>
    %706 = vector.extract_strided_slice %1 {offsets = [0, 0], sizes = [18, 18], strides = [1, 1]} : vector<20x20xf32> to vector<18x18xf32>
    %707 = vector.broadcast %705 : f32 to vector<18x18xf32>
    %708 = arith.mulf %707, %706 : vector<18x18xf32>
    %709 = arith.addf %704, %708 : vector<18x18xf32>
    %c64 = arith.constant 64 : index
    %710 = memref.load %arg3[%c64] : memref<72xf32, #tpu.memory_space<smem>>
    %711 = vector.extract_strided_slice %1 {offsets = [0, 1], sizes = [18, 18], strides = [1, 1]} : vector<20x20xf32> to vector<18x18xf32>
    %712 = vector.broadcast %710 : f32 to vector<18x18xf32>
    %713 = arith.mulf %712, %711 : vector<18x18xf32>
    %714 = arith.addf %709, %713 : vector<18x18xf32>
    %c65 = arith.constant 65 : index
    %715 = memref.load %arg3[%c65] : memref<72xf32, #tpu.memory_space<smem>>
    %716 = vector.extract_strided_slice %1 {offsets = [0, 2], sizes = [18, 18], strides = [1, 1]} : vector<20x20xf32> to vector<18x18xf32>
    %717 = vector.broadcast %715 : f32 to vector<18x18xf32>
    %718 = arith.mulf %717, %716 : vector<18x18xf32>
    %719 = arith.addf %714, %718 : vector<18x18xf32>
    %c66 = arith.constant 66 : index
    %720 = memref.load %arg3[%c66] : memref<72xf32, #tpu.memory_space<smem>>
    %721 = vector.extract_strided_slice %1 {offsets = [1, 0], sizes = [18, 18], strides = [1, 1]} : vector<20x20xf32> to vector<18x18xf32>
    %722 = vector.broadcast %720 : f32 to vector<18x18xf32>
    %723 = arith.mulf %722, %721 : vector<18x18xf32>
    %724 = arith.addf %719, %723 : vector<18x18xf32>
    %c67 = arith.constant 67 : index
    %725 = memref.load %arg3[%c67] : memref<72xf32, #tpu.memory_space<smem>>
    %726 = vector.extract_strided_slice %1 {offsets = [1, 1], sizes = [18, 18], strides = [1, 1]} : vector<20x20xf32> to vector<18x18xf32>
    %727 = vector.broadcast %725 : f32 to vector<18x18xf32>
    %728 = arith.mulf %727, %726 : vector<18x18xf32>
    %729 = arith.addf %724, %728 : vector<18x18xf32>
    %c68 = arith.constant 68 : index
    %730 = memref.load %arg3[%c68] : memref<72xf32, #tpu.memory_space<smem>>
    %731 = vector.extract_strided_slice %1 {offsets = [1, 2], sizes = [18, 18], strides = [1, 1]} : vector<20x20xf32> to vector<18x18xf32>
    %732 = vector.broadcast %730 : f32 to vector<18x18xf32>
    %733 = arith.mulf %732, %731 : vector<18x18xf32>
    %734 = arith.addf %729, %733 : vector<18x18xf32>
    %c69 = arith.constant 69 : index
    %735 = memref.load %arg3[%c69] : memref<72xf32, #tpu.memory_space<smem>>
    %736 = vector.extract_strided_slice %1 {offsets = [2, 0], sizes = [18, 18], strides = [1, 1]} : vector<20x20xf32> to vector<18x18xf32>
    %737 = vector.broadcast %735 : f32 to vector<18x18xf32>
    %738 = arith.mulf %737, %736 : vector<18x18xf32>
    %739 = arith.addf %734, %738 : vector<18x18xf32>
    %c70 = arith.constant 70 : index
    %740 = memref.load %arg3[%c70] : memref<72xf32, #tpu.memory_space<smem>>
    %741 = vector.extract_strided_slice %1 {offsets = [2, 1], sizes = [18, 18], strides = [1, 1]} : vector<20x20xf32> to vector<18x18xf32>
    %742 = vector.broadcast %740 : f32 to vector<18x18xf32>
    %743 = arith.mulf %742, %741 : vector<18x18xf32>
    %744 = arith.addf %739, %743 : vector<18x18xf32>
    %c71 = arith.constant 71 : index
    %745 = memref.load %arg3[%c71] : memref<72xf32, #tpu.memory_space<smem>>
    %746 = vector.extract_strided_slice %1 {offsets = [2, 2], sizes = [18, 18], strides = [1, 1]} : vector<20x20xf32> to vector<18x18xf32>
    %747 = vector.broadcast %745 : f32 to vector<18x18xf32>
    %748 = arith.mulf %747, %746 : vector<18x18xf32>
    %749 = arith.addf %744, %748 : vector<18x18xf32>
    %c7_100 = arith.constant 7 : index
    %750 = memref.load %arg4[%c7_100] : memref<8xf32, #tpu.memory_space<smem>>
    %751 = vector.broadcast %750 : f32 to vector<18x18xf32>
    %752 = arith.addf %749, %751 : vector<18x18xf32>
    %cst_101 = arith.constant 0.000000e+00 : f32
    %753 = vector.broadcast %cst_101 : f32 to vector<18x18xf32>
    %754 = arith.maximumf %752, %753 : vector<18x18xf32>
    %cst_102 = arith.constant 0.000000e+00 : f32
    %755 = vector.broadcast %cst_102 : f32 to vector<18x18xf32>
    %756 = arith.select %16, %754, %755 : vector<18x18xi1>, vector<18x18xf32>
    %c63_103 = arith.constant 63 : index
    %757 = memref.load %arg5[%c63_103] : memref<72xf32, #tpu.memory_space<smem>>
    %758 = vector.extract_strided_slice %756 {offsets = [0, 0], sizes = [16, 16], strides = [1, 1]} : vector<18x18xf32> to vector<16x16xf32>
    %759 = vector.broadcast %757 : f32 to vector<16x16xf32>
    %760 = arith.mulf %759, %758 : vector<16x16xf32>
    %761 = arith.addf %703, %760 : vector<16x16xf32>
    %c64_104 = arith.constant 64 : index
    %762 = memref.load %arg5[%c64_104] : memref<72xf32, #tpu.memory_space<smem>>
    %763 = vector.extract_strided_slice %756 {offsets = [0, 1], sizes = [16, 16], strides = [1, 1]} : vector<18x18xf32> to vector<16x16xf32>
    %764 = vector.broadcast %762 : f32 to vector<16x16xf32>
    %765 = arith.mulf %764, %763 : vector<16x16xf32>
    %766 = arith.addf %761, %765 : vector<16x16xf32>
    %c65_105 = arith.constant 65 : index
    %767 = memref.load %arg5[%c65_105] : memref<72xf32, #tpu.memory_space<smem>>
    %768 = vector.extract_strided_slice %756 {offsets = [0, 2], sizes = [16, 16], strides = [1, 1]} : vector<18x18xf32> to vector<16x16xf32>
    %769 = vector.broadcast %767 : f32 to vector<16x16xf32>
    %770 = arith.mulf %769, %768 : vector<16x16xf32>
    %771 = arith.addf %766, %770 : vector<16x16xf32>
    %c66_106 = arith.constant 66 : index
    %772 = memref.load %arg5[%c66_106] : memref<72xf32, #tpu.memory_space<smem>>
    %773 = vector.extract_strided_slice %756 {offsets = [1, 0], sizes = [16, 16], strides = [1, 1]} : vector<18x18xf32> to vector<16x16xf32>
    %774 = vector.broadcast %772 : f32 to vector<16x16xf32>
    %775 = arith.mulf %774, %773 : vector<16x16xf32>
    %776 = arith.addf %771, %775 : vector<16x16xf32>
    %c67_107 = arith.constant 67 : index
    %777 = memref.load %arg5[%c67_107] : memref<72xf32, #tpu.memory_space<smem>>
    %778 = vector.extract_strided_slice %756 {offsets = [1, 1], sizes = [16, 16], strides = [1, 1]} : vector<18x18xf32> to vector<16x16xf32>
    %779 = vector.broadcast %777 : f32 to vector<16x16xf32>
    %780 = arith.mulf %779, %778 : vector<16x16xf32>
    %781 = arith.addf %776, %780 : vector<16x16xf32>
    %c68_108 = arith.constant 68 : index
    %782 = memref.load %arg5[%c68_108] : memref<72xf32, #tpu.memory_space<smem>>
    %783 = vector.extract_strided_slice %756 {offsets = [1, 2], sizes = [16, 16], strides = [1, 1]} : vector<18x18xf32> to vector<16x16xf32>
    %784 = vector.broadcast %782 : f32 to vector<16x16xf32>
    %785 = arith.mulf %784, %783 : vector<16x16xf32>
    %786 = arith.addf %781, %785 : vector<16x16xf32>
    %c69_109 = arith.constant 69 : index
    %787 = memref.load %arg5[%c69_109] : memref<72xf32, #tpu.memory_space<smem>>
    %788 = vector.extract_strided_slice %756 {offsets = [2, 0], sizes = [16, 16], strides = [1, 1]} : vector<18x18xf32> to vector<16x16xf32>
    %789 = vector.broadcast %787 : f32 to vector<16x16xf32>
    %790 = arith.mulf %789, %788 : vector<16x16xf32>
    %791 = arith.addf %786, %790 : vector<16x16xf32>
    %c70_110 = arith.constant 70 : index
    %792 = memref.load %arg5[%c70_110] : memref<72xf32, #tpu.memory_space<smem>>
    %793 = vector.extract_strided_slice %756 {offsets = [2, 1], sizes = [16, 16], strides = [1, 1]} : vector<18x18xf32> to vector<16x16xf32>
    %794 = vector.broadcast %792 : f32 to vector<16x16xf32>
    %795 = arith.mulf %794, %793 : vector<16x16xf32>
    %796 = arith.addf %791, %795 : vector<16x16xf32>
    %c71_111 = arith.constant 71 : index
    %797 = memref.load %arg5[%c71_111] : memref<72xf32, #tpu.memory_space<smem>>
    %798 = vector.extract_strided_slice %756 {offsets = [2, 2], sizes = [16, 16], strides = [1, 1]} : vector<18x18xf32> to vector<16x16xf32>
    %799 = vector.broadcast %797 : f32 to vector<16x16xf32>
    %800 = arith.mulf %799, %798 : vector<16x16xf32>
    %801 = arith.addf %796, %800 : vector<16x16xf32>
    %c0_112 = arith.constant 0 : index
    %802 = memref.load %arg6[%c0_112] : memref<1xf32, #tpu.memory_space<smem>>
    %803 = vector.broadcast %802 : f32 to vector<16x16xf32>
    %804 = arith.addf %801, %803 : vector<16x16xf32>
    %805 = vector.extract_strided_slice %1 {offsets = [2, 2], sizes = [16, 16], strides = [1, 1]} : vector<20x20xf32> to vector<16x16xf32>
    %806 = arith.addf %804, %805 : vector<16x16xf32>
    %cst_113 = arith.constant 0.000000e+00 : f32
    %807 = vector.broadcast %cst_113 : f32 to vector<16x16xf32>
    %cst_114 = arith.constant 0.000000e+00 : f32
    %808 = vector.broadcast %cst_114 : f32 to vector<18x18xf32>
    %c0_115 = arith.constant 0 : index
    %809 = memref.load %arg3[%c0_115] : memref<72xf32, #tpu.memory_space<smem>>
    %810 = vector.extract_strided_slice %3 {offsets = [0, 0], sizes = [18, 18], strides = [1, 1]} : vector<20x20xf32> to vector<18x18xf32>
    %811 = vector.broadcast %809 : f32 to vector<18x18xf32>
    %812 = arith.mulf %811, %810 : vector<18x18xf32>
    %813 = arith.addf %808, %812 : vector<18x18xf32>
    %c1_116 = arith.constant 1 : index
    %814 = memref.load %arg3[%c1_116] : memref<72xf32, #tpu.memory_space<smem>>
    %815 = vector.extract_strided_slice %3 {offsets = [0, 1], sizes = [18, 18], strides = [1, 1]} : vector<20x20xf32> to vector<18x18xf32>
    %816 = vector.broadcast %814 : f32 to vector<18x18xf32>
    %817 = arith.mulf %816, %815 : vector<18x18xf32>
    %818 = arith.addf %813, %817 : vector<18x18xf32>
    %c2_117 = arith.constant 2 : index
    %819 = memref.load %arg3[%c2_117] : memref<72xf32, #tpu.memory_space<smem>>
    %820 = vector.extract_strided_slice %3 {offsets = [0, 2], sizes = [18, 18], strides = [1, 1]} : vector<20x20xf32> to vector<18x18xf32>
    %821 = vector.broadcast %819 : f32 to vector<18x18xf32>
    %822 = arith.mulf %821, %820 : vector<18x18xf32>
    %823 = arith.addf %818, %822 : vector<18x18xf32>
    %c3_118 = arith.constant 3 : index
    %824 = memref.load %arg3[%c3_118] : memref<72xf32, #tpu.memory_space<smem>>
    %825 = vector.extract_strided_slice %3 {offsets = [1, 0], sizes = [18, 18], strides = [1, 1]} : vector<20x20xf32> to vector<18x18xf32>
    %826 = vector.broadcast %824 : f32 to vector<18x18xf32>
    %827 = arith.mulf %826, %825 : vector<18x18xf32>
    %828 = arith.addf %823, %827 : vector<18x18xf32>
    %c4_119 = arith.constant 4 : index
    %829 = memref.load %arg3[%c4_119] : memref<72xf32, #tpu.memory_space<smem>>
    %830 = vector.extract_strided_slice %3 {offsets = [1, 1], sizes = [18, 18], strides = [1, 1]} : vector<20x20xf32> to vector<18x18xf32>
    %831 = vector.broadcast %829 : f32 to vector<18x18xf32>
    %832 = arith.mulf %831, %830 : vector<18x18xf32>
    %833 = arith.addf %828, %832 : vector<18x18xf32>
    %c5_120 = arith.constant 5 : index
    %834 = memref.load %arg3[%c5_120] : memref<72xf32, #tpu.memory_space<smem>>
    %835 = vector.extract_strided_slice %3 {offsets = [1, 2], sizes = [18, 18], strides = [1, 1]} : vector<20x20xf32> to vector<18x18xf32>
    %836 = vector.broadcast %834 : f32 to vector<18x18xf32>
    %837 = arith.mulf %836, %835 : vector<18x18xf32>
    %838 = arith.addf %833, %837 : vector<18x18xf32>
    %c6_121 = arith.constant 6 : index
    %839 = memref.load %arg3[%c6_121] : memref<72xf32, #tpu.memory_space<smem>>
    %840 = vector.extract_strided_slice %3 {offsets = [2, 0], sizes = [18, 18], strides = [1, 1]} : vector<20x20xf32> to vector<18x18xf32>
    %841 = vector.broadcast %839 : f32 to vector<18x18xf32>
    %842 = arith.mulf %841, %840 : vector<18x18xf32>
    %843 = arith.addf %838, %842 : vector<18x18xf32>
    %c7_122 = arith.constant 7 : index
    %844 = memref.load %arg3[%c7_122] : memref<72xf32, #tpu.memory_space<smem>>
    %845 = vector.extract_strided_slice %3 {offsets = [2, 1], sizes = [18, 18], strides = [1, 1]} : vector<20x20xf32> to vector<18x18xf32>
    %846 = vector.broadcast %844 : f32 to vector<18x18xf32>
    %847 = arith.mulf %846, %845 : vector<18x18xf32>
    %848 = arith.addf %843, %847 : vector<18x18xf32>
    %c8_123 = arith.constant 8 : index
    %849 = memref.load %arg3[%c8_123] : memref<72xf32, #tpu.memory_space<smem>>
    %850 = vector.extract_strided_slice %3 {offsets = [2, 2], sizes = [18, 18], strides = [1, 1]} : vector<20x20xf32> to vector<18x18xf32>
    %851 = vector.broadcast %849 : f32 to vector<18x18xf32>
    %852 = arith.mulf %851, %850 : vector<18x18xf32>
    %853 = arith.addf %848, %852 : vector<18x18xf32>
    %c0_124 = arith.constant 0 : index
    %854 = memref.load %arg4[%c0_124] : memref<8xf32, #tpu.memory_space<smem>>
    %855 = vector.broadcast %854 : f32 to vector<18x18xf32>
    %856 = arith.addf %853, %855 : vector<18x18xf32>
    %cst_125 = arith.constant 0.000000e+00 : f32
    %857 = vector.broadcast %cst_125 : f32 to vector<18x18xf32>
    %858 = arith.maximumf %856, %857 : vector<18x18xf32>
    %cst_126 = arith.constant 0.000000e+00 : f32
    %859 = vector.broadcast %cst_126 : f32 to vector<18x18xf32>
    %860 = arith.select %16, %858, %859 : vector<18x18xi1>, vector<18x18xf32>
    %c0_127 = arith.constant 0 : index
    %861 = memref.load %arg5[%c0_127] : memref<72xf32, #tpu.memory_space<smem>>
    %862 = vector.extract_strided_slice %860 {offsets = [0, 0], sizes = [16, 16], strides = [1, 1]} : vector<18x18xf32> to vector<16x16xf32>
    %863 = vector.broadcast %861 : f32 to vector<16x16xf32>
    %864 = arith.mulf %863, %862 : vector<16x16xf32>
    %865 = arith.addf %807, %864 : vector<16x16xf32>
    %c1_128 = arith.constant 1 : index
    %866 = memref.load %arg5[%c1_128] : memref<72xf32, #tpu.memory_space<smem>>
    %867 = vector.extract_strided_slice %860 {offsets = [0, 1], sizes = [16, 16], strides = [1, 1]} : vector<18x18xf32> to vector<16x16xf32>
    %868 = vector.broadcast %866 : f32 to vector<16x16xf32>
    %869 = arith.mulf %868, %867 : vector<16x16xf32>
    %870 = arith.addf %865, %869 : vector<16x16xf32>
    %c2_129 = arith.constant 2 : index
    %871 = memref.load %arg5[%c2_129] : memref<72xf32, #tpu.memory_space<smem>>
    %872 = vector.extract_strided_slice %860 {offsets = [0, 2], sizes = [16, 16], strides = [1, 1]} : vector<18x18xf32> to vector<16x16xf32>
    %873 = vector.broadcast %871 : f32 to vector<16x16xf32>
    %874 = arith.mulf %873, %872 : vector<16x16xf32>
    %875 = arith.addf %870, %874 : vector<16x16xf32>
    %c3_130 = arith.constant 3 : index
    %876 = memref.load %arg5[%c3_130] : memref<72xf32, #tpu.memory_space<smem>>
    %877 = vector.extract_strided_slice %860 {offsets = [1, 0], sizes = [16, 16], strides = [1, 1]} : vector<18x18xf32> to vector<16x16xf32>
    %878 = vector.broadcast %876 : f32 to vector<16x16xf32>
    %879 = arith.mulf %878, %877 : vector<16x16xf32>
    %880 = arith.addf %875, %879 : vector<16x16xf32>
    %c4_131 = arith.constant 4 : index
    %881 = memref.load %arg5[%c4_131] : memref<72xf32, #tpu.memory_space<smem>>
    %882 = vector.extract_strided_slice %860 {offsets = [1, 1], sizes = [16, 16], strides = [1, 1]} : vector<18x18xf32> to vector<16x16xf32>
    %883 = vector.broadcast %881 : f32 to vector<16x16xf32>
    %884 = arith.mulf %883, %882 : vector<16x16xf32>
    %885 = arith.addf %880, %884 : vector<16x16xf32>
    %c5_132 = arith.constant 5 : index
    %886 = memref.load %arg5[%c5_132] : memref<72xf32, #tpu.memory_space<smem>>
    %887 = vector.extract_strided_slice %860 {offsets = [1, 2], sizes = [16, 16], strides = [1, 1]} : vector<18x18xf32> to vector<16x16xf32>
    %888 = vector.broadcast %886 : f32 to vector<16x16xf32>
    %889 = arith.mulf %888, %887 : vector<16x16xf32>
    %890 = arith.addf %885, %889 : vector<16x16xf32>
    %c6_133 = arith.constant 6 : index
    %891 = memref.load %arg5[%c6_133] : memref<72xf32, #tpu.memory_space<smem>>
    %892 = vector.extract_strided_slice %860 {offsets = [2, 0], sizes = [16, 16], strides = [1, 1]} : vector<18x18xf32> to vector<16x16xf32>
    %893 = vector.broadcast %891 : f32 to vector<16x16xf32>
    %894 = arith.mulf %893, %892 : vector<16x16xf32>
    %895 = arith.addf %890, %894 : vector<16x16xf32>
    %c7_134 = arith.constant 7 : index
    %896 = memref.load %arg5[%c7_134] : memref<72xf32, #tpu.memory_space<smem>>
    %897 = vector.extract_strided_slice %860 {offsets = [2, 1], sizes = [16, 16], strides = [1, 1]} : vector<18x18xf32> to vector<16x16xf32>
    %898 = vector.broadcast %896 : f32 to vector<16x16xf32>
    %899 = arith.mulf %898, %897 : vector<16x16xf32>
    %900 = arith.addf %895, %899 : vector<16x16xf32>
    %c8_135 = arith.constant 8 : index
    %901 = memref.load %arg5[%c8_135] : memref<72xf32, #tpu.memory_space<smem>>
    %902 = vector.extract_strided_slice %860 {offsets = [2, 2], sizes = [16, 16], strides = [1, 1]} : vector<18x18xf32> to vector<16x16xf32>
    %903 = vector.broadcast %901 : f32 to vector<16x16xf32>
    %904 = arith.mulf %903, %902 : vector<16x16xf32>
    %905 = arith.addf %900, %904 : vector<16x16xf32>
    %cst_136 = arith.constant 0.000000e+00 : f32
    %906 = vector.broadcast %cst_136 : f32 to vector<18x18xf32>
    %c9_137 = arith.constant 9 : index
    %907 = memref.load %arg3[%c9_137] : memref<72xf32, #tpu.memory_space<smem>>
    %908 = vector.extract_strided_slice %3 {offsets = [0, 0], sizes = [18, 18], strides = [1, 1]} : vector<20x20xf32> to vector<18x18xf32>
    %909 = vector.broadcast %907 : f32 to vector<18x18xf32>
    %910 = arith.mulf %909, %908 : vector<18x18xf32>
    %911 = arith.addf %906, %910 : vector<18x18xf32>
    %c10_138 = arith.constant 10 : index
    %912 = memref.load %arg3[%c10_138] : memref<72xf32, #tpu.memory_space<smem>>
    %913 = vector.extract_strided_slice %3 {offsets = [0, 1], sizes = [18, 18], strides = [1, 1]} : vector<20x20xf32> to vector<18x18xf32>
    %914 = vector.broadcast %912 : f32 to vector<18x18xf32>
    %915 = arith.mulf %914, %913 : vector<18x18xf32>
    %916 = arith.addf %911, %915 : vector<18x18xf32>
    %c11_139 = arith.constant 11 : index
    %917 = memref.load %arg3[%c11_139] : memref<72xf32, #tpu.memory_space<smem>>
    %918 = vector.extract_strided_slice %3 {offsets = [0, 2], sizes = [18, 18], strides = [1, 1]} : vector<20x20xf32> to vector<18x18xf32>
    %919 = vector.broadcast %917 : f32 to vector<18x18xf32>
    %920 = arith.mulf %919, %918 : vector<18x18xf32>
    %921 = arith.addf %916, %920 : vector<18x18xf32>
    %c12_140 = arith.constant 12 : index
    %922 = memref.load %arg3[%c12_140] : memref<72xf32, #tpu.memory_space<smem>>
    %923 = vector.extract_strided_slice %3 {offsets = [1, 0], sizes = [18, 18], strides = [1, 1]} : vector<20x20xf32> to vector<18x18xf32>
    %924 = vector.broadcast %922 : f32 to vector<18x18xf32>
    %925 = arith.mulf %924, %923 : vector<18x18xf32>
    %926 = arith.addf %921, %925 : vector<18x18xf32>
    %c13_141 = arith.constant 13 : index
    %927 = memref.load %arg3[%c13_141] : memref<72xf32, #tpu.memory_space<smem>>
    %928 = vector.extract_strided_slice %3 {offsets = [1, 1], sizes = [18, 18], strides = [1, 1]} : vector<20x20xf32> to vector<18x18xf32>
    %929 = vector.broadcast %927 : f32 to vector<18x18xf32>
    %930 = arith.mulf %929, %928 : vector<18x18xf32>
    %931 = arith.addf %926, %930 : vector<18x18xf32>
    %c14_142 = arith.constant 14 : index
    %932 = memref.load %arg3[%c14_142] : memref<72xf32, #tpu.memory_space<smem>>
    %933 = vector.extract_strided_slice %3 {offsets = [1, 2], sizes = [18, 18], strides = [1, 1]} : vector<20x20xf32> to vector<18x18xf32>
    %934 = vector.broadcast %932 : f32 to vector<18x18xf32>
    %935 = arith.mulf %934, %933 : vector<18x18xf32>
    %936 = arith.addf %931, %935 : vector<18x18xf32>
    %c15_143 = arith.constant 15 : index
    %937 = memref.load %arg3[%c15_143] : memref<72xf32, #tpu.memory_space<smem>>
    %938 = vector.extract_strided_slice %3 {offsets = [2, 0], sizes = [18, 18], strides = [1, 1]} : vector<20x20xf32> to vector<18x18xf32>
    %939 = vector.broadcast %937 : f32 to vector<18x18xf32>
    %940 = arith.mulf %939, %938 : vector<18x18xf32>
    %941 = arith.addf %936, %940 : vector<18x18xf32>
    %c16_144 = arith.constant 16 : index
    %942 = memref.load %arg3[%c16_144] : memref<72xf32, #tpu.memory_space<smem>>
    %943 = vector.extract_strided_slice %3 {offsets = [2, 1], sizes = [18, 18], strides = [1, 1]} : vector<20x20xf32> to vector<18x18xf32>
    %944 = vector.broadcast %942 : f32 to vector<18x18xf32>
    %945 = arith.mulf %944, %943 : vector<18x18xf32>
    %946 = arith.addf %941, %945 : vector<18x18xf32>
    %c17_145 = arith.constant 17 : index
    %947 = memref.load %arg3[%c17_145] : memref<72xf32, #tpu.memory_space<smem>>
    %948 = vector.extract_strided_slice %3 {offsets = [2, 2], sizes = [18, 18], strides = [1, 1]} : vector<20x20xf32> to vector<18x18xf32>
    %949 = vector.broadcast %947 : f32 to vector<18x18xf32>
    %950 = arith.mulf %949, %948 : vector<18x18xf32>
    %951 = arith.addf %946, %950 : vector<18x18xf32>
    %c1_146 = arith.constant 1 : index
    %952 = memref.load %arg4[%c1_146] : memref<8xf32, #tpu.memory_space<smem>>
    %953 = vector.broadcast %952 : f32 to vector<18x18xf32>
    %954 = arith.addf %951, %953 : vector<18x18xf32>
    %cst_147 = arith.constant 0.000000e+00 : f32
    %955 = vector.broadcast %cst_147 : f32 to vector<18x18xf32>
    %956 = arith.maximumf %954, %955 : vector<18x18xf32>
    %cst_148 = arith.constant 0.000000e+00 : f32
    %957 = vector.broadcast %cst_148 : f32 to vector<18x18xf32>
    %958 = arith.select %16, %956, %957 : vector<18x18xi1>, vector<18x18xf32>
    %c9_149 = arith.constant 9 : index
    %959 = memref.load %arg5[%c9_149] : memref<72xf32, #tpu.memory_space<smem>>
    %960 = vector.extract_strided_slice %958 {offsets = [0, 0], sizes = [16, 16], strides = [1, 1]} : vector<18x18xf32> to vector<16x16xf32>
    %961 = vector.broadcast %959 : f32 to vector<16x16xf32>
    %962 = arith.mulf %961, %960 : vector<16x16xf32>
    %963 = arith.addf %905, %962 : vector<16x16xf32>
    %c10_150 = arith.constant 10 : index
    %964 = memref.load %arg5[%c10_150] : memref<72xf32, #tpu.memory_space<smem>>
    %965 = vector.extract_strided_slice %958 {offsets = [0, 1], sizes = [16, 16], strides = [1, 1]} : vector<18x18xf32> to vector<16x16xf32>
    %966 = vector.broadcast %964 : f32 to vector<16x16xf32>
    %967 = arith.mulf %966, %965 : vector<16x16xf32>
    %968 = arith.addf %963, %967 : vector<16x16xf32>
    %c11_151 = arith.constant 11 : index
    %969 = memref.load %arg5[%c11_151] : memref<72xf32, #tpu.memory_space<smem>>
    %970 = vector.extract_strided_slice %958 {offsets = [0, 2], sizes = [16, 16], strides = [1, 1]} : vector<18x18xf32> to vector<16x16xf32>
    %971 = vector.broadcast %969 : f32 to vector<16x16xf32>
    %972 = arith.mulf %971, %970 : vector<16x16xf32>
    %973 = arith.addf %968, %972 : vector<16x16xf32>
    %c12_152 = arith.constant 12 : index
    %974 = memref.load %arg5[%c12_152] : memref<72xf32, #tpu.memory_space<smem>>
    %975 = vector.extract_strided_slice %958 {offsets = [1, 0], sizes = [16, 16], strides = [1, 1]} : vector<18x18xf32> to vector<16x16xf32>
    %976 = vector.broadcast %974 : f32 to vector<16x16xf32>
    %977 = arith.mulf %976, %975 : vector<16x16xf32>
    %978 = arith.addf %973, %977 : vector<16x16xf32>
    %c13_153 = arith.constant 13 : index
    %979 = memref.load %arg5[%c13_153] : memref<72xf32, #tpu.memory_space<smem>>
    %980 = vector.extract_strided_slice %958 {offsets = [1, 1], sizes = [16, 16], strides = [1, 1]} : vector<18x18xf32> to vector<16x16xf32>
    %981 = vector.broadcast %979 : f32 to vector<16x16xf32>
    %982 = arith.mulf %981, %980 : vector<16x16xf32>
    %983 = arith.addf %978, %982 : vector<16x16xf32>
    %c14_154 = arith.constant 14 : index
    %984 = memref.load %arg5[%c14_154] : memref<72xf32, #tpu.memory_space<smem>>
    %985 = vector.extract_strided_slice %958 {offsets = [1, 2], sizes = [16, 16], strides = [1, 1]} : vector<18x18xf32> to vector<16x16xf32>
    %986 = vector.broadcast %984 : f32 to vector<16x16xf32>
    %987 = arith.mulf %986, %985 : vector<16x16xf32>
    %988 = arith.addf %983, %987 : vector<16x16xf32>
    %c15_155 = arith.constant 15 : index
    %989 = memref.load %arg5[%c15_155] : memref<72xf32, #tpu.memory_space<smem>>
    %990 = vector.extract_strided_slice %958 {offsets = [2, 0], sizes = [16, 16], strides = [1, 1]} : vector<18x18xf32> to vector<16x16xf32>
    %991 = vector.broadcast %989 : f32 to vector<16x16xf32>
    %992 = arith.mulf %991, %990 : vector<16x16xf32>
    %993 = arith.addf %988, %992 : vector<16x16xf32>
    %c16_156 = arith.constant 16 : index
    %994 = memref.load %arg5[%c16_156] : memref<72xf32, #tpu.memory_space<smem>>
    %995 = vector.extract_strided_slice %958 {offsets = [2, 1], sizes = [16, 16], strides = [1, 1]} : vector<18x18xf32> to vector<16x16xf32>
    %996 = vector.broadcast %994 : f32 to vector<16x16xf32>
    %997 = arith.mulf %996, %995 : vector<16x16xf32>
    %998 = arith.addf %993, %997 : vector<16x16xf32>
    %c17_157 = arith.constant 17 : index
    %999 = memref.load %arg5[%c17_157] : memref<72xf32, #tpu.memory_space<smem>>
    %1000 = vector.extract_strided_slice %958 {offsets = [2, 2], sizes = [16, 16], strides = [1, 1]} : vector<18x18xf32> to vector<16x16xf32>
    %1001 = vector.broadcast %999 : f32 to vector<16x16xf32>
    %1002 = arith.mulf %1001, %1000 : vector<16x16xf32>
    %1003 = arith.addf %998, %1002 : vector<16x16xf32>
    %cst_158 = arith.constant 0.000000e+00 : f32
    %1004 = vector.broadcast %cst_158 : f32 to vector<18x18xf32>
    %c18_159 = arith.constant 18 : index
    %1005 = memref.load %arg3[%c18_159] : memref<72xf32, #tpu.memory_space<smem>>
    %1006 = vector.extract_strided_slice %3 {offsets = [0, 0], sizes = [18, 18], strides = [1, 1]} : vector<20x20xf32> to vector<18x18xf32>
    %1007 = vector.broadcast %1005 : f32 to vector<18x18xf32>
    %1008 = arith.mulf %1007, %1006 : vector<18x18xf32>
    %1009 = arith.addf %1004, %1008 : vector<18x18xf32>
    %c19_160 = arith.constant 19 : index
    %1010 = memref.load %arg3[%c19_160] : memref<72xf32, #tpu.memory_space<smem>>
    %1011 = vector.extract_strided_slice %3 {offsets = [0, 1], sizes = [18, 18], strides = [1, 1]} : vector<20x20xf32> to vector<18x18xf32>
    %1012 = vector.broadcast %1010 : f32 to vector<18x18xf32>
    %1013 = arith.mulf %1012, %1011 : vector<18x18xf32>
    %1014 = arith.addf %1009, %1013 : vector<18x18xf32>
    %c20_161 = arith.constant 20 : index
    %1015 = memref.load %arg3[%c20_161] : memref<72xf32, #tpu.memory_space<smem>>
    %1016 = vector.extract_strided_slice %3 {offsets = [0, 2], sizes = [18, 18], strides = [1, 1]} : vector<20x20xf32> to vector<18x18xf32>
    %1017 = vector.broadcast %1015 : f32 to vector<18x18xf32>
    %1018 = arith.mulf %1017, %1016 : vector<18x18xf32>
    %1019 = arith.addf %1014, %1018 : vector<18x18xf32>
    %c21_162 = arith.constant 21 : index
    %1020 = memref.load %arg3[%c21_162] : memref<72xf32, #tpu.memory_space<smem>>
    %1021 = vector.extract_strided_slice %3 {offsets = [1, 0], sizes = [18, 18], strides = [1, 1]} : vector<20x20xf32> to vector<18x18xf32>
    %1022 = vector.broadcast %1020 : f32 to vector<18x18xf32>
    %1023 = arith.mulf %1022, %1021 : vector<18x18xf32>
    %1024 = arith.addf %1019, %1023 : vector<18x18xf32>
    %c22_163 = arith.constant 22 : index
    %1025 = memref.load %arg3[%c22_163] : memref<72xf32, #tpu.memory_space<smem>>
    %1026 = vector.extract_strided_slice %3 {offsets = [1, 1], sizes = [18, 18], strides = [1, 1]} : vector<20x20xf32> to vector<18x18xf32>
    %1027 = vector.broadcast %1025 : f32 to vector<18x18xf32>
    %1028 = arith.mulf %1027, %1026 : vector<18x18xf32>
    %1029 = arith.addf %1024, %1028 : vector<18x18xf32>
    %c23_164 = arith.constant 23 : index
    %1030 = memref.load %arg3[%c23_164] : memref<72xf32, #tpu.memory_space<smem>>
    %1031 = vector.extract_strided_slice %3 {offsets = [1, 2], sizes = [18, 18], strides = [1, 1]} : vector<20x20xf32> to vector<18x18xf32>
    %1032 = vector.broadcast %1030 : f32 to vector<18x18xf32>
    %1033 = arith.mulf %1032, %1031 : vector<18x18xf32>
    %1034 = arith.addf %1029, %1033 : vector<18x18xf32>
    %c24_165 = arith.constant 24 : index
    %1035 = memref.load %arg3[%c24_165] : memref<72xf32, #tpu.memory_space<smem>>
    %1036 = vector.extract_strided_slice %3 {offsets = [2, 0], sizes = [18, 18], strides = [1, 1]} : vector<20x20xf32> to vector<18x18xf32>
    %1037 = vector.broadcast %1035 : f32 to vector<18x18xf32>
    %1038 = arith.mulf %1037, %1036 : vector<18x18xf32>
    %1039 = arith.addf %1034, %1038 : vector<18x18xf32>
    %c25_166 = arith.constant 25 : index
    %1040 = memref.load %arg3[%c25_166] : memref<72xf32, #tpu.memory_space<smem>>
    %1041 = vector.extract_strided_slice %3 {offsets = [2, 1], sizes = [18, 18], strides = [1, 1]} : vector<20x20xf32> to vector<18x18xf32>
    %1042 = vector.broadcast %1040 : f32 to vector<18x18xf32>
    %1043 = arith.mulf %1042, %1041 : vector<18x18xf32>
    %1044 = arith.addf %1039, %1043 : vector<18x18xf32>
    %c26_167 = arith.constant 26 : index
    %1045 = memref.load %arg3[%c26_167] : memref<72xf32, #tpu.memory_space<smem>>
    %1046 = vector.extract_strided_slice %3 {offsets = [2, 2], sizes = [18, 18], strides = [1, 1]} : vector<20x20xf32> to vector<18x18xf32>
    %1047 = vector.broadcast %1045 : f32 to vector<18x18xf32>
    %1048 = arith.mulf %1047, %1046 : vector<18x18xf32>
    %1049 = arith.addf %1044, %1048 : vector<18x18xf32>
    %c2_168 = arith.constant 2 : index
    %1050 = memref.load %arg4[%c2_168] : memref<8xf32, #tpu.memory_space<smem>>
    %1051 = vector.broadcast %1050 : f32 to vector<18x18xf32>
    %1052 = arith.addf %1049, %1051 : vector<18x18xf32>
    %cst_169 = arith.constant 0.000000e+00 : f32
    %1053 = vector.broadcast %cst_169 : f32 to vector<18x18xf32>
    %1054 = arith.maximumf %1052, %1053 : vector<18x18xf32>
    %cst_170 = arith.constant 0.000000e+00 : f32
    %1055 = vector.broadcast %cst_170 : f32 to vector<18x18xf32>
    %1056 = arith.select %16, %1054, %1055 : vector<18x18xi1>, vector<18x18xf32>
    %c18_171 = arith.constant 18 : index
    %1057 = memref.load %arg5[%c18_171] : memref<72xf32, #tpu.memory_space<smem>>
    %1058 = vector.extract_strided_slice %1056 {offsets = [0, 0], sizes = [16, 16], strides = [1, 1]} : vector<18x18xf32> to vector<16x16xf32>
    %1059 = vector.broadcast %1057 : f32 to vector<16x16xf32>
    %1060 = arith.mulf %1059, %1058 : vector<16x16xf32>
    %1061 = arith.addf %1003, %1060 : vector<16x16xf32>
    %c19_172 = arith.constant 19 : index
    %1062 = memref.load %arg5[%c19_172] : memref<72xf32, #tpu.memory_space<smem>>
    %1063 = vector.extract_strided_slice %1056 {offsets = [0, 1], sizes = [16, 16], strides = [1, 1]} : vector<18x18xf32> to vector<16x16xf32>
    %1064 = vector.broadcast %1062 : f32 to vector<16x16xf32>
    %1065 = arith.mulf %1064, %1063 : vector<16x16xf32>
    %1066 = arith.addf %1061, %1065 : vector<16x16xf32>
    %c20_173 = arith.constant 20 : index
    %1067 = memref.load %arg5[%c20_173] : memref<72xf32, #tpu.memory_space<smem>>
    %1068 = vector.extract_strided_slice %1056 {offsets = [0, 2], sizes = [16, 16], strides = [1, 1]} : vector<18x18xf32> to vector<16x16xf32>
    %1069 = vector.broadcast %1067 : f32 to vector<16x16xf32>
    %1070 = arith.mulf %1069, %1068 : vector<16x16xf32>
    %1071 = arith.addf %1066, %1070 : vector<16x16xf32>
    %c21_174 = arith.constant 21 : index
    %1072 = memref.load %arg5[%c21_174] : memref<72xf32, #tpu.memory_space<smem>>
    %1073 = vector.extract_strided_slice %1056 {offsets = [1, 0], sizes = [16, 16], strides = [1, 1]} : vector<18x18xf32> to vector<16x16xf32>
    %1074 = vector.broadcast %1072 : f32 to vector<16x16xf32>
    %1075 = arith.mulf %1074, %1073 : vector<16x16xf32>
    %1076 = arith.addf %1071, %1075 : vector<16x16xf32>
    %c22_175 = arith.constant 22 : index
    %1077 = memref.load %arg5[%c22_175] : memref<72xf32, #tpu.memory_space<smem>>
    %1078 = vector.extract_strided_slice %1056 {offsets = [1, 1], sizes = [16, 16], strides = [1, 1]} : vector<18x18xf32> to vector<16x16xf32>
    %1079 = vector.broadcast %1077 : f32 to vector<16x16xf32>
    %1080 = arith.mulf %1079, %1078 : vector<16x16xf32>
    %1081 = arith.addf %1076, %1080 : vector<16x16xf32>
    %c23_176 = arith.constant 23 : index
    %1082 = memref.load %arg5[%c23_176] : memref<72xf32, #tpu.memory_space<smem>>
    %1083 = vector.extract_strided_slice %1056 {offsets = [1, 2], sizes = [16, 16], strides = [1, 1]} : vector<18x18xf32> to vector<16x16xf32>
    %1084 = vector.broadcast %1082 : f32 to vector<16x16xf32>
    %1085 = arith.mulf %1084, %1083 : vector<16x16xf32>
    %1086 = arith.addf %1081, %1085 : vector<16x16xf32>
    %c24_177 = arith.constant 24 : index
    %1087 = memref.load %arg5[%c24_177] : memref<72xf32, #tpu.memory_space<smem>>
    %1088 = vector.extract_strided_slice %1056 {offsets = [2, 0], sizes = [16, 16], strides = [1, 1]} : vector<18x18xf32> to vector<16x16xf32>
    %1089 = vector.broadcast %1087 : f32 to vector<16x16xf32>
    %1090 = arith.mulf %1089, %1088 : vector<16x16xf32>
    %1091 = arith.addf %1086, %1090 : vector<16x16xf32>
    %c25_178 = arith.constant 25 : index
    %1092 = memref.load %arg5[%c25_178] : memref<72xf32, #tpu.memory_space<smem>>
    %1093 = vector.extract_strided_slice %1056 {offsets = [2, 1], sizes = [16, 16], strides = [1, 1]} : vector<18x18xf32> to vector<16x16xf32>
    %1094 = vector.broadcast %1092 : f32 to vector<16x16xf32>
    %1095 = arith.mulf %1094, %1093 : vector<16x16xf32>
    %1096 = arith.addf %1091, %1095 : vector<16x16xf32>
    %c26_179 = arith.constant 26 : index
    %1097 = memref.load %arg5[%c26_179] : memref<72xf32, #tpu.memory_space<smem>>
    %1098 = vector.extract_strided_slice %1056 {offsets = [2, 2], sizes = [16, 16], strides = [1, 1]} : vector<18x18xf32> to vector<16x16xf32>
    %1099 = vector.broadcast %1097 : f32 to vector<16x16xf32>
    %1100 = arith.mulf %1099, %1098 : vector<16x16xf32>
    %1101 = arith.addf %1096, %1100 : vector<16x16xf32>
    %cst_180 = arith.constant 0.000000e+00 : f32
    %1102 = vector.broadcast %cst_180 : f32 to vector<18x18xf32>
    %c27_181 = arith.constant 27 : index
    %1103 = memref.load %arg3[%c27_181] : memref<72xf32, #tpu.memory_space<smem>>
    %1104 = vector.extract_strided_slice %3 {offsets = [0, 0], sizes = [18, 18], strides = [1, 1]} : vector<20x20xf32> to vector<18x18xf32>
    %1105 = vector.broadcast %1103 : f32 to vector<18x18xf32>
    %1106 = arith.mulf %1105, %1104 : vector<18x18xf32>
    %1107 = arith.addf %1102, %1106 : vector<18x18xf32>
    %c28_182 = arith.constant 28 : index
    %1108 = memref.load %arg3[%c28_182] : memref<72xf32, #tpu.memory_space<smem>>
    %1109 = vector.extract_strided_slice %3 {offsets = [0, 1], sizes = [18, 18], strides = [1, 1]} : vector<20x20xf32> to vector<18x18xf32>
    %1110 = vector.broadcast %1108 : f32 to vector<18x18xf32>
    %1111 = arith.mulf %1110, %1109 : vector<18x18xf32>
    %1112 = arith.addf %1107, %1111 : vector<18x18xf32>
    %c29_183 = arith.constant 29 : index
    %1113 = memref.load %arg3[%c29_183] : memref<72xf32, #tpu.memory_space<smem>>
    %1114 = vector.extract_strided_slice %3 {offsets = [0, 2], sizes = [18, 18], strides = [1, 1]} : vector<20x20xf32> to vector<18x18xf32>
    %1115 = vector.broadcast %1113 : f32 to vector<18x18xf32>
    %1116 = arith.mulf %1115, %1114 : vector<18x18xf32>
    %1117 = arith.addf %1112, %1116 : vector<18x18xf32>
    %c30_184 = arith.constant 30 : index
    %1118 = memref.load %arg3[%c30_184] : memref<72xf32, #tpu.memory_space<smem>>
    %1119 = vector.extract_strided_slice %3 {offsets = [1, 0], sizes = [18, 18], strides = [1, 1]} : vector<20x20xf32> to vector<18x18xf32>
    %1120 = vector.broadcast %1118 : f32 to vector<18x18xf32>
    %1121 = arith.mulf %1120, %1119 : vector<18x18xf32>
    %1122 = arith.addf %1117, %1121 : vector<18x18xf32>
    %c31_185 = arith.constant 31 : index
    %1123 = memref.load %arg3[%c31_185] : memref<72xf32, #tpu.memory_space<smem>>
    %1124 = vector.extract_strided_slice %3 {offsets = [1, 1], sizes = [18, 18], strides = [1, 1]} : vector<20x20xf32> to vector<18x18xf32>
    %1125 = vector.broadcast %1123 : f32 to vector<18x18xf32>
    %1126 = arith.mulf %1125, %1124 : vector<18x18xf32>
    %1127 = arith.addf %1122, %1126 : vector<18x18xf32>
    %c32_186 = arith.constant 32 : index
    %1128 = memref.load %arg3[%c32_186] : memref<72xf32, #tpu.memory_space<smem>>
    %1129 = vector.extract_strided_slice %3 {offsets = [1, 2], sizes = [18, 18], strides = [1, 1]} : vector<20x20xf32> to vector<18x18xf32>
    %1130 = vector.broadcast %1128 : f32 to vector<18x18xf32>
    %1131 = arith.mulf %1130, %1129 : vector<18x18xf32>
    %1132 = arith.addf %1127, %1131 : vector<18x18xf32>
    %c33_187 = arith.constant 33 : index
    %1133 = memref.load %arg3[%c33_187] : memref<72xf32, #tpu.memory_space<smem>>
    %1134 = vector.extract_strided_slice %3 {offsets = [2, 0], sizes = [18, 18], strides = [1, 1]} : vector<20x20xf32> to vector<18x18xf32>
    %1135 = vector.broadcast %1133 : f32 to vector<18x18xf32>
    %1136 = arith.mulf %1135, %1134 : vector<18x18xf32>
    %1137 = arith.addf %1132, %1136 : vector<18x18xf32>
    %c34_188 = arith.constant 34 : index
    %1138 = memref.load %arg3[%c34_188] : memref<72xf32, #tpu.memory_space<smem>>
    %1139 = vector.extract_strided_slice %3 {offsets = [2, 1], sizes = [18, 18], strides = [1, 1]} : vector<20x20xf32> to vector<18x18xf32>
    %1140 = vector.broadcast %1138 : f32 to vector<18x18xf32>
    %1141 = arith.mulf %1140, %1139 : vector<18x18xf32>
    %1142 = arith.addf %1137, %1141 : vector<18x18xf32>
    %c35_189 = arith.constant 35 : index
    %1143 = memref.load %arg3[%c35_189] : memref<72xf32, #tpu.memory_space<smem>>
    %1144 = vector.extract_strided_slice %3 {offsets = [2, 2], sizes = [18, 18], strides = [1, 1]} : vector<20x20xf32> to vector<18x18xf32>
    %1145 = vector.broadcast %1143 : f32 to vector<18x18xf32>
    %1146 = arith.mulf %1145, %1144 : vector<18x18xf32>
    %1147 = arith.addf %1142, %1146 : vector<18x18xf32>
    %c3_190 = arith.constant 3 : index
    %1148 = memref.load %arg4[%c3_190] : memref<8xf32, #tpu.memory_space<smem>>
    %1149 = vector.broadcast %1148 : f32 to vector<18x18xf32>
    %1150 = arith.addf %1147, %1149 : vector<18x18xf32>
    %cst_191 = arith.constant 0.000000e+00 : f32
    %1151 = vector.broadcast %cst_191 : f32 to vector<18x18xf32>
    %1152 = arith.maximumf %1150, %1151 : vector<18x18xf32>
    %cst_192 = arith.constant 0.000000e+00 : f32
    %1153 = vector.broadcast %cst_192 : f32 to vector<18x18xf32>
    %1154 = arith.select %16, %1152, %1153 : vector<18x18xi1>, vector<18x18xf32>
    %c27_193 = arith.constant 27 : index
    %1155 = memref.load %arg5[%c27_193] : memref<72xf32, #tpu.memory_space<smem>>
    %1156 = vector.extract_strided_slice %1154 {offsets = [0, 0], sizes = [16, 16], strides = [1, 1]} : vector<18x18xf32> to vector<16x16xf32>
    %1157 = vector.broadcast %1155 : f32 to vector<16x16xf32>
    %1158 = arith.mulf %1157, %1156 : vector<16x16xf32>
    %1159 = arith.addf %1101, %1158 : vector<16x16xf32>
    %c28_194 = arith.constant 28 : index
    %1160 = memref.load %arg5[%c28_194] : memref<72xf32, #tpu.memory_space<smem>>
    %1161 = vector.extract_strided_slice %1154 {offsets = [0, 1], sizes = [16, 16], strides = [1, 1]} : vector<18x18xf32> to vector<16x16xf32>
    %1162 = vector.broadcast %1160 : f32 to vector<16x16xf32>
    %1163 = arith.mulf %1162, %1161 : vector<16x16xf32>
    %1164 = arith.addf %1159, %1163 : vector<16x16xf32>
    %c29_195 = arith.constant 29 : index
    %1165 = memref.load %arg5[%c29_195] : memref<72xf32, #tpu.memory_space<smem>>
    %1166 = vector.extract_strided_slice %1154 {offsets = [0, 2], sizes = [16, 16], strides = [1, 1]} : vector<18x18xf32> to vector<16x16xf32>
    %1167 = vector.broadcast %1165 : f32 to vector<16x16xf32>
    %1168 = arith.mulf %1167, %1166 : vector<16x16xf32>
    %1169 = arith.addf %1164, %1168 : vector<16x16xf32>
    %c30_196 = arith.constant 30 : index
    %1170 = memref.load %arg5[%c30_196] : memref<72xf32, #tpu.memory_space<smem>>
    %1171 = vector.extract_strided_slice %1154 {offsets = [1, 0], sizes = [16, 16], strides = [1, 1]} : vector<18x18xf32> to vector<16x16xf32>
    %1172 = vector.broadcast %1170 : f32 to vector<16x16xf32>
    %1173 = arith.mulf %1172, %1171 : vector<16x16xf32>
    %1174 = arith.addf %1169, %1173 : vector<16x16xf32>
    %c31_197 = arith.constant 31 : index
    %1175 = memref.load %arg5[%c31_197] : memref<72xf32, #tpu.memory_space<smem>>
    %1176 = vector.extract_strided_slice %1154 {offsets = [1, 1], sizes = [16, 16], strides = [1, 1]} : vector<18x18xf32> to vector<16x16xf32>
    %1177 = vector.broadcast %1175 : f32 to vector<16x16xf32>
    %1178 = arith.mulf %1177, %1176 : vector<16x16xf32>
    %1179 = arith.addf %1174, %1178 : vector<16x16xf32>
    %c32_198 = arith.constant 32 : index
    %1180 = memref.load %arg5[%c32_198] : memref<72xf32, #tpu.memory_space<smem>>
    %1181 = vector.extract_strided_slice %1154 {offsets = [1, 2], sizes = [16, 16], strides = [1, 1]} : vector<18x18xf32> to vector<16x16xf32>
    %1182 = vector.broadcast %1180 : f32 to vector<16x16xf32>
    %1183 = arith.mulf %1182, %1181 : vector<16x16xf32>
    %1184 = arith.addf %1179, %1183 : vector<16x16xf32>
    %c33_199 = arith.constant 33 : index
    %1185 = memref.load %arg5[%c33_199] : memref<72xf32, #tpu.memory_space<smem>>
    %1186 = vector.extract_strided_slice %1154 {offsets = [2, 0], sizes = [16, 16], strides = [1, 1]} : vector<18x18xf32> to vector<16x16xf32>
    %1187 = vector.broadcast %1185 : f32 to vector<16x16xf32>
    %1188 = arith.mulf %1187, %1186 : vector<16x16xf32>
    %1189 = arith.addf %1184, %1188 : vector<16x16xf32>
    %c34_200 = arith.constant 34 : index
    %1190 = memref.load %arg5[%c34_200] : memref<72xf32, #tpu.memory_space<smem>>
    %1191 = vector.extract_strided_slice %1154 {offsets = [2, 1], sizes = [16, 16], strides = [1, 1]} : vector<18x18xf32> to vector<16x16xf32>
    %1192 = vector.broadcast %1190 : f32 to vector<16x16xf32>
    %1193 = arith.mulf %1192, %1191 : vector<16x16xf32>
    %1194 = arith.addf %1189, %1193 : vector<16x16xf32>
    %c35_201 = arith.constant 35 : index
    %1195 = memref.load %arg5[%c35_201] : memref<72xf32, #tpu.memory_space<smem>>
    %1196 = vector.extract_strided_slice %1154 {offsets = [2, 2], sizes = [16, 16], strides = [1, 1]} : vector<18x18xf32> to vector<16x16xf32>
    %1197 = vector.broadcast %1195 : f32 to vector<16x16xf32>
    %1198 = arith.mulf %1197, %1196 : vector<16x16xf32>
    %1199 = arith.addf %1194, %1198 : vector<16x16xf32>
    %cst_202 = arith.constant 0.000000e+00 : f32
    %1200 = vector.broadcast %cst_202 : f32 to vector<18x18xf32>
    %c36_203 = arith.constant 36 : index
    %1201 = memref.load %arg3[%c36_203] : memref<72xf32, #tpu.memory_space<smem>>
    %1202 = vector.extract_strided_slice %3 {offsets = [0, 0], sizes = [18, 18], strides = [1, 1]} : vector<20x20xf32> to vector<18x18xf32>
    %1203 = vector.broadcast %1201 : f32 to vector<18x18xf32>
    %1204 = arith.mulf %1203, %1202 : vector<18x18xf32>
    %1205 = arith.addf %1200, %1204 : vector<18x18xf32>
    %c37_204 = arith.constant 37 : index
    %1206 = memref.load %arg3[%c37_204] : memref<72xf32, #tpu.memory_space<smem>>
    %1207 = vector.extract_strided_slice %3 {offsets = [0, 1], sizes = [18, 18], strides = [1, 1]} : vector<20x20xf32> to vector<18x18xf32>
    %1208 = vector.broadcast %1206 : f32 to vector<18x18xf32>
    %1209 = arith.mulf %1208, %1207 : vector<18x18xf32>
    %1210 = arith.addf %1205, %1209 : vector<18x18xf32>
    %c38_205 = arith.constant 38 : index
    %1211 = memref.load %arg3[%c38_205] : memref<72xf32, #tpu.memory_space<smem>>
    %1212 = vector.extract_strided_slice %3 {offsets = [0, 2], sizes = [18, 18], strides = [1, 1]} : vector<20x20xf32> to vector<18x18xf32>
    %1213 = vector.broadcast %1211 : f32 to vector<18x18xf32>
    %1214 = arith.mulf %1213, %1212 : vector<18x18xf32>
    %1215 = arith.addf %1210, %1214 : vector<18x18xf32>
    %c39_206 = arith.constant 39 : index
    %1216 = memref.load %arg3[%c39_206] : memref<72xf32, #tpu.memory_space<smem>>
    %1217 = vector.extract_strided_slice %3 {offsets = [1, 0], sizes = [18, 18], strides = [1, 1]} : vector<20x20xf32> to vector<18x18xf32>
    %1218 = vector.broadcast %1216 : f32 to vector<18x18xf32>
    %1219 = arith.mulf %1218, %1217 : vector<18x18xf32>
    %1220 = arith.addf %1215, %1219 : vector<18x18xf32>
    %c40_207 = arith.constant 40 : index
    %1221 = memref.load %arg3[%c40_207] : memref<72xf32, #tpu.memory_space<smem>>
    %1222 = vector.extract_strided_slice %3 {offsets = [1, 1], sizes = [18, 18], strides = [1, 1]} : vector<20x20xf32> to vector<18x18xf32>
    %1223 = vector.broadcast %1221 : f32 to vector<18x18xf32>
    %1224 = arith.mulf %1223, %1222 : vector<18x18xf32>
    %1225 = arith.addf %1220, %1224 : vector<18x18xf32>
    %c41_208 = arith.constant 41 : index
    %1226 = memref.load %arg3[%c41_208] : memref<72xf32, #tpu.memory_space<smem>>
    %1227 = vector.extract_strided_slice %3 {offsets = [1, 2], sizes = [18, 18], strides = [1, 1]} : vector<20x20xf32> to vector<18x18xf32>
    %1228 = vector.broadcast %1226 : f32 to vector<18x18xf32>
    %1229 = arith.mulf %1228, %1227 : vector<18x18xf32>
    %1230 = arith.addf %1225, %1229 : vector<18x18xf32>
    %c42_209 = arith.constant 42 : index
    %1231 = memref.load %arg3[%c42_209] : memref<72xf32, #tpu.memory_space<smem>>
    %1232 = vector.extract_strided_slice %3 {offsets = [2, 0], sizes = [18, 18], strides = [1, 1]} : vector<20x20xf32> to vector<18x18xf32>
    %1233 = vector.broadcast %1231 : f32 to vector<18x18xf32>
    %1234 = arith.mulf %1233, %1232 : vector<18x18xf32>
    %1235 = arith.addf %1230, %1234 : vector<18x18xf32>
    %c43_210 = arith.constant 43 : index
    %1236 = memref.load %arg3[%c43_210] : memref<72xf32, #tpu.memory_space<smem>>
    %1237 = vector.extract_strided_slice %3 {offsets = [2, 1], sizes = [18, 18], strides = [1, 1]} : vector<20x20xf32> to vector<18x18xf32>
    %1238 = vector.broadcast %1236 : f32 to vector<18x18xf32>
    %1239 = arith.mulf %1238, %1237 : vector<18x18xf32>
    %1240 = arith.addf %1235, %1239 : vector<18x18xf32>
    %c44_211 = arith.constant 44 : index
    %1241 = memref.load %arg3[%c44_211] : memref<72xf32, #tpu.memory_space<smem>>
    %1242 = vector.extract_strided_slice %3 {offsets = [2, 2], sizes = [18, 18], strides = [1, 1]} : vector<20x20xf32> to vector<18x18xf32>
    %1243 = vector.broadcast %1241 : f32 to vector<18x18xf32>
    %1244 = arith.mulf %1243, %1242 : vector<18x18xf32>
    %1245 = arith.addf %1240, %1244 : vector<18x18xf32>
    %c4_212 = arith.constant 4 : index
    %1246 = memref.load %arg4[%c4_212] : memref<8xf32, #tpu.memory_space<smem>>
    %1247 = vector.broadcast %1246 : f32 to vector<18x18xf32>
    %1248 = arith.addf %1245, %1247 : vector<18x18xf32>
    %cst_213 = arith.constant 0.000000e+00 : f32
    %1249 = vector.broadcast %cst_213 : f32 to vector<18x18xf32>
    %1250 = arith.maximumf %1248, %1249 : vector<18x18xf32>
    %cst_214 = arith.constant 0.000000e+00 : f32
    %1251 = vector.broadcast %cst_214 : f32 to vector<18x18xf32>
    %1252 = arith.select %16, %1250, %1251 : vector<18x18xi1>, vector<18x18xf32>
    %c36_215 = arith.constant 36 : index
    %1253 = memref.load %arg5[%c36_215] : memref<72xf32, #tpu.memory_space<smem>>
    %1254 = vector.extract_strided_slice %1252 {offsets = [0, 0], sizes = [16, 16], strides = [1, 1]} : vector<18x18xf32> to vector<16x16xf32>
    %1255 = vector.broadcast %1253 : f32 to vector<16x16xf32>
    %1256 = arith.mulf %1255, %1254 : vector<16x16xf32>
    %1257 = arith.addf %1199, %1256 : vector<16x16xf32>
    %c37_216 = arith.constant 37 : index
    %1258 = memref.load %arg5[%c37_216] : memref<72xf32, #tpu.memory_space<smem>>
    %1259 = vector.extract_strided_slice %1252 {offsets = [0, 1], sizes = [16, 16], strides = [1, 1]} : vector<18x18xf32> to vector<16x16xf32>
    %1260 = vector.broadcast %1258 : f32 to vector<16x16xf32>
    %1261 = arith.mulf %1260, %1259 : vector<16x16xf32>
    %1262 = arith.addf %1257, %1261 : vector<16x16xf32>
    %c38_217 = arith.constant 38 : index
    %1263 = memref.load %arg5[%c38_217] : memref<72xf32, #tpu.memory_space<smem>>
    %1264 = vector.extract_strided_slice %1252 {offsets = [0, 2], sizes = [16, 16], strides = [1, 1]} : vector<18x18xf32> to vector<16x16xf32>
    %1265 = vector.broadcast %1263 : f32 to vector<16x16xf32>
    %1266 = arith.mulf %1265, %1264 : vector<16x16xf32>
    %1267 = arith.addf %1262, %1266 : vector<16x16xf32>
    %c39_218 = arith.constant 39 : index
    %1268 = memref.load %arg5[%c39_218] : memref<72xf32, #tpu.memory_space<smem>>
    %1269 = vector.extract_strided_slice %1252 {offsets = [1, 0], sizes = [16, 16], strides = [1, 1]} : vector<18x18xf32> to vector<16x16xf32>
    %1270 = vector.broadcast %1268 : f32 to vector<16x16xf32>
    %1271 = arith.mulf %1270, %1269 : vector<16x16xf32>
    %1272 = arith.addf %1267, %1271 : vector<16x16xf32>
    %c40_219 = arith.constant 40 : index
    %1273 = memref.load %arg5[%c40_219] : memref<72xf32, #tpu.memory_space<smem>>
    %1274 = vector.extract_strided_slice %1252 {offsets = [1, 1], sizes = [16, 16], strides = [1, 1]} : vector<18x18xf32> to vector<16x16xf32>
    %1275 = vector.broadcast %1273 : f32 to vector<16x16xf32>
    %1276 = arith.mulf %1275, %1274 : vector<16x16xf32>
    %1277 = arith.addf %1272, %1276 : vector<16x16xf32>
    %c41_220 = arith.constant 41 : index
    %1278 = memref.load %arg5[%c41_220] : memref<72xf32, #tpu.memory_space<smem>>
    %1279 = vector.extract_strided_slice %1252 {offsets = [1, 2], sizes = [16, 16], strides = [1, 1]} : vector<18x18xf32> to vector<16x16xf32>
    %1280 = vector.broadcast %1278 : f32 to vector<16x16xf32>
    %1281 = arith.mulf %1280, %1279 : vector<16x16xf32>
    %1282 = arith.addf %1277, %1281 : vector<16x16xf32>
    %c42_221 = arith.constant 42 : index
    %1283 = memref.load %arg5[%c42_221] : memref<72xf32, #tpu.memory_space<smem>>
    %1284 = vector.extract_strided_slice %1252 {offsets = [2, 0], sizes = [16, 16], strides = [1, 1]} : vector<18x18xf32> to vector<16x16xf32>
    %1285 = vector.broadcast %1283 : f32 to vector<16x16xf32>
    %1286 = arith.mulf %1285, %1284 : vector<16x16xf32>
    %1287 = arith.addf %1282, %1286 : vector<16x16xf32>
    %c43_222 = arith.constant 43 : index
    %1288 = memref.load %arg5[%c43_222] : memref<72xf32, #tpu.memory_space<smem>>
    %1289 = vector.extract_strided_slice %1252 {offsets = [2, 1], sizes = [16, 16], strides = [1, 1]} : vector<18x18xf32> to vector<16x16xf32>
    %1290 = vector.broadcast %1288 : f32 to vector<16x16xf32>
    %1291 = arith.mulf %1290, %1289 : vector<16x16xf32>
    %1292 = arith.addf %1287, %1291 : vector<16x16xf32>
    %c44_223 = arith.constant 44 : index
    %1293 = memref.load %arg5[%c44_223] : memref<72xf32, #tpu.memory_space<smem>>
    %1294 = vector.extract_strided_slice %1252 {offsets = [2, 2], sizes = [16, 16], strides = [1, 1]} : vector<18x18xf32> to vector<16x16xf32>
    %1295 = vector.broadcast %1293 : f32 to vector<16x16xf32>
    %1296 = arith.mulf %1295, %1294 : vector<16x16xf32>
    %1297 = arith.addf %1292, %1296 : vector<16x16xf32>
    %cst_224 = arith.constant 0.000000e+00 : f32
    %1298 = vector.broadcast %cst_224 : f32 to vector<18x18xf32>
    %c45_225 = arith.constant 45 : index
    %1299 = memref.load %arg3[%c45_225] : memref<72xf32, #tpu.memory_space<smem>>
    %1300 = vector.extract_strided_slice %3 {offsets = [0, 0], sizes = [18, 18], strides = [1, 1]} : vector<20x20xf32> to vector<18x18xf32>
    %1301 = vector.broadcast %1299 : f32 to vector<18x18xf32>
    %1302 = arith.mulf %1301, %1300 : vector<18x18xf32>
    %1303 = arith.addf %1298, %1302 : vector<18x18xf32>
    %c46_226 = arith.constant 46 : index
    %1304 = memref.load %arg3[%c46_226] : memref<72xf32, #tpu.memory_space<smem>>
    %1305 = vector.extract_strided_slice %3 {offsets = [0, 1], sizes = [18, 18], strides = [1, 1]} : vector<20x20xf32> to vector<18x18xf32>
    %1306 = vector.broadcast %1304 : f32 to vector<18x18xf32>
    %1307 = arith.mulf %1306, %1305 : vector<18x18xf32>
    %1308 = arith.addf %1303, %1307 : vector<18x18xf32>
    %c47_227 = arith.constant 47 : index
    %1309 = memref.load %arg3[%c47_227] : memref<72xf32, #tpu.memory_space<smem>>
    %1310 = vector.extract_strided_slice %3 {offsets = [0, 2], sizes = [18, 18], strides = [1, 1]} : vector<20x20xf32> to vector<18x18xf32>
    %1311 = vector.broadcast %1309 : f32 to vector<18x18xf32>
    %1312 = arith.mulf %1311, %1310 : vector<18x18xf32>
    %1313 = arith.addf %1308, %1312 : vector<18x18xf32>
    %c48_228 = arith.constant 48 : index
    %1314 = memref.load %arg3[%c48_228] : memref<72xf32, #tpu.memory_space<smem>>
    %1315 = vector.extract_strided_slice %3 {offsets = [1, 0], sizes = [18, 18], strides = [1, 1]} : vector<20x20xf32> to vector<18x18xf32>
    %1316 = vector.broadcast %1314 : f32 to vector<18x18xf32>
    %1317 = arith.mulf %1316, %1315 : vector<18x18xf32>
    %1318 = arith.addf %1313, %1317 : vector<18x18xf32>
    %c49_229 = arith.constant 49 : index
    %1319 = memref.load %arg3[%c49_229] : memref<72xf32, #tpu.memory_space<smem>>
    %1320 = vector.extract_strided_slice %3 {offsets = [1, 1], sizes = [18, 18], strides = [1, 1]} : vector<20x20xf32> to vector<18x18xf32>
    %1321 = vector.broadcast %1319 : f32 to vector<18x18xf32>
    %1322 = arith.mulf %1321, %1320 : vector<18x18xf32>
    %1323 = arith.addf %1318, %1322 : vector<18x18xf32>
    %c50_230 = arith.constant 50 : index
    %1324 = memref.load %arg3[%c50_230] : memref<72xf32, #tpu.memory_space<smem>>
    %1325 = vector.extract_strided_slice %3 {offsets = [1, 2], sizes = [18, 18], strides = [1, 1]} : vector<20x20xf32> to vector<18x18xf32>
    %1326 = vector.broadcast %1324 : f32 to vector<18x18xf32>
    %1327 = arith.mulf %1326, %1325 : vector<18x18xf32>
    %1328 = arith.addf %1323, %1327 : vector<18x18xf32>
    %c51_231 = arith.constant 51 : index
    %1329 = memref.load %arg3[%c51_231] : memref<72xf32, #tpu.memory_space<smem>>
    %1330 = vector.extract_strided_slice %3 {offsets = [2, 0], sizes = [18, 18], strides = [1, 1]} : vector<20x20xf32> to vector<18x18xf32>
    %1331 = vector.broadcast %1329 : f32 to vector<18x18xf32>
    %1332 = arith.mulf %1331, %1330 : vector<18x18xf32>
    %1333 = arith.addf %1328, %1332 : vector<18x18xf32>
    %c52_232 = arith.constant 52 : index
    %1334 = memref.load %arg3[%c52_232] : memref<72xf32, #tpu.memory_space<smem>>
    %1335 = vector.extract_strided_slice %3 {offsets = [2, 1], sizes = [18, 18], strides = [1, 1]} : vector<20x20xf32> to vector<18x18xf32>
    %1336 = vector.broadcast %1334 : f32 to vector<18x18xf32>
    %1337 = arith.mulf %1336, %1335 : vector<18x18xf32>
    %1338 = arith.addf %1333, %1337 : vector<18x18xf32>
    %c53_233 = arith.constant 53 : index
    %1339 = memref.load %arg3[%c53_233] : memref<72xf32, #tpu.memory_space<smem>>
    %1340 = vector.extract_strided_slice %3 {offsets = [2, 2], sizes = [18, 18], strides = [1, 1]} : vector<20x20xf32> to vector<18x18xf32>
    %1341 = vector.broadcast %1339 : f32 to vector<18x18xf32>
    %1342 = arith.mulf %1341, %1340 : vector<18x18xf32>
    %1343 = arith.addf %1338, %1342 : vector<18x18xf32>
    %c5_234 = arith.constant 5 : index
    %1344 = memref.load %arg4[%c5_234] : memref<8xf32, #tpu.memory_space<smem>>
    %1345 = vector.broadcast %1344 : f32 to vector<18x18xf32>
    %1346 = arith.addf %1343, %1345 : vector<18x18xf32>
    %cst_235 = arith.constant 0.000000e+00 : f32
    %1347 = vector.broadcast %cst_235 : f32 to vector<18x18xf32>
    %1348 = arith.maximumf %1346, %1347 : vector<18x18xf32>
    %cst_236 = arith.constant 0.000000e+00 : f32
    %1349 = vector.broadcast %cst_236 : f32 to vector<18x18xf32>
    %1350 = arith.select %16, %1348, %1349 : vector<18x18xi1>, vector<18x18xf32>
    %c45_237 = arith.constant 45 : index
    %1351 = memref.load %arg5[%c45_237] : memref<72xf32, #tpu.memory_space<smem>>
    %1352 = vector.extract_strided_slice %1350 {offsets = [0, 0], sizes = [16, 16], strides = [1, 1]} : vector<18x18xf32> to vector<16x16xf32>
    %1353 = vector.broadcast %1351 : f32 to vector<16x16xf32>
    %1354 = arith.mulf %1353, %1352 : vector<16x16xf32>
    %1355 = arith.addf %1297, %1354 : vector<16x16xf32>
    %c46_238 = arith.constant 46 : index
    %1356 = memref.load %arg5[%c46_238] : memref<72xf32, #tpu.memory_space<smem>>
    %1357 = vector.extract_strided_slice %1350 {offsets = [0, 1], sizes = [16, 16], strides = [1, 1]} : vector<18x18xf32> to vector<16x16xf32>
    %1358 = vector.broadcast %1356 : f32 to vector<16x16xf32>
    %1359 = arith.mulf %1358, %1357 : vector<16x16xf32>
    %1360 = arith.addf %1355, %1359 : vector<16x16xf32>
    %c47_239 = arith.constant 47 : index
    %1361 = memref.load %arg5[%c47_239] : memref<72xf32, #tpu.memory_space<smem>>
    %1362 = vector.extract_strided_slice %1350 {offsets = [0, 2], sizes = [16, 16], strides = [1, 1]} : vector<18x18xf32> to vector<16x16xf32>
    %1363 = vector.broadcast %1361 : f32 to vector<16x16xf32>
    %1364 = arith.mulf %1363, %1362 : vector<16x16xf32>
    %1365 = arith.addf %1360, %1364 : vector<16x16xf32>
    %c48_240 = arith.constant 48 : index
    %1366 = memref.load %arg5[%c48_240] : memref<72xf32, #tpu.memory_space<smem>>
    %1367 = vector.extract_strided_slice %1350 {offsets = [1, 0], sizes = [16, 16], strides = [1, 1]} : vector<18x18xf32> to vector<16x16xf32>
    %1368 = vector.broadcast %1366 : f32 to vector<16x16xf32>
    %1369 = arith.mulf %1368, %1367 : vector<16x16xf32>
    %1370 = arith.addf %1365, %1369 : vector<16x16xf32>
    %c49_241 = arith.constant 49 : index
    %1371 = memref.load %arg5[%c49_241] : memref<72xf32, #tpu.memory_space<smem>>
    %1372 = vector.extract_strided_slice %1350 {offsets = [1, 1], sizes = [16, 16], strides = [1, 1]} : vector<18x18xf32> to vector<16x16xf32>
    %1373 = vector.broadcast %1371 : f32 to vector<16x16xf32>
    %1374 = arith.mulf %1373, %1372 : vector<16x16xf32>
    %1375 = arith.addf %1370, %1374 : vector<16x16xf32>
    %c50_242 = arith.constant 50 : index
    %1376 = memref.load %arg5[%c50_242] : memref<72xf32, #tpu.memory_space<smem>>
    %1377 = vector.extract_strided_slice %1350 {offsets = [1, 2], sizes = [16, 16], strides = [1, 1]} : vector<18x18xf32> to vector<16x16xf32>
    %1378 = vector.broadcast %1376 : f32 to vector<16x16xf32>
    %1379 = arith.mulf %1378, %1377 : vector<16x16xf32>
    %1380 = arith.addf %1375, %1379 : vector<16x16xf32>
    %c51_243 = arith.constant 51 : index
    %1381 = memref.load %arg5[%c51_243] : memref<72xf32, #tpu.memory_space<smem>>
    %1382 = vector.extract_strided_slice %1350 {offsets = [2, 0], sizes = [16, 16], strides = [1, 1]} : vector<18x18xf32> to vector<16x16xf32>
    %1383 = vector.broadcast %1381 : f32 to vector<16x16xf32>
    %1384 = arith.mulf %1383, %1382 : vector<16x16xf32>
    %1385 = arith.addf %1380, %1384 : vector<16x16xf32>
    %c52_244 = arith.constant 52 : index
    %1386 = memref.load %arg5[%c52_244] : memref<72xf32, #tpu.memory_space<smem>>
    %1387 = vector.extract_strided_slice %1350 {offsets = [2, 1], sizes = [16, 16], strides = [1, 1]} : vector<18x18xf32> to vector<16x16xf32>
    %1388 = vector.broadcast %1386 : f32 to vector<16x16xf32>
    %1389 = arith.mulf %1388, %1387 : vector<16x16xf32>
    %1390 = arith.addf %1385, %1389 : vector<16x16xf32>
    %c53_245 = arith.constant 53 : index
    %1391 = memref.load %arg5[%c53_245] : memref<72xf32, #tpu.memory_space<smem>>
    %1392 = vector.extract_strided_slice %1350 {offsets = [2, 2], sizes = [16, 16], strides = [1, 1]} : vector<18x18xf32> to vector<16x16xf32>
    %1393 = vector.broadcast %1391 : f32 to vector<16x16xf32>
    %1394 = arith.mulf %1393, %1392 : vector<16x16xf32>
    %1395 = arith.addf %1390, %1394 : vector<16x16xf32>
    %cst_246 = arith.constant 0.000000e+00 : f32
    %1396 = vector.broadcast %cst_246 : f32 to vector<18x18xf32>
    %c54_247 = arith.constant 54 : index
    %1397 = memref.load %arg3[%c54_247] : memref<72xf32, #tpu.memory_space<smem>>
    %1398 = vector.extract_strided_slice %3 {offsets = [0, 0], sizes = [18, 18], strides = [1, 1]} : vector<20x20xf32> to vector<18x18xf32>
    %1399 = vector.broadcast %1397 : f32 to vector<18x18xf32>
    %1400 = arith.mulf %1399, %1398 : vector<18x18xf32>
    %1401 = arith.addf %1396, %1400 : vector<18x18xf32>
    %c55_248 = arith.constant 55 : index
    %1402 = memref.load %arg3[%c55_248] : memref<72xf32, #tpu.memory_space<smem>>
    %1403 = vector.extract_strided_slice %3 {offsets = [0, 1], sizes = [18, 18], strides = [1, 1]} : vector<20x20xf32> to vector<18x18xf32>
    %1404 = vector.broadcast %1402 : f32 to vector<18x18xf32>
    %1405 = arith.mulf %1404, %1403 : vector<18x18xf32>
    %1406 = arith.addf %1401, %1405 : vector<18x18xf32>
    %c56_249 = arith.constant 56 : index
    %1407 = memref.load %arg3[%c56_249] : memref<72xf32, #tpu.memory_space<smem>>
    %1408 = vector.extract_strided_slice %3 {offsets = [0, 2], sizes = [18, 18], strides = [1, 1]} : vector<20x20xf32> to vector<18x18xf32>
    %1409 = vector.broadcast %1407 : f32 to vector<18x18xf32>
    %1410 = arith.mulf %1409, %1408 : vector<18x18xf32>
    %1411 = arith.addf %1406, %1410 : vector<18x18xf32>
    %c57_250 = arith.constant 57 : index
    %1412 = memref.load %arg3[%c57_250] : memref<72xf32, #tpu.memory_space<smem>>
    %1413 = vector.extract_strided_slice %3 {offsets = [1, 0], sizes = [18, 18], strides = [1, 1]} : vector<20x20xf32> to vector<18x18xf32>
    %1414 = vector.broadcast %1412 : f32 to vector<18x18xf32>
    %1415 = arith.mulf %1414, %1413 : vector<18x18xf32>
    %1416 = arith.addf %1411, %1415 : vector<18x18xf32>
    %c58_251 = arith.constant 58 : index
    %1417 = memref.load %arg3[%c58_251] : memref<72xf32, #tpu.memory_space<smem>>
    %1418 = vector.extract_strided_slice %3 {offsets = [1, 1], sizes = [18, 18], strides = [1, 1]} : vector<20x20xf32> to vector<18x18xf32>
    %1419 = vector.broadcast %1417 : f32 to vector<18x18xf32>
    %1420 = arith.mulf %1419, %1418 : vector<18x18xf32>
    %1421 = arith.addf %1416, %1420 : vector<18x18xf32>
    %c59_252 = arith.constant 59 : index
    %1422 = memref.load %arg3[%c59_252] : memref<72xf32, #tpu.memory_space<smem>>
    %1423 = vector.extract_strided_slice %3 {offsets = [1, 2], sizes = [18, 18], strides = [1, 1]} : vector<20x20xf32> to vector<18x18xf32>
    %1424 = vector.broadcast %1422 : f32 to vector<18x18xf32>
    %1425 = arith.mulf %1424, %1423 : vector<18x18xf32>
    %1426 = arith.addf %1421, %1425 : vector<18x18xf32>
    %c60_253 = arith.constant 60 : index
    %1427 = memref.load %arg3[%c60_253] : memref<72xf32, #tpu.memory_space<smem>>
    %1428 = vector.extract_strided_slice %3 {offsets = [2, 0], sizes = [18, 18], strides = [1, 1]} : vector<20x20xf32> to vector<18x18xf32>
    %1429 = vector.broadcast %1427 : f32 to vector<18x18xf32>
    %1430 = arith.mulf %1429, %1428 : vector<18x18xf32>
    %1431 = arith.addf %1426, %1430 : vector<18x18xf32>
    %c61_254 = arith.constant 61 : index
    %1432 = memref.load %arg3[%c61_254] : memref<72xf32, #tpu.memory_space<smem>>
    %1433 = vector.extract_strided_slice %3 {offsets = [2, 1], sizes = [18, 18], strides = [1, 1]} : vector<20x20xf32> to vector<18x18xf32>
    %1434 = vector.broadcast %1432 : f32 to vector<18x18xf32>
    %1435 = arith.mulf %1434, %1433 : vector<18x18xf32>
    %1436 = arith.addf %1431, %1435 : vector<18x18xf32>
    %c62_255 = arith.constant 62 : index
    %1437 = memref.load %arg3[%c62_255] : memref<72xf32, #tpu.memory_space<smem>>
    %1438 = vector.extract_strided_slice %3 {offsets = [2, 2], sizes = [18, 18], strides = [1, 1]} : vector<20x20xf32> to vector<18x18xf32>
    %1439 = vector.broadcast %1437 : f32 to vector<18x18xf32>
    %1440 = arith.mulf %1439, %1438 : vector<18x18xf32>
    %1441 = arith.addf %1436, %1440 : vector<18x18xf32>
    %c6_256 = arith.constant 6 : index
    %1442 = memref.load %arg4[%c6_256] : memref<8xf32, #tpu.memory_space<smem>>
    %1443 = vector.broadcast %1442 : f32 to vector<18x18xf32>
    %1444 = arith.addf %1441, %1443 : vector<18x18xf32>
    %cst_257 = arith.constant 0.000000e+00 : f32
    %1445 = vector.broadcast %cst_257 : f32 to vector<18x18xf32>
    %1446 = arith.maximumf %1444, %1445 : vector<18x18xf32>
    %cst_258 = arith.constant 0.000000e+00 : f32
    %1447 = vector.broadcast %cst_258 : f32 to vector<18x18xf32>
    %1448 = arith.select %16, %1446, %1447 : vector<18x18xi1>, vector<18x18xf32>
    %c54_259 = arith.constant 54 : index
    %1449 = memref.load %arg5[%c54_259] : memref<72xf32, #tpu.memory_space<smem>>
    %1450 = vector.extract_strided_slice %1448 {offsets = [0, 0], sizes = [16, 16], strides = [1, 1]} : vector<18x18xf32> to vector<16x16xf32>
    %1451 = vector.broadcast %1449 : f32 to vector<16x16xf32>
    %1452 = arith.mulf %1451, %1450 : vector<16x16xf32>
    %1453 = arith.addf %1395, %1452 : vector<16x16xf32>
    %c55_260 = arith.constant 55 : index
    %1454 = memref.load %arg5[%c55_260] : memref<72xf32, #tpu.memory_space<smem>>
    %1455 = vector.extract_strided_slice %1448 {offsets = [0, 1], sizes = [16, 16], strides = [1, 1]} : vector<18x18xf32> to vector<16x16xf32>
    %1456 = vector.broadcast %1454 : f32 to vector<16x16xf32>
    %1457 = arith.mulf %1456, %1455 : vector<16x16xf32>
    %1458 = arith.addf %1453, %1457 : vector<16x16xf32>
    %c56_261 = arith.constant 56 : index
    %1459 = memref.load %arg5[%c56_261] : memref<72xf32, #tpu.memory_space<smem>>
    %1460 = vector.extract_strided_slice %1448 {offsets = [0, 2], sizes = [16, 16], strides = [1, 1]} : vector<18x18xf32> to vector<16x16xf32>
    %1461 = vector.broadcast %1459 : f32 to vector<16x16xf32>
    %1462 = arith.mulf %1461, %1460 : vector<16x16xf32>
    %1463 = arith.addf %1458, %1462 : vector<16x16xf32>
    %c57_262 = arith.constant 57 : index
    %1464 = memref.load %arg5[%c57_262] : memref<72xf32, #tpu.memory_space<smem>>
    %1465 = vector.extract_strided_slice %1448 {offsets = [1, 0], sizes = [16, 16], strides = [1, 1]} : vector<18x18xf32> to vector<16x16xf32>
    %1466 = vector.broadcast %1464 : f32 to vector<16x16xf32>
    %1467 = arith.mulf %1466, %1465 : vector<16x16xf32>
    %1468 = arith.addf %1463, %1467 : vector<16x16xf32>
    %c58_263 = arith.constant 58 : index
    %1469 = memref.load %arg5[%c58_263] : memref<72xf32, #tpu.memory_space<smem>>
    %1470 = vector.extract_strided_slice %1448 {offsets = [1, 1], sizes = [16, 16], strides = [1, 1]} : vector<18x18xf32> to vector<16x16xf32>
    %1471 = vector.broadcast %1469 : f32 to vector<16x16xf32>
    %1472 = arith.mulf %1471, %1470 : vector<16x16xf32>
    %1473 = arith.addf %1468, %1472 : vector<16x16xf32>
    %c59_264 = arith.constant 59 : index
    %1474 = memref.load %arg5[%c59_264] : memref<72xf32, #tpu.memory_space<smem>>
    %1475 = vector.extract_strided_slice %1448 {offsets = [1, 2], sizes = [16, 16], strides = [1, 1]} : vector<18x18xf32> to vector<16x16xf32>
    %1476 = vector.broadcast %1474 : f32 to vector<16x16xf32>
    %1477 = arith.mulf %1476, %1475 : vector<16x16xf32>
    %1478 = arith.addf %1473, %1477 : vector<16x16xf32>
    %c60_265 = arith.constant 60 : index
    %1479 = memref.load %arg5[%c60_265] : memref<72xf32, #tpu.memory_space<smem>>
    %1480 = vector.extract_strided_slice %1448 {offsets = [2, 0], sizes = [16, 16], strides = [1, 1]} : vector<18x18xf32> to vector<16x16xf32>
    %1481 = vector.broadcast %1479 : f32 to vector<16x16xf32>
    %1482 = arith.mulf %1481, %1480 : vector<16x16xf32>
    %1483 = arith.addf %1478, %1482 : vector<16x16xf32>
    %c61_266 = arith.constant 61 : index
    %1484 = memref.load %arg5[%c61_266] : memref<72xf32, #tpu.memory_space<smem>>
    %1485 = vector.extract_strided_slice %1448 {offsets = [2, 1], sizes = [16, 16], strides = [1, 1]} : vector<18x18xf32> to vector<16x16xf32>
    %1486 = vector.broadcast %1484 : f32 to vector<16x16xf32>
    %1487 = arith.mulf %1486, %1485 : vector<16x16xf32>
    %1488 = arith.addf %1483, %1487 : vector<16x16xf32>
    %c62_267 = arith.constant 62 : index
    %1489 = memref.load %arg5[%c62_267] : memref<72xf32, #tpu.memory_space<smem>>
    %1490 = vector.extract_strided_slice %1448 {offsets = [2, 2], sizes = [16, 16], strides = [1, 1]} : vector<18x18xf32> to vector<16x16xf32>
    %1491 = vector.broadcast %1489 : f32 to vector<16x16xf32>
    %1492 = arith.mulf %1491, %1490 : vector<16x16xf32>
    %1493 = arith.addf %1488, %1492 : vector<16x16xf32>
    %cst_268 = arith.constant 0.000000e+00 : f32
    %1494 = vector.broadcast %cst_268 : f32 to vector<18x18xf32>
    %c63_269 = arith.constant 63 : index
    %1495 = memref.load %arg3[%c63_269] : memref<72xf32, #tpu.memory_space<smem>>
    %1496 = vector.extract_strided_slice %3 {offsets = [0, 0], sizes = [18, 18], strides = [1, 1]} : vector<20x20xf32> to vector<18x18xf32>
    %1497 = vector.broadcast %1495 : f32 to vector<18x18xf32>
    %1498 = arith.mulf %1497, %1496 : vector<18x18xf32>
    %1499 = arith.addf %1494, %1498 : vector<18x18xf32>
    %c64_270 = arith.constant 64 : index
    %1500 = memref.load %arg3[%c64_270] : memref<72xf32, #tpu.memory_space<smem>>
    %1501 = vector.extract_strided_slice %3 {offsets = [0, 1], sizes = [18, 18], strides = [1, 1]} : vector<20x20xf32> to vector<18x18xf32>
    %1502 = vector.broadcast %1500 : f32 to vector<18x18xf32>
    %1503 = arith.mulf %1502, %1501 : vector<18x18xf32>
    %1504 = arith.addf %1499, %1503 : vector<18x18xf32>
    %c65_271 = arith.constant 65 : index
    %1505 = memref.load %arg3[%c65_271] : memref<72xf32, #tpu.memory_space<smem>>
    %1506 = vector.extract_strided_slice %3 {offsets = [0, 2], sizes = [18, 18], strides = [1, 1]} : vector<20x20xf32> to vector<18x18xf32>
    %1507 = vector.broadcast %1505 : f32 to vector<18x18xf32>
    %1508 = arith.mulf %1507, %1506 : vector<18x18xf32>
    %1509 = arith.addf %1504, %1508 : vector<18x18xf32>
    %c66_272 = arith.constant 66 : index
    %1510 = memref.load %arg3[%c66_272] : memref<72xf32, #tpu.memory_space<smem>>
    %1511 = vector.extract_strided_slice %3 {offsets = [1, 0], sizes = [18, 18], strides = [1, 1]} : vector<20x20xf32> to vector<18x18xf32>
    %1512 = vector.broadcast %1510 : f32 to vector<18x18xf32>
    %1513 = arith.mulf %1512, %1511 : vector<18x18xf32>
    %1514 = arith.addf %1509, %1513 : vector<18x18xf32>
    %c67_273 = arith.constant 67 : index
    %1515 = memref.load %arg3[%c67_273] : memref<72xf32, #tpu.memory_space<smem>>
    %1516 = vector.extract_strided_slice %3 {offsets = [1, 1], sizes = [18, 18], strides = [1, 1]} : vector<20x20xf32> to vector<18x18xf32>
    %1517 = vector.broadcast %1515 : f32 to vector<18x18xf32>
    %1518 = arith.mulf %1517, %1516 : vector<18x18xf32>
    %1519 = arith.addf %1514, %1518 : vector<18x18xf32>
    %c68_274 = arith.constant 68 : index
    %1520 = memref.load %arg3[%c68_274] : memref<72xf32, #tpu.memory_space<smem>>
    %1521 = vector.extract_strided_slice %3 {offsets = [1, 2], sizes = [18, 18], strides = [1, 1]} : vector<20x20xf32> to vector<18x18xf32>
    %1522 = vector.broadcast %1520 : f32 to vector<18x18xf32>
    %1523 = arith.mulf %1522, %1521 : vector<18x18xf32>
    %1524 = arith.addf %1519, %1523 : vector<18x18xf32>
    %c69_275 = arith.constant 69 : index
    %1525 = memref.load %arg3[%c69_275] : memref<72xf32, #tpu.memory_space<smem>>
    %1526 = vector.extract_strided_slice %3 {offsets = [2, 0], sizes = [18, 18], strides = [1, 1]} : vector<20x20xf32> to vector<18x18xf32>
    %1527 = vector.broadcast %1525 : f32 to vector<18x18xf32>
    %1528 = arith.mulf %1527, %1526 : vector<18x18xf32>
    %1529 = arith.addf %1524, %1528 : vector<18x18xf32>
    %c70_276 = arith.constant 70 : index
    %1530 = memref.load %arg3[%c70_276] : memref<72xf32, #tpu.memory_space<smem>>
    %1531 = vector.extract_strided_slice %3 {offsets = [2, 1], sizes = [18, 18], strides = [1, 1]} : vector<20x20xf32> to vector<18x18xf32>
    %1532 = vector.broadcast %1530 : f32 to vector<18x18xf32>
    %1533 = arith.mulf %1532, %1531 : vector<18x18xf32>
    %1534 = arith.addf %1529, %1533 : vector<18x18xf32>
    %c71_277 = arith.constant 71 : index
    %1535 = memref.load %arg3[%c71_277] : memref<72xf32, #tpu.memory_space<smem>>
    %1536 = vector.extract_strided_slice %3 {offsets = [2, 2], sizes = [18, 18], strides = [1, 1]} : vector<20x20xf32> to vector<18x18xf32>
    %1537 = vector.broadcast %1535 : f32 to vector<18x18xf32>
    %1538 = arith.mulf %1537, %1536 : vector<18x18xf32>
    %1539 = arith.addf %1534, %1538 : vector<18x18xf32>
    %c7_278 = arith.constant 7 : index
    %1540 = memref.load %arg4[%c7_278] : memref<8xf32, #tpu.memory_space<smem>>
    %1541 = vector.broadcast %1540 : f32 to vector<18x18xf32>
    %1542 = arith.addf %1539, %1541 : vector<18x18xf32>
    %cst_279 = arith.constant 0.000000e+00 : f32
    %1543 = vector.broadcast %cst_279 : f32 to vector<18x18xf32>
    %1544 = arith.maximumf %1542, %1543 : vector<18x18xf32>
    %cst_280 = arith.constant 0.000000e+00 : f32
    %1545 = vector.broadcast %cst_280 : f32 to vector<18x18xf32>
    %1546 = arith.select %16, %1544, %1545 : vector<18x18xi1>, vector<18x18xf32>
    %c63_281 = arith.constant 63 : index
    %1547 = memref.load %arg5[%c63_281] : memref<72xf32, #tpu.memory_space<smem>>
    %1548 = vector.extract_strided_slice %1546 {offsets = [0, 0], sizes = [16, 16], strides = [1, 1]} : vector<18x18xf32> to vector<16x16xf32>
    %1549 = vector.broadcast %1547 : f32 to vector<16x16xf32>
    %1550 = arith.mulf %1549, %1548 : vector<16x16xf32>
    %1551 = arith.addf %1493, %1550 : vector<16x16xf32>
    %c64_282 = arith.constant 64 : index
    %1552 = memref.load %arg5[%c64_282] : memref<72xf32, #tpu.memory_space<smem>>
    %1553 = vector.extract_strided_slice %1546 {offsets = [0, 1], sizes = [16, 16], strides = [1, 1]} : vector<18x18xf32> to vector<16x16xf32>
    %1554 = vector.broadcast %1552 : f32 to vector<16x16xf32>
    %1555 = arith.mulf %1554, %1553 : vector<16x16xf32>
    %1556 = arith.addf %1551, %1555 : vector<16x16xf32>
    %c65_283 = arith.constant 65 : index
    %1557 = memref.load %arg5[%c65_283] : memref<72xf32, #tpu.memory_space<smem>>
    %1558 = vector.extract_strided_slice %1546 {offsets = [0, 2], sizes = [16, 16], strides = [1, 1]} : vector<18x18xf32> to vector<16x16xf32>
    %1559 = vector.broadcast %1557 : f32 to vector<16x16xf32>
    %1560 = arith.mulf %1559, %1558 : vector<16x16xf32>
    %1561 = arith.addf %1556, %1560 : vector<16x16xf32>
    %c66_284 = arith.constant 66 : index
    %1562 = memref.load %arg5[%c66_284] : memref<72xf32, #tpu.memory_space<smem>>
    %1563 = vector.extract_strided_slice %1546 {offsets = [1, 0], sizes = [16, 16], strides = [1, 1]} : vector<18x18xf32> to vector<16x16xf32>
    %1564 = vector.broadcast %1562 : f32 to vector<16x16xf32>
    %1565 = arith.mulf %1564, %1563 : vector<16x16xf32>
    %1566 = arith.addf %1561, %1565 : vector<16x16xf32>
    %c67_285 = arith.constant 67 : index
    %1567 = memref.load %arg5[%c67_285] : memref<72xf32, #tpu.memory_space<smem>>
    %1568 = vector.extract_strided_slice %1546 {offsets = [1, 1], sizes = [16, 16], strides = [1, 1]} : vector<18x18xf32> to vector<16x16xf32>
    %1569 = vector.broadcast %1567 : f32 to vector<16x16xf32>
    %1570 = arith.mulf %1569, %1568 : vector<16x16xf32>
    %1571 = arith.addf %1566, %1570 : vector<16x16xf32>
    %c68_286 = arith.constant 68 : index
    %1572 = memref.load %arg5[%c68_286] : memref<72xf32, #tpu.memory_space<smem>>
    %1573 = vector.extract_strided_slice %1546 {offsets = [1, 2], sizes = [16, 16], strides = [1, 1]} : vector<18x18xf32> to vector<16x16xf32>
    %1574 = vector.broadcast %1572 : f32 to vector<16x16xf32>
    %1575 = arith.mulf %1574, %1573 : vector<16x16xf32>
    %1576 = arith.addf %1571, %1575 : vector<16x16xf32>
    %c69_287 = arith.constant 69 : index
    %1577 = memref.load %arg5[%c69_287] : memref<72xf32, #tpu.memory_space<smem>>
    %1578 = vector.extract_strided_slice %1546 {offsets = [2, 0], sizes = [16, 16], strides = [1, 1]} : vector<18x18xf32> to vector<16x16xf32>
    %1579 = vector.broadcast %1577 : f32 to vector<16x16xf32>
    %1580 = arith.mulf %1579, %1578 : vector<16x16xf32>
    %1581 = arith.addf %1576, %1580 : vector<16x16xf32>
    %c70_288 = arith.constant 70 : index
    %1582 = memref.load %arg5[%c70_288] : memref<72xf32, #tpu.memory_space<smem>>
    %1583 = vector.extract_strided_slice %1546 {offsets = [2, 1], sizes = [16, 16], strides = [1, 1]} : vector<18x18xf32> to vector<16x16xf32>
    %1584 = vector.broadcast %1582 : f32 to vector<16x16xf32>
    %1585 = arith.mulf %1584, %1583 : vector<16x16xf32>
    %1586 = arith.addf %1581, %1585 : vector<16x16xf32>
    %c71_289 = arith.constant 71 : index
    %1587 = memref.load %arg5[%c71_289] : memref<72xf32, #tpu.memory_space<smem>>
    %1588 = vector.extract_strided_slice %1546 {offsets = [2, 2], sizes = [16, 16], strides = [1, 1]} : vector<18x18xf32> to vector<16x16xf32>
    %1589 = vector.broadcast %1587 : f32 to vector<16x16xf32>
    %1590 = arith.mulf %1589, %1588 : vector<16x16xf32>
    %1591 = arith.addf %1586, %1590 : vector<16x16xf32>
    %c0_290 = arith.constant 0 : index
    %1592 = memref.load %arg6[%c0_290] : memref<1xf32, #tpu.memory_space<smem>>
    %1593 = vector.broadcast %1592 : f32 to vector<16x16xf32>
    %1594 = arith.addf %1591, %1593 : vector<16x16xf32>
    %1595 = vector.extract_strided_slice %3 {offsets = [2, 2], sizes = [16, 16], strides = [1, 1]} : vector<20x20xf32> to vector<16x16xf32>
    %1596 = arith.addf %1594, %1595 : vector<16x16xf32>
    %1597 = vector.extract_strided_slice %1 {offsets = [2, 2], sizes = [16, 16], strides = [1, 1]} : vector<20x20xf32> to vector<16x16xf32>
    %1598 = vector.extract_strided_slice %3 {offsets = [2, 2], sizes = [16, 16], strides = [1, 1]} : vector<20x20xf32> to vector<16x16xf32>
    %1599 = arith.mulf %806, %806 : vector<16x16xf32>
    %1600 = arith.mulf %1596, %1596 : vector<16x16xf32>
    %1601 = arith.addf %1599, %1600 : vector<16x16xf32>
    %cst_291 = arith.constant 1.000000e+00 : f32
    %1602 = vector.broadcast %cst_291 : f32 to vector<16x16xf32>
    %1603 = arith.divf %1602, %1601 : vector<16x16xf32>
    %1604 = arith.mulf %1599, %1603 : vector<16x16xf32>
    %1605 = arith.mulf %1600, %1603 : vector<16x16xf32>
    %1606 = arith.mulf %1604, %1597 : vector<16x16xf32>
    %1607 = arith.mulf %1605, %1598 : vector<16x16xf32>
    %1608 = arith.addf %1606, %1607 : vector<16x16xf32>
    %c0_292 = arith.constant 0 : index
    %c0_293 = arith.constant 0 : index
    %c0_294 = arith.constant 0 : index
    %1609 = vector.load %arg9[%c0_292, %c0_293, %c0_294] : memref<1x16x16xf32, #tpu.memory_space<vmem>>, vector<1x16x16xf32>
    %1610 = vector.shape_cast %1609 : vector<1x16x16xf32> to vector<16x16xf32>
    %1611 = vector.shape_cast %1608 : vector<16x16xf32> to vector<1x16x16xf32>
    tpu.vector_store %arg9[%c0_292, %c0_293, %c0_294], %1611 {strides = array<i32>} : memref<1x16x16xf32, #tpu.memory_space<vmem>>, vector<1x16x16xf32>,
    %c0_295 = arith.constant 0 : index
    %c0_296 = arith.constant 0 : index
    %1612 = vector.load %arg7[%c0_295, %c0_296] : memref<16x16xf32, #tpu.memory_space<vmem>>, vector<16x16xf32>
    %c0_297 = arith.constant 0 : index
    %c0_298 = arith.constant 0 : index
    %1613 = vector.load %arg8[%c0_297, %c0_298] : memref<16x16xf32, #tpu.memory_space<vmem>>, vector<16x16xf32>
    %cst_299 = arith.constant dense<0.000000e+00> : vector<16x16xf32>
    %1614 = tpu.matmul %1612, %1608, %cst_299 {dimension_numbers = #tpu.dot_dimension_numbers<[1], [0], [0], [1], [0, 0, 1, 1], [], []>} : vector<16x16xf32>, vector<16x16xf32>, vector<16x16xf32> -> vector<16x16xf32>
    %cst_300 = arith.constant dense<0.000000e+00> : vector<16x16xf32>
    %1615 = tpu.matmul %1614, %1613, %cst_300 {dimension_numbers = #tpu.dot_dimension_numbers<[1], [0], [0], [1], [0, 0, 1, 1], [], []>} : vector<16x16xf32>, vector<16x16xf32>, vector<16x16xf32> -> vector<16x16xf32>
    %1616 = arith.mulf %1615, %1615 : vector<16x16xf32>
    %1617 = arith.mulf %1608, %1608 : vector<16x16xf32>
    %cst_301 = arith.constant dense<0.000000e+00> : vector<16x16xf32>
    %1618 = tpu.matmul %1612, %1617, %cst_301 {dimension_numbers = #tpu.dot_dimension_numbers<[1], [0], [0], [1], [0, 0, 1, 1], [], []>} : vector<16x16xf32>, vector<16x16xf32>, vector<16x16xf32> -> vector<16x16xf32>
    %cst_302 = arith.constant dense<0.000000e+00> : vector<16x16xf32>
    %1619 = tpu.matmul %1618, %1613, %cst_302 {dimension_numbers = #tpu.dot_dimension_numbers<[1], [0], [0], [1], [0, 0, 1, 1], [], []>} : vector<16x16xf32>, vector<16x16xf32>, vector<16x16xf32> -> vector<16x16xf32>
    %1620 = arith.subf %1619, %1616 : vector<16x16xf32>
    %cst_303 = arith.constant dense<0.000000e+00> : vector<16x16xf32>
    %1621 = tpu.matmul %1612, %1598, %cst_303 {dimension_numbers = #tpu.dot_dimension_numbers<[1], [0], [0], [1], [0, 0, 1, 1], [], []>} : vector<16x16xf32>, vector<16x16xf32>, vector<16x16xf32> -> vector<16x16xf32>
    %cst_304 = arith.constant dense<0.000000e+00> : vector<16x16xf32>
    %1622 = tpu.matmul %1621, %1613, %cst_304 {dimension_numbers = #tpu.dot_dimension_numbers<[1], [0], [0], [1], [0, 0, 1, 1], [], []>} : vector<16x16xf32>, vector<16x16xf32>, vector<16x16xf32> -> vector<16x16xf32>
    %1623 = arith.mulf %1622, %1622 : vector<16x16xf32>
    %1624 = arith.mulf %1615, %1622 : vector<16x16xf32>
    %1625 = arith.mulf %1598, %1598 : vector<16x16xf32>
    %cst_305 = arith.constant dense<0.000000e+00> : vector<16x16xf32>
    %1626 = tpu.matmul %1612, %1625, %cst_305 {dimension_numbers = #tpu.dot_dimension_numbers<[1], [0], [0], [1], [0, 0, 1, 1], [], []>} : vector<16x16xf32>, vector<16x16xf32>, vector<16x16xf32> -> vector<16x16xf32>
    %cst_306 = arith.constant dense<0.000000e+00> : vector<16x16xf32>
    %1627 = tpu.matmul %1626, %1613, %cst_306 {dimension_numbers = #tpu.dot_dimension_numbers<[1], [0], [0], [1], [0, 0, 1, 1], [], []>} : vector<16x16xf32>, vector<16x16xf32>, vector<16x16xf32> -> vector<16x16xf32>
    %1628 = arith.subf %1627, %1623 : vector<16x16xf32>
    %1629 = arith.mulf %1608, %1598 : vector<16x16xf32>
    %cst_307 = arith.constant dense<0.000000e+00> : vector<16x16xf32>
    %1630 = tpu.matmul %1612, %1629, %cst_307 {dimension_numbers = #tpu.dot_dimension_numbers<[1], [0], [0], [1], [0, 0, 1, 1], [], []>} : vector<16x16xf32>, vector<16x16xf32>, vector<16x16xf32> -> vector<16x16xf32>
    %cst_308 = arith.constant dense<0.000000e+00> : vector<16x16xf32>
    %1631 = tpu.matmul %1630, %1613, %cst_308 {dimension_numbers = #tpu.dot_dimension_numbers<[1], [0], [0], [1], [0, 0, 1, 1], [], []>} : vector<16x16xf32>, vector<16x16xf32>, vector<16x16xf32> -> vector<16x16xf32>
    %1632 = arith.subf %1631, %1624 : vector<16x16xf32>
    %cst_309 = arith.constant 2.000000e+00 : f32
    %1633 = vector.broadcast %cst_309 : f32 to vector<16x16xf32>
    %1634 = arith.mulf %1633, %1624 : vector<16x16xf32>
    %cst_310 = arith.constant 9.99999974E-5 : f32
    %1635 = vector.broadcast %cst_310 : f32 to vector<16x16xf32>
    %1636 = arith.addf %1634, %1635 : vector<16x16xf32>
    %cst_311 = arith.constant 2.000000e+00 : f32
    %1637 = vector.broadcast %cst_311 : f32 to vector<16x16xf32>
    %1638 = arith.mulf %1637, %1632 : vector<16x16xf32>
    %cst_312 = arith.constant 8.99999984E-4 : f32
    %1639 = vector.broadcast %cst_312 : f32 to vector<16x16xf32>
    %1640 = arith.addf %1638, %1639 : vector<16x16xf32>
    %1641 = arith.mulf %1636, %1640 : vector<16x16xf32>
    %1642 = arith.addf %1616, %1623 : vector<16x16xf32>
    %cst_313 = arith.constant 9.99999974E-5 : f32
    %1643 = vector.broadcast %cst_313 : f32 to vector<16x16xf32>
    %1644 = arith.addf %1642, %1643 : vector<16x16xf32>
    %1645 = arith.addf %1620, %1628 : vector<16x16xf32>
    %cst_314 = arith.constant 8.99999984E-4 : f32
    %1646 = vector.broadcast %cst_314 : f32 to vector<16x16xf32>
    %1647 = arith.addf %1645, %1646 : vector<16x16xf32>
    %1648 = arith.mulf %1644, %1647 : vector<16x16xf32>
    %1649 = arith.divf %1641, %1648 : vector<16x16xf32>
    %1650 = vector.shape_cast %1649 : vector<16x16xf32> to vector<1x16x16xf32>
    %cst_315 = arith.constant dense<0.000000e+00> : vector<1xf32>
    %1651 = vector.multi_reduction <add>, %1650, %cst_315 [1, 2] : vector<1x16x16xf32> to vector<1xf32>
    %1652 = vector.shape_cast %1651 : vector<1xf32> to vector<1x1x1xf32>
    %1653 = vector.extract %1652[0, 0, 0] : f32 from vector<1x1x1xf32>
    %cst_316 = arith.constant 2.560000e+02 : f32
    %1654 = arith.divf %1653, %cst_316 : f32
    %cst_317 = arith.constant dense<0.000000e+00> : vector<16x16xf32>
    %1655 = tpu.matmul %1612, %1597, %cst_317 {dimension_numbers = #tpu.dot_dimension_numbers<[1], [0], [0], [1], [0, 0, 1, 1], [], []>} : vector<16x16xf32>, vector<16x16xf32>, vector<16x16xf32> -> vector<16x16xf32>
    %cst_318 = arith.constant dense<0.000000e+00> : vector<16x16xf32>
    %1656 = tpu.matmul %1655, %1613, %cst_318 {dimension_numbers = #tpu.dot_dimension_numbers<[1], [0], [0], [1], [0, 0, 1, 1], [], []>} : vector<16x16xf32>, vector<16x16xf32>, vector<16x16xf32> -> vector<16x16xf32>
    %1657 = arith.mulf %1656, %1656 : vector<16x16xf32>
    %1658 = arith.mulf %1615, %1656 : vector<16x16xf32>
    %1659 = arith.mulf %1597, %1597 : vector<16x16xf32>
    %cst_319 = arith.constant dense<0.000000e+00> : vector<16x16xf32>
    %1660 = tpu.matmul %1612, %1659, %cst_319 {dimension_numbers = #tpu.dot_dimension_numbers<[1], [0], [0], [1], [0, 0, 1, 1], [], []>} : vector<16x16xf32>, vector<16x16xf32>, vector<16x16xf32> -> vector<16x16xf32>
    %cst_320 = arith.constant dense<0.000000e+00> : vector<16x16xf32>
    %1661 = tpu.matmul %1660, %1613, %cst_320 {dimension_numbers = #tpu.dot_dimension_numbers<[1], [0], [0], [1], [0, 0, 1, 1], [], []>} : vector<16x16xf32>, vector<16x16xf32>, vector<16x16xf32> -> vector<16x16xf32>
    %1662 = arith.subf %1661, %1657 : vector<16x16xf32>
    %1663 = arith.mulf %1608, %1597 : vector<16x16xf32>
    %cst_321 = arith.constant dense<0.000000e+00> : vector<16x16xf32>
    %1664 = tpu.matmul %1612, %1663, %cst_321 {dimension_numbers = #tpu.dot_dimension_numbers<[1], [0], [0], [1], [0, 0, 1, 1], [], []>} : vector<16x16xf32>, vector<16x16xf32>, vector<16x16xf32> -> vector<16x16xf32>
    %cst_322 = arith.constant dense<0.000000e+00> : vector<16x16xf32>
    %1665 = tpu.matmul %1664, %1613, %cst_322 {dimension_numbers = #tpu.dot_dimension_numbers<[1], [0], [0], [1], [0, 0, 1, 1], [], []>} : vector<16x16xf32>, vector<16x16xf32>, vector<16x16xf32> -> vector<16x16xf32>
    %1666 = arith.subf %1665, %1658 : vector<16x16xf32>
    %cst_323 = arith.constant 2.000000e+00 : f32
    %1667 = vector.broadcast %cst_323 : f32 to vector<16x16xf32>
    %1668 = arith.mulf %1667, %1658 : vector<16x16xf32>
    %cst_324 = arith.constant 9.99999974E-5 : f32
    %1669 = vector.broadcast %cst_324 : f32 to vector<16x16xf32>
    %1670 = arith.addf %1668, %1669 : vector<16x16xf32>
    %cst_325 = arith.constant 2.000000e+00 : f32
    %1671 = vector.broadcast %cst_325 : f32 to vector<16x16xf32>
    %1672 = arith.mulf %1671, %1666 : vector<16x16xf32>
    %cst_326 = arith.constant 8.99999984E-4 : f32
    %1673 = vector.broadcast %cst_326 : f32 to vector<16x16xf32>
    %1674 = arith.addf %1672, %1673 : vector<16x16xf32>
    %1675 = arith.mulf %1670, %1674 : vector<16x16xf32>
    %1676 = arith.addf %1616, %1657 : vector<16x16xf32>
    %cst_327 = arith.constant 9.99999974E-5 : f32
    %1677 = vector.broadcast %cst_327 : f32 to vector<16x16xf32>
    %1678 = arith.addf %1676, %1677 : vector<16x16xf32>
    %1679 = arith.addf %1620, %1662 : vector<16x16xf32>
    %cst_328 = arith.constant 8.99999984E-4 : f32
    %1680 = vector.broadcast %cst_328 : f32 to vector<16x16xf32>
    %1681 = arith.addf %1679, %1680 : vector<16x16xf32>
    %1682 = arith.mulf %1678, %1681 : vector<16x16xf32>
    %1683 = arith.divf %1675, %1682 : vector<16x16xf32>
    %1684 = vector.shape_cast %1683 : vector<16x16xf32> to vector<1x16x16xf32>
    %cst_329 = arith.constant dense<0.000000e+00> : vector<1xf32>
    %1685 = vector.multi_reduction <add>, %1684, %cst_329 [1, 2] : vector<1x16x16xf32> to vector<1xf32>
    %1686 = vector.shape_cast %1685 : vector<1xf32> to vector<1x1x1xf32>
    %1687 = vector.extract %1686[0, 0, 0] : f32 from vector<1x1x1xf32>
    %cst_330 = arith.constant 2.560000e+02 : f32
    %1688 = arith.divf %1687, %cst_330 : f32
    %1689 = arith.addf %1654, %1688 : f32
    %cst_331 = arith.constant 5.000000e-01 : f32
    %1690 = arith.mulf %1689, %cst_331 : f32
    %c0_i32 = arith.constant 0 : i32
    %1691 = arith.cmpi eq, %arg0, %c0_i32 : i32
    %1692 = arith.extui %1691 : i1 to i32
    %c0_i32_332 = arith.constant 0 : i32
    %1693 = arith.cmpi ne, %1692, %c0_i32_332 : i32
    scf.if %1693 {
      %cst_338 = arith.constant 0.000000e+00 : f32
      %c0_339 = arith.constant 0 : index
      %1699 = memref.load %arg11[%c0_339] : memref<1xf32, #tpu.memory_space<smem>>
      memref.store %cst_338, %arg11[%c0_339] : memref<1xf32, #tpu.memory_space<smem>>
    } else {
    }
    %c0_333 = arith.constant 0 : index
    %1694 = memref.load %arg11[%c0_333] : memref<1xf32, #tpu.memory_space<smem>>
    %1695 = arith.addf %1694, %1690 : f32
    %c0_334 = arith.constant 0 : index
    %1696 = memref.load %arg11[%c0_334] : memref<1xf32, #tpu.memory_space<smem>>
    memref.store %1695, %arg11[%c0_334] : memref<1xf32, #tpu.memory_space<smem>>
    %c0_335 = arith.constant 0 : index
    %1697 = memref.load %arg11[%c0_335] : memref<1xf32, #tpu.memory_space<smem>>
    %c0_336 = arith.constant 0 : index
    %c0_337 = arith.constant 0 : index
    %1698 = memref.load %arg10[%c0_336, %c0_337] : memref<1x1xf32, #tpu.memory_space<smem>>
    memref.store %1697, %arg10[%c0_336, %c0_337] : memref<1x1xf32, #tpu.memory_space<smem>>
    return
  }
  func.func @transform_0(%arg0: i32) -> (i32, i32, i32) {
    %c0_i32 = arith.constant 0 : i32
    %c0_i32_0 = arith.constant 0 : i32
    %c0_i32_1 = arith.constant 0 : i32
    return %arg0, %c0_i32, %c0_i32_0 : i32, i32, i32
  }
  func.func @transform_1(%arg0: i32) -> (i32, i32, i32) {
    %c0_i32 = arith.constant 0 : i32
    %c0_i32_0 = arith.constant 0 : i32
    %c0_i32_1 = arith.constant 0 : i32
    return %arg0, %c0_i32, %c0_i32_0 : i32, i32, i32
  }
  func.func @transform_2(%arg0: i32) -> i32 {
    %c0_i32 = arith.constant 0 : i32
    %c0_i32_0 = arith.constant 0 : i32
    return %c0_i32 : i32
  }
  func.func @transform_3(%arg0: i32) -> i32 {
    %c0_i32 = arith.constant 0 : i32
    %c0_i32_0 = arith.constant 0 : i32
    return %c0_i32 : i32
  }
  func.func @transform_4(%arg0: i32) -> i32 {
    %c0_i32 = arith.constant 0 : i32
    %c0_i32_0 = arith.constant 0 : i32
    return %c0_i32 : i32
  }
  func.func @transform_5(%arg0: i32) -> i32 {
    %c0_i32 = arith.constant 0 : i32
    %c0_i32_0 = arith.constant 0 : i32
    return %c0_i32 : i32
  }
  func.func @transform_6(%arg0: i32) -> (i32, i32) {
    %c0_i32 = arith.constant 0 : i32
    %c0_i32_0 = arith.constant 0 : i32
    %c0_i32_1 = arith.constant 0 : i32
    return %c0_i32, %c0_i32_0 : i32, i32
  }
  func.func @transform_7(%arg0: i32) -> (i32, i32) {
    %c0_i32 = arith.constant 0 : i32
    %c0_i32_0 = arith.constant 0 : i32
    %c0_i32_1 = arith.constant 0 : i32
    return %c0_i32, %c0_i32_0 : i32, i32
  }
  func.func @transform_8(%arg0: i32) -> (i32, i32, i32) {
    %c0_i32 = arith.constant 0 : i32
    %c0_i32_0 = arith.constant 0 : i32
    %c0_i32_1 = arith.constant 0 : i32
    return %arg0, %c0_i32, %c0_i32_0 : i32, i32, i32
  }
  func.func @transform_9(%arg0: i32) -> (i32, i32) {
    %c0_i32 = arith.constant 0 : i32
    %c0_i32_0 = arith.constant 0 : i32
    %c0_i32_1 = arith.constant 0 : i32
    return %c0_i32, %c0_i32_0 : i32, i32
  }
}

</mosaic_0001>

<bundles_post_ra>
// kernel: model_forward.1
= control target key start
LH: loop header
LB: loop body
LE: loop exit
PB: predicated region body
PF: predicated region fallthrough
CT: control target
= control target key end

     0   :  { %s13065_s0 = inlined_call_operand.vmem [shape: f32[2,20,20], index: 0, kind: input, shape index: {}]   ;;  %s13066_s1 = inlined_call_operand.vmem [shape: f32[2,20,20], index: 1, kind: input, shape index: {}]   ;;  %s13067_s2 = inlined_call_operand.vmem [shape: f32[72], index: 2, kind: input, shape index: {}]   ;;  %s13068_s3 = inlined_call_operand.vmem [shape: f32[8], index: 3, kind: input, shape index: {}]   ;;  %s13069_s4 = inlined_call_operand.vmem [shape: f32[72], index: 4, kind: input, shape index: {}]   ;;  %s13070_s5 = inlined_call_operand.<no memory space> [shape: f32[1], index: 5, kind: input, shape index: {}]   ;;  %s13071_s6 = inlined_call_operand.vmem [shape: f32[16,16], index: 6, kind: input, shape index: {}]   ;;  %s13072_s7 = inlined_call_operand.vmem [shape: f32[16,16], index: 7, kind: input, shape index: {}]   ;;  %s13073_s8 = inlined_call_operand.hbm [shape: f32[2,16,16], index: 8, kind: output, shape index: {0}]   ;;  %s13074_s9 = inlined_call_operand.hbm [shape: f32[1,1], index: 9, kind: output, shape index: {1}]  }
   0x1   :  { %15 = sst [smem:[#allocation3]] %s13070_s5 }
   0x2   :  { %16 = vsyncpa [#allocation7], 0 }
   0x3   :  { %17 = vsyncpa [#allocation9], 0 }
   0x4   :  { %18 = vsyncpa [#allocation5], 0 }
   0x5   :  { %20 = vsyncpa [#allocation5 + $0x1], 0 }
   0x6   :  { %21 = vsyncpa [#allocation6], 0  ;;  %s8100_s11 = smov 0   ;;  %s8102_s12 = smov 0  }
   0x7   :  { %s8104_s13 = smov 0   ;;  %s8106_s14 = smov 0  }
   0x8 LB: > { %s8121_s5 = sadd.s32 4294967295, %s8035_s14   ;;  %s7313_s15 = sadd.s32 4294967294, %s8035_s14   ;;  %s8035_s14 = sphi %s8106_s14, %s13846_s14   ;;  %s8031_s13 = sphi %s8104_s13, %s13845_s13   ;;  %s8027_s12 = sphi %s8102_s12, %s13844_s12   ;;  %s8023_s11 = sphi %s8100_s11, %s13843_s11  }
   0x9   : > { %s8125_s16 = sadd.s32 1, %s8035_s14   ;;  %s212_s17 = sadd.s32 1, %s8031_s13 }
   0xa   : > { %s209_s18 = ssub.s32 %s8035_s14, %s8125_s16  ;;  %p222_p0 = scmp.ne.s32.totalorder %s8031_s13, %s8027_s12 }
   0xb   : > { %p210_p1 = scmp.eq.s32.totalorder %s209_s18, 0  ;;  %p13075_p2 = scmp.eq.s32.totalorder %s8121_s5, 1 }
   0xc   : > { %p228_p3 = scmp.ne.s32.totalorder %s8027_s12, %s8023_s11  ;;  %p229_p4 = scmp.eq.s32.totalorder %s7313_s15, 1 }
   0xd   : > { %s8136_s19 = scalar_select %p210_p1, %s8031_s13, %s212_s17  }
   0xe   : > { %p8140_p5 = por %p13075_p2, %p222_p0  ;;  %p8144_p6 = por %p229_p4, %p228_p3 }
   0xf   : > { %p7314_p7 = scmp.ge.s32.totalorder %s8035_s14, 1  ;;  %p257_p8 = scmp.lt.s32.totalorder %s8035_s14, 3 }
  0x10   : > { %s13269_s20 = scalar_select %p8140_p5, 1, 0 }
  0x11   : > { %s13270_s21 = scalar_select %p8144_p6, 1, 0 }
  0x12   : > { %p13076_p9 = scmp.eq.s32.totalorder %s8121_s5, 0  ;;  %p8151_p10 = pnand %p7314_p7, %p257_p8 }
  0x13   : > { %s281_s25 = sshll.u32 %s13068_s3, 4  ;;  %s270_s28 = sshll.u32 %s13067_s2, 4  ;;  %s282_s25 = int_to_ptr.vmem [resolvable:$true] %s281_s25  ;;  %s271_s28 = int_to_ptr.vmem [resolvable:$true] %s270_s28 }
  0x14   : > { %s13271_s22 = scalar_select %p8151_p10, 1, 0 }
  0x15   : > { %p7781_p11 = pneg %p8151_p10  ;;  %s292_s15 = sshll.u32 %s13069_s4, 4  ;;  %s8172_s15 = int_to_ptr.vmem [resolvable:$true] %s292_s15 }
  0x16   : > { %s7904_s17 = scalar_lea.vmem %s282_s25, 16  ;;  %p7912_p4 = scmp.lt.s32.totalorder %s282_s25, %s282_s25 }
  0x17   : > { %p8165_p12 = pnand %p13076_p9, %p7781_p11  ;;  %p7905_p13 = scmp.ne.s32.totalorder %s282_s25, %s7904_s17 }
  0x18   : > { %p7913_p7 = scmp.lt.s32.totalorder %s7904_s17, %s7904_s17 }
  0x19   : > { %p7906_p0 = pneg %p8165_p12 }
  0x1a   : > { %p7914_p8 = por %p7913_p7, %p7912_p4 }
  0x1b   : > { %p7907_p1 = pnand %p7906_p0, %p7905_p13 }
  0x1d   : > { %p7908_p3 = pneg %p7907_p1 }
  0x1f   : > { %p7915_p11 = pnand %p7914_p8, %p7908_p3 }
  0x21   : > { %7918 = shalt.err (!%p7915_p11)
}
  0x22   : > { %s8037_s18 = smov [#allocation8]   ;;  %s7919_s23 = scalar_lea.vmem %s271_s28, 16 }
  0x23   : > { %7787 = dma.vmem_to_smem (!%p8165_p12), %s282_s25, 16, %s8037_s18, [#allocation9]  }
  0x24   : > { %p7920_p2 = scmp.ne.s32.totalorder %s271_s28, %s7919_s23  ;;  %p7927_p5 = scmp.lt.s32.totalorder %s271_s28, %s271_s28 }
  0x25   : > { %p7928_p10 = scmp.lt.s32.totalorder %s7919_s23, %s7919_s23 }
  0x26   : > { %p7922_p9 = pnand %p7920_p2, %p7906_p0 }
  0x27   : > { %p7929_p13 = por %p7928_p10, %p7927_p5 }
  0x28   : > { %p7923_p6 = pneg %p7922_p9 }
  0x2a   : > { %p7930_p1 = pnand %p7929_p13, %p7923_p6 }
  0x2c   : > { %7933 = shalt.err (!%p7930_p1)
}
  0x2d   : > { %s8038_s24 = smov [#allocation4]   ;;  %s7934_s25 = scalar_lea.vmem %s8172_s15, 16 }
  0x2e   : > { %7784 = dma.vmem_to_smem (!%p8165_p12), %s271_s28, 16, %s8038_s24, [#allocation7]  }
  0x2f   : > { %p7935_p3 = scmp.ne.s32.totalorder %s8172_s15, %s7934_s25  ;;  %p7942_p9 = scmp.lt.s32.totalorder %s8172_s15, %s8172_s15 }
  0x30   : > { %p7943_p7 = scmp.lt.s32.totalorder %s7934_s25, %s7934_s25 }
  0x31   : > { %p7937_p4 = pnand %p7935_p3, %p7906_p0 }
  0x32   : > { %p7944_p5 = por %p7943_p7, %p7942_p9 }
  0x33   : > { %p7938_p2 = pneg %p7937_p4 }
  0x35   : > { %p7945_p6 = pnand %p7944_p5, %p7938_p2 }
  0x37   : > { %7948 = shalt.err (!%p7945_p6)
}
  0x38   : > { %s8039_s26 = smov [#allocation10]   ;;  %p13273_p10 = scmp.ne.s32.totalorder %s13271_s22, 0 }
  0x39   : > { %7790 = dma.vmem_to_smem (!%p8165_p12), %s8172_s15, 16, %s8039_s26, [#allocation9]  }
  0x3a   : > { %330 = sbr.rel (%p13273_p10) target bundleno = 1922 (0x782), region = 52 }
  0x41   : > { %p13274_p8 = scmp.eq.s32.totalorder %s8121_s5, 0 }
  0x43   : > { %8006 = dma.done.wait (%p13274_p8), [#allocation7], 16   ;;  %p13275_p0 = pmov %p13274_p8 }
  0x45   : > { %8008 = vsyncadd (%p13275_p0), [#allocation7], 4294967280  ;;  %p13276_p11 = pmov %p13275_p0 }
  0x46   : > { %p13277_p13 = pmov %p13275_p0 }
  0x47   : > { %8010 = dma.done.wait (%p13276_p11), [#allocation9], 32  }
  0x48   : > { %8012 = vsyncadd (%p13277_p13), [#allocation9], 4294967264 }
  0x49   : > { %344 = sfence }
  0x4a   : > { %p380_p1 = scmp.lt.s32.totalorder %s8121_s5, 1  ;;  %s7326_s27 = sld [smem:[#allocation4 + $0x1]]  ;;  %vm473_vm0 = vcmask 1046528   ;;  %vm543_vm1 = vcmask 1045504   ;;  %vm5757_vm9 = vcmask 130048  }
  0x4b   : > { %s7327_s28 = sld [smem:[#allocation4 + $0x2]]  ;;  %s7329_s29 = sld [smem:[#allocation4 + $0x4]] }
  0x4c   : > { %s8208_s22 = scalar_select %p380_p1, %s8121_s5, 1 }
  0x4d   : > { %s7330_s10 = sld [smem:[#allocation4 + $0x5]]  ;;  %s8040_s23 = smov 127  }
  0x4e   : > { %s7756_s30 = smul.u32 24, %s8208_s22  ;;  %s7332_s24 = sld [smem:[#allocation4 + $0x7]] }
  0x4f   : > { %s8041_s25 = smov 126   ;;  %s7333_s26 = sld [smem:[#allocation4 + $0x8]] }
  0x50   : > { %s8216_s18 = scalar_lea.vmem %s13065_s0, %s7756_s30  ;;  %v8218_v0 = vstv %s7326_s27  ;;  %s7343_s27 = sld [smem:[#allocation4 + $0xa]] }
  0x51   : > { %v8221_v1 = vld [vmem:[%s8216_s18 + $0x10] sm:$0xf]  ;;  %v8224_v2 = vld [vmem:[%s8216_s18] sm:$0xff]  ;;  %v8226_v3 = vstv %s7327_s28  ;;  %v8229_v4 = vld [vmem:[%s8216_s18 + $0x8] sm:$0xff]  ;;  %s7344_s28 = sld [smem:[#allocation4 + $0xb]]  ;;  %s7349_s22 = sld [smem:[#allocation4 + $0x10]] }
  0x52   : > { %v429_v5 = vmul.f32 %v8218_v0, %v8221_v1  ;;  %v427_v6 = vmul.f32 %v8218_v0, %v8224_v2  ;;  %v8235_v7 = vstv %s7329_s29  ;;  %v447_v8 = vmul.f32 %v8226_v3, %v8224_v2  ;;  %s7346_s29 = sld [smem:[#allocation4 + $0xd]]  ;;  %s7339_s15 = sld [smem:[#allocation10 + $0x6]] }
  0x53   : > { %v428_v9 = vmul.f32 %v8218_v0, %v8229_v4  ;;  %v488_v10 = vmul.f32 %v8235_v7, %v8229_v4  ;;  %v489_v11 = vmul.f32 %v8235_v7, %v8221_v1  ;;  %v487_v12 = vmul.f32 %v8235_v7, %v8224_v2  ;;  %s7335_s17 = sld [smem:[#allocation10 + $0x2]]  ;;  %p13836_p12 = pmov %p13275_p0 }
  0x54   : > { %437 = vrot.lane.b32.xlu1 %v429_v5, %s8040_s23  ;;  %433 = vrot.lane.b32.xlu0 %v427_v6, %s8040_s23  ;;  %v8249_v13 = vstv %s7330_s10  ;;  %v449_v14 = vmul.f32 %v8226_v3, %v8221_v1  ;;  %v448_v15 = vmul.f32 %v8226_v3, %v8229_v4  ;;  %v8265_v22 = vstv %s7332_s24  ;;  %s7347_s10 = sld [smem:[#allocation4 + $0xe]]  ;;  %s8347_s24 = scalar_lea.vmem %s13066_s1, %s7756_s30 }
  0x55   : > { %v512_v16 = vmul.f32 %v8249_v13, %v8224_v2  ;;  %v494_v17 = vrot.slane %v488_v10, 1  ;;  %v496_v18 = vrot.slane %v489_v11, 1  ;;  %v493_v19 = vrot.slane %v487_v12, 1  ;;  %v8355_v12 = vld [vmem:[%s8347_s24 + $0x8] sm:$0xff]  ;;  %s7328_s30 = sld [smem:[#allocation4 + $0x3]]  ;;  %p13837_p4 = scmp.ne.s32.totalorder %s13269_s20, 0 }
  0x56   : > { %v513_v20 = vmul.f32 %v8249_v13, %v8229_v4  ;;  %v514_v21 = vmul.f32 %v8249_v13, %v8221_v1  ;;  %v558_v28 = vmul.f32 %v8265_v22, %v8229_v4  ;;  %v559_v30 = vmul.f32 %v8265_v22, %v8221_v1 }
  0x57   : > { %v497_v23 = vsel %vm473_vm0, %v494_v17, %v496_v18  ;;  %v495_v24 = vsel %vm473_vm0, %v493_v19, %v494_v17  ;;  %v518_v25 = vrot.slane %v512_v16, 1  ;;  %v557_v31 = vmul.f32 %v8265_v22, %v8224_v2  ;;  %v8367_v17 = vld [vmem:[%s8347_s24 + $0x10] sm:$0xf] }
  0x58   : > { %453 = vrot.lane.b32.xlu1 %v447_v8, %s8041_s25  ;;  %435 = vrot.lane.b32.xlu0 %v428_v9, %s8040_s23  ;;  %v519_v26 = vrot.slane %v513_v20, 1  ;;  %v521_v27 = vrot.slane %v514_v21, 1  ;;  %v8278_v32 = vstv %s7333_s26  ;;  %v564_v34 = vrot.slane %v558_v28, 2  ;;  %s417_s26 = sld [smem:[#allocation4]] }
  0x59   : > { %v566_v35 = vrot.slane %v559_v30, 2  ;;  %v563_v36 = vrot.slane %v557_v31, 2  ;;  %v582_v37 = vmul.f32 %v8278_v32, %v8224_v2  ;;  %v583_v38 = vmul.f32 %v8278_v32, %v8229_v4 }
  0x5a   : > { %v520_v29 = vsel %vm473_vm0, %v518_v25, %v519_v26  ;;  %v522_v33 = vsel %vm473_vm0, %v519_v26, %v521_v27  ;;  %v584_v39 = vmul.f32 %v8278_v32, %v8221_v1  ;;  %v8299_v47 = vstv %s7343_s27  ;;  %s7331_s27 = sld [smem:[#allocation4 + $0x6]] }
  0x5b   : > { %v567_v40 = vsel %vm543_vm1, %v564_v34, %v566_v35  ;;  %v565_v41 = vsel %vm543_vm1, %v563_v36, %v564_v34  ;;  %v588_v42 = vrot.slane %v582_v37, 2  ;;  %v589_v43 = vrot.slane %v583_v38, 2 }
  0x5c   : > { %457 = vrot.lane.b32.xlu1 %v449_v14, %s8041_s25  ;;  %455 = vrot.lane.b32.xlu0 %v448_v15, %s8041_s25  ;;  %v591_v45 = vrot.slane %v584_v39, 2  ;;  %v779_v48 = vmul.f32 %v8299_v47, %v8229_v4  ;;  %v778_v49 = vmul.f32 %v8299_v47, %v8224_v2  ;;  %v8307_v50 = vstv %s7344_s28  ;;  %v8358_v14 = vld [vmem:[%s8347_s24] sm:$0xff]  ;;  %s605_s28 = sld [smem:[#allocation8]] }
  0x5d   : > { %v590_v44 = vsel %vm543_vm1, %v588_v42, %v589_v43  ;;  %v8309_v51 = vstv %s7346_s29  ;;  %v798_v52 = vmul.f32 %v8307_v50, %v8224_v2  ;;  %v780_v53 = vmul.f32 %v8299_v47, %v8221_v1  ;;  %s7334_s29 = sld [smem:[#allocation10 + $0x1]] }
  0x5e   : > { %v592_v46 = vsel %vm543_vm1, %v589_v43, %v591_v45  ;;  %v838_v54 = vmul.f32 %v8309_v51, %v8229_v4  ;;  %v839_v55 = vmul.f32 %v8309_v51, %v8221_v1  ;;  %v837_v56 = vmul.f32 %v8309_v51, %v8224_v2 }
  0x5f   : > { %v8323_v57 = vstv %s7347_s10  ;;  %v800_v58 = vmul.f32 %v8307_v50, %v8221_v1  ;;  %v799_v59 = vmul.f32 %v8307_v50, %v8229_v4  ;;  %v3238_v15 = vmul.f32 %v8218_v0, %v8355_v12  ;;  %s7336_s10 = sld [smem:[#allocation10 + $0x3]] }
  0x60   : > { %500 = vrot.lane.b32.xlu1 %v497_v23, %s8040_s23  ;;  %498 = vrot.lane.b32.xlu0 %v495_v24, %s8040_s23  ;;  %v862_v60 = vmul.f32 %v8323_v57, %v8224_v2  ;;  %v844_v61 = vrot.slane %v838_v54, 1  ;;  %v846_v62 = vrot.slane %v839_v55, 1  ;;  %v843_v63 = vrot.slane %v837_v56, 1 }
  0x61   : > { %v8335_v5 = vmul.f32 %v8323_v57, %v8229_v4  ;;  %v3237_v16 = vmul.f32 %v8218_v0, %v8358_v14  ;;  %v3255_v19 = vmul.f32 %v8226_v3, %v8358_v14  ;;  %v3291_v20 = vmul.f32 %v8235_v7, %v8355_v12 }
  0x62   : > { %v847_v6 = vsel %vm473_vm0, %v844_v61, %v846_v62  ;;  %v845_v8 = vsel %vm473_vm0, %v843_v63, %v844_v61  ;;  %v868_v9 = vrot.slane %v862_v60, 1  ;;  %v3292_v21 = vmul.f32 %v8235_v7, %v8367_v17 }
  0x63   : > { %v869_v10 = vrot.slane %v8335_v5, 1  ;;  %v3290_v23 = vmul.f32 %v8235_v7, %v8358_v14  ;;  %v3257_v24 = vmul.f32 %v8226_v3, %v8367_v17  ;;  %v3239_v25 = vmul.f32 %v8218_v0, %v8367_v17 }
  0x64   : > { %523 = vrot.lane.b32.xlu1 %v520_v29, %s8041_s25  ;;  %502 = vrot.lane.b32.xlu0 %v496_v18, %s8040_s23  ;;  %v3256_v18 = vmul.f32 %v8226_v3, %v8355_v12  ;;  %v3297_v26 = vrot.slane %v3291_v20, 1  ;;  %v3299_v28 = vrot.slane %v3292_v21, 1  ;;  %v3315_v30 = vmul.f32 %v8249_v13, %v8367_v17 }
  0x65   : > { %v870_v11 = vsel %vm473_vm0, %v868_v9, %v869_v10  ;;  %v3296_v29 = vrot.slane %v3290_v23, 1  ;;  %v3313_v7 = vmul.f32 %v8249_v13, %v8358_v14  ;;  %v3353_v38 = vmul.f32 %v8265_v22, %v8358_v14 }
  0x66   : > { %v3300_v31 = vsel %vm473_vm0, %v3297_v26, %v3299_v28  ;;  %v3377_v42 = vmul.f32 %v8278_v32, %v8355_v12  ;;  %v3378_v43 = vmul.f32 %v8278_v32, %v8367_v17  ;;  %v3548_v54 = vmul.f32 %v8299_v47, %v8358_v14 }
  0x67   : > { %v3298_v0 = vsel %vm473_vm0, %v3296_v29, %v3297_v26  ;;  %v3319_v34 = vrot.slane %v3313_v7, 1  ;;  %v3567_v55 = vmul.f32 %v8307_v50, %v8355_v12  ;;  %v3566_v56 = vmul.f32 %v8307_v50, %v8358_v14 }
  0x68   : > { %527 = vrot.lane.b32.xlu1 %v521_v27, %s8041_s25  ;;  %525 = vrot.lane.b32.xlu0 %v522_v33, %s8041_s25  ;;  %v3314_v27 = vmul.f32 %v8249_v13, %v8355_v12  ;;  %v3322_v33 = vrot.slane %v3315_v30, 1  ;;  %v3355_v13 = vmul.f32 %v8265_v22, %v8367_v17  ;;  %v3601_v60 = vmul.f32 %v8309_v51, %v8358_v14 }
  0x69   : > { %v3568_v61 = vmul.f32 %v8307_v50, %v8367_v17  ;;  %v3624_v63 = vmul.f32 %v8323_v57, %v8358_v14 }
  0x6a   : > { %v3320_v3 = vrot.slane %v3314_v27, 1 }
  0x6b   : > { %v3630_v50 = vrot.slane %v3624_v63, 1 }
  0x6c   : > { %570 = vrot.lane.b32.xlu1 %v567_v40, %s8040_s23  ;;  %568 = vrot.lane.b32.xlu0 %v565_v41, %s8040_s23  ;;  %v3323_v36 = vsel %vm473_vm0, %v3320_v3, %v3322_v33  ;;  %v3321_v37 = vsel %vm473_vm0, %v3319_v34, %v3320_v3  ;;  %v3362_v40 = vrot.slane %v3355_v13, 2  ;;  %v3359_v41 = vrot.slane %v3353_v38, 2 }
  0x70   : > { %593 = vrot.lane.b32.xlu1 %v590_v44, %s8041_s25  ;;  %572 = vrot.lane.b32.xlu0 %v566_v35, %s8040_s23  ;;  %v3354_v35 = vmul.f32 %v8265_v22, %v8355_v12  ;;  %v3376_v44 = vmul.f32 %v8278_v32, %v8358_v14  ;;  %v3549_v32 = vmul.f32 %v8299_v47, %v8355_v12 }
  0x72   : > { %v3360_v39 = vrot.slane %v3354_v35, 2 }
  0x74   : > { %597 = vrot.lane.b32.xlu1 %v591_v45, %s8041_s25  ;;  %595 = vrot.lane.b32.xlu0 %v592_v46, %s8041_s25  ;;  %v3363_v22 = vsel %vm543_vm1, %v3360_v39, %v3362_v40  ;;  %v3361_v45 = vsel %vm543_vm1, %v3359_v41, %v3360_v39  ;;  %v3383_v46 = vrot.slane %v3377_v42, 2 }
  0x78   : > { %786 = vrot.lane.b32.xlu1 %v779_v48, %s8040_s23  ;;  %784 = vrot.lane.b32.xlu0 %v778_v49, %s8040_s23  ;;  %v3385_v48 = vrot.slane %v3378_v43, 2  ;;  %v3382_v49 = vrot.slane %v3376_v44, 2 }
  0x7c   : > { %804 = vrot.lane.b32.xlu1 %v798_v52, %s8041_s25  ;;  %788 = vrot.lane.b32.xlu0 %v780_v53, %s8040_s23  ;;  %v3386_v52 = vsel %vm543_vm1, %v3383_v46, %v3385_v48  ;;  %v3384_v53 = vsel %vm543_vm1, %v3382_v49, %v3383_v46 }
  0x80   : > { %808 = vrot.lane.b32.xlu1 %v800_v58, %s8041_s25  ;;  %806 = vrot.lane.b32.xlu0 %v799_v59, %s8041_s25  ;;  %v3602_v58 = vmul.f32 %v8309_v51, %v8355_v12  ;;  %v3603_v59 = vmul.f32 %v8309_v51, %v8367_v17  ;;  %v864_v51 = vmul.f32 %v8323_v57, %v8221_v1 }
  0x82   : > { %v3610_v9 = vrot.slane %v3603_v59, 1 }
  0x84   : > { %850 = vrot.lane.b32.xlu1 %v847_v6, %s8040_s23  ;;  %848 = vrot.lane.b32.xlu0 %v845_v8, %s8040_s23  ;;  %v3625_v6 = vmul.f32 %v8323_v57, %v8355_v12  ;;  %v3608_v8 = vrot.slane %v3602_v58, 1 }
  0x88   : > { %873 = vrot.lane.b32.xlu1 %v870_v11, %s8041_s25  ;;  %852 = vrot.lane.b32.xlu0 %v846_v62, %s8040_s23  ;;  %v3550_v62 = vmul.f32 %v8299_v47, %v8367_v17  ;;  %v3607_v11 = vrot.slane %v3601_v60, 1  ;;  %v3611_v47 = vsel %vm473_vm0, %v3608_v8, %v3610_v9 }
  0x8c   : > { %3245 = vrot.lane.b32.xlu1 %v3238_v15, %s8040_s23  ;;  %3243 = vrot.lane.b32.xlu0 %v3237_v16, %s8040_s23  ;;  %v3631_v15 = vrot.slane %v3625_v6, 1  ;;  %v3609_v16 = vsel %vm473_vm0, %v3607_v11, %v3608_v8 }
  0x8e   : > { %v3632_v20 = vsel %vm473_vm0, %v3630_v50, %v3631_v15 }
  0x90   : > { %3263 = vrot.lane.b32.xlu1 %v3256_v18, %s8041_s25  ;;  %3261 = vrot.lane.b32.xlu0 %v3255_v19, %s8041_s25  ;;  %v871_v18 = vrot.slane %v864_v51, 1  ;;  %v3626_v19 = vmul.f32 %v8323_v57, %v8367_v17 }
  0x92   : > { %v872_v21 = vsel %vm473_vm0, %v869_v10, %v871_v18  ;;  %v3633_v23 = vrot.slane %v3626_v19, 1 }
  0x94   : > { %3265 = vrot.lane.b32.xlu1 %v3257_v24, %s8041_s25  ;;  %3247 = vrot.lane.b32.xlu0 %v3239_v25, %s8040_s23  ;;  %v905_v24 = vstv %s7349_s22  ;;  %v3634_v26 = vsel %vm473_vm0, %v3631_v15, %v3633_v23  ;;  %s7337_s22 = sld [smem:[#allocation10 + $0x4]] }
  0x95   : > { %v907_v25 = vmul.f32 %v905_v24, %v8229_v4  ;;  %v8471_v57 = vmul.f32 %v905_v24, %v8221_v1  ;;  %v906_v27 = vmul.f32 %v905_v24, %v8224_v2  ;;  %v3665_v29 = vmul.f32 %v905_v24, %v8355_v12 }
  0x96   : > { %v8480_v30 = vmul.f32 %v905_v24, %v8367_v17  ;;  %v3664_v7 = vmul.f32 %v905_v24, %v8358_v14 }
  0x97   : > { %v913_v5 = vrot.slane %v907_v25, 2  ;;  %v13080_v10 = vrot.slane %v8471_v57, 2  ;;  %v3671_v35 = vrot.slane %v3665_v29, 2 }
  0x98   : > { %3303 = vrot.lane.b32.xlu1 %v3300_v31, %s8040_s23  ;;  %3301 = vrot.lane.b32.xlu0 %v3298_v0, %s8040_s23  ;;  %v13079_v13 = vrot.slane %v8480_v30, 2 }
  0x99   : > { %v916_v0 = vsel %vm543_vm1, %v913_v5, %v13080_v10 }
  0x9c   : > { %3326 = vrot.lane.b32.xlu1 %v3323_v36, %s8041_s25  ;;  %3324 = vrot.lane.b32.xlu0 %v3321_v37, %s8041_s25  ;;  %v3670_v36 = vrot.slane %v3664_v7, 2  ;;  %v8492_v37 = vstv %s417_s26  ;;  %s8569_s26 = sld [smem:[#allocation10 + $0x7]] }
  0x9d   : > { %v419_v43 = vmul.f32 %v8492_v37, %v8224_v2  ;;  %v420_v44 = vmul.f32 %v8492_v37, %v8229_v4 }
  0xa0   : > { %3328 = vrot.lane.b32.xlu1 %v3322_v33, %s8041_s25  ;;  %3305 = vrot.lane.b32.xlu0 %v3299_v28, %s8040_s23  ;;  %v912_v28 = vrot.slane %v906_v27, 2  ;;  %v8488_v33 = vstv %s7328_s30  ;;  %s8549_s30 = sld [smem:[#allocation10 + $0x5]] }
  0xa1   : > { %v469_v41 = vmul.f32 %v8488_v33, %v8221_v1  ;;  %v467_v42 = vmul.f32 %v8488_v33, %v8224_v2 }
  0xa2   : > { %v914_v34 = vsel %vm543_vm1, %v912_v28, %v913_v5 }
  0xa4   : > { %3366 = vrot.lane.b32.xlu1 %v3363_v22, %s8040_s23  ;;  %3364 = vrot.lane.b32.xlu0 %v3361_v45, %s8040_s23  ;;  %v3674_v22 = vsel %vm543_vm1, %v3671_v35, %v13079_v13  ;;  %v3672_v45 = vsel %vm543_vm1, %v3670_v36, %v3671_v35 }
  0xa8   : > { %3389 = vrot.lane.b32.xlu1 %v3386_v52, %s8041_s25  ;;  %3387 = vrot.lane.b32.xlu0 %v3384_v53, %s8041_s25  ;;  %v477_v52 = vrot.slane %v469_v41, 1  ;;  %v474_v53 = vrot.slane %v467_v42, 1  ;;  %v8526_v41 = vstv %s605_s28  ;;  %s8611_s28 = sld [smem:[#allocation10 + $0x8]] }
  0xac   : > { %3391 = vrot.lane.b32.xlu1 %v3385_v48, %s8041_s25  ;;  %3368 = vrot.lane.b32.xlu0 %v3362_v40, %s8040_s23  ;;  %v468_v40 = vmul.f32 %v8488_v33, %v8229_v4 }
  0xae   : > { %v475_v49 = vrot.slane %v468_v40, 1 }
  0xb0   : > { %3556 = vrot.lane.b32.xlu1 %v3549_v32, %s8040_s23  ;;  %3554 = vrot.lane.b32.xlu0 %v3548_v54, %s8040_s23  ;;  %v421_v32 = vmul.f32 %v8492_v37, %v8221_v1  ;;  %v476_v63 = vsel %vm473_vm0, %v474_v53, %v475_v49  ;;  %v13281_v53 = vmov 0 }
  0xb4   : > { %3574 = vrot.lane.b32.xlu1 %v3567_v55, %s8041_s25  ;;  %3572 = vrot.lane.b32.xlu0 %v3566_v56, %s8041_s25  ;;  %v8514_v56 = vstv %s7331_s27  ;;  %s8600_s27 = sld [smem:[#allocation4 + $0x11]] }
  0xb5   : > { %v538_v6 = vmul.f32 %v8514_v56, %v8229_v4  ;;  %v537_v8 = vmul.f32 %v8514_v56, %v8224_v2  ;;  %v539_v50 = vmul.f32 %v8514_v56, %v8221_v1 }
  0xb7   : > { %v544_v19 = vrot.slane %v537_v8, 2  ;;  %v547_v25 = vrot.slane %v539_v50, 2  ;;  %v8551_v8 = vstv %s7339_s15  ;;  %s7365_s15 = sld [smem:[#allocation4 + $0x16]] }
  0xb8   : > { %3576 = vrot.lane.b32.xlu1 %v3568_v61, %s8041_s25  ;;  %3558 = vrot.lane.b32.xlu0 %v3550_v62, %s8040_s23  ;;  %v478_v62 = vsel %vm473_vm0, %v475_v49, %v477_v52 }
  0xbc   : > { %3614 = vrot.lane.b32.xlu1 %v3611_v47, %s8040_s23  ;;  %3612 = vrot.lane.b32.xlu0 %v3609_v16, %s8040_s23 }
  0xc0   : > { %3635 = vrot.lane.b32.xlu1 %v3632_v20, %s8041_s25  ;;  %875 = vrot.lane.b32.xlu0 %v872_v21, %s8041_s25  ;;  %v396_v20 = vlaneseq }
  0xc2   : > { %v401_v29 = vand.u32 127, %v396_v20 }
  0xc4   : > { %3616 = vrot.lane.b32.xlu1 %v3610_v9, %s8040_s23  ;;  %3637 = vrot.lane.b32.xlu0 %v3634_v26, %s8041_s25  ;;  %vm411_vm2 = vcmp.ge.s32.totalorder %v401_v29, 1  ;;  %vm412_vm3 = vcmp.le.s32.totalorder %v401_v29, 16 }
  0xc5   : > { %vm8528_vm5 = vmand %vm411_vm2, %vm412_vm3 }
  0xc6   : > { %v438_v3 = vpop.permute.xlu1 %437  ;;  %v434_v31 = vpop.permute.xlu0 %433 }
  0xc7   : > { %v442_v54 = vadd.f32 %v434_v31, %v419_v43  ;;  %v444_v9 = vadd.f32 %v438_v3, %v421_v32 }
  0xc8   : > { %3639 = vrot.lane.b32.xlu1 %v3633_v23, %s8041_s25  ;;  %877 = vrot.lane.b32.xlu0 %v871_v18, %s8041_s25  ;;  %v545_v18 = vrot.slane %v538_v6, 2 }
  0xca   : > { %v454_v38 = vpop.permute.xlu1 %453  ;;  %v436_v39 = vpop.permute.xlu0 %435  ;;  %v546_v28 = vsel %vm543_vm1, %v544_v19, %v545_v18  ;;  %v548_v31 = vsel %vm543_vm1, %v545_v18, %v547_v25  ;;  %v8567_v18 = vstv %s7335_s17  ;;  %s8753_s17 = sld [smem:[#allocation4 + $0x17]] }
  0xcb   : > { %v443_v55 = vadd.f32 %v436_v39, %v420_v44  ;;  %v462_v60 = vadd.f32 %v454_v38, %v442_v54  ;;  %v397_v38 = vshrl.u32 %v396_v20, 7  ;;  %v13278_v44 = vmov 0  ;;  %13288 = vst [vmem:[#allocation21_spill] sm:$0xff] %v8567_v18 }
  0xcc   : > { %919 = vrot.lane.b32.xlu1 %v916_v0, %s8040_s23  ;;  %917 = vrot.lane.b32.xlu0 %v914_v34, %s8040_s23  ;;  %v13279_v44 = vsel %vm8528_vm5, 4294967295, %v13278_v44 }
  0xcd   : > { %v482_v16 = vadd.f32 %v476_v63, %v462_v60  ;;  %vm402_vm4 = vcmp.ge.s32.totalorder %v397_v38, 1  ;;  %13280 = vst [vmem:[#allocation17_spill] sm:$0xff] %v13279_v44 }
  0xce   : > { %v458_v46 = vpop.permute.xlu1 %457  ;;  %v456_v48 = vpop.permute.xlu0 %455  ;;  %vm8535_vm6 = vmand %vm402_vm4, %vm8528_vm5 }
  0xcf   : > { %v463_v61 = vadd.f32 %v456_v48, %v443_v55  ;;  %v464_v15 = vadd.f32 %v458_v46, %v444_v9  ;;  %v399_v46 = vadd.s32 16, %v397_v38  ;;  %v13282_v53 = vsel %vm8535_vm6, 4294967295, %v13281_v53 }
  0xd0   : > { %3677 = vrot.lane.b32.xlu1 %v3674_v22, %s8040_s23  ;;  %3675 = vrot.lane.b32.xlu0 %v3672_v45, %s8040_s23  ;;  %13283 = vst [vmem:[#allocation18_spill] sm:$0xff] %v13282_v53  ;;  %v8539_v55 = vstv %s7334_s29  ;;  %v13285_v9 = vmov 0  ;;  %s7362_s29 = sld [smem:[#allocation4 + $0x13]] }
  0xd1   : > { %v483_v47 = vadd.f32 %v478_v62, %v463_v61  ;;  %v484_v5 = vadd.f32 %v477_v52, %v464_v15  ;;  %13284 = vst [vmem:[#allocation19_spill] sm:$0xff] %v8539_v55  ;;  %vm407_vm7 = vcmp.le.s32.totalorder %v399_v46, 16  ;;  %v8541_v61 = vstv %s7336_s10  ;;  %s7363_s10 = sld [smem:[#allocation4 + $0x14]] }
  0xd2   : > { %v501_v58 = vpop.permute.xlu1 %500  ;;  %v499_v59 = vpop.permute.xlu0 %498  ;;  %vm8555_vm8 = vmand %vm407_vm7, %vm8528_vm5 }
  0xd3   : > { %v507_v21 = vadd.f32 %v499_v59, %v482_v16  ;;  %v508_v26 = vadd.f32 %v501_v58, %v483_v47  ;;  %v13286_v9 = vsel %vm8555_vm8, 4294967295, %v13285_v9 }
  0xd4   : > { %13287 = vst [vmem:[#allocation20_spill] sm:$0xff] %v13286_v9 }
  0xd6   : > { %v524_v11 = vpop.permute.xlu1 %523  ;;  %v503_v51 = vpop.permute.xlu0 %502 }
  0xd7   : > { %v532_v27 = vadd.f32 %v524_v11, %v507_v21  ;;  %v509_v7 = vadd.f32 %v503_v51, %v484_v5 }
  0xd9   : > { %v552_v36 = vadd.f32 %v546_v28, %v532_v27 }
  0xda   : > { %v528_v23 = vpop.permute.xlu1 %527  ;;  %v526_v24 = vpop.permute.xlu0 %525 }
  0xdb   : > { %v533_v3 = vadd.f32 %v526_v24, %v508_v26  ;;  %v534_v35 = vadd.f32 %v528_v23, %v509_v7  ;;  %v8582_v23 = vstv %s7337_s22  ;;  %s7368_s22 = sld [smem:[#allocation4 + $0x19]] }
  0xdd   : > { %v553_v39 = vadd.f32 %v548_v31, %v533_v3  ;;  %v554_v45 = vadd.f32 %v547_v25, %v534_v35 }
  0xde   : > { %v571_v0 = vpop.permute.xlu1 %570  ;;  %v569_v34 = vpop.permute.xlu0 %568 }
  0xdf   : > { %v577_v40 = vadd.f32 %v569_v34, %v552_v36  ;;  %v578_v48 = vadd.f32 %v571_v0, %v553_v39 }
  0xe2   : > { %v594_v42 = vpop.permute.xlu1 %593  ;;  %v573_v43 = vpop.permute.xlu0 %572 }
  0xe3   : > { %v602_v22 = vadd.f32 %v594_v42, %v577_v40  ;;  %v579_v52 = vadd.f32 %v573_v43, %v554_v45  ;;  %v8609_v40 = vstv %s8549_s30  ;;  %s8885_s30 = sld [smem:[#allocation4 + $0x1a]] }
  0xe5   : > { %v607_v49 = vadd.f32 %v8526_v41, %v602_v22 }
  0xe6   : > { %v598_v32 = vpop.permute.xlu1 %597  ;;  %v596_v54 = vpop.permute.xlu0 %595 }
  0xe7   : > { %v610_v58 = vmax.f32 %v607_v49, 0.0  ;;  %v604_v59 = vadd.f32 %v598_v32, %v579_v52  ;;  %v603_v60 = vadd.f32 %v596_v54, %v578_v48  ;;  %v8636_v54 = vstv %s8569_s26  ;;  %s7345_s26 = sld [smem:[#allocation4 + $0xc]] }
  0xe9   : > { %v8545_v62 = vsel %vm8535_vm6, %v610_v58, 0.0  ;;  %v609_v63 = vadd.f32 %v8526_v41, %v604_v59  ;;  %v608_v6 = vadd.f32 %v8526_v41, %v603_v60 }
  0xea   : > { %v8559_v11 = vpop.permute.xlu1 %786  ;;  %v8561_v51 = vpop.permute.xlu0 %784  ;;  %v624_v50 = vmul.f32 %v8539_v55, %v8545_v62  ;;  %v652_v15 = vmul.f32 %v8541_v61, %v8545_v62  ;;  %v711_v19 = vmul.f32 %v8551_v8, %v8545_v62  ;;  %v638_v28 = vmul.f32 %v8567_v18, %v8545_v62 }
  0xeb   : > { %v612_v47 = vmax.f32 %v609_v63, 0.0  ;;  %v611_v16 = vmax.f32 %v608_v6, 0.0  ;;  %v669_v35 = vmul.f32 %v8582_v23, %v8545_v62  ;;  %v690_v63 = vmul.f32 %v8609_v40, %v8545_v62 }
  0xec   : > { %628 = vrot.lane.b32.xlu0 %v624_v50, %s8040_s23  ;;  %v658_v29 = vrot.slane %v652_v15, 1  ;;  %v717_v36 = vrot.slane %v711_v19, 2 }
  0xed   : > { %v8576_v20 = vsel %vm8555_vm8, %v612_v47, 0.0  ;;  %v8580_v21 = vsel %vm8528_vm5, %v611_v16, 0.0  ;;  %v675_v58 = vrot.slane %v669_v35, 1 }
  0xee   : > { %v654_v24 = vmul.f32 %v8541_v61, %v8576_v20  ;;  %v713_v25 = vmul.f32 %v8551_v8, %v8576_v20  ;;  %v653_v26 = vmul.f32 %v8541_v61, %v8580_v21  ;;  %v8590_v27 = vpop.permute.xlu1 %804  ;;  %v8592_v5 = vpop.permute.xlu0 %788  ;;  %v712_v7 = vmul.f32 %v8551_v8, %v8580_v21 }
  0xef   : > { %v625_v3 = vmul.f32 %v8539_v55, %v8580_v21  ;;  %v670_v39 = vmul.f32 %v8582_v23, %v8580_v21  ;;  %v671_v46 = vmul.f32 %v8582_v23, %v8576_v20  ;;  %v691_v48 = vmul.f32 %v8609_v40, %v8580_v21 }
  0xf0   : > { %v661_v31 = vrot.slane %v654_v24, 1  ;;  %v720_v0 = vrot.slane %v713_v25, 2  ;;  %v659_v34 = vrot.slane %v653_v26, 1  ;;  %642 = vrot.lane.b32.xlu0 %v638_v28, %s8041_s25  ;;  %v718_v38 = vrot.slane %v712_v7, 2 }
  0xf1   : > { %630 = vrot.lane.b32.xlu1 %v625_v3, %s8040_s23  ;;  %v639_v32 = vmul.f32 %v8567_v18, %v8580_v21  ;;  %v676_v59 = vrot.slane %v670_v39, 1  ;;  %v678_v60 = vrot.slane %v671_v46, 1  ;;  %v692_v6 = vmul.f32 %v8609_v40, %v8576_v20 }
  0xf2   : > { %v8614_v42 = vsel %vm473_vm0, %v658_v29, %v659_v34  ;;  %v8617_v43 = vsel %vm473_vm0, %v659_v34, %v661_v31  ;;  %v8619_v22 = vpop.permute.xlu1 %808  ;;  %v8621_v45 = vpop.permute.xlu0 %806  ;;  %v8628_v49 = vsel %vm543_vm1, %v717_v36, %v718_v38  ;;  %v8631_v52 = vsel %vm543_vm1, %v718_v38, %v720_v0 }
  0xf3   : > { %v677_v50 = vsel %vm473_vm0, %v675_v58, %v676_v59  ;;  %v697_v16 = vrot.slane %v691_v48, 1  ;;  %v729_v19 = vmul.f32 %v8636_v54, %v8580_v21  ;;  %v728_v24 = vmul.f32 %v8636_v54, %v8545_v62 }
  0xf4   : > { %680 = vrot.lane.b32.xlu0 %v677_v50, %s8040_s23  ;;  %v930_v25 = vstv %s8600_s27  ;;  %v679_v26 = vsel %vm473_vm0, %v676_v59, %v678_v60  ;;  %v696_v28 = vrot.slane %v690_v63, 1  ;;  %v699_v29 = vrot.slane %v692_v6, 1  ;;  %s7348_s27 = sld [smem:[#allocation4 + $0xf]] }
  0xf5   : > { %644 = vrot.lane.b32.xlu1 %v639_v32, %s8041_s25  ;;  %v730_v7 = vmul.f32 %v8636_v54, %v8576_v20  ;;  %v3232_v3 = vmul.f32 %v8492_v37, %v8355_v12  ;;  %v8661_v31 = vstv %s8611_s28  ;;  %v3274_v0 = vmul.f32 %v8488_v33, %v8355_v12  ;;  %s7342_s28 = sld [smem:[#allocation4 + $0x9]] }
  0xf6   : > { %v8644_v15 = vpop.permute.xlu1 %850  ;;  %v8646_v47 = vpop.permute.xlu0 %848  ;;  %v8667_v34 = vmul.f32 %v8488_v33, %v8367_v17  ;;  %v698_v35 = vsel %vm473_vm0, %v696_v28, %v697_v16  ;;  %v735_v39 = vrot.slane %v729_v19, 2  ;;  %v750_v46 = vmul.f32 %v8661_v31, %v8580_v21 }
  0xf7   : > { %v3273_v48 = vmul.f32 %v8488_v33, %v8358_v14  ;;  %v734_v32 = vrot.slane %v728_v24, 2  ;;  %v3231_v58 = vmul.f32 %v8492_v37, %v8358_v14  ;;  %v931_v59 = vmul.f32 %v930_v25, %v8224_v2 }
  0xf8   : > { %701 = vrot.lane.b32.xlu0 %v698_v35, %s8041_s25  ;;  %v932_v60 = vmul.f32 %v930_v25, %v8229_v4  ;;  %v700_v63 = vsel %vm473_vm0, %v697_v16, %v699_v29  ;;  %v737_v6 = vrot.slane %v730_v7, 2  ;;  %v749_v50 = vmul.f32 %v8661_v31, %v8545_v62 }
  0xf9   : > { %682 = vrot.lane.b32.xlu1 %v679_v26, %s8040_s23  ;;  %v751_v19 = vmul.f32 %v8661_v31, %v8576_v20  ;;  %v8690_v33 = vmul.f32 %v930_v25, %v8221_v1  ;;  %v3687_v24 = vmul.f32 %v930_v25, %v8358_v14  ;;  %v3280_v26 = vrot.slane %v3274_v0, 1 }
  0xfa   : > { %v8670_v36 = vpop.permute.xlu1 %873  ;;  %v8672_v38 = vpop.permute.xlu0 %852  ;;  %v736_v28 = vsel %vm543_vm1, %v734_v32, %v735_v39  ;;  %v756_v16 = vrot.slane %v750_v46, 2  ;;  %v3282_v29 = vrot.slane %v8667_v34, 1  ;;  %v3279_v7 = vrot.slane %v3273_v48, 1 }
  0xfb   : > { %13289 = vst [vmem:[#allocation22_spill] sm:$0xff] %v8672_v38  ;;  %v937_v18 = vrot.slane %v931_v59, 2  ;;  %v738_v1 = vsel %vm543_vm1, %v735_v39, %v737_v6  ;;  %v755_v55 = vrot.slane %v749_v50, 2  ;;  %v758_v38 = vrot.slane %v751_v19, 2 }
  0xfc   : > { %739 = vrot.lane.b32.xlu0 %v736_v28, %s8040_s23  ;;  %v938_v0 = vrot.slane %v932_v60, 2  ;;  %v940_v32 = vrot.slane %v8690_v33, 2  ;;  %v3283_v28 = vsel %vm473_vm0, %v3280_v26, %v3282_v29  ;;  %v3233_v59 = vmul.f32 %v8492_v37, %v8367_v17 }
  0xfd   : > { %703 = vrot.lane.b32.xlu1 %v700_v63, %s8041_s25  ;;  %v3688_v63 = vmul.f32 %v930_v25, %v8355_v12  ;;  %v757_v46 = vsel %vm543_vm1, %v755_v55, %v756_v16  ;;  %v759_v60 = vsel %vm543_vm1, %v756_v16, %v758_v38  ;;  %v3693_v55 = vrot.slane %v3687_v24, 2 }
  0xfe   : > { %v3246_v35 = vpop.permute.xlu1 %3245  ;;  %v3244_v13 = vpop.permute.xlu0 %3243  ;;  %v939_v6 = vsel %vm543_vm1, %v937_v18, %v938_v0  ;;  %v941_v19 = vsel %vm543_vm1, %v938_v0, %v940_v32  ;;  %v3338_v37 = vmul.f32 %v8514_v56, %v8367_v17  ;;  %v3336_v18 = vmul.f32 %v8514_v56, %v8358_v14 }
  0xff   : > { %v3253_v10 = vadd.f32 %v3246_v35, %v3232_v3  ;;  %v3252_v20 = vadd.f32 %v3244_v13, %v3231_v58  ;;  %v3281_v13 = vsel %vm473_vm0, %v3279_v7, %v3280_v26  ;;  %v3689_v3 = vmul.f32 %v930_v25, %v8367_v17 }
 0x100   : > { %760 = vrot.lane.b32.xlu0 %v757_v46, %s8041_s25  ;;  %v3694_v50 = vrot.slane %v3688_v63, 2  ;;  %v3345_v46 = vrot.slane %v3338_v37, 2 }
 0x101   : > { %741 = vrot.lane.b32.xlu1 %v738_v1, %s8040_s23  ;;  %v3696_v7 = vrot.slane %v3689_v3, 2 }
 0x102   : > { %v3264_v34 = vpop.permute.xlu1 %3263  ;;  %v3262_v48 = vpop.permute.xlu0 %3261  ;;  %v3695_v24 = vsel %vm543_vm1, %v3693_v55, %v3694_v50  ;;  %v8728_v55 = vstv %s7362_s29  ;;  %s7381_s29 = sld [smem:[#allocation4 + $0x1c]] }
 0x103   : > { %v3271_v39 = vadd.f32 %v3264_v34, %v3253_v10  ;;  %v3270_v58 = vadd.f32 %v3262_v48, %v3252_v20  ;;  %v3337_v10 = vmul.f32 %v8514_v56, %v8355_v12  ;;  %v3697_v1 = vsel %vm543_vm1, %v3694_v50, %v3696_v7 }
 0x104   : > { %942 = vrot.lane.b32.xlu0 %v939_v6, %s8041_s25  ;;  %v3342_v34 = vrot.slane %v3336_v18, 2 }
 0x105   : > { %762 = vrot.lane.b32.xlu1 %v759_v60, %s8041_s25  ;;  %v3288_v33 = vadd.f32 %v3283_v28, %v3271_v39  ;;  %v3287_v26 = vadd.f32 %v3281_v13, %v3270_v58  ;;  %v3343_v0 = vrot.slane %v3337_v10, 2  ;;  %v1128_v10 = vmul.f32 %v8728_v55, %v8229_v4 }
 0x106   : > { %v3266_v25 = vpop.permute.xlu1 %3265  ;;  %v3248_v35 = vpop.permute.xlu0 %3247 }
 0x107   : > { %v3254_v38 = vadd.f32 %v3248_v35, %v3233_v59  ;;  %v3346_v39 = vsel %vm543_vm1, %v3343_v0, %v3345_v46  ;;  %v3344_v58 = vsel %vm543_vm1, %v3342_v34, %v3343_v0  ;;  %v13290_v59 = vrot.slane %v8471_v57, 2 }
 0x108   : > { %3698 = vrot.lane.b32.xlu0 %v3695_v24, %s8041_s25  ;;  %v1127_v57 = vmul.f32 %v8728_v55, %v8224_v2  ;;  %v3859_v24 = vmul.f32 %v8728_v55, %v8358_v14 }
 0x109   : > { %v3272_v16 = vadd.f32 %v3266_v25, %v3254_v38  ;;  %944 = vrot.lane.b32.xlu1 %v941_v19, %s8041_s25 }
 0x10a   : > { %v3304_v20 = vpop.permute.xlu1 %3303  ;;  %v3302_v63 = vpop.permute.xlu0 %3301 }
 0x10b   : > { %v3311_v48 = vadd.f32 %v3304_v20, %v3288_v33  ;;  %v3310_v56 = vadd.f32 %v3302_v63, %v3287_v26  ;;  %v3289_v28 = vadd.f32 %v3282_v29, %v3272_v16  ;;  %v13291_v29 = vrot.slane %v8480_v30, 2 }
 0x10c   : > { %921 = vrot.lane.b32.xlu0 %v13290_v59, %s8040_s23  ;;  %v1146_v16 = vstv %s7363_s10  ;;  %s616_s10 = sld [smem:[#allocation10]] }
 0x10d   : > { %3700 = vrot.lane.b32.xlu1 %v3697_v1, %s8041_s25  ;;  %v1147_v34 = vmul.f32 %v1146_v16, %v8224_v2  ;;  %v1185_v2 = vstv %s7365_s15  ;;  %s9014_s15 = sld [smem:[#allocation4 + $0x1d]] }
 0x10e   : > { %v3327_v13 = vpop.permute.xlu1 %3326  ;;  %v3325_v3 = vpop.permute.xlu0 %3324 }
 0x10f   : > { %v3334_v60 = vadd.f32 %v3327_v13, %v3311_v48  ;;  %v3333_v6 = vadd.f32 %v3325_v3, %v3310_v56 }
 0x110   : > { %946 = vrot.lane.b32.xlu0 %v940_v32, %s8041_s25 }
 0x111   : > { %3679 = vrot.lane.b32.xlu1 %v13291_v29, %s8040_s23  ;;  %v3351_v50 = vadd.f32 %v3346_v39, %v3334_v60  ;;  %v3350_v19 = vadd.f32 %v3344_v58, %v3333_v6  ;;  %v3877_v58 = vmul.f32 %v1146_v16, %v8358_v14  ;;  %v3878_v29 = vmul.f32 %v1146_v16, %v8355_v12 }
 0x112   : > { %v3329_v33 = vpop.permute.xlu1 %3328  ;;  %v3306_v26 = vpop.permute.xlu0 %3305 }
 0x113   : > { %v3312_v25 = vadd.f32 %v3306_v26, %v3289_v28  ;;  %v9065_v53 = vstv %s9014_s15  ;;  %s7400_s15 = sld [smem:[#allocation4 + $0x25]] }
 0x114   : > { %1133 = vrot.lane.b32.xlu0 %v1127_v57, %s8040_s23 }
 0x115   : > { %v3335_v35 = vadd.f32 %v3329_v33, %v3312_v25  ;;  %3702 = vrot.lane.b32.xlu1 %v3696_v7, %s8041_s25  ;;  %v3860_v7 = vmul.f32 %v8728_v55, %v8355_v12  ;;  %v8770_v33 = vld [vmem:[%s8216_s18 + $0x10] sm:$0xf] }
 0x116   : > { %v3367_v37 = vpop.permute.xlu1 %3366  ;;  %v3365_v18 = vpop.permute.xlu0 %3364  ;;  %v1129_v26 = vmul.f32 %v8770_v33, %v8728_v55 }
 0x117   : > { %v3374_v30 = vadd.f32 %v3367_v37, %v3351_v50  ;;  %v3373_v38 = vadd.f32 %v3365_v18, %v3350_v19  ;;  %v3352_v32 = vadd.f32 %v3345_v46, %v3335_v35  ;;  %v1148_v46 = vmul.f32 %v1146_v16, %v8229_v4 }
 0x118   : > { %3865 = vrot.lane.b32.xlu0 %v3859_v24, %s8040_s23 }
 0x119   : > { %1135 = vrot.lane.b32.xlu1 %v1128_v10, %s8040_s23  ;;  %v8781_v10 = vld [vmem:[%s8216_s18] sm:$0xff] }
 0x11a   : > { %v3390_v20 = vpop.permute.xlu1 %3389  ;;  %v3388_v63 = vpop.permute.xlu0 %3387  ;;  %v1186_v37 = vmul.f32 %v8781_v10, %v1185_v2 }
 0x11b   : > { %v3397_v1 = vadd.f32 %v3390_v20, %v3374_v30  ;;  %v3396_v0 = vadd.f32 %v3388_v63, %v3373_v38  ;;  %v8785_v38 = vld [vmem:[%s8216_s18 + $0x8] sm:$0xff]  ;;  %v1149_v63 = vmul.f32 %v8770_v33, %v1146_v16 }
 0x11c   : > { %1153 = vrot.lane.b32.xlu0 %v1147_v34, %s8041_s25  ;;  %v1187_v24 = vmul.f32 %v8785_v38, %v1185_v2  ;;  %v3913_v34 = vmul.f32 %v1185_v2, %v8355_v12 }
 0x11d   : > { %v3400_v48 = vadd.f32 %v3397_v1, %v8526_v41  ;;  %v3399_v56 = vadd.f32 %v3396_v0, %v8526_v41  ;;  %3867 = vrot.lane.b32.xlu1 %v3860_v7, %s8040_s23  ;;  %v8793_v1 = vmul.f32 %v8770_v33, %v1185_v2  ;;  %v3912_v0 = vmul.f32 %v1185_v2, %v8358_v14 }
 0x11e   : > { %v3369_v28 = vpop.permute.xlu0 %3368  ;;  %v3392_v59 = vpop.permute.xlu1 %3391 }
 0x11f   : > { %v3403_v13 = vmax.f32 %v3400_v48, 0.0  ;;  %v3402_v3 = vmax.f32 %v3399_v56, 0.0  ;;  %v3375_v39 = vadd.f32 %v3369_v28, %v3352_v32 }
 0x120   : > { %3883 = vrot.lane.b32.xlu0 %v3877_v58, %s8041_s25  ;;  %v3879_v58 = vmul.f32 %v1146_v16, %v8367_v17 }
 0x121   : > { %v8757_v60 = vsel %vm8528_vm5, %v3403_v13, 0.0  ;;  %v8761_v4 = vsel %vm8535_vm6, %v3402_v3, 0.0  ;;  %v3398_v6 = vadd.f32 %v3392_v59, %v3375_v39  ;;  %1155 = vrot.lane.b32.xlu1 %v1148_v46, %s8041_s25  ;;  %v1193_v3 = vrot.slane %v1187_v24, 1 }
 0x122   : > { %13292 = vst [vmem:[#allocation23_spill] sm:$0xff] %v8757_v60  ;;  %13293 = vst [vmem:[#allocation24_spill] sm:$0xff] %v8761_v4  ;;  %v3437_v50 = vmul.f32 %v8757_v60, %v8541_v61  ;;  %v3490_v19 = vmul.f32 %v8757_v60, %v8551_v8  ;;  %v3436_v25 = vmul.f32 %v8761_v4, %v8541_v61  ;;  %v1210_v39 = vstv %s8753_s17  ;;  %v8828_v16 = vpop.permute.xlu0 %3554  ;;  %s9067_s17 = sld [smem:[#allocation4 + $0x1f]] }
 0x123   : > { %v3489_v57 = vmul.f32 %v8761_v4, %v8551_v8  ;;  %v3401_v35 = vadd.f32 %v3398_v6, %v8526_v41  ;;  %v3861_v41 = vmul.f32 %v8728_v55, %v8367_v17  ;;  %v1192_v55 = vrot.slane %v1186_v37, 1 }
 0x124   : > { %v3443_v18 = vrot.slane %v3437_v50, 1  ;;  %v3496_v30 = vrot.slane %v3490_v19, 2  ;;  %v3442_v32 = vrot.slane %v3436_v25, 1  ;;  %1137 = vrot.lane.b32.xlu0 %v1129_v26, %s8040_s23  ;;  %v8817_v50 = vmul.f32 %v1185_v2, %v8367_v17 }
 0x125   : > { %v3495_v7 = vrot.slane %v3489_v57, 2  ;;  %v3404_v20 = vmax.f32 %v3401_v35, 0.0  ;;  %3885 = vrot.lane.b32.xlu1 %v3878_v29, %s8041_s25  ;;  %v1195_v29 = vrot.slane %v8793_v1, 1  ;;  %v3918_v19 = vrot.slane %v3912_v0, 1 }
 0x126   : > { %v8798_v48 = vsel %vm473_vm0, %v3442_v32, %v3443_v18  ;;  %v1194_v57 = vsel %vm473_vm0, %v1192_v55, %v1193_v3  ;;  %v3919_v35 = vrot.slane %v3913_v34, 1  ;;  %v13086_v37 = vrot.slane %v8817_v50, 1  ;;  %v8852_v55 = vpop.permute.xlu0 %3572 }
 0x127   : > { %13294 = vst [vmem:[#allocation25_spill] sm:$0xff] %v8798_v48  ;;  %v8801_v56 = vsel %vm543_vm1, %v3495_v7, %v3496_v30  ;;  %v8805_v46 = vsel %vm8555_vm8, %v3404_v20, 0.0  ;;  %v1196_v2 = vsel %vm473_vm0, %v1193_v3, %v1195_v29  ;;  %v8837_v24 = vmul.f32 %v8770_v33, %v1210_v39 }
 0x128   : > { %13295 = vst [vmem:[#allocation26_spill] sm:$0xff] %v8801_v56  ;;  %v3438_v28 = vmul.f32 %v8805_v46, %v8541_v61  ;;  %v3491_v13 = vmul.f32 %v8805_v46, %v8551_v8  ;;  %1157 = vrot.lane.b32.xlu0 %v1149_v63, %s8041_s25  ;;  %v1211_v61 = vmul.f32 %v8781_v10, %v1210_v39  ;;  %v13302_v1 = vrot.slane %v8817_v50, 1 }
 0x129   : > { %3869 = vrot.lane.b32.xlu1 %v3861_v41, %s8040_s23  ;;  %v1212_v8 = vmul.f32 %v8785_v38, %v1210_v39  ;;  %v3935_v32 = vmul.f32 %v1210_v39, %v8358_v14  ;;  %v3936_v7 = vmul.f32 %v1210_v39, %v8355_v12  ;;  %v3920_v20 = vsel %vm473_vm0, %v3918_v19, %v3919_v35  ;;  %v8843_v41 = vpop.permute.xlu1 %3556 }
 0x12a   : > { %v3445_v59 = vrot.slane %v3438_v28, 1  ;;  %v3498_v6 = vrot.slane %v3491_v13, 2  ;;  %v3451_v63 = vmul.f32 %v8761_v4, %v8582_v23  ;;  %v3452_v0 = vmul.f32 %v8757_v60, %v8582_v23 }
 0x12b   : > { %v3453_v34 = vmul.f32 %v8805_v46, %v8582_v23  ;;  %v3922_v12 = vsel %vm473_vm0, %v3919_v35, %v13086_v37  ;;  %v13085_v14 = vrot.slane %v8837_v24, 1  ;;  %v8859_v28 = vmul.f32 %v1210_v39, %v8367_v17  ;;  %v8876_v35 = vpop.permute.xlu0 %3558 }
 0x12c   : > { %v8823_v26 = vsel %vm473_vm0, %v3443_v18, %v3445_v59  ;;  %v8826_v25 = vsel %vm543_vm1, %v3496_v30, %v3498_v6  ;;  %1197 = vrot.lane.b32.xlu0 %v1194_v57, %s8040_s23  ;;  %v1217_v18 = vrot.slane %v1211_v61, 1  ;;  %v1218_v30 = vrot.slane %v1212_v8, 1 }
 0x12d   : > { %13296 = vst [vmem:[#allocation27_spill] sm:$0xff] %v8823_v26  ;;  %13297 = vst [vmem:[#allocation28_spill] sm:$0xff] %v8826_v25  ;;  %3887 = vrot.lane.b32.xlu1 %v3879_v58, %s8041_s25  ;;  %v3941_v3 = vrot.slane %v3935_v32, 1  ;;  %v3942_v58 = vrot.slane %v3936_v7, 1  ;;  %v3457_v59 = vrot.slane %v3451_v63, 1  ;;  %v3458_v6 = vrot.slane %v3452_v0, 1  ;;  %v8872_v8 = vpop.permute.xlu1 %3574 }
 0x12e   : > { %v1219_v13 = vsel %vm473_vm0, %v1217_v18, %v1218_v30  ;;  %v3460_v23 = vrot.slane %v3453_v34, 1  ;;  %v3470_v19 = vmul.f32 %v8761_v4, %v8609_v40  ;;  %v3471_v61 = vmul.f32 %v8757_v60, %v8609_v40 }
 0x12f   : > { %v1221_v17 = vsel %vm473_vm0, %v1218_v30, %v13085_v14  ;;  %v3944_v39 = vrot.slane %v8859_v28, 1  ;;  %v3943_v57 = vsel %vm473_vm0, %v3941_v3, %v3942_v58  ;;  %v8879_v18 = vsel %vm473_vm0, %v3457_v59, %v3458_v6 }
 0x130   : > { %3923 = vrot.lane.b32.xlu0 %v3920_v20, %s8040_s23  ;;  %13298 = vst [vmem:[#allocation29_spill] sm:$0xff] %v8879_v18  ;;  %v8882_v32 = vsel %vm473_vm0, %v3458_v6, %v3460_v23  ;;  %v3476_v7 = vrot.slane %v3470_v19, 1  ;;  %v3477_v30 = vrot.slane %v3471_v61, 1  ;;  %v3504_v28 = vmul.f32 %v8761_v4, %v8636_v54  ;;  %v8908_v6 = vpop.permute.xlu0 %3612  ;;  %v8911_v23 = vld [vmem:[%s8347_s24] sm:$0xff]  ;;  %v8915_v19 = vld [vmem:[%s8347_s24 + $0x8] sm:$0xff] }
 0x131   : > { %1199 = vrot.lane.b32.xlu1 %v1196_v2, %s8040_s23  ;;  %v1254_v2 = vstv %s7368_s22  ;;  %13299 = vst [vmem:[#allocation30_spill] sm:$0xff] %v8882_v32  ;;  %v3945_v20 = vsel %vm473_vm0, %v3942_v58, %v3944_v39  ;;  %v3505_v58 = vmul.f32 %v8757_v60, %v8636_v54  ;;  %v3506_v59 = vmul.f32 %v8805_v46, %v8636_v54  ;;  %s9103_s22 = sld [smem:[#allocation4 + $0x20]] }
 0x132   : > { %v1255_v63 = vmul.f32 %v8781_v10, %v1254_v2  ;;  %v1256_v0 = vmul.f32 %v8785_v38, %v1254_v2  ;;  %v8892_v34 = vsel %vm473_vm0, %v3476_v7, %v3477_v30  ;;  %v8902_v3 = vmul.f32 %v8770_v33, %v1254_v2 }
 0x133   : > { %13300 = vst [vmem:[#allocation31_spill] sm:$0xff] %v8892_v34  ;;  %v3976_v61 = vmul.f32 %v8915_v19, %v1254_v2  ;;  %v3513_v14 = vrot.slane %v3506_v59, 2  ;;  %v3523_v25 = vmul.f32 %v8761_v4, %v8661_v31  ;;  %v3524_v56 = vmul.f32 %v8757_v60, %v8661_v31 }
 0x134   : > { %1222 = vrot.lane.b32.xlu0 %v1219_v13, %s8041_s25  ;;  %v8898_v13 = vpop.permute.xlu1 %3576  ;;  %v1261_v7 = vrot.slane %v1255_v63, 2  ;;  %v1262_v54 = vrot.slane %v1256_v0, 2  ;;  %v1279_v63 = vstv %s8885_s30  ;;  %v13305_v50 = vrot.slane %v8837_v24, 1  ;;  %s9163_s30 = sld [smem:[#allocation8 + $0x1]] }
 0x135   : > { %3925 = vrot.lane.b32.xlu1 %v3922_v12, %s8040_s23  ;;  %v3472_v12 = vmul.f32 %v8805_v46, %v8609_v40  ;;  %v3975_v40 = vmul.f32 %v8911_v23, %v1254_v2  ;;  %v3529_v59 = vrot.slane %v3523_v25, 2  ;;  %v13308_v24 = vrot.slane %v8902_v3, 2 }
 0x136   : > { %v3998_v26 = vmul.f32 %v8911_v23, %v1279_v63  ;;  %v9028_v32 = vstv %s616_s10  ;;  %s9276_s10 = sld [smem:[#allocation10 + $0xf]] }
 0x137   : > { %13315 = vst [vmem:[#allocation42_spill] sm:$0xff] %v9028_v32 }
 0x138   : > { %3946 = vrot.lane.b32.xlu0 %v3943_v57, %s8041_s25  ;;  %v3510_v57 = vrot.slane %v3504_v28, 2  ;;  %v8942_v28 = vld [vmem:[%s8347_s24 + $0x10] sm:$0xf] }
 0x139   : > { %1224 = vrot.lane.b32.xlu1 %v1221_v17, %s8041_s25  ;;  %v3479_v17 = vrot.slane %v3472_v12, 1  ;;  %v3525_v12 = vmul.f32 %v8805_v46, %v8661_v31  ;;  %v3530_v31 = vrot.slane %v3524_v56, 2 }
 0x13b   : > { %v8922_v37 = vsel %vm473_vm0, %v3477_v30, %v3479_v17  ;;  %v3532_v46 = vrot.slane %v3525_v12, 2  ;;  %v8947_v17 = vpop.permute.xlu1 %3614  ;;  %v8958_v25 = vsel %vm543_vm1, %v3529_v59, %v3530_v31 }
 0x13c   : > { %1201 = vrot.lane.b32.xlu0 %v1195_v29, %s8040_s23  ;;  %13301 = vst [vmem:[#allocation32_spill] sm:$0xff] %v8922_v37  ;;  %v3982_v29 = vrot.slane %v3976_v61, 2  ;;  %13306 = vst [vmem:[#allocation35_spill] sm:$0xff] %v8958_v25  ;;  %v1282_v61 = vmul.f32 %v8770_v33, %v1279_v63 }
 0x13d   : > { %3948 = vrot.lane.b32.xlu1 %v3945_v20, %s8041_s25  ;;  %v3511_v20 = vrot.slane %v3505_v58, 2  ;;  %v8945_v58 = vmul.f32 %v8942_v28, %v1254_v2  ;;  %v1281_v2 = vmul.f32 %v8785_v38, %v1279_v63  ;;  %v8961_v56 = vsel %vm543_vm1, %v3530_v31, %v3532_v46 }
 0x13e   : > { %13307 = vst [vmem:[#allocation36_spill] sm:$0xff] %v8961_v56  ;;  %v3999_v31 = vmul.f32 %v8915_v19, %v1279_v63 }
 0x13f   : > { %v8936_v0 = vsel %vm543_vm1, %v3510_v57, %v3511_v20  ;;  %v8939_v30 = vsel %vm543_vm1, %v3511_v20, %v3513_v14  ;;  %v1263_v57 = vsel %vm543_vm1, %v1261_v7, %v1262_v54  ;;  %v8953_v14 = vpop.permute.xlu0 %875  ;;  %v1280_v20 = vmul.f32 %v8781_v10, %v1279_v63  ;;  %v8973_v46 = vpop.permute.xlu1 %3635 }
 0x140   : > { %13303 = vst [vmem:[#allocation33_spill] sm:$0xff] %v8936_v0  ;;  %13304 = vst [vmem:[#allocation34_spill] sm:$0xff] %v8939_v30  ;;  %1226 = vrot.lane.b32.xlu0 %v13305_v50, %s8041_s25  ;;  %v1265_v7 = vsel %vm543_vm1, %v1262_v54, %v13308_v24  ;;  %v1287_v59 = vrot.slane %v1281_v2, 2  ;;  %v4000_v24 = vmul.f32 %v8942_v28, %v1279_v63 }
 0x141   : > { %3927 = vrot.lane.b32.xlu1 %v13302_v1, %s8040_s23  ;;  %v3981_v1 = vrot.slane %v3975_v40, 2  ;;  %v3984_v40 = vrot.slane %v8945_v58, 2  ;;  %v1286_v50 = vrot.slane %v1280_v20, 2  ;;  %v1289_v58 = vrot.slane %v1282_v61, 2 }
 0x142   : > { %v4005_v20 = vrot.slane %v3999_v31, 2  ;;  %v817_v61 = vstv %s7345_s26  ;;  %s9165_s26 = sld [smem:[#allocation10 + $0x9]] }
 0x143   : > { %v3983_v12 = vsel %vm543_vm1, %v3981_v1, %v3982_v29  ;;  %v3985_v54 = vsel %vm543_vm1, %v3982_v29, %v3984_v40  ;;  %v4004_v1 = vrot.slane %v3998_v26, 2  ;;  %v1290_v2 = vsel %vm543_vm1, %v1287_v59, %v1289_v58  ;;  %v8984_v48 = vpop.permute.xlu1 %3616 }
 0x144   : > { %1266 = vrot.lane.b32.xlu0 %v1263_v57, %s8040_s23  ;;  %v1288_v57 = vsel %vm543_vm1, %v1286_v50, %v1287_v59  ;;  %13309 = vst [vmem:[#allocation37_spill] sm:$0xff] %v8984_v48  ;;  %v8996_v59 = vstv %s7342_s28  ;;  %v819_v31 = vmul.f32 %v8785_v38, %v817_v61  ;;  %v3585_v18 = vmul.f32 %v8915_v19, %v817_v61  ;;  %s9182_s28 = sld [smem:[#allocation10 + $0xc]] }
 0x145   : > { %3950 = vrot.lane.b32.xlu1 %v3944_v39, %s8041_s25  ;;  %v8976_v39 = vpop.permute.xlu0 %3637  ;;  %v4006_v63 = vsel %vm543_vm1, %v4004_v1, %v4005_v20  ;;  %v9044_v60 = vmul.f32 %v8942_v28, %v817_v61  ;;  %v3584_v44 = vmul.f32 %v8911_v23, %v817_v61 }
 0x146   : > { %v825_v56 = vrot.slane %v819_v31, 1 }
 0x147   : > { %v8993_v50 = vpop.permute.xlu1 %3639  ;;  %v3590_v48 = vrot.slane %v3584_v44, 1  ;;  %v3544_v44 = vmul.f32 %v8942_v28, %v8996_v59 }
 0x148   : > { %3986 = vrot.lane.b32.xlu0 %v3983_v12, %s8040_s23  ;;  %v886_v12 = vstv %s7348_s27  ;;  %13311 = vst [vmem:[#allocation39_spill] sm:$0xff] %v8993_v50  ;;  %s9176_s27 = sld [smem:[#allocation4 + $0x22]] }
 0x149   : > { %1268 = vrot.lane.b32.xlu1 %v1265_v7, %s8040_s23  ;;  %v4007_v7 = vrot.slane %v4000_v24, 2  ;;  %v8987_v29 = vpop.permute.xlu0 %877  ;;  %v818_v24 = vmul.f32 %v8781_v10, %v817_v61  ;;  %v9006_v1 = vmul.f32 %v8785_v38, %v886_v12  ;;  %v9079_v50 = vmul.f32 %v8942_v28, %v886_v12 }
 0x14a   : > { %13310 = vst [vmem:[#allocation38_spill] sm:$0xff] %v8987_v29 }
 0x14b   : > { %v4008_v26 = vsel %vm543_vm1, %v4005_v20, %v4007_v7  ;;  %v887_v20 = vmul.f32 %v8781_v10, %v886_v12  ;;  %v824_v30 = vrot.slane %v818_v24, 1  ;;  %v9023_v34 = vpop.permute.xlu1 %919  ;;  %v772_v24 = vmul.f32 %v8770_v33, %v8996_v59 }
 0x14c   : > { %1291 = vrot.lane.b32.xlu0 %v1288_v57, %s8041_s25  ;;  %13314 = vst [vmem:[#allocation41_spill] sm:$0xff] %v9023_v34  ;;  %v13316_v4 = vrot.slane %v9006_v1, 2 }
 0x14d   : > { %3988 = vrot.lane.b32.xlu1 %v3985_v54, %s8040_s23  ;;  %v9000_v54 = vmul.f32 %v8770_v33, %v817_v61  ;;  %v9003_v57 = vpop.permute.xlu0 %917  ;;  %v826_v37 = vsel %vm473_vm0, %v824_v30, %v825_v56  ;;  %v3648_v61 = vmul.f32 %v8915_v19, %v886_v12 }
 0x14f   : > { %v13093_v25 = vrot.slane %v9000_v54, 1 }
 0x150   : > { %4009 = vrot.lane.b32.xlu0 %v4006_v63, %s8041_s25  ;;  %v9012_v63 = vstv %s7381_s29  ;;  %s9266_s29 = sld [smem:[#allocation4 + $0x23]] }
 0x151   : > { %1293 = vrot.lane.b32.xlu1 %v1290_v2, %s8041_s25  ;;  %v13312_v2 = vrot.slane %v8902_v3, 2  ;;  %v9020_v0 = vpop.permute.xlu0 %3675  ;;  %v893_v3 = vrot.slane %v887_v20, 2  ;;  %v1477_v20 = vmul.f32 %v8785_v38, %v9012_v63  ;;  %v4170_v30 = vmul.f32 %v8911_v23, %v9012_v63 }
 0x152   : > { %13313 = vst [vmem:[#allocation40_spill] sm:$0xff] %v9020_v0 }
 0x153   : > { %v9053_v9 = vsel %vm543_vm1, %v893_v3, %v13316_v4  ;;  %v9071_v3 = vmul.f32 %v8770_v33, %v886_v12 }
 0x154   : > { %1270 = vrot.lane.b32.xlu0 %v13312_v2, %s8040_s23  ;;  %v1476_v2 = vmul.f32 %v8781_v10, %v9012_v63 }
 0x155   : > { %4011 = vrot.lane.b32.xlu1 %v4008_v26, %s8041_s25  ;;  %v770_v26 = vmul.f32 %v8781_v10, %v8996_v59 }
 0x157   : > { %v793_v31 = vadd.f32 %v8561_v51, %v770_v26  ;;  %v618_v26 = vmul.f32 %v9028_v32, %v8545_v62  ;;  %v3542_v62 = vmul.f32 %v8911_v23, %v8996_v59 }
 0x158   : > { %1295 = vrot.lane.b32.xlu0 %v1289_v58, %s8041_s25  ;;  %v828_v58 = vsel %vm473_vm0, %v825_v56, %v13093_v25  ;;  %v9055_v25 = vpop.permute.xlu1 %3677 }
 0x159   : > { %3990 = vrot.lane.b32.xlu1 %v3984_v40, %s8040_s23  ;;  %v771_v40 = vmul.f32 %v8785_v38, %v8996_v59  ;;  %13317 = vst [vmem:[#allocation43_spill] sm:$0xff] %v9055_v25  ;;  %v813_v4 = vadd.f32 %v8590_v27, %v793_v31  ;;  %v795_v27 = vadd.f32 %v8592_v5, %v772_v24  ;;  %v896_v5 = vrot.slane %v9071_v3, 2 }
 0x15a   : > { %v3647_v31 = vmul.f32 %v8911_v23, %v886_v12  ;;  %v3563_v0 = vadd.f32 %v8828_v16, %v3542_v62 }
 0x15b   : > { %v794_v56 = vadd.f32 %v8559_v11, %v771_v40  ;;  %v4171_v11 = vmul.f32 %v8915_v19, %v9012_v63  ;;  %v3591_v40 = vrot.slane %v3585_v18, 1  ;;  %v619_v18 = vmul.f32 %v9028_v32, %v8580_v21 }
 0x15c   : > { %1482 = vrot.lane.b32.xlu0 %v1476_v2, %s8040_s23  ;;  %v832_v34 = vadd.f32 %v826_v37, %v813_v4  ;;  %v3656_v21 = vrot.slane %v9079_v50, 2  ;;  %v815_v16 = vadd.f32 %v8619_v22, %v795_v27  ;;  %v3653_v37 = vrot.slane %v3647_v31, 2 }
 0x15d   : > { %4013 = vrot.lane.b32.xlu1 %v4007_v7, %s8041_s25  ;;  %v3543_v7 = vmul.f32 %v8915_v19, %v8996_v59  ;;  %v814_v29 = vadd.f32 %v8621_v45, %v794_v56  ;;  %v4188_v56 = vmul.f32 %v8911_v23, %v9065_v53  ;;  %v1534_v4 = vstv %s9067_s17  ;;  %s7359_s17 = sld [smem:[#allocation10 + $0x10]] }
 0x15e   : > { %v629_v51 = vpop.permute.xlu0 %628  ;;  %v13318_v22 = vrot.slane %v9044_v60, 1  ;;  %v4189_v27 = vmul.f32 %v8915_v19, %v9065_v53  ;;  %v1535_v31 = vmul.f32 %v8781_v10, %v1534_v4 }
 0x15f   : > { %v634_v2 = vadd.f32 %v629_v51, %v618_v26  ;;  %v1496_v26 = vmul.f32 %v8781_v10, %v9065_v53  ;;  %v3564_v24 = vadd.f32 %v8843_v41, %v3543_v7  ;;  %v833_v62 = vadd.f32 %v828_v58, %v814_v29 }
 0x160   : > { %4176 = vrot.lane.b32.xlu0 %v4170_v30, %s8040_s23  ;;  %v3654_v30 = vrot.slane %v3648_v61, 2  ;;  %v3581_v41 = vadd.f32 %v8852_v55, %v3563_v0  ;;  %v3594_v59 = vsel %vm473_vm0, %v3591_v40, %v13318_v22  ;;  %v13319_v55 = vrot.slane %v9006_v1, 2 }
 0x161   : > { %1484 = vrot.lane.b32.xlu1 %v1477_v20, %s8040_s23  ;;  %v3582_v29 = vadd.f32 %v8872_v8, %v3564_v24  ;;  %v13320_v0 = vrot.slane %v9000_v54, 1  ;;  %v1478_v1 = vmul.f32 %v8770_v33, %v9012_v63  ;;  %v9145_v24 = vmul.f32 %v8770_v33, %v1534_v4 }
 0x162   : > { %v643_v25 = vpop.permute.xlu0 %642 }
 0x163   : > { %v631_v51 = vpop.permute.xlu1 %630  ;;  %v648_v20 = vadd.f32 %v643_v25, %v634_v2  ;;  %v1497_v25 = vmul.f32 %v8785_v38, %v9065_v53  ;;  %v857_v2 = vadd.f32 %v8646_v47, %v832_v34  ;;  %v9121_v47 = vsel %vm543_vm1, %v13319_v55, %v896_v5 }
 0x164   : > { %v635_v45 = vadd.f32 %v631_v51, %v619_v18  ;;  %1502 = vrot.lane.b32.xlu0 %v1496_v26, %s8041_s25  ;;  %v9126_v34 = vsel %vm543_vm1, %v3654_v30, %v3656_v21  ;;  %v834_v58 = vadd.f32 %v13320_v0, %v815_v16  ;;  %v858_v51 = vadd.f32 %v8644_v15, %v833_v62 }
 0x165   : > { %v665_v12 = vadd.f32 %v8614_v42, %v648_v20  ;;  %4178 = vrot.lane.b32.xlu1 %v4171_v11, %s8040_s23  ;;  %v3592_v11 = vsel %vm473_vm0, %v3590_v48, %v3591_v40  ;;  %v9132_v40 = vsel %vm543_vm1, %v3653_v37, %v3654_v30  ;;  %v882_v54 = vadd.f32 %v8670_v36, %v857_v2 }
 0x166   : > { %v681_v61 = vpop.permute.xlu0 %680  ;;  %v3598_v20 = vadd.f32 %v3592_v11, %v3581_v41  ;;  %v4223_v30 = vmul.f32 %v8911_v23, %v1534_v4  ;;  %v3565_v37 = vadd.f32 %v8876_v35, %v3544_v44  ;;  %v4190_v35 = vmul.f32 %v8942_v28, %v9065_v53 }
 0x167   : > { %v645_v42 = vpop.permute.xlu1 %644  ;;  %v686_v26 = vadd.f32 %v681_v61, %v665_v12  ;;  %v4224_v12 = vmul.f32 %v8915_v19, %v1534_v4  ;;  %v1544_v44 = vrot.slane %v9145_v24, 1 }
 0x168   : > { %v649_v7 = vadd.f32 %v645_v42, %v635_v45  ;;  %4194 = vrot.lane.b32.xlu0 %v4188_v56, %s8041_s25  ;;  %v3599_v45 = vadd.f32 %v3594_v59, %v3582_v29  ;;  %v1498_v42 = vmul.f32 %v8770_v33, %v9065_v53  ;;  %v1541_v56 = vrot.slane %v1535_v31, 1 }
 0x169   : > { %1504 = vrot.lane.b32.xlu1 %v1497_v25, %s8041_s25  ;;  %v4172_v25 = vmul.f32 %v8942_v28, %v9012_v63  ;;  %v1559_v63 = vstv %s9103_s22  ;;  %v3621_v62 = vadd.f32 %v8908_v6, %v3598_v20  ;;  %v4229_v59 = vrot.slane %v4223_v30, 1  ;;  %s7401_s22 = sld [smem:[#allocation4 + $0x26]] }
 0x16a   : > { %v666_v48 = vadd.f32 %v8617_v43, %v649_v7  ;;  %v1536_v43 = vmul.f32 %v8785_v38, %v1534_v4  ;;  %v702_v18 = vpop.permute.xlu0 %701  ;;  %v9169_v6 = vmul.f32 %v8942_v28, %v1534_v4  ;;  %v4230_v61 = vrot.slane %v4224_v12, 1 }
 0x16b   : > { %v683_v8 = vpop.permute.xlu1 %682  ;;  %v707_v16 = vadd.f32 %v702_v18, %v686_v26  ;;  %v3583_v53 = vadd.f32 %v8898_v13, %v3565_v37  ;;  %v1561_v4 = vmul.f32 %v8785_v38, %v1559_v63  ;;  %v3644_v55 = vadd.f32 %v8973_v46, %v3621_v62 }
 0x16c   : > { %v687_v15 = vadd.f32 %v683_v8, %v666_v48  ;;  %1486 = vrot.lane.b32.xlu0 %v1478_v1, %s8040_s23  ;;  %v1542_v2 = vrot.slane %v1536_v43, 1  ;;  %v883_v48 = vadd.f32 %v8953_v14, %v858_v51  ;;  %v4247_v13 = vmul.f32 %v8915_v19, %v1559_v63  ;;  %v13321_v8 = vld [vmem:[#allocation22_spill] sm:$0xff] }
 0x16d   : > { %4196 = vrot.lane.b32.xlu1 %v4189_v27, %s8041_s25  ;;  %v9156_v41 = vadd.f32 %v8628_v49, %v707_v16  ;;  %v3622_v49 = vadd.f32 %v8947_v17, %v3599_v45  ;;  %v1560_v27 = vmul.f32 %v8781_v10, %v1559_v63  ;;  %v9186_v17 = vmul.f32 %v8770_v33, %v1559_v63 }
 0x16e   : > { %v9158_v22 = vpop.permute.xlu0 %739  ;;  %v1543_v0 = vsel %vm473_vm0, %v1541_v56, %v1542_v2  ;;  %v859_v1 = vadd.f32 %v13321_v8, %v834_v58  ;;  %v901_v31 = vadd.f32 %v9053_v9, %v882_v54  ;;  %v4232_v26 = vrot.slane %v9169_v6, 1 }
 0x16f   : > { %v704_v36 = vpop.permute.xlu1 %703  ;;  %v9198_v43 = vmul.f32 %v8942_v28, %v1559_v63  ;;  %v3645_v14 = vadd.f32 %v8976_v39, %v3622_v49  ;;  %v1545_v46 = vsel %vm473_vm0, %v1542_v2, %v1544_v44  ;;  %v4231_v58 = vsel %vm473_vm0, %v4229_v59, %v4230_v61 }
 0x170   : > { %v708_v7 = vadd.f32 %v704_v36, %v687_v15  ;;  %1506 = vrot.lane.b32.xlu0 %v1498_v42, %s8041_s25  ;;  %v1566_v51 = vrot.slane %v1560_v27, 1  ;;  %v13322_v9 = vrot.slane %v9044_v60, 1  ;;  %v1569_v30 = vrot.slane %v9186_v17, 1  ;;  %v13326_v27 = vld [vmem:[#allocation40_spill] sm:$0xff] }
 0x171   : > { %4180 = vrot.lane.b32.xlu1 %v4172_v25, %s8040_s23  ;;  %v1567_v25 = vrot.slane %v1561_v4, 1  ;;  %v902_v39 = vadd.f32 %v9121_v47, %v883_v48  ;;  %v926_v15 = vadd.f32 %v9003_v57, %v901_v31  ;;  %v3661_v16 = vadd.f32 %v9132_v40, %v3644_v55  ;;  %v13327_v31 = vld [vmem:[#allocation43_spill] sm:$0xff] }
 0x172   : > { %v9173_v11 = vadd.f32 %v8631_v52, %v708_v7  ;;  %v4246_v52 = vmul.f32 %v8911_v23, %v1559_v63  ;;  %v761_v20 = vpop.permute.xlu0 %760  ;;  %v3600_v54 = vadd.f32 %v13322_v9, %v3583_v53  ;;  %v4253_v12 = vrot.slane %v4247_v13, 1  ;;  %v13324_v63 = vld [vmem:[#allocation41_spill] sm:$0xff]  ;;  %v13328_v9 = vld [vmem:[#allocation39_spill] sm:$0xff] }
 0x173   : > { %v9180_v29 = vpop.permute.xlu1 %741  ;;  %v9213_v37 = vstv %s9163_s30  ;;  %v9216_v60 = vstv %s9165_s26  ;;  %v4233_v42 = vsel %vm473_vm0, %v4230_v61, %v4232_v26  ;;  %v4255_v56 = vrot.slane %v9198_v43, 1  ;;  %v13325_v7 = vld [vmem:[#allocation37_spill] sm:$0xff]  ;;  %s7403_s30 = sld [smem:[#allocation4 + $0x28]]  ;;  %s7360_s26 = sld [smem:[#allocation10 + $0x11]] }
 0x174   : > { %1546 = vrot.lane.b32.xlu0 %v1543_v0, %s8040_s23  ;;  %v4252_v45 = vrot.slane %v4246_v52, 1  ;;  %13323 = vst [vmem:[#allocation22_spill] sm:$0xff] %v9216_v60  ;;  %v927_v47 = vadd.f32 %v13324_v63, %v902_v39  ;;  %v3662_v57 = vadd.f32 %v9126_v34, %v3645_v14  ;;  %v1603_v40 = vstv %s9176_s27  ;;  %s7364_s27 = sld [smem:[#allocation4 + $0x15]] }
 0x175   : > { %4198 = vrot.lane.b32.xlu1 %v4190_v35, %s8041_s25  ;;  %v3623_v2 = vadd.f32 %v13325_v7, %v3600_v54  ;;  %v9228_v35 = vstv %s9182_s28  ;;  %v1568_v49 = vsel %vm473_vm0, %v1566_v51, %v1567_v25  ;;  %v1570_v61 = vsel %vm473_vm0, %v1567_v25, %v1569_v30  ;;  %v13329_v25 = vld [vmem:[#allocation38_spill] sm:$0xff]  ;;  %s9495_s28 = sld [smem:[#allocation4 + $0x29]] }
 0x176   : > { %v943_v36 = vpop.permute.xlu0 %942  ;;  %v3684_v53 = vadd.f32 %v13326_v27, %v3661_v16  ;;  %v4254_v52 = vsel %vm473_vm0, %v4252_v45, %v4253_v12  ;;  %v4256_v48 = vsel %vm473_vm0, %v4253_v12, %v4255_v56  ;;  %v9243_v0 = vmul.f32 %v8781_v10, %v1603_v40 }
 0x177   : > { %v763_v18 = vpop.permute.xlu1 %762  ;;  %v951_v62 = vadd.f32 %v943_v36, %v926_v15  ;;  %v9246_v13 = vmul.f32 %v8785_v38, %v1603_v40  ;;  %v9249_v8 = vmul.f32 %v8770_v33, %v1603_v40  ;;  %v3685_v14 = vadd.f32 %v13327_v31, %v3662_v57 }
 0x178   : > { %4234 = vrot.lane.b32.xlu0 %v4231_v58, %s8040_s23  ;;  %v3646_v54 = vadd.f32 %v13328_v9, %v3623_v2  ;;  %v884_v45 = vadd.f32 %v13329_v25, %v859_v1  ;;  %v745_v39 = vadd.f32 %v9158_v22, %v9156_v41  ;;  %v9259_v16 = vmul.f32 %v8911_v23, %v1603_v40 }
 0x179   : > { %1548 = vrot.lane.b32.xlu1 %v1545_v46, %s8040_s23  ;;  %v956_v4 = vadd.f32 %v9213_v37, %v951_v62  ;;  %v746_v1 = vadd.f32 %v9180_v29, %v9173_v11  ;;  %v9274_v62 = vmul.f32 %v8915_v19, %v1603_v40  ;;  %v1611_v9 = vrot.slane %v9246_v13, 2 }
 0x17a   : > { %v3699_v55 = vpop.permute.xlu0 %3698  ;;  %v766_v41 = vadd.f32 %v761_v20, %v745_v39  ;;  %v903_v27 = vadd.f32 %v896_v5, %v884_v45  ;;  %v4292_v24 = vrot.slane %v9259_v16, 2 }
 0x17b   : > { %v945_v59 = vpop.permute.xlu1 %944  ;;  %v959_v46 = vmax.f32 %v956_v4, 0.0  ;;  %v3707_v51 = vadd.f32 %v3699_v55, %v3684_v53  ;;  %v767_v20 = vadd.f32 %v763_v18, %v746_v1  ;;  %v3663_v55 = vadd.f32 %v3656_v21, %v3646_v54 }
 0x17c   : > { %v952_v34 = vadd.f32 %v945_v59, %v927_v47  ;;  %1571 = vrot.lane.b32.xlu0 %v1568_v49, %s8041_s25  ;;  %v1613_v54 = vrot.slane %v9249_v8, 2 }
 0x17d   : > { %4236 = vrot.lane.b32.xlu1 %v4233_v42, %s8040_s23  ;;  %v9263_v36 = vsel %vm8535_vm6, %v959_v46, 0.0  ;;  %v3710_v63 = vadd.f32 %v3707_v51, %v9213_v37 }
 0x17e   : > { %v957_v58 = vadd.f32 %v9213_v37, %v952_v34  ;;  %13331 = vst [vmem:[#allocation41_spill] sm:$0xff] %v9263_v36  ;;  %v967_v22 = vmul.f32 %v9216_v60, %v9263_v36  ;;  %v922_v57 = vpop.permute.xlu0 %921  ;;  %v1001_v7 = vmul.f32 %v9228_v35, %v9263_v36 }
 0x17f   : > { %v3701_v15 = vpop.permute.xlu1 %3700  ;;  %v3713_v11 = vmax.f32 %v3710_v63, 0.0  ;;  %v928_v5 = vadd.f32 %v922_v57, %v903_v27 }
 0x180   : > { %v960_v42 = vmax.f32 %v957_v58, 0.0  ;;  %v3708_v47 = vadd.f32 %v3701_v15, %v3685_v14  ;;  %v9285_v49 = vadd.f32 %v967_v22, %v766_v41  ;;  %4257 = vrot.lane.b32.xlu0 %v4254_v52, %s8041_s25  ;;  %v9308_v14 = vmul.f32 %v8942_v28, %v1603_v40 }
 0x181   : > { %1573 = vrot.lane.b32.xlu1 %v1570_v61, %s8041_s25  ;;  %v9298_v34 = vsel %vm8535_vm6, %v3713_v11, 0.0  ;;  %v1007_v46 = vrot.slane %v1001_v7, 1  ;;  %v1610_v40 = vrot.slane %v9243_v0, 2  ;;  %v1628_v15 = vstv %s9266_s29  ;;  %s9523_s29 = sld [smem:[#allocation4 + $0x12]] }
 0x182   : > { %v9282_v59 = vsel %vm8528_vm5, %v960_v42, 0.0  ;;  %v3711_v29 = vadd.f32 %v3708_v47, %v9213_v37  ;;  %13334 = vst [vmem:[#allocation40_spill] sm:$0xff] %v9285_v49  ;;  %13335 = vst [vmem:[#allocation43_spill] sm:$0xff] %v9298_v34  ;;  %v3747_v3 = vmul.f32 %v9298_v34, %v9228_v35  ;;  %v947_v52 = vpop.permute.xlu0 %946  ;;  %v9335_v0 = vstv %s9276_s10  ;;  %s9566_s10 = sld [smem:[#allocation4 + $0x18]] }
 0x183   : > { %13333 = vst [vmem:[#allocation37_spill] sm:$0xff] %v9282_v59  ;;  %v968_v61 = vmul.f32 %v9216_v60, %v9282_v59  ;;  %v3680_v53 = vpop.permute.xlu1 %3679  ;;  %v9294_v4 = vmul.f32 %v9228_v35, %v9282_v59  ;;  %v953_v45 = vadd.f32 %v947_v52, %v928_v5  ;;  %v1612_v6 = vsel %vm543_vm1, %v1610_v40, %v1611_v9 }
 0x184   : > { %v3714_v18 = vmax.f32 %v3711_v29, 0.0  ;;  %v3686_v21 = vadd.f32 %v3680_v53, %v3663_v55  ;;  %1550 = vrot.lane.b32.xlu0 %v1544_v44, %s8040_s23  ;;  %v3753_v42 = vrot.slane %v3747_v3, 1  ;;  %v4293_v44 = vrot.slane %v9274_v62, 2 }
 0x185   : > { %v9302_v31 = vadd.f32 %v968_v61, %v767_v20  ;;  %4259 = vrot.lane.b32.xlu1 %v4256_v48, %s8041_s25  ;;  %v1008_v58 = vrot.slane %v9294_v4, 1  ;;  %v958_v13 = vadd.f32 %v9213_v37, %v953_v45  ;;  %v1630_v16 = vmul.f32 %v8785_v38, %v1628_v15 }
 0x186   : > { %v9313_v50 = vsel %vm8528_vm5, %v3714_v18, 0.0  ;;  %v9327_v47 = vpop.permute.xlu0 %1133  ;;  %v9352_v57 = vmul.f32 %v9335_v0, %v9282_v59  ;;  %v4294_v11 = vsel %vm543_vm1, %v4292_v24, %v4293_v44  ;;  %v4295_v29 = vrot.slane %v9308_v14, 2 }
 0x187   : > { %13336 = vst [vmem:[#allocation39_spill] sm:$0xff] %v9302_v31  ;;  %13337 = vst [vmem:[#allocation38_spill] sm:$0xff] %v9313_v50  ;;  %v3748_v51 = vmul.f32 %v9313_v50, %v9228_v35  ;;  %v3703_v48 = vpop.permute.xlu1 %3702  ;;  %v9324_v25 = vsel %vm473_vm0, %v1007_v46, %v1008_v58  ;;  %v961_v62 = vmax.f32 %v958_v13, 0.0  ;;  %v1631_v20 = vmul.f32 %v8770_v33, %v1628_v15 }
 0x188   : > { %13338 = vst [vmem:[#allocation44_spill] sm:$0xff] %v9324_v25  ;;  %v3709_v39 = vadd.f32 %v3703_v48, %v3686_v21  ;;  %1575 = vrot.lane.b32.xlu0 %v1569_v30, %s8041_s25  ;;  %v1614_v30 = vsel %vm543_vm1, %v1611_v9, %v1613_v54  ;;  %v4309_v43 = vmul.f32 %v8911_v23, %v1628_v15  ;;  %v13100_v5 = vrot.slane %v9352_v57, 2 }
 0x189   : > { %v3754_v63 = vrot.slane %v3748_v51, 1  ;;  %4238 = vrot.lane.b32.xlu1 %v4232_v26, %s8040_s23  ;;  %v1629_v26 = vmul.f32 %v8781_v10, %v1628_v15  ;;  %v9371_v27 = vsel %vm8555_vm8, %v961_v62, 0.0  ;;  %v1636_v46 = vrot.slane %v1630_v16, 2 }
 0x18a   : > { %v3712_v1 = vadd.f32 %v3709_v39, %v9213_v37  ;;  %v9356_v37 = vmul.f32 %v9313_v50, %v9335_v0  ;;  %v9358_v17 = vpop.permute.xlu0 %3865  ;;  %13341 = vst [vmem:[#allocation46_spill] sm:$0xff] %v9371_v27  ;;  %v1003_v4 = vmul.f32 %v9228_v35, %v9371_v27  ;;  %v1062_v18 = vmul.f32 %v9335_v0, %v9371_v27 }
 0x18b   : > { %v9340_v41 = vsel %vm473_vm0, %v3753_v42, %v3754_v63  ;;  %v9345_v22 = vpop.permute.xlu1 %1135  ;;  %v1635_v14 = vrot.slane %v1629_v26, 2  ;;  %v1638_v45 = vrot.slane %v1631_v20, 2  ;;  %v4311_v39 = vmul.f32 %v8942_v28, %v1628_v15 }
 0x18c   : > { %13339 = vst [vmem:[#allocation45_spill] sm:$0xff] %v9340_v41  ;;  %v3715_v7 = vmax.f32 %v3712_v1, 0.0  ;;  %1615 = vrot.lane.b32.xlu0 %v1612_v6, %s8040_s23  ;;  %v13099_v52 = vrot.slane %v9356_v37, 2  ;;  %v1010_v21 = vrot.slane %v1003_v4, 1  ;;  %v1069_v51 = vrot.slane %v1062_v18, 2 }
 0x18d   : > { %4261 = vrot.lane.b32.xlu1 %v4255_v56, %s8041_s25  ;;  %v4310_v56 = vmul.f32 %v8915_v19, %v1628_v15  ;;  %v4315_v15 = vrot.slane %v4309_v43, 2  ;;  %v4318_v16 = vrot.slane %v4311_v39, 2  ;;  %v1824_v4 = vstv %s7400_s15  ;;  %s9659_s15 = sld [smem:[#allocation4 + $0x2b]] }
 0x18e   : > { %v9375_v53 = vsel %vm8555_vm8, %v3715_v7, 0.0  ;;  %v9392_v9 = vpop.permute.xlu0 %1153  ;;  %v9398_v42 = vsel %vm473_vm0, %v1008_v58, %v1010_v21  ;;  %v9403_v24 = vsel %vm543_vm1, %v13100_v5, %v1069_v51  ;;  %v1637_v58 = vsel %vm543_vm1, %v1635_v14, %v1636_v46 }
 0x18f   : > { %13342 = vst [vmem:[#allocation47_spill] sm:$0xff] %v9375_v53  ;;  %v3749_v33 = vmul.f32 %v9375_v53, %v9228_v35  ;;  %v3802_v55 = vmul.f32 %v9375_v53, %v9335_v0  ;;  %v9388_v3 = vpop.permute.xlu1 %3867  ;;  %v4296_v35 = vsel %vm543_vm1, %v4293_v44, %v4295_v29  ;;  %13343 = vst [vmem:[#allocation48_spill] sm:$0xff] %v9398_v42  ;;  %v4316_v6 = vrot.slane %v4310_v56, 2 }
 0x190   : > { %13344 = vst [vmem:[#allocation49_spill] sm:$0xff] %v9403_v24  ;;  %4297 = vrot.lane.b32.xlu0 %v4294_v11, %s8040_s23  ;;  %v9440_v18 = vstv %s7359_s17  ;;  %v1825_v8 = vmul.f32 %v8781_v10, %v1824_v4  ;;  %v9525_v25 = vstv %s7364_s27  ;;  %v1908_v27 = vstv %s9495_s28  ;;  %s9706_s17 = sld [smem:[#allocation8 + $0x2]]  ;;  %s7374_s27 = sld [smem:[#allocation10 + $0x15]] }
 0x191   : > { %v3756_v48 = vrot.slane %v3749_v33, 1  ;;  %v3809_v40 = vrot.slane %v3802_v55, 2  ;;  %1617 = vrot.lane.b32.xlu1 %v1614_v30, %s8040_s23  ;;  %v4317_v7 = vsel %vm543_vm1, %v4315_v15, %v4316_v6  ;;  %v4319_v11 = vsel %vm543_vm1, %v4316_v6, %v4318_v16  ;;  %13347 = vst [vmem:[#allocation52_spill] sm:$0xff] %v9440_v18  ;;  %s7377_s28 = sld [smem:[#allocation10 + $0x18]] }
 0x192   : > { %v9417_v26 = vpop.permute.xlu0 %3883  ;;  %v9447_v55 = vmul.f32 %v9440_v18, %v9282_v59  ;;  %v9512_v5 = vmul.f32 %v9313_v50, %v9440_v18 }
 0x193   : > { %v9406_v13 = vsel %vm473_vm0, %v3754_v63, %v3756_v48  ;;  %v9411_v1 = vsel %vm543_vm1, %v13099_v52, %v3809_v40  ;;  %v9414_v44 = vpop.permute.xlu1 %1155  ;;  %v1639_v63 = vsel %vm543_vm1, %v1636_v46, %v1638_v45  ;;  %v4481_v48 = vmul.f32 %v8911_v23, %v1824_v4 }
 0x194   : > { %13345 = vst [vmem:[#allocation50_spill] sm:$0xff] %v9406_v13  ;;  %13346 = vst [vmem:[#allocation51_spill] sm:$0xff] %v9411_v1  ;;  %1640 = vrot.lane.b32.xlu0 %v1637_v58, %s8041_s25  ;;  %v13098_v21 = vrot.slane %v9447_v55, 2  ;;  %v1844_v40 = vstv %s7401_s22  ;;  %v9477_v58 = vld [vmem:[%s8216_s18] sm:$0xff]  ;;  %v4483_v1 = vmul.f32 %v8942_v28, %v1824_v4  ;;  %s9738_s22 = sld [smem:[#allocation4 + $0x2c]] }
 0x195   : > { %4299 = vrot.lane.b32.xlu1 %v4296_v35, %s8040_s23  ;;  %13348 = vst [vmem:[#allocation53_spill] sm:$0xff] %v9447_v55  ;;  %v1845_v15 = vmul.f32 %v9477_v58, %v1844_v40  ;;  %13351 = vst [vmem:[#allocation56_spill] sm:$0xff] %v9512_v5  ;;  %v13353_v55 = vrot.slane %v9512_v5, 2  ;;  %v4501_v53 = vmul.f32 %v8942_v28, %v1844_v40 }
 0x196   : > { %v9425_v30 = vpop.permute.xlu0 %1137 }
 0x197   : > { %v9422_v62 = vpop.permute.xlu1 %3885 }
 0x198   : > { %4320 = vrot.lane.b32.xlu0 %v4317_v7, %s8041_s25 }
 0x199   : > { %1642 = vrot.lane.b32.xlu1 %v1639_v63, %s8041_s25  ;;  %v9484_v63 = vld [vmem:[%s8216_s18 + $0x8] sm:$0xff] }
 0x19a   : > { %v9432_v43 = vpop.permute.xlu0 %1157 }
 0x19b   : > { %v9430_v20 = vpop.permute.xlu1 %3869 }
 0x19c   : > { %1619 = vrot.lane.b32.xlu0 %v1613_v54, %s8040_s23  ;;  %v1077_v54 = vmul.f32 %v9440_v18, %v9263_v36 }
 0x19d   : > { %4322 = vrot.lane.b32.xlu1 %v4319_v11, %s8041_s25  ;;  %v4499_v11 = vmul.f32 %v8911_v23, %v1844_v40 }
 0x19e   : > { %v9442_v33 = vpop.permute.xlu0 %1197  ;;  %v1083_v10 = vrot.slane %v1077_v54, 2  ;;  %v4500_v54 = vmul.f32 %v8915_v19, %v1844_v40 }
 0x19f   : > { %v9438_v56 = vpop.permute.xlu1 %3887 }
 0x1a0   : > { %1644 = vrot.lane.b32.xlu0 %v1638_v45, %s8041_s25  ;;  %v4482_v45 = vmul.f32 %v8915_v19, %v1824_v4 }
 0x1a1   : > { %4301 = vrot.lane.b32.xlu1 %v4295_v29, %s8040_s23  ;;  %v1826_v29 = vmul.f32 %v8785_v38, %v1824_v4  ;;  %v9471_v38 = vsel %vm543_vm1, %v1083_v10, %v13098_v21  ;;  %v9501_v10 = vld [vmem:[%s8216_s18 + $0x10] sm:$0xf] }
 0x1a2   : > { %v9455_v46 = vpop.permute.xlu0 %3923  ;;  %13349 = vst [vmem:[#allocation54_spill] sm:$0xff] %v9471_v38 }
 0x1a3   : > { %v9450_v14 = vpop.permute.xlu1 %1199 }
 0x1a4   : > { %1831 = vrot.lane.b32.xlu0 %v1825_v8, %s8040_s23 }
 0x1a5   : > { %4324 = vrot.lane.b32.xlu1 %v4318_v16, %s8041_s25  ;;  %v1846_v16 = vmul.f32 %v9484_v63, %v1844_v40 }
 0x1a6   : > { %v9464_v35 = vpop.permute.xlu0 %1222 }
 0x1a7   : > { %v9461_v51 = vpop.permute.xlu1 %3925 }
 0x1a8   : > { %4487 = vrot.lane.b32.xlu0 %v4481_v48, %s8040_s23 }
 0x1a9   : > { %1833 = vrot.lane.b32.xlu1 %v1826_v29, %s8040_s23  ;;  %v1883_v29 = vstv %s7403_s30  ;;  %s9820_s30 = sld [smem:[#allocation10 + $0x19]] }
 0x1aa   : > { %v9480_v6 = vpop.permute.xlu0 %3946  ;;  %v1884_v21 = vmul.f32 %v9477_v58, %v1883_v29  ;;  %v1885_v52 = vmul.f32 %v9484_v63, %v1883_v29  ;;  %v9519_v24 = vmul.f32 %v9501_v10, %v1883_v29  ;;  %v4534_v13 = vmul.f32 %v8911_v23, %v1883_v29 }
 0x1ab   : > { %v9474_v39 = vpop.permute.xlu1 %1224 }
 0x1ac   : > { %1851 = vrot.lane.b32.xlu0 %v1845_v15, %s8041_s25  ;;  %v9504_v15 = vstv %s7360_s26  ;;  %v1890_v42 = vrot.slane %v1884_v21, 1  ;;  %v1891_v60 = vrot.slane %v1885_v52, 1  ;;  %v4540_v21 = vrot.slane %v4534_v13, 1  ;;  %s7379_s26 = sld [smem:[#allocation10 + $0x1a]] }
 0x1ad   : > { %4489 = vrot.lane.b32.xlu1 %v4482_v45, %s8040_s23  ;;  %v1827_v45 = vmul.f32 %v9501_v10, %v1824_v4  ;;  %13350 = vst [vmem:[#allocation55_spill] sm:$0xff] %v9504_v15  ;;  %v4535_v4 = vmul.f32 %v8915_v19, %v1883_v29  ;;  %v1098_v49 = vmul.f32 %v9504_v15, %v9263_v36 }
 0x1ae   : > { %v9491_v8 = vpop.permute.xlu0 %1201  ;;  %v9550_v32 = vmul.f32 %v9504_v15, %v9282_v59  ;;  %v9564_v5 = vmul.f32 %v9313_v50, %v9504_v15  ;;  %v1909_v52 = vmul.f32 %v9477_v58, %v1908_v27  ;;  %v1168_v50 = vmul.f32 %v9484_v63, %v9525_v25 }
 0x1af   : > { %v9488_v7 = vpop.permute.xlu1 %3948 }
 0x1b0   : > { %4505 = vrot.lane.b32.xlu0 %v4499_v11, %s8041_s25  ;;  %13355 = vst [vmem:[#allocation59_spill] sm:$0xff] %v9550_v32  ;;  %13356 = vst [vmem:[#allocation60_spill] sm:$0xff] %v9564_v5 }
 0x1b1   : > { %1853 = vrot.lane.b32.xlu1 %v1846_v16, %s8041_s25  ;;  %v3815_v16 = vmul.f32 %v9298_v34, %v9440_v18 }
 0x1b2   : > { %v9514_v11 = vpop.permute.xlu0 %1226 }
 0x1b3   : > { %v9498_v48 = vpop.permute.xlu1 %3927  ;;  %v3821_v41 = vrot.slane %v3815_v16, 2  ;;  %v1060_v16 = vmul.f32 %v9335_v0, %v9263_v36  ;;  %v13360_v36 = vrot.slane %v9352_v57, 2  ;;  %v1915_v57 = vrot.slane %v1909_v52, 1 }
 0x1b4   : > { %1835 = vrot.lane.b32.xlu0 %v1827_v45, %s8040_s23  ;;  %v3800_v45 = vmul.f32 %v9298_v34, %v9335_v0  ;;  %v3834_v0 = vmul.f32 %v9298_v34, %v9504_v15  ;;  %v13359_v15 = vrot.slane %v9519_v24, 1  ;;  %v3896_v52 = vmul.f32 %v8915_v19, %v9525_v25 }
 0x1b5   : > { %4507 = vrot.lane.b32.xlu1 %v4500_v54, %s8041_s25  ;;  %v1847_v54 = vmul.f32 %v9501_v10, %v1844_v40  ;;  %v9539_v38 = vsel %vm543_vm1, %v3821_v41, %v13353_v55  ;;  %v9554_v41 = vmul.f32 %v8942_v28, %v1883_v29  ;;  %v1104_v40 = vrot.slane %v1098_v49, 2 }
 0x1b6   : > { %13354 = vst [vmem:[#allocation58_spill] sm:$0xff] %v9539_v38  ;;  %v9543_v18 = vpop.permute.xlu0 %1266  ;;  %v13124_v38 = vrot.slane %v9550_v32, 2  ;;  %v1066_v13 = vrot.slane %v1060_v16, 2  ;;  %v1892_v29 = vsel %vm473_vm0, %v1890_v42, %v1891_v60  ;;  %v3806_v34 = vrot.slane %v3800_v45, 2 }
 0x1b7   : > { %v9528_v31 = vpop.permute.xlu1 %3950  ;;  %v13125_v16 = vrot.slane %v9564_v5, 2  ;;  %v1894_v42 = vsel %vm473_vm0, %v1891_v60, %v13359_v15  ;;  %v9585_v45 = vmul.f32 %v9501_v10, %v1908_v27  ;;  %v1118_v32 = vstv %s9523_s29  ;;  %s9925_s29 = sld [smem:[#allocation4 + $0x2e]] }
 0x1b8   : > { %13352 = vst [vmem:[#allocation57_spill] sm:$0xff] %v9528_v31  ;;  %1855 = vrot.lane.b32.xlu0 %v1847_v54, %s8041_s25  ;;  %v1910_v54 = vmul.f32 %v9484_v63, %v1908_v27  ;;  %v9577_v49 = vsel %vm543_vm1, %v1104_v40, %v13124_v38  ;;  %v13364_v15 = vrot.slane %v9356_v37, 2  ;;  %v1235_v5 = vstv %s9566_s10  ;;  %s9985_s10 = sld [smem:[#allocation4 + $0x2f]] }
 0x1b9   : > { %4491 = vrot.lane.b32.xlu1 %v4483_v1, %s8040_s23  ;;  %v4541_v1 = vrot.slane %v4535_v4, 1  ;;  %13358 = vst [vmem:[#allocation62_spill] sm:$0xff] %v9577_v49  ;;  %v3840_v4 = vrot.slane %v3834_v0, 2  ;;  %v3902_v2 = vrot.slane %v3896_v52, 1  ;;  %v1121_v52 = vmul.f32 %v9501_v10, %v1118_v32 }
 0x1ba   : > { %v9571_v59 = vpop.permute.xlu0 %3986  ;;  %v9605_v38 = vsel %vm543_vm1, %v3806_v34, %v13364_v15  ;;  %v3895_v34 = vmul.f32 %v8911_v23, %v9525_v25 }
 0x1bb   : > { %v9559_v55 = vpop.permute.xlu1 %1268  ;;  %13357 = vst [vmem:[#allocation61_spill] sm:$0xff] %v9571_v59  ;;  %v4542_v40 = vsel %vm473_vm0, %v4540_v21, %v4541_v1  ;;  %v9600_v60 = vsel %vm543_vm1, %v3840_v4, %v13125_v16  ;;  %13365 = vst [vmem:[#allocation66_spill] sm:$0xff] %v9605_v38  ;;  %v1167_v21 = vmul.f32 %v9477_v58, %v9525_v25 }
 0x1bc   : > { %1895 = vrot.lane.b32.xlu0 %v1892_v29, %s8040_s23  ;;  %13363 = vst [vmem:[#allocation65_spill] sm:$0xff] %v9600_v60  ;;  %v4558_v29 = vmul.f32 %v8915_v19, %v1908_v27  ;;  %v9615_v4 = vmul.f32 %v9501_v10, %v9525_v25  ;;  %v9629_v38 = vmul.f32 %v8942_v28, %v1908_v27 }
 0x1bd   : > { %4509 = vrot.lane.b32.xlu1 %v4501_v53, %s8041_s25  ;;  %v9590_v53 = vsel %vm543_vm1, %v1066_v13, %v13360_v36  ;;  %v1916_v36 = vrot.slane %v1910_v54, 1  ;;  %v4557_v13 = vmul.f32 %v8911_v23, %v1908_v27  ;;  %v13367_v54 = vrot.slane %v9554_v41, 1 }
 0x1be   : > { %13361 = vst [vmem:[#allocation63_spill] sm:$0xff] %v9590_v53  ;;  %v9619_v37 = vpop.permute.xlu0 %1291  ;;  %v1119_v53 = vmul.f32 %v9477_v58, %v1118_v32  ;;  %v1120_v23 = vmul.f32 %v9484_v63, %v1118_v32  ;;  %v4564_v49 = vrot.slane %v4558_v29, 1  ;;  %v9641_v16 = vmul.f32 %v8942_v28, %v9525_v25  ;;  %v9651_v29 = vld [vmem:[%s8347_s24] sm:$0xff] }
 0x1bf   : > { %v9594_v0 = vpop.permute.xlu1 %3988  ;;  %13366 = vst [vmem:[#allocation67_spill] sm:$0xff] %v9619_v37  ;;  %v4544_v15 = vsel %vm473_vm0, %v4541_v1, %v13367_v54  ;;  %v1917_v19 = vsel %vm473_vm0, %v1915_v57, %v1916_v36  ;;  %v4563_v60 = vrot.slane %v4557_v13, 1  ;;  %v1173_v1 = vrot.slane %v1167_v21, 1 }
 0x1c0   : > { %13362 = vst [vmem:[#allocation64_spill] sm:$0xff] %v9594_v0  ;;  %4545 = vrot.lane.b32.xlu0 %v4542_v40, %s8040_s23  ;;  %v1174_v54 = vrot.slane %v1168_v50, 1  ;;  %v3901_v40 = vrot.slane %v3895_v34, 1  ;;  %v13370_v57 = vrot.slane %v9585_v45, 1  ;;  %v3853_v21 = vmul.f32 %v9651_v29, %v1118_v32  ;;  %v9662_v34 = vld [vmem:[%s8347_s24 + $0x8] sm:$0xff] }
 0x1c1   : > { %1897 = vrot.lane.b32.xlu1 %v1894_v42, %s8040_s23  ;;  %v1236_v28 = vmul.f32 %v9477_v58, %v1235_v5  ;;  %v1237_v25 = vmul.f32 %v9484_v63, %v1235_v5  ;;  %v4565_v50 = vsel %vm473_vm0, %v4563_v60, %v4564_v49  ;;  %v1142_v12 = vadd.f32 %v9327_v47, %v1119_v53 }
 0x1c2   : > { %v9643_v61 = vpop.permute.xlu0 %4009  ;;  %v1919_v13 = vsel %vm473_vm0, %v1916_v36, %v13370_v57  ;;  %v3854_v36 = vmul.f32 %v9662_v34, %v1118_v32  ;;  %v13373_v59 = vrot.slane %v9615_v4, 1  ;;  %v3903_v60 = vsel %vm473_vm0, %v3901_v40, %v3902_v2 }
 0x1c3   : > { %v9634_v42 = vpop.permute.xlu1 %1293  ;;  %13369 = vst [vmem:[#allocation69_spill] sm:$0xff] %v9643_v61  ;;  %v9675_v61 = vmul.f32 %v9501_v10, %v1235_v5  ;;  %v13374_v47 = vrot.slane %v9629_v38, 1  ;;  %v1243_v37 = vrot.slane %v1237_v25, 2  ;;  %v3874_v31 = vadd.f32 %v9358_v17, %v3853_v21  ;;  %v13379_v21 = vld [vmem:[#allocation21_spill] sm:$0xff] }
 0x1c4   : > { %13368 = vst [vmem:[#allocation68_spill] sm:$0xff] %v9634_v42  ;;  %1920 = vrot.lane.b32.xlu0 %v1917_v19, %s8041_s25  ;;  %v1175_v19 = vsel %vm473_vm0, %v1173_v1, %v1174_v54  ;;  %v1143_v42 = vadd.f32 %v9345_v22, %v1120_v23  ;;  %v1162_v1 = vadd.f32 %v9392_v9, %v1142_v12  ;;  %v13376_v22 = vld [vmem:[#allocation24_spill] sm:$0xff]  ;;  %v13377_v12 = vrot.slane %v9641_v16, 1 }
 0x1c5   : > { %4547 = vrot.lane.b32.xlu1 %v4544_v15, %s8040_s23  ;;  %v9667_v15 = vld [vmem:[%s8347_s24 + $0x10] sm:$0xf]  ;;  %v4567_v53 = vsel %vm473_vm0, %v4564_v49, %v13374_v47  ;;  %v3959_v40 = vmul.f32 %v9662_v34, %v1235_v5  ;;  %v3875_v49 = vadd.f32 %v9388_v3, %v3854_v36  ;;  %v3424_v25 = vmul.f32 %v13376_v22, %v13379_v21 }
 0x1c6   : > { %v3855_v57 = vmul.f32 %v9667_v15, %v1118_v32  ;;  %v9677_v0 = vpop.permute.xlu0 %1270  ;;  %v1177_v32 = vsel %vm473_vm0, %v1174_v54, %v13373_v59  ;;  %v1163_v59 = vadd.f32 %v9414_v44, %v1143_v42  ;;  %v3958_v54 = vmul.f32 %v9651_v29, %v1235_v5  ;;  %v13378_v3 = vld [vmem:[#allocation23_spill] sm:$0xff] }
 0x1c7   : > { %v9657_v27 = vpop.permute.xlu1 %4011  ;;  %13372 = vst [vmem:[#allocation71_spill] sm:$0xff] %v9677_v0  ;;  %v3905_v9 = vsel %vm473_vm0, %v3902_v2, %v13377_v12  ;;  %v3892_v44 = vadd.f32 %v9417_v26, %v3874_v31  ;;  %v9718_v2 = vmul.f32 %v13378_v3, %v13379_v21  ;;  %v1144_v36 = vadd.f32 %v9425_v30, %v1121_v52 }
 0x1c8   : > { %13371 = vst [vmem:[#allocation70_spill] sm:$0xff] %v9657_v27  ;;  %v1242_v27 = vrot.slane %v1236_v28, 2  ;;  %4568 = vrot.lane.b32.xlu0 %v4565_v50, %s8041_s25  ;;  %v9704_v28 = vmul.f32 %v9667_v15, %v1235_v5  ;;  %v3893_v5 = vadd.f32 %v9422_v62, %v3875_v49  ;;  %v1181_v47 = vadd.f32 %v1175_v19, %v1162_v1 }
 0x1c9   : > { %1922 = vrot.lane.b32.xlu1 %v1919_v13, %s8041_s25  ;;  %v13375_v13 = vld [vmem:[#allocation19_spill] sm:$0xff]  ;;  %v1952_v26 = vstv %s9659_s15  ;;  %v3964_v50 = vrot.slane %v3958_v54, 2  ;;  %v3876_v21 = vadd.f32 %v9430_v20, %v3855_v57  ;;  %v13381_v62 = vrot.slane %v9675_v61, 2  ;;  %s7383_s15 = sld [smem:[#allocation4 + $0x1e]] }
 0x1ca   : > { %v3412_v23 = vmul.f32 %v13376_v22, %v13375_v13  ;;  %v9708_v17 = vpop.permute.xlu0 %1295  ;;  %v3413_v42 = vmul.f32 %v13378_v3, %v13375_v13  ;;  %v1182_v13 = vadd.f32 %v1177_v32, %v1163_v59  ;;  %v1244_v12 = vsel %vm543_vm1, %v1242_v27, %v1243_v37 }
 0x1cb   : > { %v9690_v0 = vpop.permute.xlu1 %3990  ;;  %v3965_v22 = vrot.slane %v3959_v40, 2  ;;  %v1206_v3 = vadd.f32 %v9442_v33, %v1181_v47  ;;  %v1246_v30 = vsel %vm543_vm1, %v1243_v37, %v13381_v62  ;;  %v3967_v52 = vrot.slane %v9704_v28, 2 }
 0x1cc   : > { %v1207_v27 = vadd.f32 %v9450_v14, %v1182_v13  ;;  %v3909_v19 = vadd.f32 %v3903_v60, %v3892_v44  ;;  %v1953_v20 = vmul.f32 %v9477_v58, %v1952_v26  ;;  %v1954_v33 = vmul.f32 %v9484_v63, %v1952_v26 }
 0x1cd   : > { %4570 = vrot.lane.b32.xlu1 %v4567_v53, %s8041_s25  ;;  %v13380_v53 = vrot.slane %v9519_v24, 1  ;;  %v1164_v57 = vadd.f32 %v9432_v43, %v1144_v36  ;;  %v3894_v37 = vadd.f32 %v9438_v56, %v3876_v21  ;;  %v3910_v32 = vadd.f32 %v3905_v9, %v3893_v5 }
 0x1ce   : > { %v9735_v24 = vpop.permute.xlu0 %1482  ;;  %v1231_v1 = vadd.f32 %v9464_v35, %v1206_v3  ;;  %v3932_v59 = vadd.f32 %v9455_v46, %v3909_v19  ;;  %v1232_v14 = vadd.f32 %v9474_v39, %v1207_v27  ;;  %v9752_v60 = vmul.f32 %v9501_v10, %v1952_v26 }
 0x1cf   : > { %1899 = vrot.lane.b32.xlu0 %v13380_v53, %s8040_s23  ;;  %v9725_v31 = vpop.permute.xlu1 %4013  ;;  %v4597_v54 = vmul.f32 %v9651_v29, %v1952_v26  ;;  %v3933_v43 = vadd.f32 %v9461_v51, %v3910_v32  ;;  %v3966_v56 = vsel %vm543_vm1, %v3964_v50, %v3965_v22  ;;  %v3968_v35 = vsel %vm543_vm1, %v3965_v22, %v3967_v52  ;;  %v13389_v32 = vld [vmem:[#allocation68_spill] sm:$0xff] }
 0x1d0   : > { %v9761_v40 = vstv %s9706_s17  ;;  %v13382_v46 = vrot.slane %v9554_v41, 1  ;;  %v3955_v39 = vadd.f32 %v9480_v6, %v3932_v59  ;;  %v1959_v9 = vrot.slane %v1953_v20, 2  ;;  %v13386_v20 = vld [vmem:[#allocation57_spill] sm:$0xff]  ;;  %s7386_s17 = sld [smem:[#allocation4 + $0x21]] }
 0x1d1   : > { %3416 = vrot.lane.b32.xlu1 %v3412_v23, %s8040_s23  ;;  %v1960_v44 = vrot.slane %v1954_v33, 2  ;;  %v4598_v51 = vmul.f32 %v9662_v34, %v1952_v26  ;;  %v3956_v50 = vadd.f32 %v9488_v7, %v3933_v43  ;;  %v13383_v3 = vrot.slane %v9615_v4, 1 }
 0x1d2   : > { %v9763_v49 = vpop.permute.xlu0 %4176  ;;  %v1250_v36 = vadd.f32 %v1244_v12, %v1231_v1  ;;  %v13385_v41 = vrot.slane %v9585_v45, 1  ;;  %v1251_v6 = vadd.f32 %v1246_v30, %v1232_v14  ;;  %v1962_v53 = vrot.slane %v9752_v60, 2  ;;  %v13390_v14 = vld [vmem:[#allocation64_spill] sm:$0xff]  ;;  %v13410_v60 = vld [vmem:[#allocation29_spill] sm:$0xff] }
 0x1d3   : > { %3418 = vrot.lane.b32.xlu0 %v3413_v42, %s8040_s23  ;;  %v9747_v23 = vpop.permute.xlu1 %1484  ;;  %v1183_v22 = vadd.f32 %v13383_v3, %v1164_v57  ;;  %v13384_v42 = vrot.slane %v9641_v16, 1  ;;  %v4603_v13 = vrot.slane %v4597_v54, 2  ;;  %v9782_v21 = vmul.f32 %v9667_v15, %v1952_v26  ;;  %v13387_v57 = vld [vmem:[#allocation67_spill] sm:$0xff] }
 0x1d4   : > { %v1275_v16 = vadd.f32 %v9543_v18, %v1250_v36  ;;  %v1977_v45 = vstv %s9738_s22  ;;  %v1276_v62 = vadd.f32 %v9559_v55, %v1251_v6  ;;  %v3972_v30 = vadd.f32 %v3966_v56, %v3955_v39  ;;  %s7380_s22 = sld [smem:[#allocation4 + $0x1b]] }
 0x1d5   : > { %4549 = vrot.lane.b32.xlu1 %v13382_v46, %s8040_s23  ;;  %v3911_v5 = vadd.f32 %v13384_v42, %v3894_v37  ;;  %v1208_v7 = vadd.f32 %v9491_v8, %v1183_v22  ;;  %v1961_v27 = vsel %vm543_vm1, %v1959_v9, %v1960_v44  ;;  %v4604_v19 = vrot.slane %v4598_v51, 2 }
 0x1d6   : > { %v9787_v12 = vpop.permute.xlu0 %1502  ;;  %v3973_v8 = vadd.f32 %v3968_v35, %v3956_v50  ;;  %v1301_v55 = vadd.f32 %v13389_v32, %v1276_v62  ;;  %v1978_v1 = vmul.f32 %v9477_v58, %v1977_v45  ;;  %v1979_v59 = vmul.f32 %v9484_v63, %v1977_v45  ;;  %v13392_v35 = vld [vmem:[#allocation69_spill] sm:$0xff]  ;;  %v13393_v50 = vld [vmem:[#allocation70_spill] sm:$0xff] }
 0x1d7   : > { %1924 = vrot.lane.b32.xlu0 %v13385_v41, %s8041_s25  ;;  %v9778_v47 = vpop.permute.xlu1 %4178  ;;  %v3934_v4 = vadd.f32 %v9498_v48, %v3911_v5  ;;  %v1233_v26 = vadd.f32 %v9514_v11, %v1208_v7  ;;  %v1300_v48 = vadd.f32 %v13387_v57, %v1275_v16  ;;  %v13391_v43 = vrot.slane %v9629_v38, 1  ;;  %v13395_v7 = vld [vmem:[#allocation71_spill] sm:$0xff] }
 0x1d8   : > { %v3996_v11 = vadd.f32 %v13390_v14, %v3973_v8  ;;  %v4606_v56 = vrot.slane %v9782_v21, 2  ;;  %v4605_v39 = vsel %vm543_vm1, %v4603_v13, %v4604_v19  ;;  %v9817_v9 = vmul.f32 %v9501_v10, %v1977_v45 }
 0x1d9   : > { %3428 = vrot.lane.b32.xlu1 %v3424_v25, %s8041_s25  ;;  %v3957_v33 = vadd.f32 %v13386_v20, %v3934_v4  ;;  %v13388_v25 = vld [vmem:[#allocation61_spill] sm:$0xff]  ;;  %v4620_v51 = vmul.f32 %v9651_v29, %v1977_v45  ;;  %v1305_v38 = vadd.f32 %v9761_v40, %v1300_v48  ;;  %v13394_v22 = vrot.slane %v9675_v61, 2 }
 0x1da   : > { %v3995_v37 = vadd.f32 %v13388_v25, %v3972_v30  ;;  %v9805_v54 = vpop.permute.xlu0 %4194  ;;  %v4019_v3 = vadd.f32 %v13393_v50, %v3996_v11  ;;  %v1306_v36 = vadd.f32 %v9761_v40, %v1301_v55  ;;  %v1984_v41 = vrot.slane %v1978_v1, 2 }
 0x1db   : > { %3430 = vrot.lane.b32.xlu0 %v9718_v2, %s8041_s25  ;;  %v9798_v18 = vpop.permute.xlu1 %1504  ;;  %v1963_v2 = vsel %vm543_vm1, %v1960_v44, %v1962_v53  ;;  %v1252_v44 = vadd.f32 %v13394_v22, %v1233_v26  ;;  %v3974_v42 = vadd.f32 %v3967_v52, %v3957_v33  ;;  %v1985_v6 = vrot.slane %v1979_v59, 2 }
 0x1dc   : > { %v4018_v46 = vadd.f32 %v13392_v35, %v3995_v37  ;;  %v4621_v13 = vmul.f32 %v9662_v34, %v1977_v45  ;;  %v4607_v28 = vsel %vm543_vm1, %v4604_v19, %v4606_v56  ;;  %v1987_v52 = vrot.slane %v9817_v9, 2 }
 0x1dd   : > { %4572 = vrot.lane.b32.xlu1 %v13391_v43, %s8041_s25  ;;  %v1277_v4 = vadd.f32 %v13395_v7, %v1252_v44  ;;  %v3997_v16 = vadd.f32 %v9690_v0, %v3974_v42  ;;  %v9844_v30 = vmul.f32 %v9667_v15, %v1977_v45  ;;  %v4022_v26 = vadd.f32 %v4019_v3, %v9761_v40 }
 0x1de   : > { %v9835_v62 = vpop.permute.xlu0 %1486  ;;  %v4021_v61 = vadd.f32 %v4018_v46, %v9761_v40  ;;  %v1309_v8 = vmax.f32 %v1306_v36, 0.0  ;;  %v1986_v19 = vsel %vm543_vm1, %v1984_v41, %v1985_v6  ;;  %v4626_v57 = vrot.slane %v4620_v51, 2 }
 0x1df   : > { %1964 = vrot.lane.b32.xlu0 %v1961_v27, %s8040_s23  ;;  %v9829_v5 = vpop.permute.xlu1 %4196  ;;  %v1308_v27 = vmax.f32 %v1305_v38, 0.0  ;;  %v1302_v0 = vadd.f32 %v9708_v17, %v1277_v4  ;;  %v4020_v20 = vadd.f32 %v9725_v31, %v3997_v16  ;;  %v4627_v48 = vrot.slane %v4621_v13, 2 }
 0x1e0   : > { %v4024_v25 = vmax.f32 %v4021_v61, 0.0  ;;  %v1988_v17 = vsel %vm543_vm1, %v1985_v6, %v1987_v52  ;;  %v13134_v31 = vrot.slane %v9844_v30, 2  ;;  %v9861_v37 = vstv %s9820_s30  ;;  %s7422_s30 = sld [smem:[#allocation4 + $0x31]] }
 0x1e1   : > { %1966 = vrot.lane.b32.xlu1 %v1963_v2, %s8040_s23  ;;  %13396 = vst [vmem:[#allocation19_spill] sm:$0xff] %v9861_v37  ;;  %v9865_v55 = vsel %vm8535_vm6, %v1308_v27, 0.0  ;;  %v4025_v1 = vmax.f32 %v4022_v26, 0.0  ;;  %v1307_v59 = vadd.f32 %v9761_v40, %v1302_v0  ;;  %v4023_v14 = vadd.f32 %v4020_v20, %v9761_v40 }
 0x1e2   : > { %v9853_v45 = vpop.permute.xlu0 %1506  ;;  %13398 = vst [vmem:[#allocation21_spill] sm:$0xff] %v9865_v55  ;;  %v9874_v2 = vsel %vm8528_vm5, %v1309_v8, 0.0  ;;  %v4628_v35 = vsel %vm543_vm1, %v4626_v57, %v4627_v48  ;;  %v4630_v40 = vsel %vm543_vm1, %v4627_v48, %v13134_v31  ;;  %v1426_v51 = vmul.f32 %v9861_v37, %v9865_v55 }
 0x1e3   : > { %4608 = vrot.lane.b32.xlu0 %v4605_v39, %s8040_s23  ;;  %v9850_v33 = vpop.permute.xlu1 %4180  ;;  %13400 = vst [vmem:[#allocation57_spill] sm:$0xff] %v9874_v2  ;;  %v9882_v39 = vsel %vm8535_vm6, %v4024_v25, 0.0  ;;  %v9891_v38 = vsel %vm8528_vm5, %v4025_v1, 0.0  ;;  %v1310_v50 = vmax.f32 %v1307_v59, 0.0  ;;  %v4026_v3 = vmax.f32 %v4023_v14, 0.0 }
 0x1e4   : > { %13401 = vst [vmem:[#allocation67_spill] sm:$0xff] %v9882_v39  ;;  %13402 = vst [vmem:[#allocation61_spill] sm:$0xff] %v9891_v38  ;;  %v9898_v44 = vmul.f32 %v9861_v37, %v9874_v2  ;;  %v9900_v42 = vstv %s7379_s26  ;;  %v1432_v41 = vrot.slane %v1426_v51, 2  ;;  %v4126_v13 = vmul.f32 %v9882_v39, %v9861_v37  ;;  %s10114_s26 = sld [smem:[#allocation4 + $0x32]] }
 0x1e5   : > { %4610 = vrot.lane.b32.xlu1 %v4607_v28, %s8040_s23  ;;  %13404 = vst [vmem:[#allocation64_spill] sm:$0xff] %v9900_v42  ;;  %v9910_v7 = vmul.f32 %v9891_v38, %v9861_v37  ;;  %v9914_v16 = vsel %vm8555_vm8, %v1310_v50, 0.0  ;;  %v9918_v61 = vsel %vm8555_vm8, %v4026_v3, 0.0  ;;  %v1447_v26 = vmul.f32 %v9900_v42, %v9865_v55 }
 0x1e6   : > { %v9877_v46 = vpop.permute.xlu0 %1546  ;;  %13403 = vst [vmem:[#allocation68_spill] sm:$0xff] %v9898_v44  ;;  %v13133_v6 = vrot.slane %v9898_v44, 2  ;;  %13407 = vst [vmem:[#allocation70_spill] sm:$0xff] %v9914_v16  ;;  %v4132_v0 = vrot.slane %v4126_v13, 2  ;;  %v1349_v8 = vstv %s7374_s27  ;;  %v1408_v51 = vstv %s7377_s28  ;;  %s10185_s27 = sld [smem:[#allocation8 + $0x3]]  ;;  %s10234_s28 = sld [smem:[#allocation10 + $0xa]] }
 0x1e7   : > { %1989 = vrot.lane.b32.xlu0 %v1986_v19, %s8041_s25  ;;  %v9870_v11 = vpop.permute.xlu1 %4198  ;;  %13405 = vst [vmem:[#allocation69_spill] sm:$0xff] %v9910_v7  ;;  %13408 = vst [vmem:[#allocation71_spill] sm:$0xff] %v9918_v61  ;;  %v13132_v20 = vrot.slane %v9910_v7, 2  ;;  %v1352_v57 = vmul.f32 %v1349_v8, %v9914_v16  ;;  %v4060_v48 = vmul.f32 %v9918_v61, %v1349_v8  ;;  %v1453_v59 = vrot.slane %v1447_v26, 2 }
 0x1e8   : > { %v9930_v27 = vsel %vm543_vm1, %v1432_v41, %v13133_v6  ;;  %v1351_v50 = vmul.f32 %v1349_v8, %v9874_v2  ;;  %v4059_v3 = vmul.f32 %v9891_v38, %v1349_v8  ;;  %v4058_v9 = vmul.f32 %v9882_v39, %v1349_v8 }
 0x1e9   : > { %1991 = vrot.lane.b32.xlu1 %v1988_v17, %s8041_s25  ;;  %13409 = vst [vmem:[#allocation72_spill] sm:$0xff] %v9930_v27  ;;  %v9948_v25 = vsel %vm543_vm1, %v4132_v0, %v13132_v20  ;;  %v13413_v17 = vld [vmem:[#allocation30_spill] sm:$0xff]  ;;  %v1350_v0 = vmul.f32 %v1349_v8, %v9865_v55  ;;  %v1410_v20 = vmul.f32 %v1408_v51, %v9874_v2  ;;  %v1359_v6 = vrot.slane %v1352_v57, 1  ;;  %v13418_v57 = vld [vmem:[#allocation31_spill] sm:$0xff] }
 0x1ea   : > { %v9902_v36 = vpop.permute.xlu0 %4234  ;;  %13412 = vst [vmem:[#allocation73_spill] sm:$0xff] %v9948_v25  ;;  %v4067_v31 = vrot.slane %v4060_v48, 1 }
 0x1eb   : > { %4631 = vrot.lane.b32.xlu0 %v4628_v35, %s8041_s25  ;;  %v9894_v22 = vpop.permute.xlu1 %1548  ;;  %v4145_v35 = vmul.f32 %v9882_v39, %v9900_v42  ;;  %v1356_v48 = vrot.slane %v1350_v0, 1  ;;  %v4112_v0 = vmul.f32 %v9891_v38, %v1408_v51 }
 0x1ed   : > { %4633 = vrot.lane.b32.xlu1 %v4630_v40, %s8041_s25  ;;  %v9959_v40 = vmul.f32 %v9891_v38, %v9900_v42 }
 0x1ee   : > { %v9935_v19 = vpop.permute.xlu0 %1571 }
 0x1ef   : > { %1968 = vrot.lane.b32.xlu0 %v1962_v53, %s8040_s23  ;;  %v9923_v28 = vpop.permute.xlu1 %4236  ;;  %v9941_v53 = vmul.f32 %v9900_v42, %v9874_v2  ;;  %13414 = vst [vmem:[#allocation30_spill] sm:$0xff] %v9959_v40  ;;  %v13139_v26 = vrot.slane %v9959_v40, 2  ;;  %v1409_v40 = vmul.f32 %v1408_v51, %v9865_v55 }
 0x1f1   : > { %3462 = vrot.lane.b32.xlu1 %v13410_v60, %s8040_s23  ;;  %13411 = vst [vmem:[#allocation29_spill] sm:$0xff] %v9941_v53  ;;  %v13135_v14 = vrot.slane %v9941_v53, 2  ;;  %v1411_v60 = vmul.f32 %v1408_v51, %v9914_v16 }
 0x1f2   : > { %v9963_v41 = vpop.permute.xlu0 %4257 }
 0x1f3   : > { %3464 = vrot.lane.b32.xlu0 %v13413_v17, %s8040_s23  ;;  %v9952_v1 = vpop.permute.xlu1 %1573  ;;  %v9971_v13 = vsel %vm543_vm1, %v1453_v59, %v13135_v14  ;;  %v4151_v17 = vrot.slane %v4145_v35, 2  ;;  %v1357_v14 = vrot.slane %v1351_v50, 1  ;;  %v1418_v53 = vrot.slane %v1411_v60, 2 }
 0x1f4   : > { %13415 = vst [vmem:[#allocation74_spill] sm:$0xff] %v9971_v13  ;;  %v4113_v13 = vmul.f32 %v9918_v61, %v1408_v51 }
 0x1f5   : > { %4612 = vrot.lane.b32.xlu1 %v4606_v56, %s8040_s23  ;;  %v9983_v56 = vstv %s9925_s29  ;;  %v9990_v59 = vsel %vm543_vm1, %v4151_v17, %v13139_v26  ;;  %v13419_v17 = vld [vmem:[#allocation32_spill] sm:$0xff]  ;;  %v10009_v50 = vsel %vm473_vm0, %v1357_v14, %v1359_v6  ;;  %s7398_s29 = sld [smem:[#allocation10 + $0x23]] }
 0x1f6   : > { %13416 = vst [vmem:[#allocation75_spill] sm:$0xff] %v9990_v59  ;;  %v9992_v35 = vpop.permute.xlu0 %1550  ;;  %v2174_v7 = vmul.f32 %v9477_v58, %v9983_v56  ;;  %13422 = vst [vmem:[#allocation77_spill] sm:$0xff] %v10009_v50  ;;  %v1415_v59 = vrot.slane %v1409_v40, 2  ;;  %v4792_v6 = vmul.f32 %v9651_v29, %v9983_v56  ;;  %v4111_v40 = vmul.f32 %v9882_v39, %v1408_v51 }
 0x1f7   : > { %1993 = vrot.lane.b32.xlu0 %v1987_v52, %s8041_s25  ;;  %v9980_v21 = vpop.permute.xlu1 %4259  ;;  %13417 = vst [vmem:[#allocation76_spill] sm:$0xff] %v9992_v35  ;;  %v4065_v52 = vrot.slane %v4059_v3, 1  ;;  %v1416_v3 = vrot.slane %v1410_v20, 2  ;;  %v2232_v39 = vstv %s7422_s30  ;;  %s10350_s30 = sld [smem:[#allocation10 + $0x21]] }
 0x1f9   : > { %3481 = vrot.lane.b32.xlu1 %v13418_v57, %s8041_s25  ;;  %v10006_v57 = vsel %vm473_vm0, %v1356_v48, %v1357_v14  ;;  %v10012_v8 = vsel %vm473_vm0, %v4065_v52, %v4067_v31  ;;  %v2175_v48 = vmul.f32 %v9484_v63, %v9983_v56  ;;  %v4120_v31 = vrot.slane %v4113_v13, 2 }
 0x1fa   : > { %13421 = vst [vmem:[#allocation32_spill] sm:$0xff] %v10006_v57  ;;  %13423 = vst [vmem:[#allocation78_spill] sm:$0xff] %v10012_v8  ;;  %v10015_v60 = vpop.permute.xlu0 %1575  ;;  %v4064_v57 = vrot.slane %v4058_v9, 1  ;;  %v10037_v9 = vstv %s9985_s10  ;;  %v4118_v13 = vrot.slane %v4112_v0, 2  ;;  %s7354_s10 = sld [smem:[#allocation10 + $0xb]] }
 0x1fb   : > { %3483 = vrot.lane.b32.xlu0 %v13419_v17, %s8041_s25  ;;  %v10003_v26 = vpop.permute.xlu1 %4238  ;;  %13424 = vst [vmem:[#allocation79_spill] sm:$0xff] %v10015_v60  ;;  %v13425_v17 = vrot.slane %v9844_v30, 2  ;;  %v10031_v30 = vsel %vm543_vm1, %v1415_v59, %v1416_v3  ;;  %v2195_v0 = vmul.f32 %v9484_v63, %v10037_v9  ;;  %v2196_v60 = vmul.f32 %v9501_v10, %v10037_v9 }
 0x1fc   : > { %13420 = vst [vmem:[#allocation31_spill] sm:$0xff] %v10003_v26  ;;  %v10028_v14 = vsel %vm473_vm0, %v4064_v57, %v4065_v52  ;;  %13428 = vst [vmem:[#allocation82_spill] sm:$0xff] %v10031_v30  ;;  %v4117_v52 = vrot.slane %v4111_v40, 2  ;;  %v10051_v51 = vsel %vm543_vm1, %v4118_v13, %v4120_v31  ;;  %v4810_v40 = vmul.f32 %v9651_v29, %v10037_v9 }
 0x1fd   : > { %4635 = vrot.lane.b32.xlu1 %v13425_v17, %s8041_s25  ;;  %13427 = vst [vmem:[#allocation81_spill] sm:$0xff] %v10028_v14  ;;  %v10034_v17 = vsel %vm543_vm1, %v1416_v3, %v1418_v53  ;;  %v2194_v53 = vmul.f32 %v9477_v58, %v10037_v9  ;;  %13430 = vst [vmem:[#allocation84_spill] sm:$0xff] %v10051_v51  ;;  %v10073_v51 = vstv %s7386_s17  ;;  %s10317_s17 = sld [smem:[#allocation10 + $0x1e]] }
 0x1fe   : > { %13429 = vst [vmem:[#allocation83_spill] sm:$0xff] %v10034_v17  ;;  %v10040_v8 = vpop.permute.xlu0 %1615  ;;  %v10054_v57 = vsel %vm543_vm1, %v4117_v52, %v4118_v13  ;;  %v4811_v13 = vmul.f32 %v9662_v34, %v10037_v9  ;;  %v1585_v25 = vmul.f32 %v9477_v58, %v10073_v51  ;;  %v1586_v42 = vmul.f32 %v9484_v63, %v10073_v51 }
 0x1ff   : > { %2180 = vrot.lane.b32.xlu0 %v2174_v7, %s8040_s23  ;;  %v10025_v20 = vpop.permute.xlu1 %4261  ;;  %v4793_v7 = vmul.f32 %v9662_v34, %v9983_v56  ;;  %13431 = vst [vmem:[#allocation85_spill] sm:$0xff] %v10054_v57  ;;  %v10147_v35 = vmul.f32 %v9662_v34, %v10073_v51 }
 0x200   : > { %13426 = vst [vmem:[#allocation80_spill] sm:$0xff] %v10025_v20  ;;  %v1592_v43 = vrot.slane %v1586_v42, 2  ;;  %v2233_v42 = vmul.f32 %v9477_v58, %v2232_v39 }
 0x201   : > { %2182 = vrot.lane.b32.xlu1 %v2175_v48, %s8040_s23  ;;  %v1515_v48 = vstv %s7383_s15  ;;  %s7425_s15 = sld [smem:[#allocation4 + $0x34]] }
 0x202   : > { %v10056_v3 = vpop.permute.xlu0 %4297  ;;  %v1517_v52 = vmul.f32 %v9484_v63, %v1515_v48  ;;  %v10076_v57 = vmul.f32 %v9501_v10, %v1515_v48  ;;  %v4206_v30 = vmul.f32 %v9651_v29, %v1515_v48  ;;  %v4207_v14 = vmul.f32 %v9662_v34, %v1515_v48 }
 0x203   : > { %4798 = vrot.lane.b32.xlu0 %v4792_v6, %s8040_s23  ;;  %v10046_v59 = vpop.permute.xlu1 %1617  ;;  %v10086_v50 = vmul.f32 %v9667_v15, %v1515_v48 }
 0x204   : > { %v1523_v37 = vrot.slane %v1517_v52, 1  ;;  %v4212_v55 = vrot.slane %v4206_v30, 1  ;;  %v4213_v4 = vrot.slane %v4207_v14, 1  ;;  %v1591_v52 = vrot.slane %v1585_v25, 2 }
 0x205   : > { %4800 = vrot.lane.b32.xlu1 %v4793_v7, %s8040_s23  ;;  %v1516_v7 = vmul.f32 %v9477_v58, %v1515_v48  ;;  %v13433_v48 = vld [vmem:[#allocation33_spill] sm:$0xff] }
 0x206   : > { %v10066_v31 = vpop.permute.xlu0 %1640  ;;  %v4214_v26 = vsel %vm473_vm0, %v4212_v55, %v4213_v4 }
 0x207   : > { %2200 = vrot.lane.b32.xlu0 %v2194_v53, %s8041_s25  ;;  %v10062_v6 = vpop.permute.xlu1 %4299  ;;  %v1467_v53 = vstv %s7380_s22  ;;  %v1522_v27 = vrot.slane %v1516_v7, 1  ;;  %s10336_s22 = sld [smem:[#allocation10 + $0xd]] }
 0x208   : > { %v1469_v61 = vmul.f32 %v9484_v63, %v1467_v53  ;;  %v4164_v16 = vmul.f32 %v9651_v29, %v1467_v53  ;;  %v4165_v2 = vmul.f32 %v9662_v34, %v1467_v53  ;;  %v10117_v14 = vmul.f32 %v9501_v10, %v1467_v53 }
 0x209   : > { %2202 = vrot.lane.b32.xlu1 %v2195_v0, %s8041_s25  ;;  %v2176_v0 = vmul.f32 %v9501_v10, %v9983_v56  ;;  %v10120_v30 = vmul.f32 %v9667_v15, %v1467_v53  ;;  %v1524_v7 = vsel %vm473_vm0, %v1522_v27, %v1523_v37 }
 0x20a   : > { %v10092_v44 = vpop.permute.xlu0 %4320  ;;  %v1492_v27 = vadd.f32 %v9747_v23, %v1469_v61  ;;  %v4185_v55 = vadd.f32 %v9763_v49, %v4164_v16 }
 0x20b   : > { %4816 = vrot.lane.b32.xlu0 %v4810_v40, %s8041_s25  ;;  %v10079_v17 = vpop.permute.xlu1 %1642  ;;  %v1468_v40 = vmul.f32 %v9477_v58, %v1467_v53  ;;  %v2234_v53 = vmul.f32 %v9484_v63, %v2232_v39 }
 0x20c   : > { %v1512_v61 = vadd.f32 %v9798_v18, %v1492_v27  ;;  %v4203_v49 = vadd.f32 %v9805_v54, %v4185_v55  ;;  %v10169_v27 = vmul.f32 %v9667_v15, %v10073_v51  ;;  %v4812_v54 = vmul.f32 %v9667_v15, %v10037_v9 }
 0x20d   : > { %4818 = vrot.lane.b32.xlu1 %v4811_v13, %s8041_s25  ;;  %v10105_v13 = vmul.f32 %v9501_v10, %v10073_v51  ;;  %v1491_v25 = vadd.f32 %v9735_v24, %v1468_v40  ;;  %v4269_v40 = vmul.f32 %v9651_v29, %v10073_v51  ;;  %v2239_v24 = vrot.slane %v2233_v42, 1 }
 0x20e   : > { %v10108_v32 = vpop.permute.xlu0 %1619  ;;  %v2257_v55 = vstv %s10114_s26  ;;  %v10182_v51 = vmul.f32 %v9667_v15, %v2232_v39  ;;  %s10353_s26 = sld [smem:[#allocation10 + $0xe]] }
 0x20f   : > { %2184 = vrot.lane.b32.xlu0 %v2176_v0, %s8040_s23  ;;  %v10100_v38 = vpop.permute.xlu1 %4322  ;;  %13432 = vst [vmem:[#allocation86_spill] sm:$0xff] %v10108_v32  ;;  %v4794_v0 = vmul.f32 %v9667_v15, %v9983_v56  ;;  %v13434_v32 = vrot.slane %v10076_v57, 1  ;;  %v13435_v56 = vld [vmem:[#allocation34_spill] sm:$0xff]  ;;  %v13439_v18 = vrot.slane %v10105_v13, 2  ;;  %v4275_v42 = vrot.slane %v4269_v40, 2 }
 0x211   : > { %3515 = vrot.lane.b32.xlu1 %v13433_v48, %s8040_s23  ;;  %v1526_v48 = vsel %vm473_vm0, %v1523_v37, %v13434_v32  ;;  %v1511_v37 = vadd.f32 %v9787_v12, %v1491_v25  ;;  %v13437_v32 = vrot.slane %v10086_v50, 1  ;;  %v10155_v12 = vmul.f32 %v9501_v10, %v2232_v39 }
 0x212   : > { %v10149_v23 = vpop.permute.xlu0 %1644  ;;  %v2240_v25 = vrot.slane %v2234_v53, 1  ;;  %v1595_v16 = vsel %vm543_vm1, %v1592_v43, %v13439_v18  ;;  %v13440_v53 = vld [vmem:[#allocation35_spill] sm:$0xff]  ;;  %v2258_v18 = vmul.f32 %v9477_v58, %v2257_v55 }
 0x213   : > { %3517 = vrot.lane.b32.xlu0 %v13435_v56, %s8040_s23  ;;  %v10130_v20 = vpop.permute.xlu1 %4301  ;;  %v4216_v56 = vsel %vm473_vm0, %v4213_v4, %v13437_v32  ;;  %v4186_v4 = vadd.f32 %v9778_v47, %v4165_v2  ;;  %v4845_v32 = vmul.f32 %v9651_v29, %v2232_v39  ;;  %v1530_v2 = vadd.f32 %v1524_v7, %v1511_v37  ;;  %v13441_v7 = vld [vmem:[#allocation36_spill] sm:$0xff] }
 0x214   : > { %13436 = vst [vmem:[#allocation33_spill] sm:$0xff] %v10130_v20  ;;  %v1593_v20 = vsel %vm543_vm1, %v1591_v52, %v1592_v43  ;;  %v4276_v43 = vrot.slane %v10147_v35, 2  ;;  %v2241_v9 = vsel %vm473_vm0, %v2239_v24, %v2240_v25  ;;  %v10201_v24 = vmul.f32 %v9501_v10, %v2257_v55 }
 0x215   : > { %4802 = vrot.lane.b32.xlu1 %v4794_v0, %s8040_s23  ;;  %v4846_v0 = vmul.f32 %v9662_v34, %v2232_v39  ;;  %v4204_v47 = vadd.f32 %v9829_v5, %v4186_v4  ;;  %v1555_v5 = vadd.f32 %v9877_v46, %v1530_v2  ;;  %v4851_v4 = vrot.slane %v4845_v32, 1 }
 0x216   : > { %v2259_v39 = vmul.f32 %v9484_v63, %v2257_v55  ;;  %v4278_v2 = vrot.slane %v10169_v27, 2  ;;  %v13442_v58 = vrot.slane %v10155_v12, 1 }
 0x217   : > { %2204 = vrot.lane.b32.xlu0 %v2196_v60, %s8041_s25  ;;  %v10159_v52 = vpop.permute.xlu1 %4324  ;;  %v10172_v60 = vpop.permute.xlu0 %1831  ;;  %v1580_v46 = vadd.f32 %v9935_v19, %v1555_v5  ;;  %v10224_v5 = vmul.f32 %v9667_v15, %v2257_v55 }
 0x218   : > { %13438 = vst [vmem:[#allocation34_spill] sm:$0xff] %v10159_v52  ;;  %v1531_v52 = vadd.f32 %v1526_v48, %v1512_v61  ;;  %v4852_v48 = vrot.slane %v4846_v0, 1  ;;  %v4220_v61 = vadd.f32 %v4214_v26, %v4203_v49  ;;  %v2243_v63 = vsel %vm473_vm0, %v2240_v25, %v13442_v58 }
 0x219   : > { %3534 = vrot.lane.b32.xlu1 %v13440_v53, %s8041_s25  ;;  %v4221_v53 = vadd.f32 %v4216_v56, %v4204_v47  ;;  %v4854_v26 = vrot.slane %v10182_v51, 1  ;;  %v4277_v56 = vsel %vm543_vm1, %v4275_v42, %v4276_v43  ;;  %v2264_v0 = vrot.slane %v2258_v18, 1 }
 0x21a   : > { %v1556_v35 = vadd.f32 %v9894_v22, %v1531_v52  ;;  %v4243_v32 = vadd.f32 %v9902_v36, %v4220_v61  ;;  %v4853_v10 = vsel %vm473_vm0, %v4851_v4, %v4852_v48  ;;  %v4868_v36 = vmul.f32 %v9651_v29, %v2257_v55 }
 0x21b   : > { %3536 = vrot.lane.b32.xlu0 %v13441_v7, %s8041_s25  ;;  %v10189_v37 = vpop.permute.xlu1 %1833  ;;  %v10197_v40 = vpop.permute.xlu0 %4487  ;;  %v4244_v19 = vadd.f32 %v9923_v28, %v4221_v53  ;;  %v2265_v49 = vrot.slane %v2259_v39, 1  ;;  %v4869_v25 = vmul.f32 %v9662_v34, %v2257_v55  ;;  %v1599_v28 = vadd.f32 %v1593_v20, %v1580_v46  ;;  %v13467_v27 = vld [vmem:[#allocation33_spill] sm:$0xff] }
 0x21c   : > { %v1581_v22 = vadd.f32 %v9952_v1, %v1556_v35  ;;  %v4266_v1 = vadd.f32 %v9963_v41, %v4243_v32  ;;  %v2267_v42 = vrot.slane %v10201_v24, 1  ;;  %v1493_v41 = vadd.f32 %v9835_v62, %v10117_v14 }
 0x21d   : > { %4820 = vrot.lane.b32.xlu1 %v4812_v54, %s8041_s25  ;;  %v4267_v47 = vadd.f32 %v9980_v21, %v4244_v19  ;;  %v4855_v21 = vsel %vm473_vm0, %v4852_v48, %v4854_v26  ;;  %v1624_v20 = vadd.f32 %v10040_v8, %v1599_v28  ;;  %v10238_v4 = vstv %s10185_s27  ;;  %s10369_s27 = sld [smem:[#allocation4 + $0x35]] }
 0x21e   : > { %v1600_v7 = vadd.f32 %v1595_v16, %v1581_v22  ;;  %v4874_v62 = vrot.slane %v4868_v36, 1  ;;  %v4283_v16 = vadd.f32 %v4277_v56, %v4266_v1  ;;  %v4875_v35 = vrot.slane %v4869_v25, 1 }
 0x21f   : > { %2244 = vrot.lane.b32.xlu0 %v2241_v9, %s8040_s23  ;;  %v10212_v52 = vpop.permute.xlu1 %4489  ;;  %v10219_v54 = vpop.permute.xlu0 %1851  ;;  %v4279_v9 = vsel %vm543_vm1, %v4276_v43, %v4278_v2  ;;  %v2266_v43 = vsel %vm473_vm0, %v2264_v0, %v2265_v49  ;;  %v1649_v48 = vadd.f32 %v10066_v31, %v1624_v20  ;;  %v2268_v8 = vsel %vm473_vm0, %v2265_v49, %v2267_v42 }
 0x220   : > { %v1625_v14 = vadd.f32 %v10046_v59, %v1600_v7  ;;  %v4284_v61 = vadd.f32 %v4279_v9, %v4267_v47  ;;  %v13162_v39 = vrot.slane %v10224_v5, 1  ;;  %v4187_v59 = vadd.f32 %v9850_v33, %v10120_v30  ;;  %v13446_v47 = vld [vmem:[#allocation41_spill] sm:$0xff]  ;;  %v13448_v9 = vld [vmem:[#allocation79_spill] sm:$0xff] }
 0x221   : > { %2246 = vrot.lane.b32.xlu1 %v2243_v63, %s8040_s23  ;;  %v1513_v53 = vadd.f32 %v9853_v45, %v1493_v41  ;;  %v4306_v46 = vadd.f32 %v10056_v3, %v4283_v16  ;;  %v4876_v19 = vsel %vm473_vm0, %v4874_v62, %v4875_v35  ;;  %v1654_v33 = vadd.f32 %v10238_v4, %v1649_v48  ;;  %v13447_v41 = vld [vmem:[#allocation31_spill] sm:$0xff]  ;;  %v13449_v62 = vld [vmem:[#allocation37_spill] sm:$0xff]  ;;  %v13450_v16 = vld [vmem:[#allocation80_spill] sm:$0xff] }
 0x222   : > { %v1650_v31 = vadd.f32 %v10079_v17, %v1625_v14  ;;  %v4307_v32 = vadd.f32 %v10062_v6, %v4284_v61  ;;  %v4205_v58 = vadd.f32 %v9870_v11, %v4187_v59  ;;  %v13443_v17 = vrot.slane %v10076_v57, 1 }
 0x223   : > { %4856 = vrot.lane.b32.xlu0 %v4853_v10, %s8040_s23  ;;  %v10241_v55 = vpop.permute.xlu1 %1853  ;;  %v10246_v18 = vpop.permute.xlu0 %4505  ;;  %v4329_v63 = vadd.f32 %v10092_v44, %v4306_v46  ;;  %v4878_v11 = vsel %vm473_vm0, %v4875_v35, %v13162_v39  ;;  %v972_v44 = vstv %s10234_s28  ;;  %v13445_v36 = vrot.slane %v10086_v50, 1  ;;  %s10533_s28 = sld [smem:[#allocation4 + $0x24]] }
 0x224   : > { %v4330_v45 = vadd.f32 %v10100_v38, %v4307_v32  ;;  %v1532_v6 = vadd.f32 %v13443_v17, %v1513_v53  ;;  %v1655_v30 = vadd.f32 %v10238_v4, %v1650_v31  ;;  %v13444_v38 = vld [vmem:[#allocation76_spill] sm:$0xff]  ;;  %v1657_v57 = vmax.f32 %v1654_v33, 0.0  ;;  %v13460_v33 = vld [vmem:[#allocation43_spill] sm:$0xff] }
 0x225   : > { %4858 = vrot.lane.b32.xlu1 %v4855_v21, %s8040_s23  ;;  %v4222_v1 = vadd.f32 %v13445_v36, %v4205_v58  ;;  %v4332_v0 = vadd.f32 %v4329_v63, %v10238_v4  ;;  %v973_v28 = vmul.f32 %v972_v44, %v13446_v47  ;;  %v974_v14 = vmul.f32 %v972_v44, %v13449_v62 }
 0x226   : > { %v1557_v10 = vadd.f32 %v13444_v38, %v1532_v6  ;;  %v4333_v49 = vadd.f32 %v4330_v45, %v10238_v4  ;;  %v1658_v20 = vmax.f32 %v1655_v30, 0.0  ;;  %v10298_v48 = vsel %vm8535_vm6, %v1657_v57, 0.0  ;;  %v13462_v6 = vld [vmem:[#allocation86_spill] sm:$0xff] }
 0x227   : > { %2269 = vrot.lane.b32.xlu0 %v2266_v43, %s8041_s25  ;;  %v10260_v22 = vpop.permute.xlu1 %4507  ;;  %v10267_v3 = vpop.permute.xlu0 %1835  ;;  %v4245_v7 = vadd.f32 %v13447_v41, %v4222_v1  ;;  %v4335_v35 = vmax.f32 %v4332_v0, 0.0  ;;  %13452 = vst [vmem:[#allocation35_spill] sm:$0xff] %v10298_v48  ;;  %v10303_v53 = vstv %s7398_s29  ;;  %v13457_v32 = vrot.slane %v10105_v13, 2  ;;  %s10535_s29 = sld [smem:[#allocation4 + $0x27]] }
 0x228   : > { %v1582_v21 = vadd.f32 %v13448_v9, %v1557_v10  ;;  %13454 = vst [vmem:[#allocation76_spill] sm:$0xff] %v10303_v53  ;;  %v10307_v31 = vsel %vm8528_vm5, %v1658_v20, 0.0  ;;  %v13458_v63 = vrot.slane %v10155_v12, 1  ;;  %v3723_v45 = vmul.f32 %v13460_v33, %v972_v44  ;;  %v13465_v10 = vld [vmem:[#allocation38_spill] sm:$0xff] }
 0x229   : > { %2271 = vrot.lane.b32.xlu1 %v2268_v8, %s8041_s25  ;;  %v4268_v43 = vadd.f32 %v13450_v16, %v4245_v7  ;;  %v4336_v8 = vmax.f32 %v4333_v49, 0.0  ;;  %13456 = vst [vmem:[#allocation41_spill] sm:$0xff] %v10307_v31  ;;  %v10321_v17 = vsel %vm8535_vm6, %v4335_v35, 0.0  ;;  %v3724_v36 = vmul.f32 %v13465_v10, %v972_v44  ;;  %v13469_v9 = vld [vmem:[#allocation34_spill] sm:$0xff]  ;;  %v10366_v16 = vld [vmem:[%s8216_s18] sm:$0xff] }
 0x22a   : > { %v1601_v58 = vadd.f32 %v13457_v32, %v1582_v21  ;;  %13461 = vst [vmem:[#allocation79_spill] sm:$0xff] %v10321_v17  ;;  %v10340_v1 = vmul.f32 %v10303_v53, %v10307_v31  ;;  %v986_v57 = vstv %s7354_s10  ;;  %v2301_v49 = vstv %s7425_s15  ;;  %v10378_v32 = vld [vmem:[%s8216_s18 + $0x8] sm:$0xff]  ;;  %s10578_s10 = sld [smem:[#allocation4 + $0x2a]]  ;;  %s10656_s15 = sld [smem:[#allocation4 + $0x37]] }
 0x22b   : > { %4879 = vrot.lane.b32.xlu0 %v4876_v19, %s8041_s25  ;;  %v10278_v56 = vpop.permute.xlu1 %4491  ;;  %v10285_v25 = vpop.permute.xlu0 %1855  ;;  %v4285_v13 = vadd.f32 %v4278_v2, %v4268_v43  ;;  %v10330_v12 = vsel %vm8528_vm5, %v4336_v8, 0.0  ;;  %v4456_v7 = vmul.f32 %v10321_v17, %v10303_v53  ;;  %v2302_v43 = vmul.f32 %v10366_v16, %v2301_v49 }
 0x22c   : > { %v1626_v30 = vadd.f32 %v13462_v6, %v1601_v58  ;;  %13463 = vst [vmem:[#allocation37_spill] sm:$0xff] %v10330_v12  ;;  %13466 = vst [vmem:[#allocation86_spill] sm:$0xff] %v10340_v1  ;;  %v13161_v44 = vrot.slane %v10340_v1, 2  ;;  %v2303_v51 = vmul.f32 %v10378_v32, %v2301_v49  ;;  %v1698_v6 = vstv %s10317_s17  ;;  %s10703_s17 = sld [smem:[#allocation4 + $0x38]] }
 0x22d   : > { %4881 = vrot.lane.b32.xlu1 %v4878_v11, %s8041_s25  ;;  %v1796_v11 = vmul.f32 %v10303_v53, %v10298_v48  ;;  %v4308_v2 = vadd.f32 %v13467_v27, %v4285_v13  ;;  %v10428_v39 = vstv %s10353_s26  ;;  %v3736_v24 = vmul.f32 %v13465_v10, %v986_v57  ;;  %s7415_s26 = sld [smem:[#allocation10 + $0x2a]] }
 0x22e   : > { %v1651_v0 = vadd.f32 %v10149_v23, %v1626_v30  ;;  %v10357_v23 = vmul.f32 %v10330_v12, %v10303_v53 }
 0x22f   : > { %977 = vrot.lane.b32.xlu0 %v973_v28, %s8040_s23  ;;  %v10292_v50 = vpop.permute.xlu1 %4509  ;;  %v10300_v59 = vpop.permute.xlu0 %1895  ;;  %v1802_v41 = vrot.slane %v1796_v11, 2  ;;  %v4331_v21 = vadd.f32 %v13469_v9, %v4308_v2  ;;  %v13475_v11 = vld [vmem:[#allocation42_spill] sm:$0xff] }
 0x230   : > { %13453 = vst [vmem:[#allocation36_spill] sm:$0xff] %v10300_v59  ;;  %13470 = vst [vmem:[#allocation34_spill] sm:$0xff] %v10357_v23  ;;  %v1656_v8 = vadd.f32 %v10238_v4, %v1651_v0  ;;  %v13160_v58 = vrot.slane %v10357_v23, 2  ;;  %v10401_v0 = vld [vmem:[%s8216_s18 + $0x10] sm:$0xf] }
 0x231   : > { %979 = vrot.lane.b32.xlu1 %v974_v14, %s8040_s23  ;;  %v987_v14 = vmul.f32 %v986_v57, %v13446_v47  ;;  %v10374_v35 = vsel %vm543_vm1, %v1802_v41, %v13161_v44  ;;  %v4334_v30 = vadd.f32 %v4331_v21, %v10238_v4  ;;  %v10404_v41 = vmul.f32 %v10401_v0, %v2301_v49 }
 0x232   : > { %13472 = vst [vmem:[#allocation88_spill] sm:$0xff] %v10374_v35  ;;  %v4908_v4 = vmul.f32 %v9651_v29, %v2301_v49  ;;  %v1659_v9 = vmax.f32 %v1656_v8, 0.0  ;;  %v2308_v21 = vrot.slane %v2302_v43, 2  ;;  %v10419_v29 = vmul.f32 %v9667_v15, %v2301_v49  ;;  %v13479_v43 = vld [vmem:[#allocation24_spill] sm:$0xff] }
 0x233   : > { %2248 = vrot.lane.b32.xlu0 %v13458_v63, %s8040_s23  ;;  %v10314_v19 = vpop.permute.xlu1 %1897  ;;  %v10332_v38 = vpop.permute.xlu0 %4545  ;;  %v1699_v8 = vmul.f32 %v1698_v6, %v10298_v48  ;;  %v10425_v44 = vstv %s10350_s30  ;;  %v2326_v15 = vstv %s10369_s27  ;;  %v4370_v35 = vmul.f32 %v10330_v12, %v1698_v6  ;;  %s7412_s30 = sld [smem:[#allocation10 + $0x27]]  ;;  %s10825_s27 = sld [smem:[#allocation4 + $0x3a]] }
 0x234   : > { %13459 = vst [vmem:[#allocation31_spill] sm:$0xff] %v10314_v19  ;;  %13464 = vst [vmem:[#allocation80_spill] sm:$0xff] %v10332_v38  ;;  %v13487_v38 = vrot.slane %v10419_v29, 2 }
 0x235   : > { %3727 = vrot.lane.b32.xlu1 %v3723_v45, %s8040_s23  ;;  %v988_v45 = vmul.f32 %v986_v57, %v13449_v62 }
 0x237   : > { %3729 = vrot.lane.b32.xlu0 %v3724_v36, %s8040_s23  ;;  %v10345_v28 = vpop.permute.xlu1 %4547  ;;  %v10359_v20 = vpop.permute.xlu0 %1920  ;;  %v13476_v36 = vld [vmem:[#allocation23_spill] sm:$0xff] }
 0x238   : > { %13468 = vst [vmem:[#allocation33_spill] sm:$0xff] %v10345_v28  ;;  %13471 = vst [vmem:[#allocation87_spill] sm:$0xff] %v10359_v20  ;;  %v10395_v27 = vmul.f32 %v13476_v36, %v13475_v11  ;;  %v1700_v36 = vmul.f32 %v1698_v6, %v10307_v31 }
 0x239   : > { %4860 = vrot.lane.b32.xlu1 %v4854_v26, %s8040_s23  ;;  %v4462_v26 = vrot.slane %v4456_v7, 2  ;;  %v10408_v7 = vstv %s10336_s22  ;;  %s10716_s22 = sld [smem:[#allocation8 + $0x4]] }
 0x23a   : > { %v1706_v53 = vrot.slane %v1700_v36, 1 }
 0x23b   : > { %991 = vrot.lane.b32.xlu0 %v987_v14, %s8041_s25  ;;  %v10383_v63 = vpop.permute.xlu1 %1922  ;;  %v10391_v13 = vsel %vm543_vm1, %v4462_v26, %v13160_v58  ;;  %v10397_v2 = vpop.permute.xlu0 %4568  ;;  %v2309_v14 = vrot.slane %v2303_v51, 2  ;;  %v4909_v26 = vmul.f32 %v9662_v34, %v2301_v49  ;;  %v3735_v58 = vmul.f32 %v13460_v33, %v986_v57 }
 0x23c   : > { %13473 = vst [vmem:[#allocation89_spill] sm:$0xff] %v10383_v63  ;;  %13474 = vst [vmem:[#allocation90_spill] sm:$0xff] %v10391_v13  ;;  %v3408_v51 = vmul.f32 %v13479_v43, %v13475_v11  ;;  %v4337_v34 = vmax.f32 %v4334_v30, 0.0  ;;  %v10438_v49 = vmul.f32 %v10408_v7, %v13446_v47  ;;  %v10442_v11 = vsel %vm8555_vm8, %v1659_v9, 0.0 }
 0x23d   : > { %13477 = vst [vmem:[#allocation42_spill] sm:$0xff] %v10397_v2  ;;  %993 = vrot.lane.b32.xlu1 %v988_v45, %s8041_s25  ;;  %13482 = vst [vmem:[#allocation91_spill] sm:$0xff] %v10442_v11  ;;  %v2310_v30 = vsel %vm543_vm1, %v2308_v21, %v2309_v14  ;;  %v4914_v43 = vrot.slane %v4908_v4, 2  ;;  %v4915_v1 = vrot.slane %v4909_v26, 2  ;;  %v2327_v9 = vmul.f32 %v10366_v16, %v2326_v15  ;;  %v10473_v2 = vld [vmem:[%s8347_s24] sm:$0xff] }
 0x23e   : > { %v10450_v61 = vsel %vm8555_vm8, %v4337_v34, 0.0  ;;  %v2328_v4 = vmul.f32 %v10378_v32, %v2326_v15  ;;  %v10455_v21 = vmul.f32 %v10401_v0, %v2326_v15  ;;  %v1701_v13 = vmul.f32 %v1698_v6, %v10442_v11 }
 0x23f   : > { %2273 = vrot.lane.b32.xlu0 %v2267_v42, %s8041_s25  ;;  %v10415_v45 = vpop.permute.xlu1 %4570  ;;  %v1705_v42 = vrot.slane %v1699_v8, 1  ;;  %13483 = vst [vmem:[#allocation92_spill] sm:$0xff] %v10450_v61  ;;  %v10465_v8 = vmul.f32 %v10408_v7, %v13449_v62  ;;  %v4916_v46 = vsel %vm543_vm1, %v4914_v43, %v4915_v1  ;;  %v4371_v20 = vmul.f32 %v10450_v61, %v1698_v6 }
 0x240   : > { %13478 = vst [vmem:[#allocation23_spill] sm:$0xff] %v10415_v45  ;;  %v1708_v43 = vrot.slane %v1701_v13, 1  ;;  %v4918_v45 = vsel %vm543_vm1, %v4915_v1, %v13487_v38  ;;  %v2333_v59 = vrot.slane %v2327_v9, 2  ;;  %v2334_v63 = vrot.slane %v2328_v4, 2 }
 0x241   : > { %v10430_v23 = vpop.permute.xlu0 %1899  ;;  %3739 = vrot.lane.b32.xlu1 %v3735_v58, %s8041_s25  ;;  %v13485_v58 = vrot.slane %v10404_v41, 2  ;;  %v10468_v34 = vsel %vm473_vm0, %v1705_v42, %v1706_v53  ;;  %v1759_v42 = vmul.f32 %v10425_v44, %v10307_v31  ;;  %v10497_v31 = vld [vmem:[%s8347_s24 + $0x10] sm:$0xf]  ;;  %v4378_v13 = vrot.slane %v4371_v20, 1 }
 0x242   : > { %13480 = vst [vmem:[#allocation24_spill] sm:$0xff] %v10430_v23  ;;  %13486 = vst [vmem:[#allocation93_spill] sm:$0xff] %v10468_v34  ;;  %v4376_v23 = vrot.slane %v4370_v35, 1  ;;  %v10503_v35 = vsel %vm473_vm0, %v1706_v53, %v1708_v43  ;;  %v4423_v38 = vmul.f32 %v10330_v12, %v10425_v44  ;;  %v1758_v53 = vmul.f32 %v10425_v44, %v10298_v48 }
 0x243   : > { %3741 = vrot.lane.b32.xlu0 %v3736_v24, %s8041_s25  ;;  %v3417_v57 = vpop.permute.xlu1 %3416  ;;  %v13484_v24 = vrot.slane %v10224_v5, 1  ;;  %v2312_v36 = vsel %vm543_vm1, %v2309_v14, %v13485_v58  ;;  %v4931_v5 = vmul.f32 %v10473_v2, %v2326_v15  ;;  %v4369_v58 = vmul.f32 %v10321_v17, %v1698_v6  ;;  %13488 = vst [vmem:[#allocation94_spill] sm:$0xff] %v10497_v31 }
 0x244   : > { %13489 = vst [vmem:[#allocation95_spill] sm:$0xff] %v10503_v35  ;;  %v3422_v1 = vadd.f32 %v3417_v57, %v3408_v51  ;;  %v1765_v20 = vrot.slane %v1759_v42, 2  ;;  %v2335_v51 = vsel %vm543_vm1, %v2333_v59, %v2334_v63  ;;  %v13492_v57 = vrot.slane %v10455_v21, 2 }
 0x245   : > { %v3419_v26 = vpop.permute.xlu0 %3418  ;;  %4883 = vrot.lane.b32.xlu1 %v13484_v24, %s8041_s25  ;;  %v10477_v24 = vld [vmem:[%s8347_s24 + $0x8] sm:$0xff]  ;;  %v4375_v6 = vrot.slane %v4369_v58, 1  ;;  %v4937_v9 = vrot.slane %v4931_v5, 2  ;;  %v4422_v42 = vmul.f32 %v10321_v17, %v10425_v44  ;;  %v1933_v35 = vstv %s10578_s10  ;;  %s7373_s10 = sld [smem:[#allocation10 + $0x14]] }
 0x246   : > { %v10480_v14 = vmul.f32 %v10477_v24, %v2326_v15  ;;  %v3423_v58 = vadd.f32 %v3419_v26, %v10395_v27  ;;  %v13493_v27 = vld [vmem:[#allocation25_spill] sm:$0xff] }
 0x247   : > { %2313 = vrot.lane.b32.xlu0 %v2310_v30, %s8040_s23  ;;  %v10486_v34 = vpop.permute.xlu1 %4549  ;;  %v10500_v30 = vmul.f32 %v10497_v31, %v2326_v15  ;;  %v10510_v28 = vsel %vm473_vm0, %v4375_v6, %v4376_v23  ;;  %v10513_v15 = vsel %vm473_vm0, %v4376_v23, %v4378_v13  ;;  %v1764_v23 = vrot.slane %v1758_v53, 2 }
 0x248   : > { %v4938_v4 = vrot.slane %v10480_v14, 2  ;;  %13490 = vst [vmem:[#allocation96_spill] sm:$0xff] %v10510_v28  ;;  %13491 = vst [vmem:[#allocation97_spill] sm:$0xff] %v10513_v15  ;;  %v1760_v6 = vmul.f32 %v10425_v44, %v10442_v11  ;;  %v4429_v13 = vrot.slane %v4423_v38, 2  ;;  %v13496_v38 = vld [vmem:[#allocation27_spill] sm:$0xff] }
 0x249   : > { %v10493_v19 = vpop.permute.xlu0 %1924  ;;  %2315 = vrot.lane.b32.xlu1 %v2312_v36, %s8040_s23  ;;  %v10543_v53 = vsel %vm543_vm1, %v1764_v23, %v1765_v20  ;;  %v13497_v14 = vld [vmem:[#allocation47_spill] sm:$0xff]  ;;  %v1040_v23 = vmul.f32 %v10428_v39, %v13449_v62 }
 0x24a   : > { %13495 = vst [vmem:[#allocation25_spill] sm:$0xff] %v10543_v53  ;;  %v3764_v15 = vmul.f32 %v13497_v14, %v10408_v7 }
 0x24b   : > { %4919 = vrot.lane.b32.xlu0 %v4916_v46, %s8040_s23  ;;  %v3429_v36 = vpop.permute.xlu1 %3428  ;;  %v2337_v46 = vsel %vm543_vm1, %v2334_v63, %v13492_v57  ;;  %v4424_v63 = vmul.f32 %v10450_v61, %v10425_v44  ;;  %v4939_v44 = vsel %vm543_vm1, %v4937_v9, %v4938_v4  ;;  %v13500_v9 = vrot.slane %v10500_v30, 2 }
 0x24c   : > { %v3434_v43 = vadd.f32 %v3429_v36, %v3422_v1  ;;  %v13494_v1 = vld [vmem:[#allocation46_spill] sm:$0xff] }
 0x24d   : > { %v3431_v5 = vpop.permute.xlu0 %3430  ;;  %4921 = vrot.lane.b32.xlu1 %v4918_v45, %s8040_s23  ;;  %v1020_v36 = vmul.f32 %v10408_v7, %v13494_v1 }
 0x24e   : > { %v10529_v26 = vadd.f32 %v13493_v27, %v3434_v43  ;;  %v3435_v59 = vadd.f32 %v3431_v5, %v3423_v58  ;;  %v1767_v43 = vrot.slane %v1760_v6, 2  ;;  %v4428_v58 = vrot.slane %v4422_v42, 2 }
 0x24f   : > { %2338 = vrot.lane.b32.xlu0 %v2335_v51, %s8041_s25  ;;  %v10538_v45 = vpop.permute.xlu1 %4572  ;;  %v3763_v5 = vmul.f32 %v13465_v10, %v10408_v7  ;;  %v4431_v27 = vrot.slane %v4424_v63, 2  ;;  %v1025_v63 = vrot.slane %v10465_v8, 1  ;;  %v1027_v8 = vrot.slane %v1020_v36, 1 }
 0x250   : > { %v10546_v57 = vadd.f32 %v13496_v38, %v3435_v59  ;;  %v10559_v6 = vsel %vm543_vm1, %v1765_v20, %v1767_v43  ;;  %v10562_v42 = vsel %vm543_vm1, %v4428_v58, %v4429_v13  ;;  %v4941_v59 = vsel %vm543_vm1, %v4938_v4, %v13500_v9 }
 0x251   : > { %v10551_v51 = vpop.permute.xlu0 %1964  ;;  %2340 = vrot.lane.b32.xlu1 %v2337_v46, %s8041_s25  ;;  %13498 = vst [vmem:[#allocation46_spill] sm:$0xff] %v10559_v6  ;;  %13499 = vst [vmem:[#allocation27_spill] sm:$0xff] %v10562_v42  ;;  %v3762_v46 = vmul.f32 %v13460_v33, %v10408_v7  ;;  %v10571_v38 = vsel %vm543_vm1, %v4429_v13, %v4431_v27  ;;  %v1039_v20 = vmul.f32 %v10428_v39, %v13446_v47 }
 0x252   : > { %13501 = vst [vmem:[#allocation98_spill] sm:$0xff] %v10571_v38  ;;  %v1024_v4 = vrot.slane %v10438_v49, 1  ;;  %v1041_v7 = vmul.f32 %v10428_v39, %v13494_v1  ;;  %v3769_v13 = vrot.slane %v3763_v5, 1  ;;  %v3771_v58 = vrot.slane %v3764_v15, 1 }
 0x253   : > { %4942 = vrot.lane.b32.xlu0 %v4939_v44, %s8041_s25  ;;  %v10574_v62 = vpop.permute.xlu1 %1966  ;;  %v1046_v44 = vrot.slane %v1040_v23, 1  ;;  %v10588_v27 = vmul.f32 %v13460_v33, %v10428_v39  ;;  %v3768_v9 = vrot.slane %v3762_v46, 1  ;;  %v1816_v38 = vstv %s10533_s28  ;;  %s10864_s28 = sld [smem:[#allocation4 + $0x3b]] }
 0x254   : > { %v1026_v47 = vsel %vm473_vm0, %v1024_v4, %v1025_v63  ;;  %v1864_v49 = vstv %s10535_s29  ;;  %v1045_v42 = vrot.slane %v1039_v20, 1  ;;  %v1028_v5 = vsel %vm473_vm0, %v1025_v63, %v1027_v8  ;;  %s7372_s29 = sld [smem:[#allocation10 + $0x13]] }
 0x255   : > { %v10583_v43 = vpop.permute.xlu0 %4608  ;;  %4944 = vrot.lane.b32.xlu1 %v4941_v59, %s8041_s25  ;;  %v10598_v59 = vmul.f32 %v13465_v10, %v10428_v39  ;;  %v10601_v15 = vmul.f32 %v10401_v0, %v1864_v49  ;;  %v1048_v23 = vrot.slane %v1041_v7, 1  ;;  %v10606_v46 = vmul.f32 %v13497_v14, %v10428_v39 }
 0x256   : > { %v3770_v20 = vsel %vm473_vm0, %v3768_v9, %v3769_v13  ;;  %v1047_v6 = vsel %vm473_vm0, %v1045_v42, %v1046_v44  ;;  %v1818_v63 = vmul.f32 %v10378_v32, %v1816_v38  ;;  %v1865_v8 = vmul.f32 %v10366_v16, %v1864_v49 }
 0x257   : > { %1029 = vrot.lane.b32.xlu0 %v1026_v47, %s8040_s23  ;;  %v10594_v36 = vpop.permute.xlu1 %4610  ;;  %v3772_v47 = vsel %vm473_vm0, %v3769_v13, %v3771_v58  ;;  %v1866_v39 = vmul.f32 %v10378_v32, %v1864_v49  ;;  %v10619_v7 = vmul.f32 %v10497_v31, %v1864_v49  ;;  %v4517_v28 = vmul.f32 %v10473_v2, %v1864_v49 }
 0x258   : > { %v4518_v9 = vmul.f32 %v10477_v24, %v1864_v49  ;;  %v13502_v42 = vrot.slane %v10404_v41, 2  ;;  %v3788_v58 = vrot.slane %v10598_v59, 1  ;;  %v1049_v61 = vsel %vm473_vm0, %v1046_v44, %v1048_v23 }
 0x259   : > { %v10608_v4 = vpop.permute.xlu0 %1989  ;;  %1031 = vrot.lane.b32.xlu1 %v1028_v5, %s8040_s23  ;;  %v4476_v5 = vmul.f32 %v10477_v24, %v1816_v38  ;;  %v3790_v11 = vrot.slane %v10606_v46, 1  ;;  %v1817_v12 = vmul.f32 %v10366_v16, %v1816_v38  ;;  %v4475_v17 = vmul.f32 %v10473_v2, %v1816_v38 }
 0x25a   : > { %v1819_v49 = vmul.f32 %v10401_v0, %v1816_v38  ;;  %v4477_v41 = vmul.f32 %v10497_v31, %v1816_v38  ;;  %v1841_v59 = vadd.f32 %v10189_v37, %v1818_v63  ;;  %v1871_v53 = vrot.slane %v1865_v8, 1 }
 0x25b   : > { %2317 = vrot.lane.b32.xlu0 %v13502_v42, %s8040_s23  ;;  %v10627_v13 = vpop.permute.xlu1 %1991  ;;  %v1872_v48 = vrot.slane %v1866_v39, 1  ;;  %v4526_v44 = vrot.slane %v10619_v7, 1  ;;  %v4497_v23 = vadd.f32 %v10212_v52, %v4476_v5  ;;  %v4523_v46 = vrot.slane %v4517_v28, 1 }
 0x25c   : > { %v4524_v10 = vrot.slane %v4518_v9, 1  ;;  %v1934_v33 = vmul.f32 %v10366_v16, %v1933_v35  ;;  %v1861_v38 = vadd.f32 %v10241_v55, %v1841_v59  ;;  %v1935_v63 = vmul.f32 %v10378_v32, %v1933_v35 }
 0x25d   : > { %v10638_v42 = vpop.permute.xlu0 %4631  ;;  %3773 = vrot.lane.b32.xlu1 %v3770_v20, %s8040_s23  ;;  %v13503_v20 = vrot.slane %v10601_v15, 1  ;;  %v10654_v8 = vmul.f32 %v10401_v0, %v1933_v35  ;;  %v1840_v52 = vadd.f32 %v10172_v60, %v1817_v12  ;;  %v4515_v28 = vadd.f32 %v10260_v22, %v4497_v23 }
 0x25e   : > { %v4580_v39 = vmul.f32 %v10473_v2, %v1933_v35  ;;  %v13504_v7 = vrot.slane %v10419_v29, 2  ;;  %v1873_v5 = vsel %vm473_vm0, %v1871_v53, %v1872_v48  ;;  %v4527_v9 = vsel %vm473_vm0, %v4524_v10, %v4526_v44 }
 0x25f   : > { %3775 = vrot.lane.b32.xlu0 %v3772_v47, %s8040_s23  ;;  %v10646_v14 = vpop.permute.xlu1 %4633  ;;  %v1875_v37 = vsel %vm473_vm0, %v1872_v48, %v13503_v20  ;;  %v1842_v47 = vadd.f32 %v10267_v3, %v1819_v49  ;;  %v4581_v59 = vmul.f32 %v10477_v24, %v1933_v35  ;;  %v10671_v60 = vmul.f32 %v10497_v31, %v1933_v35 }
 0x260   : > { %v4496_v22 = vadd.f32 %v10197_v40, %v4475_v17  ;;  %v1860_v3 = vadd.f32 %v10219_v54, %v1840_v52  ;;  %v4525_v12 = vsel %vm473_vm0, %v4523_v46, %v4524_v10  ;;  %v1940_v49 = vrot.slane %v1934_v33, 2  ;;  %v13505_v17 = vld [vmem:[#allocation31_spill] sm:$0xff]  ;;  %v13506_v46 = vld [vmem:[#allocation33_spill] sm:$0xff] }
 0x261   : > { %v10662_v55 = vpop.permute.xlu0 %1968  ;;  %4923 = vrot.lane.b32.xlu1 %v13504_v7, %s8040_s23  ;;  %v4498_v23 = vadd.f32 %v10278_v56, %v4477_v41  ;;  %v1880_v48 = vadd.f32 %v1875_v37, %v1861_v38  ;;  %v1941_v53 = vrot.slane %v1935_v63, 2  ;;  %v1943_v20 = vrot.slane %v10654_v8, 2  ;;  %v13509_v63 = vld [vmem:[#allocation89_spill] sm:$0xff] }
 0x262   : > { %v4514_v7 = vadd.f32 %v10246_v18, %v4496_v22  ;;  %v1862_v35 = vadd.f32 %v10285_v25, %v1842_v47  ;;  %v4532_v31 = vadd.f32 %v4527_v9, %v4515_v28  ;;  %v4586_v40 = vrot.slane %v4580_v39, 2 }
 0x263   : > { %1050 = vrot.lane.b32.xlu0 %v1047_v6, %s8041_s25  ;;  %v3463_v29 = vpop.permute.xlu1 %3462  ;;  %v4516_v33 = vadd.f32 %v10292_v50, %v4498_v23  ;;  %v1905_v10 = vadd.f32 %v13505_v17, %v1880_v48  ;;  %v4587_v6 = vrot.slane %v4581_v59, 2  ;;  %v4589_v56 = vrot.slane %v10671_v60, 2  ;;  %v13513_v23 = vld [vmem:[#allocation80_spill] sm:$0xff] }
 0x264   : > { %v1879_v41 = vadd.f32 %v1873_v5, %v1860_v3  ;;  %v4555_v38 = vadd.f32 %v13506_v46, %v4532_v31  ;;  %v13507_v18 = vrot.slane %v10455_v21, 2  ;;  %v13508_v37 = vrot.slane %v10588_v27, 1  ;;  %v13510_v21 = vld [vmem:[#allocation36_spill] sm:$0xff]  ;;  %v13511_v27 = vld [vmem:[#allocation23_spill] sm:$0xff] }
 0x265   : > { %v3465_v54 = vpop.permute.xlu0 %3464  ;;  %1052 = vrot.lane.b32.xlu1 %v1049_v61, %s8041_s25  ;;  %v3791_v50 = vsel %vm473_vm0, %v3788_v58, %v3790_v11  ;;  %v1930_v52 = vadd.f32 %v13509_v63, %v1905_v10  ;;  %v1942_v28 = vsel %vm543_vm1, %v1940_v49, %v1941_v53  ;;  %v1944_v31 = vsel %vm543_vm1, %v1941_v53, %v1943_v20  ;;  %v13514_v53 = vld [vmem:[#allocation87_spill] sm:$0xff] }
 0x266   : > { %v3789_v61 = vsel %vm473_vm0, %v13508_v37, %v3788_v58  ;;  %v10701_v47 = vstv %s10656_s15  ;;  %v1904_v39 = vadd.f32 %v13510_v21, %v1879_v41  ;;  %v4531_v5 = vadd.f32 %v4525_v12, %v4514_v7  ;;  %v13515_v12 = vld [vmem:[#allocation24_spill] sm:$0xff]  ;;  %s7375_s15 = sld [smem:[#allocation10 + $0x16]] }
 0x267   : > { %2342 = vrot.lane.b32.xlu0 %v13507_v18, %s8041_s25  ;;  %v10689_v25 = vpop.permute.xlu1 %4612  ;;  %v4578_v9 = vadd.f32 %v13511_v27, %v4555_v38  ;;  %v13512_v59 = vrot.slane %v10601_v15, 1  ;;  %v4533_v60 = vadd.f32 %v4526_v44, %v4516_v33  ;;  %v4588_v22 = vsel %vm543_vm1, %v4586_v40, %v4587_v6 }
 0x268   : > { %v4590_v3 = vsel %vm543_vm1, %v4587_v6, %v4589_v56  ;;  %v3468_v49 = vadd.f32 %v3463_v29, %v10529_v26  ;;  %v4554_v48 = vadd.f32 %v13513_v23, %v4531_v5  ;;  %v1929_v17 = vadd.f32 %v13514_v53, %v1904_v39  ;;  %v13516_v29 = vld [vmem:[#allocation42_spill] sm:$0xff] }
 0x269   : > { %v1881_v11 = vadd.f32 %v13512_v59, %v1862_v35  ;;  %v1994_v58 = vpop.permute.xlu0 %1993  ;;  %3792 = vrot.lane.b32.xlu1 %v3789_v61, %s8041_s25  ;;  %v2523_v44 = vmul.f32 %v10366_v16, %v10701_v47  ;;  %v4556_v35 = vadd.f32 %v10486_v34, %v4533_v60  ;;  %v1949_v40 = vadd.f32 %v1944_v31, %v1930_v52  ;;  %v13519_v31 = vld [vmem:[#allocation28_spill] sm:$0xff] }
 0x26a   : > { %v3469_v33 = vadd.f32 %v3465_v54, %v10546_v57  ;;  %v4577_v10 = vadd.f32 %v13516_v29, %v4554_v48  ;;  %v4595_v41 = vadd.f32 %v4590_v3, %v4578_v9  ;;  %v13517_v38 = vrot.slane %v10500_v30, 2  ;;  %v13518_v57 = vld [vmem:[#allocation26_spill] sm:$0xff] }
 0x26b   : > { %v1906_v7 = vadd.f32 %v13515_v12, %v1881_v11  ;;  %3794 = vrot.lane.b32.xlu0 %v3791_v50, %s8041_s25  ;;  %v3482_v15 = vpop.permute.xlu1 %3481  ;;  %v2524_v18 = vmul.f32 %v10378_v32, %v10701_v47  ;;  %v4579_v34 = vadd.f32 %v10538_v45, %v4556_v35  ;;  %v1974_v37 = vadd.f32 %v10574_v62, %v1949_v40  ;;  %v13521_v40 = vld [vmem:[#allocation47_spill] sm:$0xff] }
 0x26c   : > { %v3487_v26 = vadd.f32 %v3482_v15, %v3468_v49  ;;  %v5103_v30 = vmul.f32 %v10473_v2, %v10701_v47  ;;  %v1948_v63 = vadd.f32 %v1942_v28, %v1929_v17  ;;  %v10744_v62 = vstv %s10703_s17  ;;  %s7376_s17 = sld [smem:[#allocation10 + $0x17]] }
 0x26d   : > { %v1931_v6 = vadd.f32 %v10493_v19, %v1906_v7  ;;  %v3484_v46 = vpop.permute.xlu0 %3483  ;;  %4946 = vrot.lane.b32.xlu1 %v13517_v38, %s8041_s25  ;;  %v4618_v19 = vadd.f32 %v10594_v36, %v4595_v41  ;;  %v1999_v52 = vadd.f32 %v10627_v13, %v1974_v37  ;;  %v4594_v21 = vadd.f32 %v4588_v22, %v4577_v10 }
 0x26e   : > { %v10733_v54 = vadd.f32 %v13518_v57, %v3487_v26  ;;  %v3488_v61 = vadd.f32 %v3484_v46, %v3469_v33  ;;  %v5104_v28 = vmul.f32 %v10477_v24, %v10701_v47  ;;  %v1973_v13 = vadd.f32 %v10551_v51, %v1948_v63 }
 0x26f   : > { %2529 = vrot.lane.b32.xlu0 %v2523_v44, %s8040_s23  ;;  %v4636_v50 = vpop.permute.xlu1 %4635  ;;  %v4641_v39 = vadd.f32 %v10646_v14, %v4618_v19  ;;  %v1950_v36 = vadd.f32 %v1943_v20, %v1931_v6  ;;  %v4596_v27 = vadd.f32 %v4589_v56, %v4579_v34  ;;  %v4617_v9 = vadd.f32 %v10583_v43, %v4594_v21  ;;  %v13528_v21 = vld [vmem:[#allocation53_spill] sm:$0xff] }
 0x270   : > { %v10741_v45 = vadd.f32 %v13519_v31, %v3488_v61  ;;  %v2002_v59 = vstv %s10716_s22  ;;  %v2543_v8 = vmul.f32 %v10366_v16, %v10744_v62  ;;  %v1998_v20 = vadd.f32 %v10608_v4, %v1973_v13  ;;  %v13525_v61 = vld [vmem:[#allocation54_spill] sm:$0xff]  ;;  %s7444_s22 = sld [smem:[#allocation4 + $0x3d]] }
 0x271   : > { %v10749_v5 = vpop.permute.xlu0 %2180  ;;  %2531 = vrot.lane.b32.xlu1 %v2524_v18, %s8040_s23  ;;  %v1975_v11 = vadd.f32 %v10662_v55, %v1950_v36  ;;  %v2004_v60 = vadd.f32 %v2002_v59, %v1999_v52  ;;  %v4619_v22 = vadd.f32 %v10689_v25, %v4596_v27  ;;  %v4640_v51 = vadd.f32 %v10638_v42, %v4617_v9 }
 0x272   : > { %v4644_v56 = vadd.f32 %v4641_v39, %v2002_v59  ;;  %v2544_v55 = vmul.f32 %v10378_v32, %v10744_v62  ;;  %v5121_v4 = vmul.f32 %v10473_v2, %v10744_v62  ;;  %v2003_v25 = vadd.f32 %v2002_v59, %v1998_v20 }
 0x273   : > { %5109 = vrot.lane.b32.xlu0 %v5103_v30, %s8040_s23  ;;  %v10759_v14 = vpop.permute.xlu1 %2182  ;;  %v2000_v3 = vadd.f32 %v1994_v58, %v1975_v11  ;;  %v4642_v49 = vadd.f32 %v4636_v50, %v4619_v22  ;;  %v2007_v42 = vmax.f32 %v2004_v60, 0.0  ;;  %v13520_v58 = vld [vmem:[#allocation52_spill] sm:$0xff]  ;;  %v4643_v53 = vadd.f32 %v4640_v51, %v2002_v59  ;;  %v13534_v11 = vld [vmem:[#allocation55_spill] sm:$0xff] }
 0x274   : > { %v1079_v48 = vmul.f32 %v13520_v58, %v13494_v1  ;;  %v4647_v17 = vmax.f32 %v4644_v56, 0.0  ;;  %v5122_v15 = vmul.f32 %v10477_v24, %v10744_v62  ;;  %v3817_v33 = vmul.f32 %v13521_v40, %v13520_v58  ;;  %v13535_v22 = vld [vmem:[#allocation56_spill] sm:$0xff] }
 0x275   : > { %v10766_v43 = vpop.permute.xlu0 %4798  ;;  %5111 = vrot.lane.b32.xlu1 %v5104_v28, %s8040_s23  ;;  %v2005_v12 = vadd.f32 %v2002_v59, %v2000_v3  ;;  %v4645_v44 = vadd.f32 %v4642_v49, %v2002_v59  ;;  %v2006_v26 = vmax.f32 %v2003_v25, 0.0  ;;  %v10790_v10 = vsel %vm8528_vm5, %v2007_v42, 0.0  ;;  %v13537_v49 = vld [vmem:[#allocation94_spill] sm:$0xff] }
 0x276   : > { %13523 = vst [vmem:[#allocation31_spill] sm:$0xff] %v10790_v10  ;;  %v1086_v6 = vrot.slane %v1079_v48, 2  ;;  %v4646_v41 = vmax.f32 %v4643_v53, 0.0  ;;  %v10794_v46 = vsel %vm8528_vm5, %v4647_v17, 0.0  ;;  %v2047_v34 = vstv %s7412_s30  ;;  %v13538_v48 = vld [vmem:[#allocation58_spill] sm:$0xff]  ;;  %s7421_s30 = sld [smem:[#allocation4 + $0x30]] }
 0x277   : > { %2549 = vrot.lane.b32.xlu0 %v2543_v8, %s8041_s25  ;;  %v10772_v23 = vpop.permute.xlu1 %4800  ;;  %13524 = vst [vmem:[#allocation33_spill] sm:$0xff] %v10794_v46  ;;  %v2008_v38 = vmax.f32 %v2005_v12, 0.0  ;;  %v4648_v37 = vmax.f32 %v4645_v44, 0.0  ;;  %v2049_v57 = vmul.f32 %v2047_v34, %v10790_v10  ;;  %v2525_v50 = vmul.f32 %v10401_v0, %v10701_v47 }
 0x278   : > { %v3824_v30 = vrot.slane %v3817_v33, 2  ;;  %v10808_v52 = vsel %vm8535_vm6, %v2006_v26, 0.0  ;;  %v4681_v31 = vmul.f32 %v10794_v46, %v2047_v34  ;;  %v13529_v39 = vrot.slane %v13528_v21, 2 }
 0x279   : > { %v10778_v7 = vpop.permute.xlu0 %2200  ;;  %2551 = vrot.lane.b32.xlu1 %v2544_v55, %s8041_s25  ;;  %13527 = vst [vmem:[#allocation89_spill] sm:$0xff] %v10808_v52  ;;  %v10816_v28 = vsel %vm8535_vm6, %v4646_v41, 0.0  ;;  %v10820_v27 = vsel %vm8555_vm8, %v2008_v38, 0.0  ;;  %v10829_v59 = vsel %vm8555_vm8, %v4648_v37, 0.0  ;;  %v1100_v8 = vmul.f32 %v13534_v11, %v13494_v1 }
 0x27a   : > { %v1087_v36 = vsel %vm543_vm1, %v13529_v39, %v1086_v6  ;;  %13530 = vst [vmem:[#allocation36_spill] sm:$0xff] %v10816_v28  ;;  %13532 = vst [vmem:[#allocation23_spill] sm:$0xff] %v10820_v27  ;;  %v2106_v20 = vstv %s7415_s26  ;;  %v13536_v51 = vrot.slane %v13535_v22, 2  ;;  %v2048_v3 = vmul.f32 %v2047_v34, %v10808_v52  ;;  %s10999_s26 = sld [smem:[#allocation4 + $0x2d]] }
 0x27b   : > { %5127 = vrot.lane.b32.xlu0 %v5121_v4, %s8041_s25  ;;  %v10784_v35 = vpop.permute.xlu1 %2202  ;;  %13533 = vst [vmem:[#allocation80_spill] sm:$0xff] %v10829_v59  ;;  %v2055_v55 = vrot.slane %v2049_v57, 1  ;;  %v5105_v4 = vmul.f32 %v13537_v49, %v10701_v47  ;;  %v2050_v25 = vmul.f32 %v2047_v34, %v10820_v27  ;;  %v4680_v42 = vmul.f32 %v10816_v28, %v2047_v34 }
 0x27c   : > { %v3825_v56 = vsel %vm543_vm1, %v13536_v51, %v3824_v30  ;;  %v4687_v58 = vrot.slane %v4681_v31, 1  ;;  %v2054_v53 = vrot.slane %v2048_v3, 1  ;;  %v4682_v17 = vmul.f32 %v10829_v59, %v2047_v34 }
 0x27d   : > { %v10796_v18 = vpop.permute.xlu0 %4816  ;;  %5129 = vrot.lane.b32.xlu1 %v5122_v15, %s8041_s25  ;;  %v2107_v12 = vmul.f32 %v2106_v20, %v10808_v52  ;;  %v2108_v15 = vmul.f32 %v2106_v20, %v10790_v10  ;;  %v1107_v44 = vrot.slane %v1100_v8, 2  ;;  %v2057_v33 = vrot.slane %v2050_v25, 1  ;;  %v13545_v8 = vld [vmem:[#allocation43_spill] sm:$0xff]  ;;  %v13548_v25 = vld [vmem:[#allocation62_spill] sm:$0xff] }
 0x27e   : > { %v4686_v47 = vrot.slane %v4680_v42, 1  ;;  %v2109_v26 = vmul.f32 %v2106_v20, %v10820_v27  ;;  %v10852_v41 = vsel %vm473_vm0, %v2054_v53, %v2055_v55  ;;  %v4689_v38 = vrot.slane %v4682_v17, 1 }
 0x27f   : > { %1088 = vrot.lane.b32.xlu0 %v13525_v61, %s8040_s23  ;;  %v10802_v19 = vpop.permute.xlu1 %4818  ;;  %13539 = vst [vmem:[#allocation87_spill] sm:$0xff] %v10852_v41  ;;  %v2113_v37 = vrot.slane %v2107_v12, 2  ;;  %v2114_v34 = vrot.slane %v2108_v15, 2  ;;  %v10855_v57 = vsel %vm473_vm0, %v2055_v55, %v2057_v33  ;;  %v2581_v30 = vstv %s10825_s27  ;;  %v13566_v41 = vld [vmem:[#allocation44_spill] sm:$0xff]  ;;  %s11007_s27 = sld [smem:[#allocation4 + $0x3e]] }
 0x280   : > { %13540 = vst [vmem:[#allocation24_spill] sm:$0xff] %v10855_v57  ;;  %v10858_v61 = vsel %vm473_vm0, %v4686_v47, %v4687_v58  ;;  %v10867_v31 = vsel %vm473_vm0, %v4687_v58, %v4689_v38  ;;  %v2116_v39 = vrot.slane %v2109_v26, 2  ;;  %v2545_v58 = vmul.f32 %v10401_v0, %v10744_v62 }
 0x281   : > { %v10822_v9 = vpop.permute.xlu0 %2184  ;;  %1090 = vrot.lane.b32.xlu1 %v1087_v36, %s8040_s23  ;;  %13541 = vst [vmem:[#allocation42_spill] sm:$0xff] %v10858_v61  ;;  %13542 = vst [vmem:[#allocation26_spill] sm:$0xff] %v10867_v31  ;;  %v10870_v21 = vsel %vm543_vm1, %v2113_v37, %v2114_v34  ;;  %v13544_v36 = vld [vmem:[#allocation22_spill] sm:$0xff]  ;;  %v4734_v53 = vmul.f32 %v10794_v46, %v2106_v20  ;;  %v2582_v12 = vmul.f32 %v10366_v16, %v2581_v30 }
 0x282   : > { %13543 = vst [vmem:[#allocation28_spill] sm:$0xff] %v10870_v21  ;;  %v3719_v22 = vmul.f32 %v13545_v8, %v13544_v36  ;;  %v4733_v33 = vmul.f32 %v10816_v28, %v2106_v20  ;;  %v5156_v37 = vmul.f32 %v10473_v2, %v2581_v30  ;;  %v1335_v61 = vstv %s7373_s10  ;;  %v13572_v28 = vld [vmem:[#allocation70_spill] sm:$0xff]  ;;  %s11293_s10 = sld [smem:[#allocation10 + $0x30]] }
 0x283   : > { %2533 = vrot.lane.b32.xlu0 %v2525_v50, %s8040_s23  ;;  %v3516_v60 = vpop.permute.xlu1 %3515  ;;  %v13580_v46 = vld [vmem:[#allocation50_spill] sm:$0xff] }
 0x284   : > { %v3521_v51 = vadd.f32 %v3516_v60, %v10733_v54  ;;  %v4735_v54 = vmul.f32 %v10829_v59, %v2106_v20  ;;  %v2588_v20 = vrot.slane %v2582_v12, 1 }
 0x285   : > { %v3518_v1 = vpop.permute.xlu0 %3517  ;;  %3826 = vrot.lane.b32.xlu1 %v13538_v48, %s8040_s23  ;;  %v10885_v48 = vsel %vm543_vm1, %v2114_v34, %v2116_v39  ;;  %v5157_v34 = vmul.f32 %v10477_v24, %v2581_v30  ;;  %v4740_v39 = vrot.slane %v4734_v53, 2 }
 0x286   : > { %13549 = vst [vmem:[#allocation52_spill] sm:$0xff] %v10885_v48  ;;  %v3522_v60 = vadd.f32 %v3518_v1, %v10741_v45  ;;  %v10899_v45 = vmul.f32 %v10401_v0, %v2581_v30  ;;  %v13565_v48 = vld [vmem:[#allocation39_spill] sm:$0xff] }
 0x287   : > { %3828 = vrot.lane.b32.xlu0 %v3825_v56, %s8040_s23  ;;  %v10849_v6 = vpop.permute.xlu1 %4802  ;;  %v13546_v56 = vld [vmem:[#allocation59_spill] sm:$0xff]  ;;  %v5163_v12 = vrot.slane %v5157_v34, 1 }
 0x288   : > { %v13547_v3 = vrot.slane %v13546_v56, 2  ;;  %v13551_v56 = vld [vmem:[#allocation65_spill] sm:$0xff]  ;;  %v2591_v53 = vrot.slane %v10899_v45, 1 }
 0x289   : > { %v10860_v50 = vpop.permute.xlu0 %2204  ;;  %5113 = vrot.lane.b32.xlu1 %v5105_v4, %s8040_s23  ;;  %v3836_v4 = vmul.f32 %v13521_v40, %v13534_v11  ;;  %v2583_v40 = vmul.f32 %v10378_v32, %v2581_v30  ;;  %v13550_v11 = vld [vmem:[#allocation38_spill] sm:$0xff] }
 0x28a   : > { %v1108_v55 = vsel %vm543_vm1, %v13547_v3, %v1107_v44  ;;  %v3720_v15 = vmul.f32 %v13550_v11, %v13544_v36  ;;  %v4742_v36 = vrot.slane %v4735_v54, 2  ;;  %v5123_v3 = vmul.f32 %v13537_v49, %v10744_v62 }
 0x28b   : > { %1109 = vrot.lane.b32.xlu0 %v13548_v25, %s8041_s25  ;;  %v3535_v42 = vpop.permute.xlu1 %3534  ;;  %v3843_v38 = vrot.slane %v3836_v4, 2  ;;  %v4739_v4 = vrot.slane %v4733_v33, 2  ;;  %v13552_v25 = vld [vmem:[#allocation60_spill] sm:$0xff]  ;;  %v10920_v54 = vmul.f32 %v13537_v49, %v2581_v30 }
 0x28c   : > { %v3540_v17 = vadd.f32 %v3535_v42, %v3521_v51  ;;  %v13553_v42 = vrot.slane %v13552_v25, 2  ;;  %v10929_v62 = vsel %vm543_vm1, %v4740_v39, %v4742_v36 }
 0x28d   : > { %v3537_v44 = vpop.permute.xlu0 %3536  ;;  %1111 = vrot.lane.b32.xlu1 %v1108_v55, %s8041_s25  ;;  %v2606_v55 = vstv %s10864_s28  ;;  %13555 = vst [vmem:[#allocation54_spill] sm:$0xff] %v10929_v62  ;;  %s11064_s28 = sld [smem:[#allocation4 + $0x33]] }
 0x28e   : > { %v10896_v47 = vadd.f32 %v3719_v22, %v3540_v17  ;;  %v3541_v26 = vadd.f32 %v3537_v44, %v3522_v60  ;;  %v2589_v22 = vrot.slane %v2583_v40, 1  ;;  %v5162_v17 = vrot.slane %v5156_v37, 1 }
 0x28f   : > { %2553 = vrot.lane.b32.xlu0 %v2545_v58, %s8041_s25  ;;  %v10902_v1 = vpop.permute.xlu1 %4820  ;;  %v3844_v58 = vsel %vm543_vm1, %v13553_v42, %v3843_v38  ;;  %v10926_v40 = vsel %vm543_vm1, %v4739_v4, %v4740_v39  ;;  %v2608_v44 = vmul.f32 %v10378_v32, %v2606_v55  ;;  %v10940_v38 = vmul.f32 %v10401_v0, %v2606_v55 }
 0x290   : > { %v10906_v8 = vadd.f32 %v3720_v15, %v3541_v26  ;;  %13554 = vst [vmem:[#allocation47_spill] sm:$0xff] %v10926_v40  ;;  %v2590_v11 = vsel %vm473_vm0, %v2588_v20, %v2589_v22  ;;  %v2607_v15 = vmul.f32 %v10366_v16, %v2606_v55  ;;  %v2592_v33 = vsel %vm473_vm0, %v2589_v22, %v2591_v53 }
 0x291   : > { %v10908_v51 = vpop.permute.xlu0 %2244  ;;  %3845 = vrot.lane.b32.xlu1 %v13551_v56, %s8041_s25  ;;  %v13189_v26 = vrot.slane %v10920_v54, 1  ;;  %v5164_v37 = vsel %vm473_vm0, %v5162_v17, %v5163_v12  ;;  %v2614_v39 = vrot.slane %v2608_v44, 1  ;;  %v5179_v36 = vmul.f32 %v10473_v2, %v2606_v55 }
 0x292   : > { %v2613_v34 = vrot.slane %v2607_v15, 1  ;;  %v5180_v20 = vmul.f32 %v10477_v24, %v2606_v55  ;;  %v10956_v4 = vmul.f32 %v13537_v49, %v2606_v55 }
 0x293   : > { %3847 = vrot.lane.b32.xlu0 %v3844_v58, %s8041_s25  ;;  %v10923_v60 = vpop.permute.xlu1 %2246  ;;  %v5166_v22 = vsel %vm473_vm0, %v5163_v12, %v13189_v26  ;;  %v5185_v58 = vrot.slane %v5179_v36, 1 }
 0x294   : > { %v2615_v42 = vsel %vm473_vm0, %v2613_v34, %v2614_v39  ;;  %v5186_v17 = vrot.slane %v5180_v20, 1  ;;  %v13188_v55 = vrot.slane %v10956_v4, 1  ;;  %v1321_v34 = vstv %s7372_s29  ;;  %v13559_v20 = vld [vmem:[#allocation21_spill] sm:$0xff]  ;;  %s11234_s29 = sld [smem:[#allocation8 + $0x5]] }
 0x295   : > { %v10934_v30 = vpop.permute.xlu0 %4856  ;;  %5131 = vrot.lane.b32.xlu1 %v5123_v3, %s8041_s25  ;;  %v13187_v3 = vrot.slane %v10940_v38, 1 }
 0x296   : > { %v5187_v44 = vsel %vm473_vm0, %v5185_v58, %v5186_v17  ;;  %v13560_v58 = vld [vmem:[#allocation57_spill] sm:$0xff] }
 0x297   : > { %2593 = vrot.lane.b32.xlu0 %v2590_v11, %s8040_s23  ;;  %v10943_v45 = vpop.permute.xlu1 %4858  ;;  %v2617_v12 = vsel %vm473_vm0, %v2614_v39, %v13187_v3 }
 0x298   : > { %13556 = vst [vmem:[#allocation53_spill] sm:$0xff] %v10943_v45 }
 0x299   : > { %v10948_v56 = vpop.permute.xlu0 %2269  ;;  %2595 = vrot.lane.b32.xlu1 %v2592_v33, %s8040_s23 }
 0x29b   : > { %5167 = vrot.lane.b32.xlu0 %v5164_v37, %s8040_s23  ;;  %v10959_v25 = vpop.permute.xlu1 %2271  ;;  %v5189_v37 = vsel %vm473_vm0, %v5186_v17, %v13188_v55  ;;  %v13563_v55 = vld [vmem:[#allocation40_spill] sm:$0xff] }
 0x29d   : > { %v10962_v11 = vpop.permute.xlu0 %4879  ;;  %5169 = vrot.lane.b32.xlu1 %v5166_v22, %s8040_s23  ;;  %v1322_v22 = vmul.f32 %v1321_v34, %v13559_v20 }
 0x29e   : > { %13557 = vst [vmem:[#allocation55_spill] sm:$0xff] %v10962_v11 }
 0x29f   : > { %2618 = vrot.lane.b32.xlu0 %v2615_v42, %s8041_s25  ;;  %v10970_v15 = vpop.permute.xlu1 %4881 }
 0x2a0   : > { %13558 = vst [vmem:[#allocation56_spill] sm:$0xff] %v10970_v15 }
 0x2a1   : > { %v978_v33 = vpop.permute.xlu0 %977  ;;  %2620 = vrot.lane.b32.xlu1 %v2617_v12, %s8041_s25  ;;  %v1323_v12 = vmul.f32 %v1321_v34, %v13560_v58 }
 0x2a2   : > { %v983_v26 = vadd.f32 %v978_v33, %v13563_v55  ;;  %v13569_v33 = vrot.slane %v10920_v54, 1 }
 0x2a3   : > { %5190 = vrot.lane.b32.xlu0 %v5187_v44, %s8041_s25  ;;  %v980_v36 = vpop.permute.xlu1 %979  ;;  %v13562_v44 = vld [vmem:[#allocation67_spill] sm:$0xff] }
 0x2a4   : > { %v984_v21 = vadd.f32 %v980_v36, %v13565_v48  ;;  %v1336_v48 = vmul.f32 %v1335_v61, %v13559_v20  ;;  %v4046_v36 = vmul.f32 %v13562_v44, %v1335_v61 }
 0x2a5   : > { %v10978_v39 = vpop.permute.xlu0 %2248  ;;  %5192 = vrot.lane.b32.xlu1 %v5189_v37, %s8041_s25  ;;  %v4034_v37 = vmul.f32 %v13562_v44, %v1321_v34 }
 0x2a7   : > { %1326 = vrot.lane.b32.xlu0 %v1322_v22, %s8040_s23  ;;  %v3728_v42 = vpop.permute.xlu1 %3727  ;;  %v13564_v22 = vld [vmem:[#allocation61_spill] sm:$0xff] }
 0x2a8   : > { %v4035_v40 = vmul.f32 %v13564_v22, %v1321_v34  ;;  %v1337_v34 = vmul.f32 %v1335_v61, %v13560_v58 }
 0x2a9   : > { %v3730_v3 = vpop.permute.xlu0 %3729  ;;  %1328 = vrot.lane.b32.xlu1 %v1323_v12, %s8040_s23  ;;  %v1366_v12 = vstv %s7375_s15  ;;  %s11306_s15 = sld [smem:[#allocation4 + $0x40]] }
 0x2aa   : > { %v11035_v10 = vmul.f32 %v1366_v12, %v13572_v28  ;;  %v11038_v52 = vmul.f32 %v13562_v44, %v1366_v12 }
 0x2ab   : > { %2597 = vrot.lane.b32.xlu0 %v2591_v53, %s8040_s23  ;;  %v10986_v17 = vpop.permute.xlu1 %4860  ;;  %v10994_v53 = vstv %s7376_s17  ;;  %s7458_s17 = sld [smem:[#allocation4 + $0x41]] }
 0x2ac   : > { %13561 = vst [vmem:[#allocation94_spill] sm:$0xff] %v10986_v17  ;;  %v11084_v17 = vmul.f32 %v10994_v53, %v13560_v58 }
 0x2ad   : > { %v992_v62 = vpop.permute.xlu0 %991  ;;  %4038 = vrot.lane.b32.xlu1 %v4034_v37, %s8040_s23  ;;  %v11026_v37 = vmul.f32 %v1366_v12, %v13560_v58 }
 0x2ae   : > { %v997_v31 = vadd.f32 %v992_v62, %v983_v26  ;;  %v2650_v62 = vstv %s7444_s22  ;;  %v11020_v26 = vstv %s7421_s30  ;;  %13584 = vst [vmem:[#allocation44_spill] sm:$0xff] %v11084_v17  ;;  %s7434_s22 = sld [smem:[#allocation10 + $0x33]]  ;;  %s7371_s30 = sld [smem:[#allocation10 + $0x12]] }
 0x2af   : > { %4040 = vrot.lane.b32.xlu0 %v4035_v40, %s8040_s23  ;;  %v994_v57 = vpop.permute.xlu1 %993  ;;  %v11010_v40 = vmul.f32 %v1366_v12, %v13559_v20 }
 0x2b0   : > { %v10997_v59 = vadd.f32 %v13566_v41, %v997_v31  ;;  %v998_v27 = vadd.f32 %v994_v57, %v984_v21  ;;  %v3733_v41 = vadd.f32 %v3728_v42, %v10896_v47  ;;  %v13570_v31 = vld [vmem:[#allocation48_spill] sm:$0xff]  ;;  %v11018_v21 = vmul.f32 %v10994_v53, %v13559_v20 }
 0x2b1   : > { %v11001_v55 = vpop.permute.xlu0 %2273  ;;  %5171 = vrot.lane.b32.xlu1 %v13569_v33, %s8040_s23  ;;  %v2651_v42 = vmul.f32 %v10366_v16, %v2650_v62  ;;  %v2652_v33 = vmul.f32 %v10378_v32, %v2650_v62  ;;  %v11044_v16 = vmul.f32 %v10401_v0, %v2650_v62  ;;  %v11047_v32 = vmul.f32 %v13564_v22, %v1366_v12 }
 0x2b2   : > { %13567 = vst [vmem:[#allocation58_spill] sm:$0xff] %v10997_v59  ;;  %13568 = vst [vmem:[#allocation22_spill] sm:$0xff] %v11001_v55  ;;  %v11014_v57 = vadd.f32 %v13570_v31, %v998_v27  ;;  %v3734_v27 = vadd.f32 %v3730_v3, %v10906_v8  ;;  %v13573_v8 = vld [vmem:[#allocation45_spill] sm:$0xff] }
 0x2b3   : > { %1340 = vrot.lane.b32.xlu0 %v1336_v48, %s8041_s25  ;;  %v3740_v54 = vpop.permute.xlu1 %3739  ;;  %v4047_v48 = vmul.f32 %v13564_v22, %v1335_v61  ;;  %13575 = vst [vmem:[#allocation62_spill] sm:$0xff] %v11044_v16  ;;  %v11050_v61 = vld [vmem:[%s8216_s18] sm:$0xff]  ;;  %v2657_v13 = vrot.slane %v2651_v42, 2  ;;  %v2658_v29 = vrot.slane %v2652_v33, 2  ;;  %v13589_v59 = vrot.slane %v11044_v16, 2 }
 0x2b4   : > { %13571 = vst [vmem:[#allocation43_spill] sm:$0xff] %v11014_v57  ;;  %v3745_v47 = vadd.f32 %v3740_v54, %v3733_v41  ;;  %13576 = vst [vmem:[#allocation38_spill] sm:$0xff] %v11050_v61  ;;  %v2214_v54 = vmul.f32 %v11050_v61, %v11020_v26 }
 0x2b5   : > { %v3742_v31 = vpop.permute.xlu0 %3741  ;;  %1342 = vrot.lane.b32.xlu1 %v1337_v34, %s8041_s25  ;;  %v11055_v34 = vld [vmem:[%s8216_s18 + $0x8] sm:$0xff]  ;;  %v2659_v44 = vsel %vm543_vm1, %v2657_v13, %v2658_v29  ;;  %v13588_v13 = vrot.slane %v10956_v4, 1  ;;  %v2661_v15 = vsel %vm543_vm1, %v2658_v29, %v13589_v59 }
 0x2b6   : > { %v11041_v3 = vadd.f32 %v13573_v8, %v3745_v47  ;;  %v3746_v41 = vadd.f32 %v3742_v31, %v3734_v27  ;;  %13577 = vst [vmem:[#allocation65_spill] sm:$0xff] %v11055_v34  ;;  %v2215_v47 = vmul.f32 %v11055_v34, %v11020_v26  ;;  %v13578_v27 = vrot.slane %v10940_v38, 1 }
 0x2b7   : > { %v11062_v0 = vpop.permute.xlu1 %4883  ;;  %v5219_v31 = vmul.f32 %v10473_v2, %v2650_v62  ;;  %v5220_v8 = vmul.f32 %v10477_v24, %v2650_v62  ;;  %v2220_v63 = vrot.slane %v2214_v54, 1 }
 0x2b8   : > { %13574 = vst [vmem:[#allocation59_spill] sm:$0xff] %v11041_v3  ;;  %2622 = vrot.lane.b32.xlu0 %v13578_v27, %s8041_s25  ;;  %13579 = vst [vmem:[#allocation60_spill] sm:$0xff] %v11062_v0  ;;  %v11069_v20 = vadd.f32 %v13580_v46, %v3746_v41  ;;  %v11073_v3 = vstv %s10999_s26  ;;  %v2675_v27 = vstv %s11007_s27  ;;  %v13583_v0 = vld [vmem:[#allocation71_spill] sm:$0xff]  ;;  %v11095_v41 = vmul.f32 %v13537_v49, %v2650_v62  ;;  %s7460_s26 = sld [smem:[#allocation4 + $0x43]]  ;;  %s7461_s27 = sld [smem:[#allocation4 + $0x44]] }
 0x2b9   : > { %v11075_v38 = vpop.permute.xlu0 %2313  ;;  %4050 = vrot.lane.b32.xlu1 %v4046_v36, %s8041_s25  ;;  %v11080_v57 = vmul.f32 %v13583_v0, %v1366_v12  ;;  %v11087_v46 = vld [vmem:[%s8216_s18 + $0x10] sm:$0xf]  ;;  %v2221_v12 = vrot.slane %v2215_v47, 1  ;;  %v5225_v58 = vrot.slane %v5219_v31, 2  ;;  %v5226_v0 = vrot.slane %v5220_v8, 2 }
 0x2ba   : > { %13581 = vst [vmem:[#allocation40_spill] sm:$0xff] %v11069_v20  ;;  %13582 = vst [vmem:[#allocation39_spill] sm:$0xff] %v11075_v38  ;;  %v11091_v42 = vmul.f32 %v11087_v46, %v11020_v26  ;;  %v2166_v22 = vmul.f32 %v11050_v61, %v11073_v3  ;;  %v2676_v33 = vmul.f32 %v11050_v61, %v2675_v27 }
 0x2bb   : > { %13585 = vst [vmem:[#allocation48_spill] sm:$0xff] %v11087_v46  ;;  %v11099_v20 = vpop.permute.xlu1 %2315  ;;  %v2677_v62 = vmul.f32 %v11055_v34, %v2675_v27  ;;  %v2167_v54 = vmul.f32 %v11055_v34, %v11073_v3  ;;  %v4828_v47 = vmul.f32 %v10473_v2, %v11020_v26  ;;  %v11114_v31 = vmul.f32 %v10477_v24, %v11020_v26 }
 0x2bc   : > { %4052 = vrot.lane.b32.xlu0 %v4047_v48, %s8041_s25  ;;  %13586 = vst [vmem:[#allocation70_spill] sm:$0xff] %v11099_v20  ;;  %v2168_v48 = vmul.f32 %v11087_v46, %v11073_v3  ;;  %v11127_v17 = vmul.f32 %v11087_v46, %v2675_v27  ;;  %v2222_v55 = vsel %vm473_vm0, %v2220_v63, %v2221_v12  ;;  %v11135_v20 = vstv %s11064_s28  ;;  %s7391_s28 = sld [smem:[#allocation10 + $0x1c]] }
 0x2bd   : > { %v11116_v8 = vpop.permute.xlu0 %4919  ;;  %5194 = vrot.lane.b32.xlu1 %v13588_v13, %s8041_s25  ;;  %v5227_v13 = vsel %vm543_vm1, %v5225_v58, %v5226_v0  ;;  %v2682_v29 = vrot.slane %v2676_v33, 2  ;;  %v2683_v59 = vrot.slane %v2677_v62, 2  ;;  %v5242_v11 = vmul.f32 %v10473_v2, %v2675_v27 }
 0x2be   : > { %13587 = vst [vmem:[#allocation45_spill] sm:$0xff] %v11116_v8  ;;  %13590 = vst [vmem:[#allocation50_spill] sm:$0xff] %v11127_v17  ;;  %v11132_v8 = vmul.f32 %v13537_v49, %v11020_v26  ;;  %v5243_v36 = vmul.f32 %v10477_v24, %v2675_v27  ;;  %v2189_v63 = vadd.f32 %v10749_v5, %v2166_v22  ;;  %v4834_v26 = vrot.slane %v4828_v47, 1 }
 0x2bf   : > { %v11138_v4 = vpop.permute.xlu1 %4921  ;;  %v2190_v16 = vadd.f32 %v10759_v14, %v2167_v54  ;;  %v4835_v38 = vrot.slane %v11114_v31, 1  ;;  %v13591_v58 = vrot.slane %v11091_v42, 1  ;;  %v13592_v2 = vrot.slane %v11095_v41, 2  ;;  %v11179_v54 = vld [vmem:[%s8347_s24 + $0x8] sm:$0xff] }
 0x2c0   : > { %2662 = vrot.lane.b32.xlu0 %v2659_v44, %s8040_s23  ;;  %v13217_v5 = vrot.slane %v11127_v17, 2  ;;  %v11157_v14 = vmul.f32 %v13537_v49, %v2675_v27  ;;  %v2209_v22 = vadd.f32 %v10778_v7, %v2189_v63  ;;  %v2684_v49 = vsel %vm543_vm1, %v2682_v29, %v2683_v59 }
 0x2c1   : > { %v11146_v45 = vpop.permute.xlu0 %2338  ;;  %2664 = vrot.lane.b32.xlu1 %v2661_v15, %s8040_s23  ;;  %v2224_v44 = vsel %vm473_vm0, %v2221_v12, %v13591_v58  ;;  %v5229_v24 = vsel %vm543_vm1, %v5226_v0, %v13592_v2  ;;  %v2210_v33 = vadd.f32 %v10784_v35, %v2190_v16  ;;  %v2283_v15 = vmul.f32 %v11050_v61, %v11135_v20  ;;  %v11174_v35 = vld [vmem:[%s8347_s24] sm:$0xff] }
 0x2c2   : > { %v2284_v12 = vmul.f32 %v11055_v34, %v11135_v20  ;;  %v11170_v0 = vmul.f32 %v11087_v46, %v11135_v20  ;;  %v5248_v7 = vrot.slane %v5242_v11, 2  ;;  %v5249_v27 = vrot.slane %v5243_v36, 2  ;;  %v11189_v11 = vld [vmem:[%s8347_s24 + $0x10] sm:$0xf] }
 0x2c3   : > { %v11166_v62 = vpop.permute.xlu1 %2340  ;;  %v4786_v16 = vmul.f32 %v11174_v35, %v11073_v3  ;;  %v4787_v47 = vmul.f32 %v11179_v54, %v11073_v3  ;;  %v4788_v36 = vmul.f32 %v11189_v11, %v11073_v3  ;;  %v2686_v58 = vsel %vm543_vm1, %v2683_v59, %v13217_v5 }
 0x2c4   : > { %5230 = vrot.lane.b32.xlu0 %v5227_v13, %s8040_s23  ;;  %v5251_v2 = vrot.slane %v11157_v14, 2  ;;  %v2228_v46 = vadd.f32 %v2222_v55, %v2209_v22  ;;  %v2229_v34 = vadd.f32 %v2224_v44, %v2210_v33  ;;  %v2289_v13 = vrot.slane %v2283_v15, 2 }
 0x2c5   : > { %v11183_v31 = vpop.permute.xlu0 %4942  ;;  %5232 = vrot.lane.b32.xlu1 %v5229_v24, %s8040_s23  ;;  %v4836_v24 = vsel %vm473_vm0, %v4834_v26, %v4835_v38  ;;  %v2191_v61 = vadd.f32 %v10822_v9, %v2168_v48  ;;  %v2290_v3 = vrot.slane %v2284_v12, 2  ;;  %v2292_v63 = vrot.slane %v11170_v0, 2  ;;  %v13619_v0 = vld [vmem:[#allocation45_spill] sm:$0xff] }
 0x2c6   : > { %v5250_v17 = vsel %vm543_vm1, %v5248_v7, %v5249_v27  ;;  %v4807_v59 = vadd.f32 %v10766_v43, %v4786_v16  ;;  %v4808_v5 = vadd.f32 %v10772_v23, %v4787_v47  ;;  %v2253_v55 = vadd.f32 %v10908_v51, %v2228_v46 }
 0x2c7   : > { %v11200_v29 = vpop.permute.xlu1 %4944  ;;  %v2254_v26 = vadd.f32 %v10923_v60, %v2229_v34  ;;  %v2211_v22 = vadd.f32 %v10860_v50, %v2191_v61  ;;  %v4891_v9 = vmul.f32 %v11174_v35, %v11135_v20  ;;  %v4892_v48 = vmul.f32 %v11179_v54, %v11135_v20 }
 0x2c8   : > { %2687 = vrot.lane.b32.xlu0 %v2684_v49, %s8041_s25  ;;  %v5252_v43 = vsel %vm543_vm1, %v5249_v27, %v5251_v2  ;;  %v4825_v23 = vadd.f32 %v10796_v18, %v4807_v59  ;;  %v4826_v51 = vadd.f32 %v10802_v19, %v4808_v5  ;;  %v2278_v60 = vadd.f32 %v10948_v56, %v2253_v55 }
 0x2c9   : > { %v1030_v44 = vpop.permute.xlu0 %1029  ;;  %2689 = vrot.lane.b32.xlu1 %v2686_v58, %s8041_s25  ;;  %v2279_v34 = vadd.f32 %v10959_v25, %v2254_v26  ;;  %v13593_v61 = vrot.slane %v11132_v8, 1  ;;  %v2291_v33 = vsel %vm543_vm1, %v2289_v13, %v2290_v3  ;;  %v2293_v15 = vsel %vm543_vm1, %v2290_v3, %v2292_v63 }
 0x2ca   : > { %v11232_v18 = vmul.f32 %v11189_v11, %v11135_v20  ;;  %v13594_v56 = vrot.slane %v11026_v37, 1  ;;  %v13595_v25 = vrot.slane %v11010_v40, 1  ;;  %v4082_v20 = vrot.slane %v11080_v57, 1 }
 0x2cb   : > { %v1032_v50 = vpop.permute.xlu1 %1031  ;;  %v4838_v46 = vsel %vm473_vm0, %v4835_v38, %v13593_v61  ;;  %v13596_v38 = vrot.slane %v11035_v10, 1  ;;  %v1394_v49 = vrot.slane %v11018_v21, 1  ;;  %v4809_v7 = vadd.f32 %v10849_v6, %v4788_v36  ;;  %v13599_v36 = vld [vmem:[#allocation53_spill] sm:$0xff]  ;;  %v13606_v61 = vld [vmem:[#allocation55_spill] sm:$0xff] }
 0x2cc   : > { %5253 = vrot.lane.b32.xlu0 %v5250_v17, %s8041_s25  ;;  %v1375_v17 = vsel %vm473_vm0, %v13595_v25, %v13594_v56  ;;  %v13597_v5 = vmov %v13594_v56  ;;  %v13598_v27 = vrot.slane %v11091_v42, 1  ;;  %v4897_v47 = vrot.slane %v4891_v9, 2  ;;  %v13608_v25 = vld [vmem:[#allocation62_spill] sm:$0xff] }
 0x2cd   : > { %v2318_v19 = vpop.permute.xlu0 %2317  ;;  %5255 = vrot.lane.b32.xlu1 %v5252_v43, %s8041_s25  ;;  %v1377_v12 = vsel %vm473_vm0, %v13597_v5, %v13596_v38  ;;  %v4898_v13 = vrot.slane %v4892_v48, 2  ;;  %v4842_v40 = vadd.f32 %v4836_v24, %v4825_v23  ;;  %v4843_v58 = vadd.f32 %v4838_v46, %v4826_v51  ;;  %v13600_v24 = vld [vmem:[#allocation39_spill] sm:$0xff] }
 0x2ce   : > { %v2230_v16 = vadd.f32 %v13598_v27, %v2211_v22  ;;  %v2297_v3 = vadd.f32 %v2291_v33, %v2278_v60  ;;  %v2298_v59 = vadd.f32 %v2293_v15, %v2279_v34  ;;  %v4827_v37 = vadd.f32 %v10902_v1, %v4809_v7  ;;  %v13601_v22 = vld [vmem:[#allocation70_spill] sm:$0xff]  ;;  %v13605_v60 = vld [vmem:[#allocation44_spill] sm:$0xff] }
 0x2cf   : > { %v3774_v10 = vpop.permute.xlu1 %3773  ;;  %v4900_v21 = vrot.slane %v11232_v18, 2  ;;  %v1390_v6 = vmul.f32 %v10994_v53, %v13572_v28  ;;  %v4865_v42 = vadd.f32 %v10934_v30, %v4842_v40  ;;  %v4866_v55 = vadd.f32 %v13599_v36, %v4843_v58  ;;  %v13602_v1 = vld [vmem:[#allocation22_spill] sm:$0xff]  ;;  %v13607_v33 = vld [vmem:[#allocation56_spill] sm:$0xff]  ;;  %v13613_v58 = vld [vmem:[#allocation67_spill] sm:$0xff] }
 0x2d0   : > { %1378 = vrot.lane.b32.xlu0 %v1375_v17, %s8040_s23  ;;  %v2255_v57 = vadd.f32 %v10978_v39, %v2230_v16  ;;  %v2322_v26 = vadd.f32 %v13600_v24, %v2297_v3  ;;  %v2323_v9 = vadd.f32 %v13601_v22, %v2298_v59  ;;  %v4899_v39 = vsel %vm543_vm1, %v4897_v47, %v4898_v13  ;;  %v13611_v27 = vld [vmem:[#allocation58_spill] sm:$0xff] }
 0x2d1   : > { %v3776_v48 = vpop.permute.xlu0 %3775  ;;  %1380 = vrot.lane.b32.xlu1 %v1377_v12, %s8040_s23  ;;  %v13603_v23 = vrot.slane %v11047_v32, 1  ;;  %v13604_v51 = vrot.slane %v11038_v52, 1  ;;  %v1395_v34 = vrot.slane %v13605_v60, 1  ;;  %v4888_v46 = vadd.f32 %v13606_v61, %v4865_v42  ;;  %v13621_v60 = vld [vmem:[#allocation71_spill] sm:$0xff] }
 0x2d2   : > { %v2280_v43 = vadd.f32 %v13602_v1, %v2255_v57  ;;  %v4889_v15 = vadd.f32 %v13607_v33, %v4866_v55  ;;  %v2347_v18 = vadd.f32 %v11146_v45, %v2322_v26  ;;  %v2348_v56 = vadd.f32 %v11166_v62, %v2323_v9  ;;  %v13616_v57 = vld [vmem:[#allocation43_spill] sm:$0xff]  ;;  %v13617_v26 = vld [vmem:[#allocation60_spill] sm:$0xff]  ;;  %v13623_v33 = vld [vmem:[#allocation49_spill] sm:$0xff] }
 0x2d3   : > { %v4081_v30 = vsel %vm473_vm0, %v13604_v51, %v13603_v23  ;;  %v13609_v17 = vrot.slane %v13608_v25, 2  ;;  %v4924_v38 = vpop.permute.xlu1 %4923  ;;  %v13610_v5 = vrot.slane %v11132_v8, 1  ;;  %v4901_v12 = vsel %vm543_vm1, %v4898_v13, %v4900_v21  ;;  %v13614_v8 = vld [vmem:[#allocation61_spill] sm:$0xff]  ;;  %v13615_v13 = vld [vmem:[#allocation94_spill] sm:$0xff]  ;;  %v13618_v1 = vld [vmem:[#allocation63_spill] sm:$0xff] }
 0x2d4   : > { %v11282_v7 = vstv %s11234_s29  ;;  %v1035_v16 = vadd.f32 %v1030_v44, %v13611_v27  ;;  %v13612_v45 = vmov %v13603_v23  ;;  %v1397_v40 = vrot.slane %v1390_v6, 1  ;;  %v13622_v61 = vld [vmem:[#allocation59_spill] sm:$0xff]  ;;  %s7394_s29 = sld [smem:[#allocation10 + $0x1f]] }
 0x2d5   : > { %2666 = vrot.lane.b32.xlu0 %v13609_v17, %s8040_s23  ;;  %v4844_v52 = vadd.f32 %v13610_v5, %v4827_v37  ;;  %v1051_v47 = vpop.permute.xlu0 %1050  ;;  %4084 = vrot.lane.b32.xlu1 %v4081_v30, %s8040_s23  ;;  %v4083_v62 = vsel %vm473_vm0, %v13612_v45, %v4082_v20  ;;  %v4092_v3 = vmul.f32 %v13613_v58, %v10994_v53  ;;  %v13620_v51 = vrot.slane %v11095_v41, 2  ;;  %v13624_v5 = vld [vmem:[#allocation40_spill] sm:$0xff] }
 0x2d6   : > { %v4093_v59 = vmul.f32 %v13614_v8, %v10994_v53  ;;  %v1036_v44 = vadd.f32 %v1032_v50, %v13616_v57  ;;  %v2299_v42 = vadd.f32 %v2292_v63, %v2280_v43  ;;  %v1056_v36 = vadd.f32 %v1051_v47, %v1035_v16 }
 0x2d7   : > { %v4867_v37 = vadd.f32 %v13615_v13, %v4844_v52  ;;  %v4905_v32 = vadd.f32 %v4899_v39, %v4888_v46  ;;  %v4906_v55 = vadd.f32 %v4901_v12, %v4889_v15  ;;  %v2352_v20 = vadd.f32 %v11282_v7, %v2347_v18  ;;  %v1053_v24 = vpop.permute.xlu1 %1052 }
 0x2d8   : > { %v2353_v6 = vadd.f32 %v11282_v7, %v2348_v56  ;;  %v2324_v9 = vadd.f32 %v2318_v19, %v2299_v42  ;;  %v11304_v23 = vadd.f32 %v13618_v1, %v1056_v36  ;;  %v1057_v50 = vadd.f32 %v1053_v24, %v1036_v44  ;;  %v13632_v42 = vld [vmem:[#allocation51_spill] sm:$0xff] }
 0x2d9   : > { %4086 = vrot.lane.b32.xlu0 %v4083_v62, %s8040_s23  ;;  %v4890_v22 = vadd.f32 %v13617_v26, %v4867_v37  ;;  %v4928_v63 = vadd.f32 %v13619_v0, %v4905_v32  ;;  %v4929_v43 = vadd.f32 %v11138_v4, %v4906_v55  ;;  %v2343_v39 = vpop.permute.xlu0 %2342  ;;  %5234 = vrot.lane.b32.xlu1 %v13620_v51, %s8040_s23  ;;  %v2355_v4 = vmax.f32 %v2352_v20, 0.0  ;;  %v13625_v62 = vld [vmem:[#allocation66_spill] sm:$0xff] }
 0x2da   : > { %v1396_v30 = vsel %vm473_vm0, %v1394_v49, %v1395_v34  ;;  %v4094_v19 = vmul.f32 %v13621_v60, %v10994_v53  ;;  %v3779_v46 = vadd.f32 %v3774_v10, %v13622_v61  ;;  %v11318_v15 = vadd.f32 %v13623_v33, %v1057_v50 }
 0x2db   : > { %v2349_v18 = vadd.f32 %v2343_v39, %v2324_v9  ;;  %v1398_v56 = vsel %vm473_vm0, %v1395_v34, %v1397_v40  ;;  %v2356_v25 = vmax.f32 %v2353_v6, 0.0  ;;  %v4951_v17 = vadd.f32 %v11183_v31, %v4928_v63  ;;  %v3793_v49 = vpop.permute.xlu1 %3792 }
 0x2dc   : > { %v4952_v41 = vadd.f32 %v11200_v29, %v4929_v43  ;;  %v3780_v53 = vadd.f32 %v3776_v48, %v13624_v5  ;;  %v4907_v52 = vadd.f32 %v4900_v21, %v4890_v22  ;;  %v3798_v10 = vadd.f32 %v3793_v49, %v3779_v46  ;;  %v13633_v43 = vld [vmem:[#allocation38_spill] sm:$0xff] }
 0x2dd   : > { %1399 = vrot.lane.b32.xlu0 %v1396_v30, %s8041_s25  ;;  %v4099_v12 = vrot.slane %v4093_v59, 1  ;;  %v3795_v27 = vpop.permute.xlu0 %3794  ;;  %1401 = vrot.lane.b32.xlu1 %v1398_v56, %s8041_s25  ;;  %v4098_v16 = vrot.slane %v4092_v3, 1  ;;  %v4101_v34 = vrot.slane %v4094_v19, 1  ;;  %v2396_v47 = vstv %s11293_s10  ;;  %s7440_s10 = sld [smem:[#allocation4 + $0x39]] }
 0x2de   : > { %v4930_v45 = vadd.f32 %v4924_v38, %v4907_v52  ;;  %v2354_v31 = vadd.f32 %v11282_v7, %v2349_v18  ;;  %v11329_v29 = vadd.f32 %v13625_v62, %v3798_v10  ;;  %v3799_v40 = vadd.f32 %v3795_v27, %v3780_v53  ;;  %v13630_v38 = vld [vmem:[#allocation50_spill] sm:$0xff] }
 0x2df   : > { %v11333_v48 = vsel %vm8535_vm6, %v2355_v4, 0.0  ;;  %v11337_v59 = vsel %vm8528_vm5, %v2356_v25, 0.0  ;;  %v4954_v3 = vadd.f32 %v4951_v17, %v11282_v7  ;;  %v4955_v37 = vadd.f32 %v4952_v41, %v11282_v7  ;;  %v4947_v44 = vpop.permute.xlu1 %4946 }
 0x2e0   : > { %13627 = vst [vmem:[#allocation53_spill] sm:$0xff] %v11333_v48  ;;  %13629 = vst [vmem:[#allocation39_spill] sm:$0xff] %v11337_v59  ;;  %v13631_v57 = vrot.slane %v13630_v38, 2  ;;  %v11345_v36 = vadd.f32 %v13632_v42, %v3799_v40  ;;  %v4953_v32 = vadd.f32 %v4947_v44, %v4930_v45  ;;  %v4100_v55 = vsel %vm473_vm0, %v4098_v16, %v4099_v12 }
 0x2e1   : > { %v11349_v20 = vstv %s11306_s15  ;;  %v11351_v6 = vpop.permute.xlu0 %2529  ;;  %4103 = vrot.lane.b32.xlu1 %v4100_v55, %s8041_s25  ;;  %v4102_v24 = vsel %vm473_vm0, %v4099_v12, %v4101_v34  ;;  %v2357_v26 = vmax.f32 %v2354_v31, 0.0  ;;  %v2397_v9 = vmul.f32 %v2396_v47, %v11333_v48  ;;  %s7392_s15 = sld [smem:[#allocation10 + $0x1d]] }
 0x2e2   : > { %2691 = vrot.lane.b32.xlu0 %v13631_v57, %s8041_s25  ;;  %v4956_v22 = vadd.f32 %v4953_v32, %v11282_v7  ;;  %v2398_v1 = vmul.f32 %v2396_v47, %v11337_v59  ;;  %v4957_v50 = vmax.f32 %v4954_v3, 0.0  ;;  %v4958_v0 = vmax.f32 %v4955_v37, 0.0  ;;  %v13634_v7 = vld [vmem:[#allocation65_spill] sm:$0xff] }
 0x2e3   : > { %v11359_v63 = vpop.permute.xlu1 %2531  ;;  %v2872_v39 = vmul.f32 %v13633_v43, %v11349_v20  ;;  %v2873_v19 = vmul.f32 %v13634_v7, %v11349_v20  ;;  %v11372_v46 = vsel %vm8555_vm8, %v2357_v26, 0.0  ;;  %v2403_v18 = vrot.slane %v2397_v9, 1 }
 0x2e4   : > { %v2404_v51 = vrot.slane %v2398_v1, 1  ;;  %13636 = vst [vmem:[#allocation70_spill] sm:$0xff] %v11372_v46  ;;  %v4959_v33 = vmax.f32 %v4956_v22, 0.0  ;;  %v11376_v56 = vsel %vm8535_vm6, %v4957_v50, 0.0  ;;  %v11380_v4 = vsel %vm8528_vm5, %v4958_v0, 0.0 }
 0x2e5   : > { %v11363_v30 = vpop.permute.xlu0 %5109  ;;  %5257 = vrot.lane.b32.xlu1 %v5251_v2, %s8041_s25  ;;  %13637 = vst [vmem:[#allocation22_spill] sm:$0xff] %v11376_v56  ;;  %13638 = vst [vmem:[#allocation44_spill] sm:$0xff] %v11380_v4  ;;  %v5414_v2 = vmul.f32 %v11174_v35, %v11349_v20  ;;  %v11387_v25 = vstv %s7458_s17  ;;  %v5415_v49 = vmul.f32 %v11179_v54, %v11349_v20  ;;  %v2455_v34 = vstv %s7434_s22  ;;  %s7395_s17 = sld [smem:[#allocation10 + $0x20]]  ;;  %s7437_s22 = sld [smem:[#allocation4 + $0x36]] }
 0x2e6   : > { %4105 = vrot.lane.b32.xlu0 %v4102_v24, %s8041_s25  ;;  %v11390_v17 = vsel %vm473_vm0, %v2403_v18, %v2404_v51  ;;  %v2399_v5 = vmul.f32 %v2396_v47, %v11372_v46  ;;  %v11400_v53 = vsel %vm8555_vm8, %v4959_v33, 0.0  ;;  %v4991_v52 = vmul.f32 %v11376_v56, %v2396_v47 }
 0x2e7   : > { %v11383_v14 = vpop.permute.xlu1 %5111  ;;  %13639 = vst [vmem:[#allocation55_spill] sm:$0xff] %v11390_v17  ;;  %13640 = vst [vmem:[#allocation56_spill] sm:$0xff] %v11400_v53  ;;  %v4992_v10 = vmul.f32 %v11380_v4, %v2396_v47  ;;  %v2892_v27 = vmul.f32 %v13633_v43, %v11387_v25  ;;  %v2893_v45 = vmul.f32 %v13634_v7, %v11387_v25 }
 0x2e8   : > { %v2406_v16 = vrot.slane %v2399_v5, 1  ;;  %v4997_v40 = vrot.slane %v4991_v52, 1  ;;  %v4993_v37 = vmul.f32 %v11400_v53, %v2396_v47  ;;  %v5432_v38 = vmul.f32 %v11174_v35, %v11387_v25  ;;  %v13643_v47 = vld [vmem:[#allocation19_spill] sm:$0xff] }
 0x2e9   : > { %v11392_v41 = vpop.permute.xlu0 %2549  ;;  %2880 = vrot.lane.b32.xlu1 %v2873_v19, %s8040_s23  ;;  %v4998_v3 = vrot.slane %v4992_v10, 1  ;;  %v2456_v57 = vmul.f32 %v2455_v34, %v11333_v48  ;;  %v2457_v44 = vmul.f32 %v2455_v34, %v11337_v59  ;;  %v2458_v24 = vmul.f32 %v2455_v34, %v11372_v46  ;;  %v13675_v46 = vld [vmem:[#allocation79_spill] sm:$0xff] }
 0x2ea   : > { %2878 = vrot.lane.b32.xlu0 %v2872_v39, %s8040_s23  ;;  %v11415_v62 = vsel %vm473_vm0, %v2404_v51, %v2406_v16  ;;  %v5000_v55 = vrot.slane %v4993_v37, 1  ;;  %v5044_v26 = vmul.f32 %v11376_v56, %v2455_v34  ;;  %v1428_v22 = vmul.f32 %v13643_v47, %v13572_v28 }
 0x2eb   : > { %v11405_v12 = vpop.permute.xlu1 %2551  ;;  %13641 = vst [vmem:[#allocation62_spill] sm:$0xff] %v11415_v62  ;;  %v11426_v32 = vsel %vm473_vm0, %v4997_v40, %v4998_v3  ;;  %v2462_v9 = vrot.slane %v2456_v57, 2  ;;  %v2463_v1 = vrot.slane %v2457_v44, 2  ;;  %v5433_v0 = vmul.f32 %v11179_v54, %v11387_v25  ;;  %v13651_v44 = vld [vmem:[#allocation68_spill] sm:$0xff] }
 0x2ec   : > { %13642 = vst [vmem:[#allocation58_spill] sm:$0xff] %v11426_v32  ;;  %v11436_v39 = vsel %vm473_vm0, %v4998_v3, %v5000_v55  ;;  %v2465_v51 = vrot.slane %v2458_v24, 2  ;;  %v5045_v19 = vmul.f32 %v11380_v4, %v2455_v34  ;;  %v5046_v18 = vmul.f32 %v11400_v53, %v2455_v34  ;;  %v13649_v3 = vld [vmem:[#allocation72_spill] sm:$0xff] }
 0x2ed   : > { %v11411_v31 = vpop.permute.xlu0 %5127  ;;  %5422 = vrot.lane.b32.xlu1 %v5415_v49, %s8040_s23  ;;  %13644 = vst [vmem:[#allocation67_spill] sm:$0xff] %v11436_v39  ;;  %v11440_v33 = vsel %vm543_vm1, %v2462_v9, %v2463_v1  ;;  %v5050_v5 = vrot.slane %v5044_v26, 2  ;;  %v1435_v10 = vrot.slane %v1428_v22, 2  ;;  %v4128_v34 = vmul.f32 %v13621_v60, %v13643_v47 }
 0x2ee   : > { %5420 = vrot.lane.b32.xlu0 %v5414_v2, %s8040_s23  ;;  %13645 = vst [vmem:[#allocation61_spill] sm:$0xff] %v11440_v33  ;;  %v11445_v49 = vsel %vm543_vm1, %v2463_v1, %v2465_v51  ;;  %v5051_v52 = vrot.slane %v5045_v19, 2  ;;  %v13652_v55 = vrot.slane %v13651_v44, 2  ;;  %v1315_v9 = vstv %s7371_s30  ;;  %v13654_v1 = vld [vmem:[#allocation64_spill] sm:$0xff]  ;;  %s11591_s30 = sld [smem:[#allocation4 + $0x46]] }
 0x2ef   : > { %v11423_v42 = vpop.permute.xlu1 %5129  ;;  %13646 = vst [vmem:[#allocation94_spill] sm:$0xff] %v11445_v49  ;;  %v4135_v22 = vrot.slane %v4128_v34, 2  ;;  %v11617_v4 = vstv %s7437_s22  ;;  %s7411_s22 = sld [smem:[#allocation10 + $0x26]] }
 0x2f0   : > { %v1436_v24 = vsel %vm543_vm1, %v13652_v55, %v1435_v10  ;;  %v13656_v10 = vld [vmem:[#allocation21_spill] sm:$0xff] }
 0x2f1   : > { %v1089_v50 = vpop.permute.xlu0 %1088  ;;  %2900 = vrot.lane.b32.xlu1 %v2893_v45, %s8041_s25  ;;  %v11451_v45 = vsel %vm543_vm1, %v5050_v5, %v5051_v52  ;;  %v5416_v5 = vmul.f32 %v11189_v11, %v11349_v20  ;;  %v13659_v55 = vld [vmem:[#allocation57_spill] sm:$0xff] }
 0x2f2   : > { %2898 = vrot.lane.b32.xlu0 %v2892_v27, %s8041_s25  ;;  %v5053_v27 = vrot.slane %v5046_v18, 2  ;;  %13647 = vst [vmem:[#allocation43_spill] sm:$0xff] %v11451_v45  ;;  %v1094_v51 = vadd.f32 %v1089_v50, %v11304_v23  ;;  %v13655_v18 = vld [vmem:[#allocation73_spill] sm:$0xff] }
 0x2f3   : > { %v1091_v2 = vpop.permute.xlu1 %1090 }
 0x2f4   : > { %v11456_v40 = vsel %vm543_vm1, %v5051_v52, %v5053_v27  ;;  %v1095_v52 = vadd.f32 %v1091_v2, %v11318_v15  ;;  %v1316_v27 = vmul.f32 %v1315_v9, %v13656_v10  ;;  %v2930_v15 = vstv %s7460_s26  ;;  %s11594_s26 = sld [smem:[#allocation4 + $0x3c]] }
 0x2f5   : > { %v11447_v16 = vpop.permute.xlu0 %2533  ;;  %5440 = vrot.lane.b32.xlu1 %v5433_v0, %s8041_s25  ;;  %13648 = vst [vmem:[#allocation60_spill] sm:$0xff] %v11456_v40  ;;  %v1449_v0 = vmul.f32 %v13654_v1, %v13572_v28 }
 0x2f6   : > { %5438 = vrot.lane.b32.xlu0 %v5432_v38, %s8041_s25  ;;  %v13650_v38 = vld [vmem:[#allocation48_spill] sm:$0xff] }
 0x2f7   : > { %v3827_v37 = vpop.permute.xlu1 %3826  ;;  %v2874_v57 = vmul.f32 %v13650_v38, %v11349_v20  ;;  %v1456_v23 = vrot.slane %v1449_v0, 2  ;;  %v13660_v0 = vld [vmem:[#allocation74_spill] sm:$0xff] }
 0x2f8   : > { %v3832_v20 = vadd.f32 %v3827_v37, %v11329_v29 }
 0x2f9   : > { %v3829_v26 = vpop.permute.xlu0 %3828  ;;  %1439 = vrot.lane.b32.xlu1 %v1436_v24, %s8040_s23  ;;  %v1317_v24 = vmul.f32 %v1315_v9, %v13659_v55 }
 0x2fa   : > { %1437 = vrot.lane.b32.xlu0 %v13649_v3, %s8040_s23  ;;  %v13657_v3 = vld [vmem:[#allocation69_spill] sm:$0xff]  ;;  %v3833_v29 = vadd.f32 %v3829_v26, %v11345_v36  ;;  %v5467_v26 = vmul.f32 %v11174_v35, %v2930_v15 }
 0x2fb   : > { %v11467_v47 = vpop.permute.xlu1 %5113 }
 0x2fc   : > { %13653 = vst [vmem:[#allocation63_spill] sm:$0xff] %v11467_v47  ;;  %v13678_v47 = vld [vmem:[#allocation32_spill] sm:$0xff] }
 0x2fd   : > { %v1110_v19 = vpop.permute.xlu0 %1109  ;;  %4137 = vrot.lane.b32.xlu1 %v13655_v18, %s8040_s23 }
 0x2fe   : > { %2882 = vrot.lane.b32.xlu0 %v2874_v57, %s8040_s23  ;;  %v1115_v34 = vadd.f32 %v1110_v19, %v1094_v51  ;;  %v13658_v57 = vrot.slane %v13657_v3, 2  ;;  %v4030_v19 = vmul.f32 %v13613_v58, %v1315_v9 }
 0x2ff   : > { %v1112_v28 = vpop.permute.xlu1 %1111 }
 0x300   : > { %v4136_v44 = vsel %vm543_vm1, %v13658_v57, %v4135_v22  ;;  %v11482_v50 = vadd.f32 %v1316_v27, %v1115_v34  ;;  %v1116_v18 = vadd.f32 %v1112_v28, %v1095_v52  ;;  %v4147_v22 = vmul.f32 %v13621_v60, %v13654_v1  ;;  %v13661_v52 = vld [vmem:[#allocation29_spill] sm:$0xff] }
 0x301   : > { %v11485_v40 = vpop.permute.xlu0 %2553  ;;  %5424 = vrot.lane.b32.xlu1 %v5416_v5, %s8040_s23  ;;  %v13662_v10 = vrot.slane %v13661_v52, 2  ;;  %v2894_v5 = vmul.f32 %v13650_v38, %v11387_v25  ;;  %v2931_v34 = vmul.f32 %v13633_v43, %v2930_v15  ;;  %v2932_v60 = vmul.f32 %v13634_v7, %v2930_v15 }
 0x302   : > { %4139 = vrot.lane.b32.xlu0 %v4136_v44, %s8040_s23  ;;  %v11489_v2 = vadd.f32 %v1317_v24, %v1116_v18  ;;  %v4031_v1 = vmul.f32 %v13614_v8, %v1315_v9  ;;  %v4154_v44 = vrot.slane %v4147_v22, 2  ;;  %v11509_v28 = vmul.f32 %v13650_v38, %v2930_v15  ;;  %v13664_v18 = vld [vmem:[#allocation75_spill] sm:$0xff] }
 0x303   : > { %v3846_v51 = vpop.permute.xlu1 %3845  ;;  %v1457_v27 = vsel %vm543_vm1, %v13662_v10, %v1456_v23  ;;  %v5468_v23 = vmul.f32 %v11179_v54, %v2930_v15  ;;  %v2937_v8 = vrot.slane %v2931_v34, 1  ;;  %v2938_v9 = vrot.slane %v2932_v60, 1 }
 0x304   : > { %v3851_v37 = vadd.f32 %v3846_v51, %v3832_v20  ;;  %v5434_v20 = vmul.f32 %v11189_v11, %v11387_v25  ;;  %v2955_v22 = vstv %s7461_s27  ;;  %v13220_v52 = vrot.slane %v11509_v28, 1  ;;  %s11644_s27 = sld [smem:[#allocation4 + $0x47]] }
 0x305   : > { %v3848_v3 = vpop.permute.xlu0 %3847  ;;  %1460 = vrot.lane.b32.xlu1 %v1457_v27, %s8041_s25  ;;  %v11529_v10 = vmul.f32 %v11189_v11, %v2930_v15  ;;  %v2956_v25 = vmul.f32 %v13633_v43, %v2955_v22  ;;  %v2957_v34 = vmul.f32 %v13634_v7, %v2955_v22  ;;  %v13673_v17 = vrot.slane %v11509_v28, 1  ;;  %v13677_v28 = vld [vmem:[#allocation37_spill] sm:$0xff] }
 0x306   : > { %1458 = vrot.lane.b32.xlu0 %v13660_v0, %s8041_s25  ;;  %v11506_v58 = vadd.f32 %v4030_v19, %v3851_v37  ;;  %v3852_v57 = vadd.f32 %v3848_v3, %v3833_v29  ;;  %v13665_v0 = vld [vmem:[#allocation30_spill] sm:$0xff]  ;;  %v5474_v29 = vrot.slane %v5468_v23, 1  ;;  %v2939_v37 = vsel %vm473_vm0, %v2937_v8, %v2938_v9 }
 0x307   : > { %v11512_v36 = vpop.permute.xlu1 %5131  ;;  %v13666_v51 = vrot.slane %v13665_v0, 2  ;;  %v2941_v15 = vsel %vm473_vm0, %v2938_v9, %v13220_v52  ;;  %v11545_v3 = vmul.f32 %v13650_v38, %v2955_v22  ;;  %v2963_v23 = vrot.slane %v2957_v34, 1  ;;  %v13669_v52 = vld [vmem:[#allocation41_spill] sm:$0xff] }
 0x308   : > { %13663 = vst [vmem:[#allocation45_spill] sm:$0xff] %v11512_v36  ;;  %v11516_v55 = vadd.f32 %v4031_v1, %v3852_v57  ;;  %v13219_v1 = vrot.slane %v11529_v10, 1  ;;  %v5490_v8 = vmul.f32 %v11174_v35, %v2955_v22  ;;  %v2515_v36 = vmul.f32 %v13633_v43, %v11617_v4 }
 0x309   : > { %v11518_v24 = vpop.permute.xlu0 %2593  ;;  %4156 = vrot.lane.b32.xlu1 %v13664_v18, %s8041_s25  ;;  %v4155_v19 = vsel %vm543_vm1, %v13666_v51, %v4154_v44  ;;  %v5491_v18 = vmul.f32 %v11179_v54, %v2955_v22  ;;  %v13218_v0 = vrot.slane %v11545_v3, 1  ;;  %v11561_v51 = vmul.f32 %v11189_v11, %v2955_v22 }
 0x30a   : > { %2902 = vrot.lane.b32.xlu0 %v2894_v5, %s8041_s25  ;;  %v5473_v5 = vrot.slane %v5467_v26, 1  ;;  %v2962_v26 = vrot.slane %v2956_v25, 1  ;;  %v5477_v9 = vsel %vm473_vm0, %v5474_v29, %v13219_v1  ;;  %v2562_v1 = vstv %s7440_s10  ;;  %s11837_s10 = sld [smem:[#allocation10 + $0x39]] }
 0x30b   : > { %v11532_v27 = vpop.permute.xlu1 %2595  ;;  %v5497_v25 = vrot.slane %v5491_v18, 1  ;;  %v13221_v22 = vrot.slane %v11561_v51, 1  ;;  %v2563_v49 = vmul.f32 %v13633_v43, %v2562_v1  ;;  %v11607_v32 = vmul.f32 %v13650_v38, %v2562_v1 }
 0x30c   : > { %v5475_v44 = vsel %vm473_vm0, %v5473_v5, %v5474_v29  ;;  %v2964_v5 = vsel %vm473_vm0, %v2962_v26, %v2963_v23  ;;  %v2966_v29 = vsel %vm473_vm0, %v2963_v23, %v13218_v0  ;;  %v1670_v23 = vstv %s7391_s28  ;;  %s11782_s28 = sld [smem:[#allocation8 + $0x6]] }
 0x30d   : > { %v11537_v60 = vpop.permute.xlu0 %5167  ;;  %5442 = vrot.lane.b32.xlu1 %v5434_v20, %s8041_s25  ;;  %v1672_v45 = vmul.f32 %v1670_v23, %v13669_v52  ;;  %13672 = vst [vmem:[#allocation40_spill] sm:$0xff] %v11607_v32  ;;  %v5140_v62 = vmul.f32 %v11179_v54, %v2562_v1  ;;  %v4345_v56 = vmul.f32 %v13675_v46, %v1670_v23 }
 0x30e   : > { %4158 = vrot.lane.b32.xlu0 %v4155_v19, %s8041_s25  ;;  %v11620_v48 = vmul.f32 %v11189_v11, %v2562_v1 }
 0x30f   : > { %v11548_v57 = vpop.permute.xlu1 %5169 }
 0x310   : > { %13676 = vst [vmem:[#allocation50_spill] sm:$0xff] %v11620_v48 }
 0x311   : > { %v11553_v20 = vpop.permute.xlu0 %2618  ;;  %2944 = vrot.lane.b32.xlu1 %v2941_v15, %s8040_s23 }
 0x312   : > { %2942 = vrot.lane.b32.xlu0 %v2939_v37, %s8040_s23  ;;  %v5496_v37 = vrot.slane %v5490_v8, 1  ;;  %v5500_v8 = vsel %vm473_vm0, %v5497_v25, %v13221_v22  ;;  %v11600_v22 = vstv %s7395_s17  ;;  %s7410_s17 = sld [smem:[#allocation10 + $0x25]] }
 0x313   : > { %v11564_v19 = vpop.permute.xlu1 %2620  ;;  %13671 = vst [vmem:[#allocation49_spill] sm:$0xff] %v11600_v22  ;;  %v5146_v22 = vrot.slane %v5140_v62, 1  ;;  %v5098_v62 = vmul.f32 %v11179_v54, %v11617_v4 }
 0x315   : > { %v11567_v34 = vpop.permute.xlu0 %5190  ;;  %5480 = vrot.lane.b32.xlu1 %v5477_v9, %s8040_s23 }
 0x316   : > { %5478 = vrot.lane.b32.xlu0 %v5475_v44, %s8040_s23  ;;  %v5498_v44 = vsel %vm473_vm0, %v5496_v37, %v5497_v25  ;;  %v11587_v37 = vstv %s7394_s29  ;;  %v1684_v25 = vstv %s7392_s15  ;;  %s11807_s29 = sld [smem:[#allocation10 + $0x22]]  ;;  %s11855_s15 = sld [smem:[#allocation10 + $0x3c]] }
 0x317   : > { %v11575_v15 = vpop.permute.xlu1 %5192  ;;  %v1686_v39 = vmul.f32 %v1684_v25, %v13669_v52  ;;  %v11625_v61 = vmul.f32 %v11587_v37, %v13669_v52  ;;  %v4357_v13 = vmul.f32 %v13675_v46, %v1684_v25 }
 0x319   : > { %v1327_v26 = vpop.permute.xlu0 %1326  ;;  %2969 = vrot.lane.b32.xlu1 %v2966_v29, %s8041_s25 }
 0x31a   : > { %2967 = vrot.lane.b32.xlu0 %v2964_v5, %s8041_s25  ;;  %v13668_v5 = vld [vmem:[#allocation35_spill] sm:$0xff]  ;;  %v1332_v59 = vadd.f32 %v1327_v26, %v11482_v50 }
 0x31b   : > { %v1329_v18 = vpop.permute.xlu1 %1328  ;;  %v1671_v0 = vmul.f32 %v1670_v23, %v13668_v5  ;;  %v1685_v33 = vmul.f32 %v1684_v25, %v13668_v5 }
 0x31c   : > { %v1333_v50 = vadd.f32 %v1329_v18, %v11489_v2  ;;  %v13681_v18 = vrot.slane %v11529_v10, 1 }
 0x31d   : > { %v11583_v9 = vpop.permute.xlu0 %2597  ;;  %5503 = vrot.lane.b32.xlu1 %v5500_v8, %s8041_s25  ;;  %v11598_v8 = vmul.f32 %v11587_v37, %v13668_v5 }
 0x31e   : > { %5501 = vrot.lane.b32.xlu0 %v5498_v44, %s8041_s25  ;;  %13667 = vst [vmem:[#allocation71_spill] sm:$0xff] %v11583_v9  ;;  %v2569_v9 = vrot.slane %v2563_v49, 1 }
 0x31f   : > { %v4039_v29 = vpop.permute.xlu1 %4038  ;;  %13670 = vst [vmem:[#allocation59_spill] sm:$0xff] %v11598_v8  ;;  %v3024_v8 = vstv %s11644_s27  ;;  %s12078_s27 = sld [smem:[#allocation10 + $0x29]] }
 0x321   : > { %v4041_v44 = vpop.permute.xlu0 %4040  ;;  %1677 = vrot.lane.b32.xlu1 %v1672_v45, %s8040_s23  ;;  %v5139_v45 = vmul.f32 %v11174_v35, %v2562_v1 }
 0x322   : > { %1675 = vrot.lane.b32.xlu0 %v1671_v0, %s8040_s23  ;;  %v2564_v0 = vmul.f32 %v13634_v7, %v2562_v1 }
 0x323   : > { %v11614_v53 = vpop.permute.xlu1 %5171 }
 0x324   : > { %13674 = vst [vmem:[#allocation66_spill] sm:$0xff] %v11614_v53  ;;  %v11631_v53 = vmul.f32 %v13677_v28, %v1684_v25  ;;  %v2570_v5 = vrot.slane %v2564_v0, 1  ;;  %v2999_v0 = vstv %s11591_s30  ;;  %s7390_s30 = sld [smem:[#allocation10 + $0x1b]] }
 0x325   : > { %v1341_v21 = vpop.permute.xlu0 %1340  ;;  %4349 = vrot.lane.b32.xlu1 %v4345_v56, %s8040_s23  ;;  %v13240_v56 = vrot.slane %v11607_v32, 1 }
 0x326   : > { %2946 = vrot.lane.b32.xlu0 %v13673_v17, %s8040_s23  ;;  %v4346_v17 = vmul.f32 %v13677_v28, %v1670_v23  ;;  %v1346_v26 = vadd.f32 %v1341_v21, %v1332_v59  ;;  %v5145_v23 = vrot.slane %v5139_v45, 1  ;;  %v2516_v21 = vmul.f32 %v13634_v7, %v11617_v4 }
 0x327   : > { %v1343_v52 = vpop.permute.xlu1 %1342  ;;  %v5097_v59 = vmul.f32 %v11174_v35, %v11617_v4  ;;  %v2571_v45 = vsel %vm473_vm0, %v2569_v9, %v2570_v5  ;;  %v2573_v25 = vsel %vm473_vm0, %v2570_v5, %v13240_v56  ;;  %v13684_v9 = vrot.slane %v11620_v48, 1 }
 0x328   : > { %v11641_v1 = vadd.f32 %v13678_v47, %v1346_v26  ;;  %v1347_v49 = vadd.f32 %v1343_v52, %v1333_v50  ;;  %v2631_v47 = vstv %s11594_s26  ;;  %v11660_v52 = vmul.f32 %v13650_v38, %v11617_v4  ;;  %v13682_v50 = vld [vmem:[#allocation77_spill] sm:$0xff]  ;;  %s7413_s26 = sld [smem:[#allocation10 + $0x28]] }
 0x329   : > { %5482 = vrot.lane.b32.xlu1 %v13681_v18, %s8040_s23  ;;  %v3000_v18 = vmul.f32 %v13633_v43, %v2999_v0  ;;  %v11691_v56 = vmul.f32 %v13650_v38, %v2999_v0 }
 0x32a   : > { %4351 = vrot.lane.b32.xlu0 %v4346_v17, %s8040_s23  ;;  %13679 = vst [vmem:[#allocation51_spill] sm:$0xff] %v11641_v1  ;;  %v11652_v2 = vpop.permute.xlu0 %2622  ;;  %v4044_v17 = vadd.f32 %v4039_v29, %v11506_v58  ;;  %v11665_v26 = vadd.f32 %v13682_v50, %v1347_v49  ;;  %v5147_v1 = vsel %vm473_vm0, %v5145_v23, %v5146_v22 }
 0x32b   : > { %13680 = vst [vmem:[#allocation38_spill] sm:$0xff] %v11652_v2  ;;  %v4051_v10 = vpop.permute.xlu1 %4050  ;;  %v3001_v2 = vmul.f32 %v13634_v7, %v2999_v0  ;;  %v11677_v58 = vsel %vm473_vm0, %v5146_v22, %v13684_v9  ;;  %v4045_v29 = vadd.f32 %v4041_v44, %v11516_v55  ;;  %v11681_v50 = vmul.f32 %v13633_v43, %v2631_v47  ;;  %v13685_v55 = vld [vmem:[#allocation81_spill] sm:$0xff] }
 0x32c   : > { %13683 = vst [vmem:[#allocation65_spill] sm:$0xff] %v11665_v26  ;;  %v4056_v49 = vadd.f32 %v4051_v10, %v4044_v17  ;;  %v11688_v23 = vmul.f32 %v13650_v38, %v2631_v47  ;;  %v5530_v22 = vmul.f32 %v11174_v35, %v2999_v0  ;;  %v11698_v10 = vmul.f32 %v11174_v35, %v2631_v47 }
 0x32d   : > { %1691 = vrot.lane.b32.xlu1 %v1686_v39, %s8041_s25  ;;  %v5531_v39 = vmul.f32 %v11179_v54, %v2999_v0  ;;  %v11707_v26 = vmul.f32 %v11179_v54, %v2631_v47  ;;  %v3006_v48 = vrot.slane %v3000_v18, 2  ;;  %v3007_v32 = vrot.slane %v3001_v2, 2 }
 0x32e   : > { %1689 = vrot.lane.b32.xlu0 %v1685_v33, %s8041_s25  ;;  %v4053_v5 = vpop.permute.xlu0 %4052  ;;  %v11685_v33 = vmul.f32 %v13634_v7, %v2631_v47  ;;  %v11695_v44 = vadd.f32 %v13685_v55, %v4056_v49  ;;  %v13687_v7 = vrot.slane %v11545_v3, 1  ;;  %v11710_v49 = vmul.f32 %v11189_v11, %v2631_v47  ;;  %v13688_v55 = vld [vmem:[#allocation78_spill] sm:$0xff] }
 0x32f   : > { %v4057_v17 = vadd.f32 %v4053_v5, %v4045_v29  ;;  %v11704_v9 = vpop.permute.xlu1 %5194  ;;  %v2538_v29 = vadd.f32 %v11351_v6, %v2515_v36  ;;  %v2539_v5 = vadd.f32 %v11359_v63, %v2516_v21  ;;  %v5118_v3 = vadd.f32 %v11363_v30, %v5097_v59 }
 0x330   : > { %13686 = vst [vmem:[#allocation19_spill] sm:$0xff] %v11695_v44  ;;  %v3009_v18 = vrot.slane %v11691_v56, 2  ;;  %v5536_v2 = vrot.slane %v5530_v22, 2  ;;  %v11724_v47 = vmul.f32 %v11189_v11, %v2999_v0  ;;  %v5119_v6 = vadd.f32 %v11383_v14, %v5098_v62  ;;  %v11741_v62 = vld [vmem:[%s8216_s18 + $0x8] sm:$0xff] }
 0x331   : > { %v11715_v44 = vadd.f32 %v13688_v55, %v4057_v17  ;;  %4361 = vrot.lane.b32.xlu1 %v4357_v13, %s8041_s25  ;;  %v2558_v63 = vadd.f32 %v11392_v41, %v2538_v29  ;;  %v2559_v36 = vadd.f32 %v11405_v12, %v2539_v5  ;;  %v5537_v21 = vrot.slane %v5531_v39, 2 }
 0x332   : > { %2971 = vrot.lane.b32.xlu0 %v13687_v7, %s8041_s25  ;;  %v11719_v7 = vpop.permute.xlu0 %2662  ;;  %v5136_v30 = vadd.f32 %v11411_v31, %v5118_v3  ;;  %v2638_v59 = vrot.slane %v11681_v50, 2  ;;  %v2639_v13 = vrot.slane %v11685_v33, 2  ;;  %v3025_v0 = vmul.f32 %v13633_v43, %v3024_v8 }
 0x333   : > { %v11734_v22 = vpop.permute.xlu1 %2664  ;;  %v5137_v14 = vadd.f32 %v11423_v42, %v5119_v6  ;;  %v2641_v41 = vrot.slane %v11688_v23, 2  ;;  %v3008_v12 = vsel %vm543_vm1, %v3006_v48, %v3007_v32  ;;  %v3026_v31 = vmul.f32 %v11741_v62, %v3024_v8 }
 0x334   : > { %v5208_v50 = vrot.slane %v11698_v10, 2  ;;  %v5209_v33 = vrot.slane %v11707_v26, 2  ;;  %v3010_v43 = vsel %vm543_vm1, %v3007_v32, %v3009_v18  ;;  %v5539_v42 = vrot.slane %v11724_v47, 2 }
 0x335   : > { %v2577_v48 = vadd.f32 %v2571_v45, %v2558_v63  ;;  %v2578_v39 = vadd.f32 %v2573_v25, %v2559_v36  ;;  %v5538_v29 = vsel %vm543_vm1, %v5536_v2, %v5537_v21  ;;  %v11755_v5 = vmul.f32 %v13650_v38, %v3024_v8 }
 0x336   : > { %4363 = vrot.lane.b32.xlu0 %v11631_v53, %s8041_s25  ;;  %v5231_v17 = vpop.permute.xlu0 %5230  ;;  %v13689_v53 = vrot.slane %v11561_v51, 1  ;;  %v5153_v10 = vadd.f32 %v5147_v1, %v5136_v30  ;;  %v3031_v55 = vrot.slane %v3025_v0, 2  ;;  %v5553_v51 = vmul.f32 %v11174_v35, %v3024_v8 }
 0x337   : > { %v5233_v26 = vpop.permute.xlu1 %5232  ;;  %v5554_v3 = vmul.f32 %v11179_v54, %v3024_v8  ;;  %v2602_v32 = vadd.f32 %v11518_v24, %v2577_v48  ;;  %v2603_v6 = vadd.f32 %v11532_v27, %v2578_v39  ;;  %v5154_v25 = vadd.f32 %v11677_v58, %v5137_v14  ;;  %v13690_v14 = vld [vmem:[#allocation91_spill] sm:$0xff] }
 0x338   : > { %5505 = vrot.lane.b32.xlu1 %v13689_v53, %s8041_s25  ;;  %v3032_v45 = vrot.slane %v3026_v31, 2  ;;  %v5176_v2 = vadd.f32 %v11537_v60, %v5153_v10  ;;  %v5211_v38 = vrot.slane %v11710_v49, 2  ;;  %v5540_v35 = vsel %vm543_vm1, %v5537_v21, %v5539_v42 }
 0x339   : > { %v11770_v54 = vmul.f32 %v11189_v11, %v3024_v8  ;;  %v5177_v24 = vadd.f32 %v11548_v57, %v5154_v25  ;;  %v2627_v27 = vadd.f32 %v11553_v20, %v2602_v32  ;;  %v2628_v58 = vadd.f32 %v11564_v19, %v2603_v6  ;;  %v13693_v25 = vld [vmem:[#allocation92_spill] sm:$0xff] }
 0x33a   : > { %3011 = vrot.lane.b32.xlu0 %v3008_v12, %s8040_s23  ;;  %v2688_v1 = vpop.permute.xlu0 %2687  ;;  %v3034_v60 = vrot.slane %v11755_v5, 2  ;;  %v5199_v63 = vadd.f32 %v11567_v34, %v5176_v2  ;;  %v2640_v36 = vsel %vm543_vm1, %v2638_v59, %v2639_v13  ;;  %v2642_v30 = vsel %vm543_vm1, %v2639_v13, %v2641_v41  ;;  %v13722_v5 = vld [vmem:[#allocation84_spill] sm:$0xff] }
 0x33b   : > { %v5210_v21 = vsel %vm543_vm1, %v5208_v50, %v5209_v33  ;;  %v2690_v57 = vpop.permute.xlu1 %2689  ;;  %v5200_v20 = vadd.f32 %v11575_v15, %v5177_v24  ;;  %v3033_v19 = vsel %vm543_vm1, %v3031_v55, %v3032_v45  ;;  %v5559_v8 = vrot.slane %v5553_v51, 2  ;;  %v13694_v24 = vld [vmem:[#allocation63_spill] sm:$0xff] }
 0x33c   : > { %3013 = vrot.lane.b32.xlu1 %v3010_v43, %s8040_s23  ;;  %v5560_v0 = vrot.slane %v5554_v3, 2  ;;  %v5212_v34 = vsel %vm543_vm1, %v5209_v33, %v5211_v38  ;;  %v1723_v13 = vrot.slane %v11625_v61, 1  ;;  %v1718_v12 = vmul.f32 %v11587_v37, %v13690_v14  ;;  %v13691_v3 = vld [vmem:[#allocation59_spill] sm:$0xff] }
 0x33d   : > { %v4384_v31 = vmul.f32 %v13675_v46, %v11587_v37  ;;  %v2646_v15 = vadd.f32 %v2640_v36, %v2627_v27  ;;  %v2647_v50 = vadd.f32 %v2642_v30, %v2628_v58  ;;  %v3035_v53 = vsel %vm543_vm1, %v3032_v45, %v3034_v60 }
 0x33e   : > { %5541 = vrot.lane.b32.xlu0 %v5538_v29, %s8040_s23  ;;  %v5254_v59 = vpop.permute.xlu0 %5253  ;;  %v5562_v43 = vrot.slane %v11770_v54, 2  ;;  %v2540_v33 = vadd.f32 %v11447_v16, %v11660_v52  ;;  %v5099_v61 = vmul.f32 %v11189_v11, %v11617_v4  ;;  %v5216_v48 = vadd.f32 %v5210_v21, %v5199_v63 }
 0x33f   : > { %v5256_v39 = vpop.permute.xlu1 %5255  ;;  %v4385_v29 = vmul.f32 %v13677_v28, %v11587_v37  ;;  %v2671_v10 = vadd.f32 %v11719_v7, %v2646_v15  ;;  %v2672_v55 = vadd.f32 %v11734_v22, %v2647_v50  ;;  %v5217_v51 = vadd.f32 %v5212_v34, %v5200_v20 }
 0x340   : > { %5543 = vrot.lane.b32.xlu1 %v5540_v35, %s8040_s23  ;;  %v5561_v16 = vsel %vm543_vm1, %v5559_v8, %v5560_v0  ;;  %v2560_v52 = vadd.f32 %v11485_v40, %v2540_v33  ;;  %v5239_v11 = vadd.f32 %v5231_v17, %v5216_v48  ;;  %v13692_v32 = vrot.slane %v13691_v3, 1  ;;  %v13702_v3 = vld [vmem:[#allocation50_spill] sm:$0xff] }
 0x341   : > { %v4386_v45 = vmul.f32 %v13693_v25, %v11587_v37  ;;  %v5240_v2 = vadd.f32 %v5233_v26, %v5217_v51  ;;  %v2696_v7 = vadd.f32 %v2688_v1, %v2671_v10  ;;  %v2697_v35 = vadd.f32 %v2690_v57, %v2672_v55  ;;  %v13695_v37 = vld [vmem:[#allocation41_spill] sm:$0xff] }
 0x342   : > { %3036 = vrot.lane.b32.xlu0 %v3033_v19, %s8041_s25  ;;  %v1379_v4 = vpop.permute.xlu0 %1378  ;;  %v1724_v6 = vsel %vm473_vm0, %v13692_v32, %v1723_v13  ;;  %v5563_v22 = vsel %vm543_vm1, %v5560_v0, %v5562_v43  ;;  %v5120_v40 = vadd.f32 %v13694_v24, %v5099_v61  ;;  %v11824_v17 = vstv %s11782_s28  ;;  %v13696_v26 = vld [vmem:[#allocation49_spill] sm:$0xff]  ;;  %v13698_v19 = vld [vmem:[#allocation40_spill] sm:$0xff]  ;;  %v13701_v61 = vld [vmem:[#allocation71_spill] sm:$0xff]  ;;  %s7416_s28 = sld [smem:[#allocation10 + $0x2b]] }
 0x343   : > { %v5262_v27 = vadd.f32 %v5254_v59, %v5239_v11  ;;  %v1381_v58 = vpop.permute.xlu1 %1380  ;;  %v1725_v63 = vrot.slane %v1718_v12, 1  ;;  %v5263_v36 = vadd.f32 %v5256_v39, %v5240_v2  ;;  %v4390_v30 = vrot.slane %v4384_v31, 1  ;;  %v13697_v57 = vld [vmem:[#allocation45_spill] sm:$0xff]  ;;  %v13700_v59 = vld [vmem:[#allocation35_spill] sm:$0xff] }
 0x344   : > { %3038 = vrot.lane.b32.xlu1 %v3035_v53, %s8041_s25  ;;  %v4391_v21 = vrot.slane %v4385_v29, 1  ;;  %v1738_v1 = vmul.f32 %v13696_v26, %v13695_v37  ;;  %v5138_v20 = vadd.f32 %v13697_v57, %v5120_v40  ;;  %v13699_v8 = vrot.slane %v13698_v19, 1 }
 0x345   : > { %v1737_v15 = vmul.f32 %v13696_v26, %v13700_v59  ;;  %v1739_v12 = vmul.f32 %v13696_v26, %v13690_v14  ;;  %v2701_v31 = vadd.f32 %v11824_v17, %v2696_v7  ;;  %v2702_v50 = vadd.f32 %v11824_v17, %v2697_v35 }
 0x346   : > { %5564 = vrot.lane.b32.xlu0 %v5561_v16, %s8041_s25  ;;  %v2579_v0 = vadd.f32 %v13699_v8, %v2560_v52  ;;  %v4393_v53 = vrot.slane %v4386_v45, 1  ;;  %v11843_v33 = vmul.f32 %v13675_v46, %v13696_v26  ;;  %v5265_v39 = vadd.f32 %v5262_v27, %v11824_v17  ;;  %v13706_v8 = vld [vmem:[#allocation51_spill] sm:$0xff] }
 0x347   : > { %v2667_v34 = vpop.permute.xlu0 %2666  ;;  %v4085_v29 = vpop.permute.xlu1 %4084  ;;  %v11850_v10 = vmul.f32 %v13677_v28, %v13696_v26  ;;  %v11853_v55 = vstv %s11807_s29  ;;  %v5266_v51 = vadd.f32 %v5263_v36, %v11824_v17  ;;  %v1726_v16 = vsel %vm473_vm0, %v1723_v13, %v1725_v63  ;;  %v13705_v13 = vld [vmem:[#allocation66_spill] sm:$0xff]  ;;  %s7417_s29 = sld [smem:[#allocation10 + $0x2c]] }
 0x348   : > { %5566 = vrot.lane.b32.xlu1 %v5563_v22, %s8041_s25  ;;  %v2604_v48 = vadd.f32 %v13701_v61, %v2579_v0  ;;  %v4392_v52 = vsel %vm473_vm0, %v4390_v30, %v4391_v21  ;;  %v1744_v11 = vrot.slane %v1738_v1, 1  ;;  %v13703_v32 = vrot.slane %v13702_v3, 1  ;;  %v13714_v3 = vld [vmem:[#allocation82_spill] sm:$0xff] }
 0x349   : > { %v1743_v35 = vrot.slane %v1737_v15, 1  ;;  %v1746_v22 = vrot.slane %v1739_v12, 1  ;;  %v2704_v24 = vmax.f32 %v2701_v31, 0.0  ;;  %v2705_v40 = vmax.f32 %v2702_v50, 0.0 }
 0x34a   : > { %1727 = vrot.lane.b32.xlu0 %v1724_v6, %s8040_s23  ;;  %v5155_v45 = vadd.f32 %v13703_v32, %v5138_v20  ;;  %v13704_v6 = vld [vmem:[#allocation38_spill] sm:$0xff]  ;;  %v4394_v27 = vsel %vm473_vm0, %v4391_v21, %v4393_v53  ;;  %v4409_v36 = vrot.slane %v11843_v33, 1  ;;  %v5268_v30 = vmax.f32 %v5265_v39, 0.0 }
 0x34b   : > { %v2629_v2 = vadd.f32 %v13704_v6, %v2604_v48  ;;  %v4087_v7 = vpop.permute.xlu0 %4086  ;;  %v5235_v1 = vpop.permute.xlu1 %5234  ;;  %v4410_v57 = vrot.slane %v11850_v10, 1  ;;  %v11873_v20 = vmul.f32 %v13693_v25, %v13696_v26  ;;  %v5269_v19 = vmax.f32 %v5266_v51, 0.0  ;;  %v13711_v48 = vld [vmem:[#allocation65_spill] sm:$0xff]  ;;  %v13715_v6 = vld [vmem:[#allocation19_spill] sm:$0xff] }
 0x34c   : > { %1729 = vrot.lane.b32.xlu1 %v1726_v16, %s8040_s23  ;;  %v5178_v63 = vadd.f32 %v13705_v13, %v5155_v45  ;;  %v1384_v21 = vadd.f32 %v1379_v4, %v13706_v8  ;;  %v1745_v0 = vsel %vm473_vm0, %v1743_v35, %v1744_v11  ;;  %v11879_v15 = vmul.f32 %v11853_v55, %v13700_v59 }
 0x34d   : > { %v1747_v26 = vsel %vm473_vm0, %v1744_v11, %v1746_v22  ;;  %v11887_v31 = vstv %s11837_s10  ;;  %v11891_v50 = vsel %vm8535_vm6, %v2704_v24, 0.0  ;;  %v11895_v61 = vsel %vm8528_vm5, %v2705_v40, 0.0  ;;  %s12160_s10 = sld [smem:[#allocation10 + $0x31]] }
 0x34e   : > { %3015 = vrot.lane.b32.xlu0 %v3009_v18, %s8040_s23  ;;  %v5201_v56 = vadd.f32 %v11704_v9, %v5178_v63  ;;  %v2648_v18 = vadd.f32 %v2641_v41, %v2629_v2  ;;  %13708 = vst [vmem:[#allocation72_spill] sm:$0xff] %v11891_v50  ;;  %13710 = vst [vmem:[#allocation48_spill] sm:$0xff] %v11895_v61  ;;  %v1385_v9 = vadd.f32 %v1381_v58, %v13711_v48  ;;  %v13718_v48 = vld [vmem:[#allocation85_spill] sm:$0xff] }
 0x34f   : > { %v1400_v12 = vpop.permute.xlu0 %1399  ;;  %v11900_v23 = vsel %vm8535_vm6, %v5268_v30, 0.0  ;;  %v1402_v41 = vpop.permute.xlu1 %1401  ;;  %v4412_v51 = vrot.slane %v11873_v20, 1  ;;  %v11906_v16 = vmul.f32 %v11853_v55, %v13695_v37  ;;  %v11913_v11 = vsel %vm8528_vm5, %v5269_v19, 0.0 }
 0x350   : > { %4395 = vrot.lane.b32.xlu1 %v4392_v52, %s8040_s23  ;;  %v1405_v39 = vadd.f32 %v1400_v12, %v1384_v21  ;;  %13712 = vst [vmem:[#allocation68_spill] sm:$0xff] %v11900_v23  ;;  %v11909_v52 = vstv %s11855_s15  ;;  %13713 = vst [vmem:[#allocation64_spill] sm:$0xff] %v11913_v11  ;;  %v2673_v58 = vadd.f32 %v2667_v34, %v2648_v18  ;;  %s12165_s15 = sld [smem:[#allocation10 + $0x2e]] }
 0x351   : > { %v1406_v45 = vadd.f32 %v1402_v41, %v1385_v9  ;;  %v4090_v2 = vadd.f32 %v4085_v29, %v13715_v6  ;;  %v5218_v35 = vadd.f32 %v5211_v38, %v5201_v56  ;;  %v2746_v24 = vmul.f32 %v11887_v31, %v11891_v50 }
 0x352   : > { %4397 = vrot.lane.b32.xlu0 %v4394_v27, %s8040_s23  ;;  %v11916_v32 = vadd.f32 %v13714_v3, %v1405_v39  ;;  %v2747_v34 = vmul.f32 %v11887_v31, %v11895_v61  ;;  %v4091_v40 = vadd.f32 %v4087_v7, %v11715_v44  ;;  %v13716_v27 = vld [vmem:[#allocation83_spill] sm:$0xff]  ;;  %v5302_v49 = vmul.f32 %v11900_v23, %v11887_v31 }
 0x353   : > { %v11930_v13 = vadd.f32 %v13716_v27, %v1406_v45  ;;  %v4104_v38 = vpop.permute.xlu1 %4103  ;;  %v2752_v47 = vrot.slane %v2746_v24, 1  ;;  %v11937_v63 = vmul.f32 %v11913_v11, %v11887_v31  ;;  %v2805_v30 = vmul.f32 %v11909_v52, %v11891_v50 }
 0x354   : > { %v2692_v22 = vpop.permute.xlu0 %2691  ;;  %5545 = vrot.lane.b32.xlu1 %v5539_v42, %s8040_s23  ;;  %v2753_v42 = vrot.slane %v2747_v34, 1  ;;  %v5241_v44 = vadd.f32 %v5235_v1, %v5218_v35  ;;  %v4109_v20 = vadd.f32 %v4104_v38, %v4090_v2  ;;  %v2806_v19 = vmul.f32 %v11909_v52, %v11895_v61 }
 0x355   : > { %v2698_v29 = vadd.f32 %v2692_v22, %v2673_v58  ;;  %v5309_v56 = vrot.slane %v11937_v63, 1  ;;  %v2811_v18 = vrot.slane %v2805_v30, 2  ;;  %v1777_v58 = vmul.f32 %v11853_v55, %v13690_v14 }
 0x356   : > { %1748 = vrot.lane.b32.xlu0 %v1745_v0, %s8041_s25  ;;  %v11946_v21 = vsel %vm473_vm0, %v2752_v47, %v2753_v42  ;;  %v5308_v0 = vrot.slane %v5302_v49, 1  ;;  %v11950_v9 = vadd.f32 %v13718_v48, %v4109_v20  ;;  %v2812_v39 = vrot.slane %v2806_v19, 2 }
 0x357   : > { %v2703_v7 = vadd.f32 %v11824_v17, %v2698_v29  ;;  %13717 = vst [vmem:[#allocation73_spill] sm:$0xff] %v11946_v21  ;;  %v5258_v41 = vpop.permute.xlu1 %5257  ;;  %v4413_v35 = vsel %vm473_vm0, %v4410_v57, %v4412_v51  ;;  %v1781_v22 = vrot.slane %v11879_v15, 2  ;;  %v1782_v24 = vrot.slane %v11906_v16, 2 }
 0x358   : > { %v4106_v8 = vpop.permute.xlu0 %4105  ;;  %1750 = vrot.lane.b32.xlu1 %v1747_v26, %s8041_s25  ;;  %v4411_v26 = vsel %vm473_vm0, %v4409_v36, %v4410_v57  ;;  %v11965_v3 = vsel %vm473_vm0, %v5308_v0, %v5309_v56  ;;  %v5264_v2 = vadd.f32 %v5258_v41, %v5241_v44  ;;  %v11975_v33 = vsel %vm543_vm1, %v2811_v18, %v2812_v39  ;;  %v13727_v18 = vld [vmem:[#allocation76_spill] sm:$0xff] }
 0x359   : > { %v2706_v12 = vmax.f32 %v2703_v7, 0.0  ;;  %v4110_v1 = vadd.f32 %v4106_v8, %v4091_v40  ;;  %13719 = vst [vmem:[#allocation21_spill] sm:$0xff] %v11965_v3  ;;  %13723 = vst [vmem:[#allocation57_spill] sm:$0xff] %v11975_v33  ;;  %v4438_v40 = vmul.f32 %v13677_v28, %v11853_v55  ;;  %v1784_v57 = vrot.slane %v1777_v58, 2 }
 0x35a   : > { %3040 = vrot.lane.b32.xlu0 %v3034_v60, %s8041_s25  ;;  %v5267_v34 = vadd.f32 %v5264_v2, %v11824_v17  ;;  %v4437_v15 = vmul.f32 %v13675_v46, %v11853_v55  ;;  %v4439_v17 = vmul.f32 %v13693_v25, %v11853_v55  ;;  %v5355_v51 = vmul.f32 %v11900_v23, %v11909_v52 }
 0x35b   : > { %v11969_v6 = vsel %vm8555_vm8, %v2706_v12, 0.0  ;;  %v11972_v60 = vadd.f32 %v13722_v5, %v4110_v1  ;;  %v11993_v10 = vpop.permute.xlu1 %2880  ;;  %v5356_v47 = vmul.f32 %v11913_v11, %v11909_v52  ;;  %v1783_v44 = vsel %vm543_vm1, %v1781_v22, %v1782_v24 }
 0x35c   : > { %13721 = vst [vmem:[#allocation69_spill] sm:$0xff] %v11969_v6  ;;  %v11977_v36 = vpop.permute.xlu0 %2878  ;;  %4414 = vrot.lane.b32.xlu1 %v4411_v26, %s8041_s25  ;;  %v2748_v27 = vmul.f32 %v11887_v31, %v11969_v6  ;;  %v2807_v29 = vmul.f32 %v11909_v52, %v11969_v6  ;;  %v5270_v16 = vmax.f32 %v5267_v34, 0.0  ;;  %v4444_v7 = vrot.slane %v4438_v40, 2  ;;  %v13731_v40 = vld [vmem:[#allocation88_spill] sm:$0xff] }
 0x35d   : > { %v1785_v54 = vsel %vm543_vm1, %v1782_v24, %v1784_v57  ;;  %v4446_v0 = vrot.slane %v4439_v17, 2  ;;  %v1798_v12 = vmul.f32 %v13727_v18, %v13690_v14  ;;  %v5361_v1 = vrot.slane %v5355_v51, 2  ;;  %v13734_v17 = vld [vmem:[#allocation90_spill] sm:$0xff] }
 0x35e   : > { %4416 = vrot.lane.b32.xlu0 %v4413_v35, %s8041_s25  ;;  %v2755_v49 = vrot.slane %v2748_v27, 1  ;;  %v2814_v38 = vrot.slane %v2807_v29, 2  ;;  %v12011_v55 = vsel %vm8555_vm8, %v5270_v16, 0.0  ;;  %v13732_v29 = vld [vmem:[#allocation86_spill] sm:$0xff] }
 0x35f   : > { %13724 = vst [vmem:[#allocation74_spill] sm:$0xff] %v12011_v55  ;;  %v12020_v8 = vpop.permute.xlu1 %5422  ;;  %v5304_v48 = vmul.f32 %v12011_v55, %v11887_v31  ;;  %v4447_v2 = vsel %vm543_vm1, %v4444_v7, %v4446_v0  ;;  %v1805_v35 = vrot.slane %v1798_v12, 2  ;;  %v13733_v57 = vrot.slane %v13732_v29, 2  ;;  %v13735_v16 = vld [vmem:[#allocation34_spill] sm:$0xff]  ;;  %v13740_v12 = vld [vmem:[#allocation36_spill] sm:$0xff] }
 0x360   : > { %v12003_v30 = vpop.permute.xlu0 %5420  ;;  %5568 = vrot.lane.b32.xlu1 %v5562_v43, %s8041_s25  ;;  %v12014_v20 = vsel %vm473_vm0, %v2753_v42, %v2755_v49  ;;  %v12017_v19 = vsel %vm543_vm1, %v2812_v39, %v2814_v38  ;;  %v4443_v43 = vrot.slane %v4437_v15, 2  ;;  %v5362_v42 = vrot.slane %v5356_v47, 2 }
 0x361   : > { %13725 = vst [vmem:[#allocation29_spill] sm:$0xff] %v12014_v20  ;;  %13726 = vst [vmem:[#allocation75_spill] sm:$0xff] %v12017_v19  ;;  %v5357_v39 = vmul.f32 %v12011_v55, %v11909_v52  ;;  %v5311_v58 = vrot.slane %v5304_v48, 1  ;;  %v4458_v52 = vmul.f32 %v13693_v25, %v13727_v18  ;;  %v1806_v25 = vsel %vm543_vm1, %v13733_v57, %v1805_v35  ;;  %v13749_v19 = vld [vmem:[#allocation53_spill] sm:$0xff]  ;;  %v13751_v20 = vld [vmem:[#allocation44_spill] sm:$0xff] }
 0x362   : > { %1786 = vrot.lane.b32.xlu0 %v1783_v44, %s8040_s23  ;;  %v4445_v26 = vsel %vm543_vm1, %v4443_v43, %v4444_v7  ;;  %v12034_v5 = vsel %vm543_vm1, %v5361_v1, %v5362_v42  ;;  %v13736_v49 = vrot.slane %v13735_v16, 2  ;;  %v13738_v44 = vld [vmem:[#allocation89_spill] sm:$0xff]  ;;  %v13739_v43 = vld [vmem:[#allocation31_spill] sm:$0xff]  ;;  %v2033_v1 = vstv %s7411_s22  ;;  %s7433_s22 = sld [smem:[#allocation10 + $0x32]] }
 0x363   : > { %13728 = vst [vmem:[#allocation30_spill] sm:$0xff] %v12034_v5  ;;  %v5364_v14 = vrot.slane %v5357_v39, 2  ;;  %v12037_v31 = vpop.permute.xlu1 %2900  ;;  %v12045_v22 = vsel %vm473_vm0, %v5309_v56, %v5311_v58  ;;  %v4465_v63 = vrot.slane %v4458_v52, 2  ;;  %v2019_v56 = vstv %s7410_s17  ;;  %s12167_s17 = sld [smem:[#allocation10 + $0x2f]] }
 0x364   : > { %v12029_v41 = vpop.permute.xlu0 %2898  ;;  %1788 = vrot.lane.b32.xlu1 %v1785_v54, %s8040_s23  ;;  %13729 = vst [vmem:[#allocation79_spill] sm:$0xff] %v12045_v22  ;;  %v2020_v7 = vmul.f32 %v2019_v56, %v13738_v44  ;;  %v2021_v0 = vmul.f32 %v2019_v56, %v13739_v43  ;;  %v4656_v48 = vmul.f32 %v13740_v12, %v2019_v56  ;;  %v1664_v39 = vstv %s7390_s30  ;;  %s7435_s30 = sld [smem:[#allocation10 + $0x34]] }
 0x365   : > { %v12048_v24 = vsel %vm543_vm1, %v5362_v42, %v5364_v14  ;;  %v4466_v38 = vsel %vm543_vm1, %v13736_v49, %v4465_v63  ;;  %v2034_v52 = vmul.f32 %v2033_v1, %v13738_v44  ;;  %v1665_v29 = vmul.f32 %v1664_v39, %v13700_v59  ;;  %v13743_v49 = vld [vmem:[#allocation23_spill] sm:$0xff] }
 0x366   : > { %4448 = vrot.lane.b32.xlu0 %v4445_v26, %s8040_s23  ;;  %13730 = vst [vmem:[#allocation37_spill] sm:$0xff] %v12048_v24  ;;  %v13742_v26 = vld [vmem:[#allocation33_spill] sm:$0xff]  ;;  %v4668_v59 = vmul.f32 %v13740_v12, %v2033_v1 }
 0x367   : > { %v12055_v27 = vpop.permute.xlu1 %5440  ;;  %v4657_v58 = vmul.f32 %v13742_v26, %v2019_v56  ;;  %v2035_v56 = vmul.f32 %v2033_v1, %v13739_v43 }
 0x368   : > { %v12050_v34 = vpop.permute.xlu0 %5438  ;;  %4450 = vrot.lane.b32.xlu1 %v4447_v2, %s8040_s23  ;;  %v2064_v2 = vstv %s7413_s26  ;;  %s12175_s26 = sld [smem:[#allocation10 + $0x35]] }
 0x36a   : > { %1807 = vrot.lane.b32.xlu0 %v13731_v40, %s8041_s25 }
 0x36b   : > { %v1440_v51 = vpop.permute.xlu1 %1439 }
 0x36c   : > { %v1438_v15 = vpop.permute.xlu0 %1437  ;;  %1809 = vrot.lane.b32.xlu1 %v1806_v25, %s8041_s25  ;;  %v1444_v40 = vadd.f32 %v1440_v51, %v11930_v13  ;;  %v2066_v25 = vmul.f32 %v2064_v2, %v13739_v43  ;;  %v2067_v13 = vmul.f32 %v2064_v2, %v13743_v49 }
 0x36d   : > { %v1443_v14 = vadd.f32 %v1438_v15, %v11916_v32  ;;  %v2065_v32 = vmul.f32 %v2064_v2, %v13738_v44 }
 0x36e   : > { %4467 = vrot.lane.b32.xlu0 %v13734_v17, %s8041_s25  ;;  %v1666_v17 = vmul.f32 %v1664_v39, %v13695_v37  ;;  %v12212_v22 = vstv %s12175_s26  ;;  %s12546_s26 = sld [smem:[#allocation10 + $0x38]] }
 0x36f   : > { %v4138_v54 = vpop.permute.xlu1 %4137  ;;  %13750 = vst [vmem:[#allocation59_spill] sm:$0xff] %v12212_v22  ;;  %v12315_v22 = vld [vmem:[%s8347_s24 + $0x10] sm:$0xf] }
 0x370   : > { %v12066_v47 = vpop.permute.xlu0 %2882  ;;  %4469 = vrot.lane.b32.xlu1 %v4466_v38, %s8041_s25  ;;  %v4341_v38 = vmul.f32 %v13675_v46, %v1664_v39 }
 0x371   : > { %13737 = vst [vmem:[#allocation32_spill] sm:$0xff] %v12066_v47 }
 0x372   : > { %2024 = vrot.lane.b32.xlu0 %v2020_v7, %s8040_s23  ;;  %v4143_v7 = vadd.f32 %v4138_v54, %v11950_v9  ;;  %v13745_v9 = vld [vmem:[#allocation80_spill] sm:$0xff] }
 0x373   : > { %v12075_v42 = vpop.permute.xlu1 %5424  ;;  %v4697_v54 = vmul.f32 %v13745_v9, %v2064_v2 }
 0x374   : > { %v4140_v18 = vpop.permute.xlu0 %4139  ;;  %2026 = vrot.lane.b32.xlu1 %v2021_v0, %s8040_s23  ;;  %13741 = vst [vmem:[#allocation77_spill] sm:$0xff] %v12075_v42 }
 0x376   : > { %4660 = vrot.lane.b32.xlu0 %v4656_v48, %s8040_s23  ;;  %v2072_v48 = vrot.slane %v2066_v25, 1  ;;  %v4342_v25 = vmul.f32 %v13677_v28, %v1664_v39  ;;  %v4704_v39 = vrot.slane %v4697_v54, 1 }
 0x377   : > { %v1461_v63 = vpop.permute.xlu1 %1460 }
 0x378   : > { %v1459_v35 = vpop.permute.xlu0 %1458  ;;  %4662 = vrot.lane.b32.xlu1 %v4657_v58, %s8040_s23  ;;  %v1465_v16 = vadd.f32 %v1461_v63, %v1444_v40  ;;  %v4696_v58 = vmul.f32 %v13742_v26, %v2064_v2  ;;  %v2085_v40 = vstv %s12078_s27  ;;  %s12184_s27 = sld [smem:[#allocation4 + $0x42]] }
 0x379   : > { %v1464_v57 = vadd.f32 %v1459_v35, %v1443_v14  ;;  %v4669_v14 = vmul.f32 %v13742_v26, %v2033_v1  ;;  %v2071_v35 = vrot.slane %v2065_v32, 1 }
 0x37a   : > { %2038 = vrot.lane.b32.xlu0 %v2034_v52, %s8041_s25  ;;  %v12099_v0 = vadd.f32 %v1666_v17, %v1465_v16  ;;  %v4695_v52 = vmul.f32 %v13740_v12, %v2064_v2  ;;  %v4702_v16 = vrot.slane %v4696_v58, 1  ;;  %v2086_v2 = vmul.f32 %v2085_v40, %v13738_v44 }
 0x37b   : > { %v12089_v15 = vadd.f32 %v1665_v29, %v1464_v57  ;;  %v4157_v37 = vpop.permute.xlu1 %4156  ;;  %v4144_v29 = vadd.f32 %v4140_v18, %v11972_v60  ;;  %v2074_v57 = vrot.slane %v2067_v13, 1  ;;  %v2073_v32 = vsel %vm473_vm0, %v2071_v35, %v2072_v48 }
 0x37c   : > { %v12093_v51 = vpop.permute.xlu0 %2902  ;;  %2040 = vrot.lane.b32.xlu1 %v2035_v56, %s8041_s25  ;;  %v4162_v46 = vadd.f32 %v4157_v37, %v4143_v7  ;;  %v2087_v56 = vmul.f32 %v2085_v40, %v13739_v43  ;;  %v4701_v18 = vrot.slane %v4695_v52, 1  ;;  %v4715_v37 = vmul.f32 %v13742_v26, %v2085_v40 }
 0x37d   : > { %13744 = vst [vmem:[#allocation81_spill] sm:$0xff] %v12093_v51  ;;  %v2075_v28 = vsel %vm473_vm0, %v2072_v48, %v2074_v57  ;;  %v2092_v35 = vrot.slane %v2086_v2, 1  ;;  %v2123_v52 = vstv %s7416_s28  ;;  %v4705_v48 = vsel %vm473_vm0, %v4702_v16, %v4704_v39  ;;  %s12197_s28 = sld [smem:[#allocation4 + $0x3f]] }
 0x37e   : > { %4672 = vrot.lane.b32.xlu0 %v4668_v59, %s8041_s25  ;;  %v12111_v17 = vadd.f32 %v4341_v38, %v4162_v46  ;;  %v2088_v59 = vmul.f32 %v2085_v40, %v13743_v49  ;;  %v4703_v7 = vsel %vm473_vm0, %v4701_v18, %v4702_v16  ;;  %v2093_v58 = vrot.slane %v2087_v56, 1 }
 0x37f   : > { %v12115_v60 = vpop.permute.xlu1 %5442  ;;  %v4714_v46 = vmul.f32 %v13740_v12, %v2085_v40  ;;  %v4716_v57 = vmul.f32 %v13745_v9, %v2085_v40  ;;  %v2125_v56 = vmul.f32 %v2123_v52, %v13739_v43  ;;  %v2126_v2 = vmul.f32 %v2123_v52, %v13743_v49 }
 0x380   : > { %v4159_v63 = vpop.permute.xlu0 %4158  ;;  %4674 = vrot.lane.b32.xlu1 %v4669_v14, %s8041_s25  ;;  %13746 = vst [vmem:[#allocation78_spill] sm:$0xff] %v12115_v60 }
 0x381   : > { %v4163_v1 = vadd.f32 %v4159_v63, %v4144_v29  ;;  %v2095_v29 = vrot.slane %v2088_v59, 1  ;;  %v4721_v63 = vrot.slane %v4715_v37, 1  ;;  %v4720_v18 = vrot.slane %v4714_v46, 1 }
 0x382   : > { %2076 = vrot.lane.b32.xlu0 %v2073_v32, %s8040_s23  ;;  %v2124_v32 = vmul.f32 %v2123_v52, %v13738_v44  ;;  %v4723_v40 = vrot.slane %v4716_v57, 1  ;;  %v2131_v59 = vrot.slane %v2125_v56, 2  ;;  %v4750_v46 = vmul.f32 %v13745_v9, %v2123_v52 }
 0x383   : > { %v12118_v13 = vadd.f32 %v4342_v25, %v4163_v1  ;;  %v12128_v14 = vpop.permute.xlu1 %2944  ;;  %v2094_v25 = vsel %vm473_vm0, %v2092_v35, %v2093_v58  ;;  %v2096_v16 = vsel %vm473_vm0, %v2093_v58, %v2095_v29  ;;  %v4722_v39 = vsel %vm473_vm0, %v4720_v18, %v4721_v63 }
 0x384   : > { %v12122_v38 = vpop.permute.xlu0 %2942  ;;  %2078 = vrot.lane.b32.xlu1 %v2075_v28, %s8040_s23  ;;  %v4748_v35 = vmul.f32 %v13740_v12, %v2123_v52  ;;  %v4724_v58 = vsel %vm473_vm0, %v4721_v63, %v4723_v40  ;;  %v2133_v29 = vrot.slane %v2126_v2, 2 }
 0x386   : > { %4706 = vrot.lane.b32.xlu0 %v4703_v7, %s8040_s23  ;;  %v4749_v7 = vmul.f32 %v13742_v26, %v2123_v52  ;;  %v4754_v63 = vrot.slane %v4748_v35, 2  ;;  %v2134_v52 = vsel %vm543_vm1, %v2131_v59, %v2133_v29 }
 0x387   : > { %v12139_v1 = vpop.permute.xlu1 %5480 }
 0x388   : > { %v12133_v54 = vpop.permute.xlu0 %5478  ;;  %4708 = vrot.lane.b32.xlu1 %v4705_v48, %s8040_s23  ;;  %v2130_v48 = vrot.slane %v2124_v32, 2  ;;  %v4757_v32 = vrot.slane %v4750_v46, 2 }
 0x38a   : > { %2097 = vrot.lane.b32.xlu0 %v2094_v25, %s8041_s25  ;;  %v2144_v25 = vstv %s7417_s29  ;;  %v2132_v56 = vsel %vm543_vm1, %v2130_v48, %v2131_v59  ;;  %s12259_s29 = sld [smem:[#allocation4 + $0x45]] }
 0x38b   : > { %v12150_v37 = vpop.permute.xlu1 %2969  ;;  %v2146_v18 = vmul.f32 %v2144_v25, %v13739_v43  ;;  %v2145_v40 = vmul.f32 %v2144_v25, %v13738_v44  ;;  %v2147_v2 = vmul.f32 %v2144_v25, %v13743_v49  ;;  %v4769_v35 = vmul.f32 %v13745_v9, %v2144_v25 }
 0x38c   : > { %v12144_v28 = vpop.permute.xlu0 %2967  ;;  %2099 = vrot.lane.b32.xlu1 %v2096_v16, %s8041_s25  ;;  %v4755_v16 = vrot.slane %v4749_v7, 2  ;;  %v4767_v49 = vmul.f32 %v13740_v12, %v2144_v25 }
 0x38d   : > { %v2152_v59 = vrot.slane %v2146_v18, 2  ;;  %v4776_v5 = vrot.slane %v4769_v35, 2  ;;  %v12200_v35 = vstv %s7433_s22  ;;  %s12488_s22 = sld [smem:[#allocation10 + $0x45]] }
 0x38e   : > { %4725 = vrot.lane.b32.xlu0 %v4722_v39, %s8041_s25  ;;  %v4756_v48 = vsel %vm543_vm1, %v4754_v63, %v4755_v16  ;;  %v4758_v46 = vsel %vm543_vm1, %v4755_v16, %v4757_v32  ;;  %v12188_v63 = vstv %s12160_s10  ;;  %v2368_v16 = vstv %s12165_s15  ;;  %s12406_s10 = sld [smem:[#allocation8 + $0x7]]  ;;  %s12474_s15 = sld [smem:[#allocation10 + $0x42]] }
 0x38f   : > { %v12163_v39 = vpop.permute.xlu1 %5503  ;;  %v2382_v32 = vstv %s12167_s17  ;;  %v2414_v33 = vmul.f32 %v12188_v63, %v13749_v19  ;;  %v2369_v3 = vmul.f32 %v2368_v16, %v13749_v19  ;;  %v12221_v21 = vmul.f32 %v13751_v20, %v12188_v63  ;;  %s12486_s17 = sld [smem:[#allocation10 + $0x37]] }
 0x390   : > { %v12155_v57 = vpop.permute.xlu0 %5501  ;;  %4727 = vrot.lane.b32.xlu1 %v4724_v58, %s8041_s25  ;;  %v4768_v58 = vmul.f32 %v13742_v26, %v2144_v25  ;;  %v12234_v6 = vmul.f32 %v12200_v35, %v13749_v19 }
 0x391   : > { %v2420_v11 = vrot.slane %v2414_v33, 1  ;;  %v12262_v33 = vmul.f32 %v13751_v20, %v2382_v32 }
 0x392   : > { %2135 = vrot.lane.b32.xlu0 %v2132_v56, %s8040_s23  ;;  %v2151_v56 = vrot.slane %v2145_v40, 2  ;;  %v4774_v9 = vrot.slane %v4768_v58, 2  ;;  %v13748_v40 = vld [vmem:[#allocation39_spill] sm:$0xff] }
 0x393   : > { %v1678_v29 = vpop.permute.xlu1 %1677  ;;  %v12241_v43 = vmul.f32 %v12200_v35, %v13748_v40 }
 0x394   : > { %v1676_v7 = vpop.permute.xlu0 %1675  ;;  %2137 = vrot.lane.b32.xlu1 %v2134_v52, %s8040_s23  ;;  %v2154_v52 = vrot.slane %v2147_v2, 2  ;;  %v2153_v18 = vsel %vm543_vm1, %v2151_v56, %v2152_v59  ;;  %v12195_v2 = vmul.f32 %v12188_v63, %v13748_v40 }
 0x395   : > { %v1681_v26 = vadd.f32 %v1676_v7, %v12089_v15  ;;  %v12253_v15 = vmul.f32 %v13751_v20, %v12200_v35  ;;  %v2911_v7 = vstv %s12184_s27  ;;  %s12551_s27 = sld [smem:[#allocation10 + $0x24]] }
 0x396   : > { %4759 = vrot.lane.b32.xlu0 %v4756_v48, %s8040_s23  ;;  %v4773_v48 = vrot.slane %v4767_v49, 2  ;;  %v2155_v58 = vsel %vm543_vm1, %v2152_v59, %v2154_v52  ;;  %v2370_v59 = vmul.f32 %v2368_v16, %v13748_v40  ;;  %v12217_v52 = vmul.f32 %v2382_v32, %v13749_v19 }
 0x397   : > { %v4350_v25 = vpop.permute.xlu1 %4349  ;;  %13755 = vst [vmem:[#allocation41_spill] sm:$0xff] %v12253_v15  ;;  %v13756_v50 = vrot.slane %v12195_v2, 1  ;;  %v12318_v47 = vmul.f32 %v12315_v22, %v2911_v7  ;;  %v13765_v15 = vld [vmem:[#allocation96_spill] sm:$0xff] }
 0x398   : > { %v12181_v24 = vpop.permute.xlu0 %2946  ;;  %4761 = vrot.lane.b32.xlu1 %v4758_v46, %s8040_s23  ;;  %v12202_v46 = vstv %s7435_s30  ;;  %v4775_v49 = vsel %vm543_vm1, %v4773_v48, %v4774_v9  ;;  %s12496_s30 = sld [smem:[#allocation10 + $0x3a]] }
 0x399   : > { %13747 = vst [vmem:[#allocation91_spill] sm:$0xff] %v12181_v24  ;;  %v12267_v53 = vsel %vm473_vm0, %v2420_v11, %v13756_v50 }
 0x39a   : > { %2156 = vrot.lane.b32.xlu0 %v2153_v18, %s8041_s25  ;;  %v4777_v18 = vsel %vm543_vm1, %v4774_v9, %v4776_v5  ;;  %v12227_v9 = vmul.f32 %v2382_v32, %v13748_v40 }
 0x39b   : > { %v12224_v5 = vpop.permute.xlu1 %5482 }
 0x39c   : > { %v12204_v56 = vpop.permute.xlu0 %4351  ;;  %2158 = vrot.lane.b32.xlu1 %v2155_v58, %s8041_s25  ;;  %13752 = vst [vmem:[#allocation92_spill] sm:$0xff] %v12224_v5  ;;  %v13753_v58 = vld [vmem:[#allocation22_spill] sm:$0xff]  ;;  %v7893_v5 = vld [vmem:[%s8216_s18] sm:$0xff] }
 0x39d   : > { %v5006_v55 = vmul.f32 %v13753_v58, %v12188_v63  ;;  %v4967_v12 = vmul.f32 %v13753_v58, %v2368_v16  ;;  %v12245_v48 = vmul.f32 %v13753_v58, %v2382_v32  ;;  %v12249_v23 = vmul.f32 %v13753_v58, %v12200_v35 }
 0x39e   : > { %4778 = vrot.lane.b32.xlu0 %v4775_v49, %s8041_s25  ;;  %v4968_v49 = vmul.f32 %v13751_v20, %v2368_v16  ;;  %v1682_v16 = vadd.f32 %v1678_v29, %v12099_v0  ;;  %v13757_v29 = vld [vmem:[#allocation93_spill] sm:$0xff]  ;;  %v2912_v24 = vmul.f32 %v7893_v5, %v2911_v7  ;;  %v2913_v32 = vmul.f32 %v11741_v62, %v2911_v7  ;;  %v13761_v0 = vld [vmem:[#allocation95_spill] sm:$0xff] }
 0x39f   : > { %13754 = vst [vmem:[#allocation63_spill] sm:$0xff] %v12249_v23  ;;  %v1692_v61 = vpop.permute.xlu1 %1691  ;;  %v5012_v4 = vrot.slane %v5006_v55, 1 }
 0x3a0   : > { %v1690_v44 = vpop.permute.xlu0 %1689  ;;  %4780 = vrot.lane.b32.xlu1 %v4777_v18, %s8041_s25  ;;  %v2919_v51 = vrot.slane %v2913_v32, 1 }
 0x3a1   : > { %v1695_v45 = vadd.f32 %v1690_v44, %v1681_v26  ;;  %v12271_v44 = vstv %s12197_s28  ;;  %v1696_v26 = vadd.f32 %v1692_v61, %v1682_v16  ;;  %v12285_v61 = vld [vmem:[%s8216_s18 + $0x10] sm:$0xf]  ;;  %v13760_v16 = vrot.slane %v12221_v21, 1  ;;  %s12564_s28 = sld [smem:[#allocation10 + $0x3b]] }
 0x3a2   : > { %2373 = vrot.lane.b32.xlu0 %v2369_v3, %s8040_s23  ;;  %v12288_v55 = vmul.f32 %v12285_v61, %v2911_v7  ;;  %v2865_v50 = vmul.f32 %v11741_v62, %v12271_v44 }
 0x3a3   : > { %v12275_v18 = vadd.f32 %v13757_v29, %v1695_v45  ;;  %v4355_v45 = vadd.f32 %v4350_v25, %v12111_v17  ;;  %v12294_v29 = vsel %vm473_vm0, %v5012_v4, %v13760_v16  ;;  %v12297_v3 = vadd.f32 %v13761_v0, %v1696_v26  ;;  %v4362_v11 = vpop.permute.xlu1 %4361  ;;  %v7895_v4 = vld [vmem:[%s8347_s24] sm:$0xff]  ;;  %v7896_v0 = vld [vmem:[%s8347_s24 + $0x8] sm:$0xff] }
 0x3a4   : > { %v12279_v60 = vpop.permute.xlu0 %2971  ;;  %2375 = vrot.lane.b32.xlu1 %v2370_v59, %s8040_s23  ;;  %v2864_v59 = vmul.f32 %v7893_v5, %v12271_v44  ;;  %v12307_v25 = vmul.f32 %v12202_v46, %v13749_v19  ;;  %v5450_v16 = vmul.f32 %v7895_v4, %v2911_v7  ;;  %v5451_v26 = vmul.f32 %v7896_v0, %v2911_v7  ;;  %v13767_v7 = vld [vmem:[#allocation56_spill] sm:$0xff] }
 0x3a5   : > { %13758 = vst [vmem:[#allocation49_spill] sm:$0xff] %v12275_v18  ;;  %13759 = vst [vmem:[#allocation45_spill] sm:$0xff] %v12279_v60  ;;  %v13763_v18 = vld [vmem:[#allocation70_spill] sm:$0xff]  ;;  %v4367_v60 = vadd.f32 %v4362_v11, %v4355_v45  ;;  %v5408_v42 = vmul.f32 %v7895_v4, %v12271_v44  ;;  %v5409_v20 = vmul.f32 %v7896_v0, %v12271_v44 }
 0x3a6   : > { %13762 = vst [vmem:[#allocation40_spill] sm:$0xff] %v12297_v3  ;;  %4971 = vrot.lane.b32.xlu0 %v4967_v12, %s8040_s23  ;;  %v2416_v17 = vmul.f32 %v12188_v63, %v13763_v18  ;;  %13764 = vst [vmem:[#allocation35_spill] sm:$0xff] %v12307_v25  ;;  %v4356_v3 = vadd.f32 %v12204_v56, %v12118_v13  ;;  %v2918_v12 = vrot.slane %v2912_v24, 1  ;;  %v2980_v56 = vstv %s12259_s29  ;;  %s12678_s29 = sld [smem:[#allocation10 + $0x3d]] }
 0x3a7   : > { %v12324_v13 = vadd.f32 %v13765_v15, %v4367_v60  ;;  %v12333_v11 = vmul.f32 %v13767_v7, %v12188_v63  ;;  %v5457_v60 = vrot.slane %v5451_v26, 1  ;;  %v13768_v15 = vld [vmem:[#allocation97_spill] sm:$0xff]  ;;  %v5429_v25 = vadd.f32 %v12003_v30, %v5408_v42 }
 0x3a8   : > { %v4364_v19 = vpop.permute.xlu0 %4363  ;;  %4973 = vrot.lane.b32.xlu1 %v4968_v49, %s8040_s23  ;;  %v2423_v32 = vrot.slane %v2416_v17, 1  ;;  %v12337_v49 = vmul.f32 %v12202_v46, %v13748_v40  ;;  %v2920_v17 = vsel %vm473_vm0, %v2918_v12, %v2919_v51  ;;  %v5459_v63 = vrot.slane %v12318_v47, 1 }
 0x3a9   : > { %v4368_v23 = vadd.f32 %v4364_v19, %v4356_v3  ;;  %13766 = vst [vmem:[#allocation71_spill] sm:$0xff] %v12324_v13  ;;  %v2887_v19 = vadd.f32 %v11977_v36, %v2864_v59  ;;  %v5456_v3 = vrot.slane %v5450_v16, 1  ;;  %v5430_v36 = vadd.f32 %v12020_v8, %v5409_v20 }
 0x3aa   : > { %2387 = vrot.lane.b32.xlu0 %v12217_v52, %s8041_s25  ;;  %v12328_v24 = vpop.permute.xlu1 %5505  ;;  %v2888_v52 = vadd.f32 %v11993_v10, %v2865_v50  ;;  %v2981_v10 = vmul.f32 %v7893_v5, %v2980_v56  ;;  %v5447_v42 = vadd.f32 %v12050_v34, %v5429_v25  ;;  %v2982_v50 = vmul.f32 %v11741_v62, %v2980_v56 }
 0x3ab   : > { %v12341_v45 = vadd.f32 %v13768_v15, %v4368_v23  ;;  %v2907_v59 = vadd.f32 %v12029_v41, %v2887_v19  ;;  %v13769_v23 = vrot.slane %v12288_v55, 1  ;;  %v5448_v8 = vadd.f32 %v12055_v27, %v5430_v36 }
 0x3ac   : > { %v12347_v13 = vpop.permute.xlu0 %3011  ;;  %2389 = vrot.lane.b32.xlu1 %v12227_v9, %s8041_s25  ;;  %v2908_v30 = vadd.f32 %v12037_v31, %v2888_v52  ;;  %v12362_v9 = vmul.f32 %v12285_v61, %v2980_v56  ;;  %v5458_v41 = vsel %vm473_vm0, %v5456_v3, %v5457_v60  ;;  %v5514_v5 = vmul.f32 %v7896_v0, %v2980_v56 }
 0x3ad   : > { %v2922_v16 = vsel %vm473_vm0, %v2919_v51, %v13769_v23  ;;  %v5513_v51 = vmul.f32 %v7895_v4, %v2980_v56  ;;  %v5460_v31 = vsel %vm473_vm0, %v5457_v60, %v5459_v63  ;;  %v12374_v62 = vmul.f32 %v12315_v22, %v2980_v56 }
 0x3ae   : > { %4983 = vrot.lane.b32.xlu0 %v12245_v48, %s8041_s25  ;;  %v12364_v20 = vpop.permute.xlu1 %3013  ;;  %v2437_v48 = vmul.f32 %v12200_v35, %v13763_v18  ;;  %v12380_v27 = vmul.f32 %v13753_v58, %v12202_v46  ;;  %v2926_v25 = vadd.f32 %v2920_v17, %v2907_v59  ;;  %v2987_v4 = vrot.slane %v2981_v10, 2 }
 0x3af   : > { %v13770_v0 = vrot.slane %v12195_v2, 1  ;;  %v5015_v12 = vrot.slane %v12333_v11, 1  ;;  %v2927_v19 = vadd.f32 %v2922_v16, %v2908_v30  ;;  %v2988_v3 = vrot.slane %v2982_v50, 2 }
 0x3b0   : > { %v5542_v34 = vpop.permute.xlu0 %5541  ;;  %4985 = vrot.lane.b32.xlu1 %v12262_v33, %s8041_s25  ;;  %v5464_v33 = vadd.f32 %v5458_v41, %v5447_v42  ;;  %v2990_v56 = vrot.slane %v12362_v9, 2  ;;  %v2951_v15 = vadd.f32 %v12122_v38, %v2926_v25  ;;  %v5465_v52 = vadd.f32 %v5460_v31, %v5448_v8 }
 0x3b1   : > { %v2424_v26 = vsel %vm473_vm0, %v13770_v0, %v2423_v32  ;;  %v5519_v17 = vrot.slane %v5513_v51, 2  ;;  %v5520_v36 = vrot.slane %v5514_v5, 2  ;;  %v2952_v2 = vadd.f32 %v12128_v14, %v2927_v19  ;;  %v13776_v5 = vld [vmem:[#allocation63_spill] sm:$0xff] }
 0x3b2   : > { %2425 = vrot.lane.b32.xlu0 %v12267_v53, %s8040_s23  ;;  %v5544_v60 = vpop.permute.xlu1 %5543  ;;  %v5487_v32 = vadd.f32 %v12133_v54, %v5464_v33  ;;  %v5522_v11 = vrot.slane %v12374_v62, 2  ;;  %v13771_v23 = vrot.slane %v12241_v43, 1  ;;  %v13772_v16 = vrot.slane %v12234_v6, 1 }
 0x3b3   : > { %v5488_v38 = vadd.f32 %v12139_v1, %v5465_v52  ;;  %v2976_v10 = vadd.f32 %v12144_v28, %v2951_v15  ;;  %v2444_v30 = vrot.slane %v2437_v48, 1  ;;  %v5027_v14 = vmul.f32 %v13767_v7, %v12200_v35 }
 0x3b4   : > { %v3037_v59 = vpop.permute.xlu0 %3036  ;;  %2427 = vrot.lane.b32.xlu1 %v2424_v26, %s8040_s23  ;;  %v2443_v53 = vsel %vm473_vm0, %v13772_v16, %v13771_v23  ;;  %v2977_v54 = vadd.f32 %v12150_v37, %v2952_v2  ;;  %v5510_v42 = vadd.f32 %v12155_v57, %v5487_v32  ;;  %v2989_v50 = vsel %vm543_vm1, %v2987_v4, %v2988_v3  ;;  %v13779_v26 = vld [vmem:[#allocation44_spill] sm:$0xff] }
 0x3b5   : > { %v13773_v1 = vrot.slane %v12221_v21, 1  ;;  %v2866_v8 = vmul.f32 %v12285_v61, %v12271_v44  ;;  %v5511_v35 = vadd.f32 %v12163_v39, %v5488_v38  ;;  %v2991_v37 = vsel %vm543_vm1, %v2988_v3, %v2990_v56  ;;  %v13774_v21 = vld [vmem:[#allocation41_spill] sm:$0xff]  ;;  %v13778_v39 = vld [vmem:[#allocation35_spill] sm:$0xff] }
 0x3b6   : > { %5017 = vrot.lane.b32.xlu0 %v12294_v29, %s8040_s23  ;;  %v3039_v6 = vpop.permute.xlu1 %3038  ;;  %v5521_v57 = vsel %vm543_vm1, %v5519_v17, %v5520_v36  ;;  %v5523_v29 = vsel %vm543_vm1, %v5520_v36, %v5522_v11  ;;  %v13775_v51 = vrot.slane %v13774_v21, 1  ;;  %v13777_v31 = vrot.slane %v13776_v5, 1  ;;  %v13781_v36 = vld [vmem:[#allocation32_spill] sm:$0xff] }
 0x3b7   : > { %v5016_v28 = vsel %vm473_vm0, %v13773_v1, %v5015_v12  ;;  %v2479_v48 = vrot.slane %v13778_v39, 2  ;;  %v2480_v25 = vrot.slane %v12337_v49, 2  ;;  %v2995_v4 = vadd.f32 %v2989_v50, %v2976_v10 }
 0x3b8   : > { %v5565_v41 = vpop.permute.xlu0 %5564  ;;  %5019 = vrot.lane.b32.xlu1 %v5016_v28, %s8040_s23  ;;  %v5033_v61 = vsel %vm473_vm0, %v13777_v31, %v13775_v51  ;;  %v2475_v0 = vmul.f32 %v12202_v46, %v13763_v18  ;;  %v12435_v12 = vmul.f32 %v13779_v26, %v12202_v46  ;;  %v5065_v19 = vrot.slane %v12380_v27, 2 }
 0x3b9   : > { %v5410_v33 = vmul.f32 %v12315_v22, %v12271_v44  ;;  %v2996_v3 = vadd.f32 %v2991_v37, %v2977_v54  ;;  %v5527_v15 = vadd.f32 %v5521_v57, %v5510_v42  ;;  %v13780_v49 = vmov %v13771_v23  ;;  %v13782_v44 = vld [vmem:[#allocation53_spill] sm:$0xff] }
 0x3ba   : > { %2446 = vrot.lane.b32.xlu0 %v2443_v53, %s8041_s25  ;;  %v5567_v52 = vpop.permute.xlu1 %5566  ;;  %v2445_v17 = vsel %vm473_vm0, %v13780_v49, %v2444_v30  ;;  %v2889_v2 = vadd.f32 %v13781_v36, %v2866_v8  ;;  %v3020_v32 = vadd.f32 %v12347_v13, %v2995_v4  ;;  %v5528_v23 = vadd.f32 %v5523_v29, %v5511_v35  ;;  %v13783_v53 = vld [vmem:[#allocation59_spill] sm:$0xff]  ;;  %v13784_v30 = vld [vmem:[#allocation81_spill] sm:$0xff] }
 0x3bb   : > { %v5034_v16 = vrot.slane %v5027_v14, 1  ;;  %v3021_v38 = vadd.f32 %v12364_v20, %v2996_v3  ;;  %v5550_v10 = vadd.f32 %v5542_v34, %v5527_v15  ;;  %v2494_v54 = vmul.f32 %v13783_v53, %v13782_v44  ;;  %v13785_v14 = vld [vmem:[#allocation77_spill] sm:$0xff] }
 0x3bc   : > { %v1728_v22 = vpop.permute.xlu0 %1727  ;;  %2448 = vrot.lane.b32.xlu1 %v2445_v17, %s8041_s25  ;;  %v12452_v43 = vmul.f32 %v13783_v53, %v13748_v40  ;;  %v2909_v42 = vadd.f32 %v13784_v30, %v2889_v2  ;;  %v5551_v50 = vadd.f32 %v5544_v60, %v5528_v23  ;;  %v3045_v1 = vadd.f32 %v3037_v59, %v3020_v32  ;;  %v13787_v59 = vld [vmem:[#allocation78_spill] sm:$0xff] }
 0x3bd   : > { %v5079_v13 = vmul.f32 %v13779_v26, %v13783_v53  ;;  %v5431_v20 = vadd.f32 %v13785_v14, %v5410_v33  ;;  %v12459_v34 = vstv %s12406_s10  ;;  %v3046_v28 = vadd.f32 %v3039_v6, %v3021_v38  ;;  %s7455_s10 = sld [smem:[#allocation10 + $0x3e]] }
 0x3be   : > { %v5573_v8 = vadd.f32 %v5565_v41, %v5550_v10  ;;  %5036 = vrot.lane.b32.xlu0 %v5033_v61, %s8041_s25  ;;  %v1730_v35 = vpop.permute.xlu1 %1729  ;;  %v5574_v37 = vadd.f32 %v5567_v52, %v5551_v50  ;;  %v13786_v57 = vmov %v13775_v51  ;;  %v2482_v51 = vrot.slane %v2475_v0, 2 }
 0x3bf   : > { %v5035_v29 = vsel %vm473_vm0, %v13786_v57, %v5034_v16  ;;  %v5061_v60 = vmul.f32 %v13767_v7, %v12202_v46  ;;  %v5449_v5 = vadd.f32 %v13787_v59, %v5431_v20  ;;  %v2481_v6 = vsel %vm543_vm1, %v2479_v48, %v2480_v25  ;;  %v13790_v16 = vld [vmem:[#allocation45_spill] sm:$0xff] }
 0x3c0   : > { %v3016_v31 = vpop.permute.xlu0 %3015  ;;  %5038 = vrot.lane.b32.xlu1 %v5035_v29, %s8041_s25  ;;  %v2496_v41 = vmul.f32 %v13783_v53, %v13763_v18  ;;  %v5080_v61 = vmul.f32 %v13767_v7, %v13783_v53  ;;  %v13788_v21 = vrot.slane %v12288_v55, 1  ;;  %v3050_v46 = vadd.f32 %v12459_v34, %v3045_v1  ;;  %v13789_v55 = vld [vmem:[#allocation91_spill] sm:$0xff]  ;;  %v13792_v1 = vld [vmem:[#allocation49_spill] sm:$0xff]  ;;  %v13794_v29 = vld [vmem:[#allocation40_spill] sm:$0xff] }
 0x3c1   : > { %v5066_v4 = vrot.slane %v12435_v12, 2  ;;  %v5078_v0 = vmul.f32 %v13753_v58, %v13783_v53  ;;  %v3051_v48 = vadd.f32 %v12459_v34, %v3046_v28  ;;  %v5576_v33 = vadd.f32 %v5573_v8, %v12459_v34 }
 0x3c2   : > { %v2928_v39 = vadd.f32 %v13788_v21, %v2909_v42  ;;  %2484 = vrot.lane.b32.xlu0 %v2481_v6, %s8040_s23  ;;  %v4396_v18 = vpop.permute.xlu1 %4395  ;;  %v2501_v7 = vrot.slane %v12452_v43, 2  ;;  %v5085_v3 = vrot.slane %v5079_v13, 2  ;;  %v5577_v12 = vadd.f32 %v5574_v37, %v12459_v34  ;;  %v13791_v43 = vld [vmem:[#allocation92_spill] sm:$0xff] }
 0x3c3   : > { %v2483_v52 = vsel %vm543_vm1, %v2480_v25, %v2482_v51  ;;  %v5068_v49 = vrot.slane %v5061_v60, 2  ;;  %v5466_v17 = vadd.f32 %v5459_v63, %v5449_v5  ;;  %v2500_v2 = vrot.slane %v2494_v54, 2 }
 0x3c4   : > { %v2953_v15 = vadd.f32 %v13789_v55, %v2928_v39  ;;  %v4398_v36 = vpop.permute.xlu0 %4397  ;;  %2486 = vrot.lane.b32.xlu1 %v2483_v52, %s8040_s23  ;;  %v2503_v32 = vrot.slane %v2496_v41, 2  ;;  %v5087_v23 = vrot.slane %v5080_v61, 2  ;;  %v3053_v10 = vmax.f32 %v3050_v46, 0.0  ;;  %v13796_v39 = vld [vmem:[#allocation25_spill] sm:$0xff] }
 0x3c5   : > { %v5067_v53 = vsel %vm543_vm1, %v5065_v19, %v5066_v4  ;;  %v5084_v25 = vrot.slane %v5078_v0, 2  ;;  %v5489_v47 = vadd.f32 %v13791_v43, %v5466_v17  ;;  %v3054_v63 = vmax.f32 %v3051_v48, 0.0 }
 0x3c6   : > { %v2978_v38 = vadd.f32 %v13790_v16, %v2953_v15  ;;  %v5579_v30 = vmax.f32 %v5576_v33, 0.0  ;;  %5070 = vrot.lane.b32.xlu0 %v5067_v53, %s8040_s23  ;;  %v5546_v54 = vpop.permute.xlu1 %5545  ;;  %v2502_v42 = vsel %vm543_vm1, %v2500_v2, %v2501_v7  ;;  %v5580_v50 = vmax.f32 %v5577_v12, 0.0  ;;  %v13798_v15 = vld [vmem:[#allocation46_spill] sm:$0xff] }
 0x3c7   : > { %v1733_v13 = vadd.f32 %v1728_v22, %v13792_v1  ;;  %v5069_v14 = vsel %vm543_vm1, %v5066_v4, %v5068_v49  ;;  %v5086_v27 = vsel %vm543_vm1, %v5084_v25, %v5085_v3  ;;  %v5512_v19 = vadd.f32 %v12328_v24, %v5489_v47  ;;  %v13797_v4 = vld [vmem:[#allocation71_spill] sm:$0xff] }
 0x3c8   : > { %v1749_v20 = vpop.permute.xlu0 %1748  ;;  %5072 = vrot.lane.b32.xlu1 %v5069_v14, %s8040_s23  ;;  %v2504_v28 = vsel %vm543_vm1, %v2501_v7, %v2503_v32  ;;  %v5088_v8 = vsel %vm543_vm1, %v5085_v3, %v5087_v23  ;;  %v12513_v37 = vstv %s12474_s15  ;;  %v12517_v22 = vsel %vm8535_vm6, %v3053_v10, 0.0  ;;  %s7467_s15 = sld [smem:[#allocation10 + $0x40]] }
 0x3c9   : > { %v1734_v51 = vadd.f32 %v1730_v35, %v13794_v29  ;;  %v2997_v60 = vadd.f32 %v2990_v56, %v2978_v38  ;;  %v1754_v59 = vadd.f32 %v1749_v20, %v1733_v13  ;;  %v12524_v5 = vsel %vm8528_vm5, %v3054_v63, 0.0  ;;  %v13799_v38 = vld [vmem:[#allocation72_spill] sm:$0xff]  ;;  %v13800_v63 = vld [vmem:[#allocation27_spill] sm:$0xff] }
 0x3ca   : > { %v12528_v6 = vsel %vm8535_vm6, %v5579_v30, 0.0  ;;  %2505 = vrot.lane.b32.xlu0 %v2502_v42, %s8041_s25  ;;  %v1751_v41 = vpop.permute.xlu1 %1750  ;;  %v2717_v61 = vstv %s12486_s17  ;;  %v12533_v21 = vstv %s12488_s22  ;;  %v12537_v9 = vsel %vm8528_vm5, %v5580_v50, 0.0  ;;  %v13801_v50 = vld [vmem:[#allocation48_spill] sm:$0xff]  ;;  %s7468_s17 = sld [smem:[#allocation10 + $0x41]]  ;;  %s7470_s22 = sld [smem:[#allocation10 + $0x43]] }
 0x3cb   : > { %v3022_v56 = vadd.f32 %v3016_v31, %v2997_v60  ;;  %v1755_v35 = vadd.f32 %v1751_v41, %v1734_v51  ;;  %v12540_v46 = vadd.f32 %v13796_v39, %v1754_v59  ;;  %v4401_v0 = vadd.f32 %v4396_v18, %v13797_v4  ;;  %v13804_v60 = vld [vmem:[#allocation68_spill] sm:$0xff] }
 0x3cc   : > { %v5529_v48 = vadd.f32 %v5522_v11, %v5512_v19  ;;  %v3041_v33 = vpop.permute.xlu0 %3040  ;;  %2507 = vrot.lane.b32.xlu1 %v2504_v28, %s8041_s25  ;;  %v12549_v7 = vstv %s12496_s30  ;;  %v3095_v31 = vmul.f32 %v12513_v37, %v12517_v22  ;;  %v4402_v3 = vadd.f32 %v4398_v36, %v12341_v45  ;;  %s7428_s30 = sld [smem:[#allocation10 + $0x2d]] }
 0x3cd   : > { %v3047_v55 = vadd.f32 %v3041_v33, %v3022_v56  ;;  %v12557_v18 = vadd.f32 %v13798_v15, %v1755_v35  ;;  %v12561_v62 = vmul.f32 %v12513_v37, %v12524_v5  ;;  %v5613_v52 = vmul.f32 %v12528_v6, %v12513_v37  ;;  %v13807_v15 = vld [vmem:[#allocation31_spill] sm:$0xff] }
 0x3ce   : > { %5089 = vrot.lane.b32.xlu0 %v5086_v27, %s8041_s25  ;;  %v4415_v11 = vpop.permute.xlu1 %4414  ;;  %v3101_v12 = vrot.slane %v3095_v31, 1  ;;  %v12570_v45 = vmul.f32 %v12537_v9, %v12513_v37  ;;  %v3154_v49 = vmul.f32 %v12533_v21, %v12517_v22  ;;  %v12578_v32 = vmul.f32 %v12533_v21, %v12524_v5 }
 0x3cf   : > { %v3052_v17 = vadd.f32 %v12459_v34, %v3047_v55  ;;  %v4420_v36 = vadd.f32 %v4415_v11, %v4401_v0  ;;  %v3102_v2 = vrot.slane %v12561_v62, 1  ;;  %v5552_v23 = vadd.f32 %v5546_v54, %v5529_v48  ;;  %v13805_v48 = vld [vmem:[#allocation64_spill] sm:$0xff] }
 0x3d0   : > { %v4417_v16 = vpop.permute.xlu0 %4416  ;;  %5091 = vrot.lane.b32.xlu1 %v5088_v8, %s8041_s25  ;;  %v2718_v10 = vmul.f32 %v2717_v61, %v13799_v38  ;;  %v5619_v53 = vrot.slane %v5613_v52, 1  ;;  %v5620_v25 = vrot.slane %v12570_v45, 1  ;;  %v2719_v1 = vmul.f32 %v2717_v61, %v13801_v50  ;;  %v13803_v8 = vld [vmem:[#allocation98_spill] sm:$0xff] }
 0x3d1   : > { %v3055_v43 = vmax.f32 %v3052_v17, 0.0  ;;  %v4421_v47 = vadd.f32 %v4417_v16, %v4402_v3  ;;  %v12584_v30 = vadd.f32 %v13800_v63, %v4420_v36  ;;  %v12589_v42 = vsel %vm473_vm0, %v3101_v12, %v3102_v2  ;;  %v13806_v3 = vld [vmem:[#allocation89_spill] sm:$0xff]  ;;  %v13808_v17 = vld [vmem:[#allocation36_spill] sm:$0xff] }
 0x3d2   : > { %2722 = vrot.lane.b32.xlu0 %v2718_v10, %s8040_s23  ;;  %v5569_v54 = vpop.permute.xlu1 %5568  ;;  %v12595_v13 = vmul.f32 %v12549_v7, %v13801_v50  ;;  %v12600_v14 = vsel %vm473_vm0, %v5619_v53, %v5620_v25  ;;  %v3161_v27 = vrot.slane %v12578_v32, 2  ;;  %v3160_v29 = vrot.slane %v3154_v49, 2 }
 0x3d3   : > { %v12605_v20 = vsel %vm8555_vm8, %v3055_v43, 0.0  ;;  %v5575_v28 = vadd.f32 %v5569_v54, %v5552_v23  ;;  %v12608_v57 = vadd.f32 %v13803_v8, %v4421_v47  ;;  %v5278_v59 = vmul.f32 %v13804_v60, %v2717_v61  ;;  %v13809_v23 = vld [vmem:[#allocation33_spill] sm:$0xff] }
 0x3d4   : > { %v1787_v51 = vpop.permute.xlu0 %1786  ;;  %2724 = vrot.lane.b32.xlu1 %v2719_v1, %s8040_s23  ;;  %v2731_v24 = vstv %s12546_s26  ;;  %v2013_v41 = vstv %s12551_s27  ;;  %v2763_v35 = vmul.f32 %v12549_v7, %v13799_v38  ;;  %v3097_v39 = vmul.f32 %v12513_v37, %v12605_v20  ;;  %v13810_v54 = vld [vmem:[#allocation69_spill] sm:$0xff]  ;;  %s7471_s26 = sld [smem:[#allocation10 + $0x44]]  ;;  %s12785_s27 = sld [smem:[#allocation10 + $0x46]] }
 0x3d5   : > { %v5578_v56 = vadd.f32 %v5575_v28, %v12459_v34  ;;  %v12622_v4 = vsel %vm543_vm1, %v3160_v29, %v3161_v27  ;;  %v5279_v33 = vmul.f32 %v13805_v48, %v2717_v61  ;;  %v12627_v31 = vstv %s12564_s28  ;;  %s7474_s28 = sld [smem:[#allocation10 + $0x47]] }
 0x3d6   : > { %5282 = vrot.lane.b32.xlu0 %v5278_v59, %s8040_s23  ;;  %v1789_v0 = vpop.permute.xlu1 %1788  ;;  %v2770_v34 = vrot.slane %v12595_v13, 1  ;;  %v2014_v55 = vmul.f32 %v2013_v41, %v13806_v3  ;;  %v2015_v11 = vmul.f32 %v2013_v41, %v13807_v15  ;;  %v2732_v49 = vmul.f32 %v2731_v24, %v13799_v38 }
 0x3d7   : > { %v5581_v12 = vmax.f32 %v5578_v56, 0.0  ;;  %v4652_v36 = vmul.f32 %v13808_v17, %v2013_v41  ;;  %v4653_v16 = vmul.f32 %v13809_v23, %v2013_v41  ;;  %v2769_v10 = vrot.slane %v2763_v35, 1  ;;  %v13811_v17 = vld [vmem:[#allocation74_spill] sm:$0xff] }
 0x3d8   : > { %v4449_v52 = vpop.permute.xlu0 %4448  ;;  %5284 = vrot.lane.b32.xlu1 %v5279_v33, %s8040_s23  ;;  %v5317_v61 = vmul.f32 %v13804_v60, %v12549_v7  ;;  %v12640_v53 = vmul.f32 %v12627_v31, %v13799_v38  ;;  %v3104_v43 = vrot.slane %v3097_v39, 1  ;;  %v2733_v63 = vmul.f32 %v2731_v24, %v13801_v50 }
 0x3d9   : > { %v2765_v1 = vmul.f32 %v12549_v7, %v13810_v54  ;;  %v5318_v13 = vmul.f32 %v13805_v48, %v12549_v7  ;;  %v12650_v28 = vmul.f32 %v12627_v31, %v13801_v50  ;;  %v1792_v8 = vadd.f32 %v1787_v51, %v12540_v46 }
 0x3da   : > { %2736 = vrot.lane.b32.xlu0 %v2732_v49, %s8041_s25  ;;  %v4451_v47 = vpop.permute.xlu1 %4450  ;;  %v5290_v29 = vmul.f32 %v13804_v60, %v2731_v24  ;;  %v5291_v59 = vmul.f32 %v13805_v48, %v2731_v24  ;;  %v2771_v41 = vsel %vm473_vm0, %v2769_v10, %v2770_v34  ;;  %v12658_v56 = vsel %vm8555_vm8, %v5581_v12, 0.0 }
 0x3db   : > { %v3156_v39 = vmul.f32 %v12533_v21, %v12605_v20  ;;  %v5666_v33 = vmul.f32 %v12528_v6, %v12533_v21  ;;  %v5667_v46 = vmul.f32 %v12537_v9, %v12533_v21  ;;  %v1793_v51 = vadd.f32 %v1789_v0, %v12557_v18 }
 0x3dc   : > { %v1808_v35 = vpop.permute.xlu0 %1807  ;;  %2738 = vrot.lane.b32.xlu1 %v2733_v63, %s8041_s25  ;;  %v5323_v3 = vrot.slane %v5317_v61, 1  ;;  %v12671_v19 = vsel %vm473_vm0, %v3102_v2, %v3104_v43  ;;  %v2772_v12 = vrot.slane %v2765_v1, 1  ;;  %v5324_v49 = vrot.slane %v5318_v13, 1 }
 0x3dd   : > { %v1813_v24 = vadd.f32 %v1808_v35, %v1792_v8  ;;  %v5319_v23 = vmul.f32 %v13811_v17, %v12549_v7  ;;  %v2786_v10 = vmul.f32 %v12627_v31, %v13810_v54  ;;  %v4454_v18 = vadd.f32 %v4449_v52, %v12584_v30 }
 0x3de   : > { %5294 = vrot.lane.b32.xlu0 %v5290_v29, %s8041_s25  ;;  %v1810_v15 = vpop.permute.xlu1 %1809  ;;  %v5615_v2 = vmul.f32 %v12658_v56, %v12513_v37  ;;  %v3163_v43 = vrot.slane %v3156_v39, 2  ;;  %v5672_v63 = vrot.slane %v5666_v33, 2  ;;  %v5673_v1 = vrot.slane %v5667_v46, 2 }
 0x3df   : > { %v1814_v0 = vadd.f32 %v1810_v15, %v1793_v51  ;;  %v2016_v62 = vadd.f32 %v2014_v55, %v1813_v24  ;;  %v5668_v7 = vmul.f32 %v12658_v56, %v12533_v21  ;;  %v4455_v13 = vadd.f32 %v4451_v47, %v12608_v57 }
 0x3e0   : > { %v4468_v61 = vpop.permute.xlu0 %4467  ;;  %5296 = vrot.lane.b32.xlu1 %v5291_v59, %s8041_s25  ;;  %v5622_v35 = vrot.slane %v5615_v2, 1  ;;  %v2773_v55 = vsel %vm473_vm0, %v2770_v34, %v2772_v12  ;;  %v12692_v37 = vsel %vm543_vm1, %v3161_v27, %v3163_v43  ;;  %v12695_v52 = vsel %vm543_vm1, %v5672_v63, %v5673_v1 }
 0x3e1   : > { %v4473_v8 = vadd.f32 %v4468_v61, %v4454_v18  ;;  %v2017_v29 = vadd.f32 %v2015_v11, %v1814_v0  ;;  %v5675_v59 = vrot.slane %v5668_v7, 2  ;;  %v5326_v47 = vrot.slane %v5319_v23, 1 }
 0x3e2   : > { %2774 = vrot.lane.b32.xlu0 %v2771_v41, %s8040_s23  ;;  %v4470_v30 = vpop.permute.xlu1 %4469  ;;  %v12700_v11 = vsel %vm473_vm0, %v5620_v25, %v5622_v35  ;;  %v5325_v27 = vsel %vm473_vm0, %v5323_v3, %v5324_v49  ;;  %v2791_v34 = vrot.slane %v12650_v28, 1  ;;  %v2790_v25 = vrot.slane %v12640_v53, 1 }
 0x3e3   : > { %v4474_v21 = vadd.f32 %v4470_v30, %v4455_v13  ;;  %v4654_v57 = vadd.f32 %v4652_v36, %v4473_v8  ;;  %v12704_v32 = vsel %vm543_vm1, %v5673_v1, %v5675_v59  ;;  %v5337_v36 = vmul.f32 %v13805_v48, %v12627_v31 }
 0x3e4   : > { %v2025_v41 = vpop.permute.xlu0 %2024  ;;  %2776 = vrot.lane.b32.xlu1 %v2773_v55, %s8040_s23  ;;  %v2821_v33 = vstv %s12678_s29  ;;  %v5327_v46 = vsel %vm473_vm0, %v5324_v49, %v5326_v47  ;;  %v2793_v51 = vrot.slane %v2786_v10, 1  ;;  %v5336_v24 = vmul.f32 %v13804_v60, %v12627_v31 }
 0x3e5   : > { %v4655_v39 = vadd.f32 %v4653_v16, %v4474_v21  ;;  %v5338_v28 = vmul.f32 %v13811_v17, %v12627_v31  ;;  %v2823_v3 = vmul.f32 %v2821_v33, %v13801_v50  ;;  %v2792_v15 = vsel %vm473_vm0, %v2790_v25, %v2791_v34 }
 0x3e6   : > { %5328 = vrot.lane.b32.xlu0 %v5325_v27, %s8040_s23  ;;  %v2027_v45 = vpop.permute.xlu1 %2026  ;;  %v5343_v12 = vrot.slane %v5337_v36, 1  ;;  %v2822_v49 = vmul.f32 %v2821_v33, %v13799_v38  ;;  %v2824_v23 = vmul.f32 %v2821_v33, %v13810_v54  ;;  %v2030_v10 = vadd.f32 %v2025_v41, %v2016_v62  ;;  %v13812_v41 = vld [vmem:[#allocation87_spill] sm:$0xff] }
 0x3e7   : > { %v2794_v18 = vsel %vm473_vm0, %v2791_v34, %v2793_v51  ;;  %v5342_v0 = vrot.slane %v5336_v24, 1  ;;  %v5345_v31 = vrot.slane %v5338_v28, 1  ;;  %v2829_v61 = vrot.slane %v2823_v3, 2 }
 0x3e8   : > { %v4661_v16 = vpop.permute.xlu0 %4660  ;;  %5330 = vrot.lane.b32.xlu1 %v5327_v46, %s8040_s23  ;;  %v5371_v43 = vmul.f32 %v13805_v48, %v2821_v33  ;;  %v2031_v63 = vadd.f32 %v2027_v45, %v2017_v29  ;;  %v2842_v13 = vstv %s7455_s10  ;;  %v2828_v35 = vrot.slane %v2822_v49, 2  ;;  %v13813_v46 = vld [vmem:[#allocation24_spill] sm:$0xff] }
 0x3e9   : > { %v5344_v7 = vsel %vm473_vm0, %v5342_v0, %v5343_v12  ;;  %v2831_v62 = vrot.slane %v2824_v23, 2  ;;  %v5370_v30 = vmul.f32 %v13804_v60, %v2821_v33  ;;  %v5372_v55 = vmul.f32 %v13811_v17, %v2821_v33  ;;  %v13815_v0 = vld [vmem:[#allocation26_spill] sm:$0xff] }
 0x3ea   : > { %2795 = vrot.lane.b32.xlu0 %v2792_v15, %s8041_s25  ;;  %v4663_v53 = vpop.permute.xlu1 %4662  ;;  %v4666_v59 = vadd.f32 %v4661_v16, %v4654_v57  ;;  %v5346_v47 = vsel %vm473_vm0, %v5343_v12, %v5345_v31  ;;  %v2830_v34 = vsel %vm543_vm1, %v2828_v35, %v2829_v61  ;;  %v5377_v36 = vrot.slane %v5371_v43, 2  ;;  %v13814_v12 = vld [vmem:[#allocation42_spill] sm:$0xff] }
 0x3eb   : > { %v4667_v45 = vadd.f32 %v4663_v53, %v4655_v39  ;;  %v2844_v24 = vmul.f32 %v2842_v13, %v13801_v50  ;;  %v5376_v33 = vrot.slane %v5370_v30, 2  ;;  %v2843_v28 = vmul.f32 %v2842_v13, %v13799_v38 }
 0x3ec   : > { %v2039_v2 = vpop.permute.xlu0 %2038  ;;  %2797 = vrot.lane.b32.xlu1 %v2794_v18, %s8041_s25  ;;  %v2845_v16 = vmul.f32 %v2842_v13, %v13810_v54  ;;  %v2832_v15 = vsel %vm543_vm1, %v2829_v61, %v2831_v62  ;;  %v5379_v23 = vrot.slane %v5372_v55, 2  ;;  %v5389_v61 = vmul.f32 %v13804_v60, %v2842_v13 }
 0x3ed   : > { %v2044_v1 = vadd.f32 %v2039_v2, %v2030_v10  ;;  %v5378_v53 = vsel %vm543_vm1, %v5376_v33, %v5377_v36  ;;  %v2850_v18 = vrot.slane %v2844_v24, 2  ;;  %v5390_v2 = vmul.f32 %v13805_v48, %v2842_v13 }
 0x3ee   : > { %5347 = vrot.lane.b32.xlu0 %v5344_v7, %s8041_s25  ;;  %v2041_v8 = vpop.permute.xlu1 %2040  ;;  %v2849_v43 = vrot.slane %v2843_v28, 2  ;;  %v2852_v7 = vrot.slane %v2845_v16, 2  ;;  %v13817_v28 = vld [vmem:[#allocation52_spill] sm:$0xff] }
 0x3ef   : > { %v2045_v21 = vadd.f32 %v2041_v8, %v2031_v63  ;;  %v2061_v27 = vadd.f32 %v13812_v41, %v2044_v1  ;;  %v5380_v1 = vsel %vm543_vm1, %v5377_v36, %v5379_v23  ;;  %v5391_v8 = vmul.f32 %v13811_v17, %v2842_v13 }
 0x3f0   : > { %v4673_v29 = vpop.permute.xlu0 %4672  ;;  %5349 = vrot.lane.b32.xlu1 %v5346_v47, %s8041_s25  ;;  %v2851_v30 = vsel %vm543_vm1, %v2849_v43, %v2850_v18  ;;  %v5396_v55 = vrot.slane %v5390_v2, 2  ;;  %v2853_v47 = vsel %vm543_vm1, %v2850_v18, %v2852_v7  ;;  %v5395_v41 = vrot.slane %v5389_v61, 2 }
 0x3f1   : > { %v4678_v25 = vadd.f32 %v4673_v29, %v4666_v59  ;;  %v2062_v51 = vadd.f32 %v13813_v46, %v2045_v21  ;;  %v3066_v13 = vstv %s7467_s15  ;;  %v13816_v46 = vld [vmem:[#allocation28_spill] sm:$0xff]  ;;  %v3080_v18 = vstv %s7468_s17 }
 0x3f2   : > { %2833 = vrot.lane.b32.xlu0 %v2830_v34, %s8040_s23  ;;  %v4675_v57 = vpop.permute.xlu1 %4674  ;;  %v5397_v17 = vsel %vm543_vm1, %v5395_v41, %v5396_v55  ;;  %v3111_v61 = vstv %s7470_s22  ;;  %v5601_v41 = vmul.f32 %v12528_v6, %v3080_v18  ;;  %s3211_s22 = sld [smem:[#allocation3]] }
 0x3f3   : > { %v4679_v3 = vadd.f32 %v4675_v57, %v4667_v45  ;;  %v4693_v49 = vadd.f32 %v13814_v12, %v4678_v25  ;;  %v3067_v57 = vmul.f32 %v3066_v13, %v12517_v22 }
 0x3f4   : > { %v2077_v39 = vpop.permute.xlu0 %2076  ;;  %2835 = vrot.lane.b32.xlu1 %v2832_v15, %s8040_s23  ;;  %v3068_v15 = vmul.f32 %v3066_v13, %v12524_v5 }
 0x3f5   : > { %v2082_v10 = vadd.f32 %v2077_v39, %v2061_v27  ;;  %v4694_v31 = vadd.f32 %v13815_v0, %v4679_v3  ;;  %v5398_v27 = vrot.slane %v5391_v8, 2  ;;  %v13819_v0 = vld [vmem:[#allocation54_spill] sm:$0xff]  ;;  %v3113_v8 = vmul.f32 %v3111_v61, %v12524_v5 }
 0x3f6   : > { %5381 = vrot.lane.b32.xlu0 %v5378_v53, %s8040_s23  ;;  %v2079_v54 = vpop.permute.xlu1 %2078  ;;  %v5589_v53 = vmul.f32 %v12528_v6, %v3066_v13 }
 0x3f7   : > { %v2083_v63 = vadd.f32 %v2079_v54, %v2062_v51  ;;  %v5399_v25 = vsel %vm543_vm1, %v5396_v55, %v5398_v27  ;;  %v5590_v54 = vmul.f32 %v12537_v9, %v3066_v13  ;;  %v3112_v55 = vmul.f32 %v3111_v61, %v12517_v22 }
 0x3f8   : > { %v4707_v35 = vpop.permute.xlu0 %4706  ;;  %5383 = vrot.lane.b32.xlu1 %v5380_v1, %s8040_s23  ;;  %v3081_v1 = vmul.f32 %v3080_v18, %v12517_v22 }
 0x3f9   : > { %v4712_v62 = vadd.f32 %v4707_v35, %v4693_v49  ;;  %v13818_v49 = vld [vmem:[#allocation47_spill] sm:$0xff]  ;;  %v2362_v35 = vstv %s7428_s30  ;;  %s375_s30 = sand.u32 1, %s8027_s12  }
 0x3fa   : > { %2854 = vrot.lane.b32.xlu0 %v2851_v30, %s8041_s25  ;;  %v4709_v59 = vpop.permute.xlu1 %4708  ;;  %v3082_v30 = vmul.f32 %v3080_v18, %v12524_v5  ;;  %v2363_v27 = vmul.f32 %v2362_v35, %v13782_v44  ;;  %v2364_v13 = vmul.f32 %v2362_v35, %v13748_v40  ;;  %v4963_v40 = vmul.f32 %v13753_v58, %v2362_v35  ;;  %s13004_s17 = scalar_lea.sflag [#allocation5], %s375_s30 }
 0x3fb   : > { %v4713_v21 = vadd.f32 %v4709_v59, %v4694_v31 }
 0x3fc   : > { %v2098_v29 = vpop.permute.xlu0 %2097  ;;  %2856 = vrot.lane.b32.xlu1 %v2853_v47, %s8041_s25 }
 0x3fd   : > { %v2103_v34 = vadd.f32 %v2098_v29, %v2082_v10 }
 0x3fe   : > { %5400 = vrot.lane.b32.xlu0 %v5397_v17, %s8041_s25  ;;  %v2100_v36 = vpop.permute.xlu1 %2099  ;;  %v5629_v17 = vmul.f32 %v12537_v9, %v3111_v61 }
 0x3ff   : > { %v2104_v45 = vadd.f32 %v2100_v36, %v2083_v63  ;;  %v2120_v51 = vadd.f32 %v13816_v46, %v2103_v34  ;;  %v3119_v34 = vrot.slane %v3113_v8, 1  ;;  %v5628_v46 = vmul.f32 %v12528_v6, %v3111_v61 }
 0x400   : > { %v4726_v24 = vpop.permute.xlu0 %4725  ;;  %5402 = vrot.lane.b32.xlu1 %v5399_v25, %s8041_s25  ;;  %v3118_v25 = vrot.slane %v3112_v55, 1 }
 0x401   : > { %v4731_v33 = vadd.f32 %v4726_v24, %v4712_v62  ;;  %v2121_v16 = vadd.f32 %v13817_v28, %v2104_v45  ;;  %v5602_v45 = vmul.f32 %v12537_v9, %v3080_v18 }
 0x402   : > { %3071 = vrot.lane.b32.xlu0 %v3067_v57, %s8040_s23  ;;  %v4728_v3 = vpop.permute.xlu1 %4727 }
 0x403   : > { %v4732_v12 = vadd.f32 %v4728_v3, %v4713_v21  ;;  %v4746_v23 = vadd.f32 %v13818_v49, %v4731_v33  ;;  %v3114_v21 = vmul.f32 %v3111_v61, %v12605_v20  ;;  %v5630_v33 = vmul.f32 %v12658_v56, %v3111_v61 }
 0x404   : > { %v2136_v39 = vpop.permute.xlu0 %2135  ;;  %3073 = vrot.lane.b32.xlu1 %v3068_v15, %s8040_s23  ;;  %v3120_v15 = vsel %vm473_vm0, %v3118_v25, %v3119_v34 }
 0x405   : > { %v2141_v10 = vadd.f32 %v2136_v39, %v2120_v51  ;;  %v4747_v31 = vadd.f32 %v13819_v0, %v4732_v12  ;;  %v3132_v51 = vstv %s7471_s26  ;;  %v3121_v44 = vrot.slane %v3114_v21, 1  ;;  %s7323_s26 = sshll.u32 %s375_s30, 4 }
 0x406   : > { %5593 = vrot.lane.b32.xlu0 %v5589_v53, %s8040_s23  ;;  %v2138_v2 = vpop.permute.xlu1 %2137  ;;  %v5635_v12 = vrot.slane %v5629_v17, 1  ;;  %v5634_v39 = vrot.slane %v5628_v46, 1  ;;  %v3133_v53 = vmul.f32 %v3132_v51, %v12517_v22  ;;  %v3135_v18 = vmul.f32 %v3132_v51, %v12605_v20 }
 0x407   : > { %v2142_v43 = vadd.f32 %v2138_v2, %v2121_v16  ;;  %v3134_v16 = vmul.f32 %v3132_v51, %v12524_v5  ;;  %v3122_v58 = vsel %vm473_vm0, %v3119_v34, %v3121_v44  ;;  %v5637_v2 = vrot.slane %v5630_v33, 1 }
 0x408   : > { %v4760_v63 = vpop.permute.xlu0 %4759  ;;  %5595 = vrot.lane.b32.xlu1 %v5590_v54, %s8040_s23  ;;  %v3139_v8 = vrot.slane %v3133_v53, 1  ;;  %v5649_v21 = vmul.f32 %v12658_v56, %v3132_v51 }
 0x409   : > { %v4765_v7 = vadd.f32 %v4760_v63, %v4746_v23  ;;  %v5636_v63 = vsel %vm473_vm0, %v5634_v39, %v5635_v12  ;;  %v5638_v55 = vsel %vm473_vm0, %v5635_v12, %v5637_v2  ;;  %v3191_v12 = vstv %s7474_s28  ;;  %v13820_v39 = vld [vmem:[#allocation55_spill] sm:$0xff]  ;;  %v13821_v2 = vld [vmem:[#allocation62_spill] sm:$0xff] }
 0x40a   : > { %3085 = vrot.lane.b32.xlu0 %v3081_v1, %s8041_s25  ;;  %v4762_v62 = vpop.permute.xlu1 %4761 }
 0x40b   : > { %v4766_v59 = vadd.f32 %v4762_v62, %v4747_v31  ;;  %v3170_v62 = vstv %s12785_s27  ;;  %s12923_s27 = scalar_lea.vmem [#allocation11], %s7323_s26  ;;  %s8043_s26 = smov [#allocation11]  }
 0x40c   : > { %v2157_v47 = vpop.permute.xlu0 %2156  ;;  %3087 = vrot.lane.b32.xlu1 %v3082_v30, %s8041_s25  ;;  %v3172_v34 = vmul.f32 %v3170_v62, %v12524_v5 }
 0x40d   : > { %v2162_v29 = vadd.f32 %v2157_v47, %v2141_v10  ;;  %v4964_v10 = vmul.f32 %v13779_v26, %v2362_v35  ;;  %v5647_v35 = vmul.f32 %v12528_v6, %v3132_v51 }
 0x40e   : > { %5605 = vrot.lane.b32.xlu0 %v5601_v41, %s8041_s25  ;;  %v2159_v36 = vpop.permute.xlu1 %2158 }
 0x40f   : > { %v2163_v24 = vadd.f32 %v2159_v36, %v2142_v43  ;;  %v2365_v57 = vadd.f32 %v2363_v27, %v2162_v29  ;;  %v3140_v43 = vrot.slane %v3134_v16, 1  ;;  %v3173_v36 = vmul.f32 %v3170_v62, %v12605_v20 }
 0x410   : > { %v4779_v28 = vpop.permute.xlu0 %4778  ;;  %5607 = vrot.lane.b32.xlu1 %v5602_v45, %s8041_s25  ;;  %v5653_v46 = vrot.slane %v5647_v35, 1  ;;  %v13822_v35 = vld [vmem:[#allocation58_spill] sm:$0xff] }
 0x411   : > { %v4784_v3 = vadd.f32 %v4779_v28, %v4765_v7  ;;  %v2366_v49 = vadd.f32 %v2364_v13, %v2163_v24  ;;  %v5648_v7 = vmul.f32 %v12537_v9, %v3132_v51  ;;  %v3141_v27 = vsel %vm473_vm0, %v3139_v8, %v3140_v43 }
 0x412   : > { %3123 = vrot.lane.b32.xlu0 %v3120_v15, %s8040_s23  ;;  %v4781_v23 = vpop.permute.xlu1 %4780  ;;  %v3171_v13 = vmul.f32 %v3170_v62, %v12517_v22  ;;  %v5656_v51 = vrot.slane %v5649_v21, 1  ;;  %v3178_v28 = vrot.slane %v3172_v34, 2  ;;  %v5681_v15 = vmul.f32 %v12528_v6, %v3170_v62 }
 0x413   : > { %v4785_v0 = vadd.f32 %v4781_v23, %v4766_v59  ;;  %v4965_v31 = vadd.f32 %v4963_v40, %v4784_v3  ;;  %v3142_v59 = vrot.slane %v3135_v18, 1  ;;  %v5654_v29 = vrot.slane %v5648_v7, 1 }
 0x414   : > { %v2374_v54 = vpop.permute.xlu0 %2373  ;;  %3125 = vrot.lane.b32.xlu1 %v3122_v58, %s8040_s23  ;;  %v3177_v16 = vrot.slane %v3171_v13, 2  ;;  %v3180_v3 = vrot.slane %v3173_v36, 2  ;;  %v3194_v7 = vmul.f32 %v3191_v12, %v12605_v20 }
 0x415   : > { %v2379_v61 = vadd.f32 %v2374_v54, %v2365_v57  ;;  %v4966_v1 = vadd.f32 %v4964_v10, %v4785_v0  ;;  %v3143_v25 = vsel %vm473_vm0, %v3140_v43, %v3142_v59  ;;  %v5682_v57 = vmul.f32 %v12537_v9, %v3170_v62 }
 0x416   : > { %5639 = vrot.lane.b32.xlu0 %v5636_v63, %s8040_s23  ;;  %v2376_v26 = vpop.permute.xlu1 %2375  ;;  %v5655_v33 = vsel %vm473_vm0, %v5653_v46, %v5654_v29  ;;  %v5657_v23 = vsel %vm473_vm0, %v5654_v29, %v5656_v51  ;;  %v5683_v10 = vmul.f32 %v12658_v56, %v3170_v62  ;;  %v3193_v43 = vmul.f32 %v3191_v12, %v12524_v5  ;;  %v7898_v51 = vld [vmem:[%s8216_s18] sm:$0xff] }
 0x417   : > { %v2380_v30 = vadd.f32 %v2376_v26, %v2366_v49  ;;  %v5688_v0 = vrot.slane %v5682_v57, 2  ;;  %v5687_v63 = vrot.slane %v5681_v15, 2  ;;  %v3181_v8 = vsel %vm543_vm1, %v3178_v28, %v3180_v3  ;;  %v7899_v57 = vld [vmem:[%s8216_s18 + $0x8] sm:$0xff]  ;;  %v7900_v15 = vld [vmem:[%s8347_s24] sm:$0xff] }
 0x418   : > { %v4972_v47 = vpop.permute.xlu0 %4971  ;;  %5641 = vrot.lane.b32.xlu1 %v5638_v55, %s8040_s23  ;;  %v5701_v29 = vmul.f32 %v12537_v9, %v3191_v12 }
 0x419   : > { %v4977_v41 = vadd.f32 %v4972_v47, %v4965_v31  ;;  %v3179_v31 = vsel %vm543_vm1, %v3177_v16, %v3178_v28  ;;  %v5689_v59 = vsel %vm543_vm1, %v5687_v63, %v5688_v0  ;;  %v3199_v47 = vrot.slane %v3193_v43, 2 }
 0x41a   : > { %3144 = vrot.lane.b32.xlu0 %v3141_v27, %s8041_s25  ;;  %v4974_v17 = vpop.permute.xlu1 %4973  ;;  %v6783_v63 = vmul.f32 %v7899_v57, %v7899_v57 }
 0x41b   : > { %v4978_v45 = vadd.f32 %v4974_v17, %v4966_v1  ;;  %v3192_v1 = vmul.f32 %v3191_v12, %v12517_v22  ;;  %v5700_v17 = vmul.f32 %v12528_v6, %v3191_v12 }
 0x41c   : > { %v2388_v24 = vpop.permute.xlu0 %2387  ;;  %3146 = vrot.lane.b32.xlu1 %v3143_v25, %s8041_s25  ;;  %v5702_v25 = vmul.f32 %v12658_v56, %v3191_v12  ;;  %v7901_v56 = vld [vmem:[%s8347_s24 + $0x8] sm:$0xff] }
 0x41d   : > { %v2393_v44 = vadd.f32 %v2388_v24, %v2379_v61  ;;  %v3198_v34 = vrot.slane %v3192_v1, 2  ;;  %v3218_v24 = vrot.slane %v7898_v51, 2  ;;  %v5706_v3 = vrot.slane %v5700_v17, 2  ;;  %v13825_v17 = vld [vmem:[#allocation94_spill] sm:$0xff] }
 0x41e   : > { %5658 = vrot.lane.b32.xlu0 %v5655_v33, %s8041_s25  ;;  %v2390_v40 = vpop.permute.xlu1 %2389  ;;  %v6249_v12 = vmul.f32 %v7901_v56, %v7901_v56 }
 0x41f   : > { %v2394_v49 = vadd.f32 %v2390_v40, %v2380_v30  ;;  %v2410_v53 = vadd.f32 %v13820_v39, %v2393_v44  ;;  %v5690_v30 = vrot.slane %v5683_v10, 2  ;;  %v3219_v44 = vrot.slane %v7899_v57, 2  ;;  %v7902_v10 = vld [vmem:[%s8347_s24 + $0x10] sm:$0xf]  ;;  %s7466_s24 = sld [smem:[#allocation10 + $0x3f]] }
 0x420   : > { %v4984_v18 = vpop.permute.xlu0 %4983  ;;  %5660 = vrot.lane.b32.xlu1 %v5657_v23, %s8041_s25  ;;  %v3200_v28 = vsel %vm543_vm1, %v3198_v34, %v3199_v47  ;;  %v5707_v40 = vrot.slane %v5701_v29, 2  ;;  %v5727_v29 = vrot.slane %v7902_v10, 2 }
 0x421   : > { %v4989_v58 = vadd.f32 %v4984_v18, %v4977_v41  ;;  %v2411_v54 = vadd.f32 %v13821_v2, %v2394_v49  ;;  %v13823_v41 = vld [vmem:[#allocation67_spill] sm:$0xff]  ;;  %v5691_v36 = vsel %vm543_vm1, %v5688_v0, %v5690_v30  ;;  %v6248_v49 = vmul.f32 %v7900_v15, %v7900_v15 }
 0x422   : > { %3182 = vrot.lane.b32.xlu0 %v3179_v31, %s8040_s23  ;;  %v4986_v61 = vpop.permute.xlu1 %4985  ;;  %v6250_v18 = vmul.f32 %v7902_v10, %v7902_v10  ;;  %v7903_v31 = vld [vmem:[%s8216_s18 + $0x10] sm:$0xf]  ;;  %s7447_s18 = sld [smem:[#allocation10 + $0x36]] }
 0x423   : > { %v4990_v26 = vadd.f32 %v4986_v61, %v4978_v45  ;;  %v5004_v62 = vadd.f32 %v13822_v35, %v4989_v58  ;;  %v3201_v45 = vrot.slane %v3194_v7, 2  ;;  %v3220_v58 = vsel %vm543_vm1, %v3218_v24, %v3219_v44  ;;  %v13826_v24 = vld [vmem:[#allocation43_spill] sm:$0xff] }
 0x424   : > { %v2426_v55 = vpop.permute.xlu0 %2425  ;;  %3184 = vrot.lane.b32.xlu1 %v3181_v8, %s8040_s23  ;;  %v3221_v2 = vrot.slane %v7903_v31, 2  ;;  %v5708_v61 = vsel %vm543_vm1, %v5706_v3, %v5707_v40  ;;  %v6784_v1 = vmul.f32 %v7903_v31, %v7903_v31  ;;  %v5725_v8 = vrot.slane %v7901_v56, 2  ;;  %v13827_v3 = vld [vmem:[#allocation60_spill] sm:$0xff] }
 0x425   : > { %v2431_v21 = vadd.f32 %v2426_v55, %v2410_v53  ;;  %v5005_v27 = vadd.f32 %v13823_v41, %v4990_v26  ;;  %v3202_v39 = vsel %vm543_vm1, %v3199_v47, %v3201_v45  ;;  %v5709_v53 = vrot.slane %v5702_v25, 2 }
 0x426   : > { %5692 = vrot.lane.b32.xlu0 %v5689_v59, %s8040_s23  ;;  %v2428_v20 = vpop.permute.xlu1 %2427  ;;  %v5724_v26 = vrot.slane %v7900_v15, 2  ;;  %v6254_v35 = vrot.slane %v6248_v49, 2  ;;  %v13824_v59 = vld [vmem:[#allocation61_spill] sm:$0xff]  ;;  %v6257_v41 = vrot.slane %v6250_v18, 2  ;;  %v6789_v45 = vrot.slane %v6783_v63, 2 }
 0x427   : > { %v2432_v13 = vadd.f32 %v2428_v20, %v2411_v54  ;;  %v6782_v54 = vmul.f32 %v7898_v51, %v7898_v51  ;;  %v5710_v55 = vsel %vm543_vm1, %v5707_v40, %v5709_v53  ;;  %v6791_v25 = vrot.slane %v6784_v1, 2 }
 0x428   : > { %v5018_v46 = vpop.permute.xlu0 %5017  ;;  %5694 = vrot.lane.b32.xlu1 %v5691_v36, %s8040_s23  ;;  %s8042_s23 = smov 0.0  }
 0x429   : > { %v5023_v33 = vadd.f32 %v5018_v46, %v5004_v62  ;;  %v6255_v62 = vrot.slane %v6249_v12, 2  ;;  %v6788_v20 = vrot.slane %v6782_v54, 2  ;;  %v5726_v46 = vsel %vm543_vm1, %v5724_v26, %v5725_v8  ;;  %7774 = sst [smem:[#allocation2]] (%p13836_p12), %s8042_s23 }
 0x42a   : > { %3203 = vrot.lane.b32.xlu0 %v3200_v28, %s8041_s25  ;;  %v5020_v16 = vpop.permute.xlu1 %5019  ;;  %v6792_v56 = vsel %vm543_vm1, %v6789_v45, %v6791_v25  ;;  %v13828_v25 = vld [vmem:[#allocation73_spill] sm:$0xff] }
 0x42b   : > { %v5024_v23 = vadd.f32 %v5020_v16, %v5005_v27  ;;  %v6256_v28 = vsel %vm543_vm1, %v6254_v35, %v6255_v62  ;;  %v6790_v49 = vsel %vm543_vm1, %v6788_v20, %v6789_v45 }
 0x42c   : > { %v2447_v0 = vpop.permute.xlu0 %2446  ;;  %3205 = vrot.lane.b32.xlu1 %v3202_v39, %s8041_s25  ;;  %v7851_v10 = vpack.i.bf16 %v6792_v56, %v6790_v49 }
 0x42d   : > { %v2452_v43 = vadd.f32 %v2447_v0, %v2431_v21  ;;  %v3222_v21 = vsel %vm543_vm1, %v3219_v44, %v3221_v2  ;;  %v6258_v44 = vsel %vm543_vm1, %v6255_v62, %v6257_v41 }
 0x42e   : > { %5711 = vrot.lane.b32.xlu0 %v5708_v61, %s8041_s25  ;;  %v2449_v7 = vpop.permute.xlu1 %2448 }
 0x42f   : > { %v2453_v30 = vadd.f32 %v2449_v7, %v2432_v13  ;;  %v2469_v47 = vadd.f32 %v13824_v59, %v2452_v43 }
 0x430   : > { %v5037_v27 = vpop.permute.xlu0 %5036  ;;  %5713 = vrot.lane.b32.xlu1 %v5710_v55, %s8041_s25 }
 0x431   : > { %v5042_v34 = vadd.f32 %v5037_v27, %v5023_v33  ;;  %v2470_v36 = vadd.f32 %v13825_v17, %v2453_v30  ;;  %v5728_v33 = vsel %vm543_vm1, %v5725_v8, %v5727_v29 }
 0x432   : > { %3223 = vrot.lane.b32.xlu0 %v3220_v58, %s8041_s25  ;;  %v5039_v13 = vpop.permute.xlu1 %5038  ;;  %v2711_v58 = vstv %s7447_s18 }
 0x433   : > { %v5043_v51 = vadd.f32 %v5039_v13, %v5024_v23  ;;  %v5057_v57 = vadd.f32 %v13826_v24, %v5042_v34  ;;  %v7846_v23 = vpack.i.bf16 %v6258_v44, %v6256_v28  ;;  %v2712_v43 = vmul.f32 %v2711_v58, %v13799_v38  ;;  %v12877_v38 = vld [vmem:[%s13071_s6] sm:$0xff] }
 0x434   : > { %v2485_v40 = vpop.permute.xlu0 %2484  ;;  %3225 = vrot.lane.b32.xlu1 %v3222_v21, %s8041_s25  ;;  %v2713_v7 = vmul.f32 %v2711_v58, %v13801_v50  ;;  %v5274_v62 = vmul.f32 %v13804_v60, %v2711_v58  ;;  %7584 = vmatprep.mubr.msk.f32.mxu0 %vm5757_vm9, %v12877_v38 }
 0x435   : > { %v2490_v16 = vadd.f32 %v2485_v40, %v2469_v47  ;;  %v5058_v15 = vadd.f32 %v13827_v3, %v5043_v51  ;;  %v5275_v47 = vmul.f32 %v13805_v48, %v2711_v58 }
 0x436   : > { %5729 = vrot.lane.b32.xlu0 %v5726_v46, %s8041_s25  ;;  %v2487_v12 = vpop.permute.xlu1 %2486 }
 0x437   : > { %v2491_v39 = vadd.f32 %v2487_v12, %v2470_v36 }
 0x438   : > { %v5071_v53 = vpop.permute.xlu0 %5070  ;;  %5731 = vrot.lane.b32.xlu1 %v5728_v33, %s8041_s25  ;;  %v13830_v33 = vld [vmem:[#allocation21_spill] sm:$0xff] }
 0x439   : > { %v5076_v18 = vadd.f32 %v5071_v53, %v5057_v57  ;;  %v13829_v57 = vld [vmem:[#allocation29_spill] sm:$0xff] }
 0x43a   : > { %v5073_v0 = vpop.permute.xlu1 %5072  ;;  %7847 = vrot.lane.b32.xlu0 %v7846_v23, %s8041_s25 }
 0x43b   : > { %v5077_v31 = vadd.f32 %v5073_v0, %v5058_v15  ;;  %v13831_v15 = vld [vmem:[#allocation79_spill] sm:$0xff] }
 0x43c   : > { %v2506_v2 = vpop.permute.xlu0 %2505  ;;  %7852 = vrot.lane.b32.xlu1 %v7851_v10, %s8041_s25  ;;  %s7515_s25 = sshll.u32 %s8121_s5, 8 }
 0x43d   : > { %v2511_v54 = vadd.f32 %v2506_v2, %v2490_v16  ;;  %v13832_v2 = vld [vmem:[#allocation57_spill] sm:$0xff]  ;;  %s12998_s15 = scalar_lea.hbm %s13073_s8, %s7515_s25 }
 0x43e   : > { %v2508_v61 = vpop.permute.xlu1 %2507 }
 0x43f   : > { %v2512_v63 = vadd.f32 %v2508_v61, %v2491_v39  ;;  %v2714_v1 = vadd.f32 %v2712_v43, %v2511_v54 }
 0x440   : > { %v5090_v26 = vpop.permute.xlu0 %5089 }
 0x441   : > { %v5095_v8 = vadd.f32 %v5090_v26, %v5076_v18  ;;  %v2715_v35 = vadd.f32 %v2713_v7, %v2512_v63 }
 0x442   : > { %v5092_v30 = vpop.permute.xlu1 %5091 }
 0x443   : > { %v5096_v55 = vadd.f32 %v5092_v30, %v5077_v31  ;;  %v5276_v59 = vadd.f32 %v5274_v62, %v5095_v8 }
 0x444   : > { %v2723_v41 = vpop.permute.xlu0 %2722 }
 0x445   : > { %v2728_v27 = vadd.f32 %v2723_v41, %v2714_v1  ;;  %v5277_v21 = vadd.f32 %v5275_v47, %v5096_v55  ;;  %v13833_v1 = vld [vmem:[#allocation75_spill] sm:$0xff]  ;;  %v5762_v55 = vld [vmem:[%s13072_s7] sm:$0xff] }
 0x446   : > { %v2725_v29 = vpop.permute.xlu1 %2724  ;;  %v13835_v47 = vld [vmem:[#allocation37_spill] sm:$0xff] }
 0x447   : > { %v2729_v50 = vadd.f32 %v2725_v29, %v2715_v35  ;;  %v13834_v35 = vld [vmem:[#allocation30_spill] sm:$0xff] }
 0x448   : > { %v5283_v60 = vpop.permute.xlu0 %5282 }
 0x449   : > { %v5288_v48 = vadd.f32 %v5283_v60, %v5276_v59  ;;  %v5763_v59 = vld [vmem:[%s13072_s7 + $0x8] sm:$0xff]  ;;  %v3060_v60 = vstv %s7466_s24  ;;  %s7185_s24 = sshll.u32 %s12923_s27, 4  ;;  %s13000_s24 = int_to_ptr.vmem [resolvable:$true] %s7185_s24 }
 0x44a   : > { %v5285_v20 = vpop.permute.xlu1 %5284 }
 0x44b   : > { %v5289_v51 = vadd.f32 %v5285_v20, %v5277_v21 }
 0x44c   : > { %v2737_v34 = vpop.permute.xlu0 %2736 }
 0x44d   : > { %v2742_v17 = vadd.f32 %v2737_v34, %v2728_v27  ;;  %v12895_v27 = vpack.c.bf16 %v5763_v59, %v5762_v55 }
 0x44e   : > { %v2739_v36 = vpop.permute.xlu1 %2738 }
 0x44f   : > { %v2743_v45 = vadd.f32 %v2739_v36, %v2729_v50  ;;  %v2759_v13 = vadd.f32 %v13828_v25, %v2742_v17  ;;  %7697 = vmatprep.subr.bf16.mxu1 %v12895_v27 }
 0x450   : > { %v5295_v46 = vpop.permute.xlu0 %5294  ;;  %7699 = vmatpush3.bf16.msra.mxu1 %v12895_v27 }
 0x451   : > { %v5300_v24 = vadd.f32 %v5295_v46, %v5288_v48  ;;  %v2760_v28 = vadd.f32 %v13829_v57, %v2743_v45  ;;  %7705 = vmatprep.subr.bf16.mxu1 %v12895_v27  ;;  %v3061_v48 = vmul.f32 %v3060_v60, %v12517_v22 }
 0x452   : > { %v5297_v44 = vpop.permute.xlu1 %5296 }
 0x453   : > { %v5301_v40 = vadd.f32 %v5297_v44, %v5289_v51  ;;  %v5315_v16 = vadd.f32 %v13830_v33, %v5300_v24  ;;  %v3062_v51 = vmul.f32 %v3060_v60, %v12524_v5 }
 0x454   : > { %v2775_v3 = vpop.permute.xlu0 %2774 }
 0x455   : > { %v5316_v49 = vadd.f32 %v13831_v15, %v5301_v40  ;;  %v2780_v39 = vadd.f32 %v2775_v3, %v2759_v13  ;;  %v5585_v40 = vmul.f32 %v12528_v6, %v3060_v60  ;;  %v5586_v15 = vmul.f32 %v12537_v9, %v3060_v60 }
 0x456   : > { %v2777_v56 = vpop.permute.xlu1 %2776 }
 0x457   : > { %v2781_v10 = vadd.f32 %v2777_v56, %v2760_v28 }
 0x458   : > { %v5329_v12 = vpop.permute.xlu0 %5328 }
 0x459   : > { %v5334_v58 = vadd.f32 %v5329_v12, %v5315_v16 }
 0x45a   : > { %v5331_v23 = vpop.permute.xlu1 %5330 }
 0x45b   : > { %v5335_v61 = vadd.f32 %v5331_v23, %v5316_v49 }
 0x45c   : > { %v2796_v53 = vpop.permute.xlu0 %2795 }
 0x45d   : > { %v2801_v18 = vadd.f32 %v2796_v53, %v2780_v39 }
 0x45e   : > { %v2798_v0 = vpop.permute.xlu1 %2797 }
 0x45f   : > { %v2802_v31 = vadd.f32 %v2798_v0, %v2781_v10  ;;  %v2818_v54 = vadd.f32 %v13832_v2, %v2801_v18 }
 0x460   : > { %v5348_v43 = vpop.permute.xlu0 %5347 }
 0x461   : > { %v5353_v63 = vadd.f32 %v5348_v43, %v5334_v58  ;;  %v2819_v7 = vadd.f32 %v13833_v1, %v2802_v31 }
 0x462   : > { %v5350_v26 = vpop.permute.xlu1 %5349 }
 0x463   : > { %v5354_v8 = vadd.f32 %v5350_v26, %v5335_v61  ;;  %v5368_v62 = vadd.f32 %v13834_v35, %v5353_v63 }
 0x464   : > { %v2834_v30 = vpop.permute.xlu0 %2833 }
 0x465   : > { %v5369_v41 = vadd.f32 %v13835_v47, %v5354_v8  ;;  %v2839_v20 = vadd.f32 %v2834_v30, %v2818_v54 }
 0x466   : > { %v2836_v21 = vpop.permute.xlu1 %2835 }
 0x467   : > { %v2840_v17 = vadd.f32 %v2836_v21, %v2819_v7 }
 0x468   : > { %v5382_v29 = vpop.permute.xlu0 %5381 }
 0x469   : > { %v5387_v25 = vadd.f32 %v5382_v29, %v5368_v62 }
 0x46a   : > { %v5384_v50 = vpop.permute.xlu1 %5383 }
 0x46b   : > { %v5388_v57 = vadd.f32 %v5384_v50, %v5369_v41 }
 0x46c   : > { %v2855_v34 = vpop.permute.xlu0 %2854 }
 0x46d   : > { %v2860_v36 = vadd.f32 %v2855_v34, %v2839_v20 }
 0x46e   : > { %v2857_v45 = vpop.permute.xlu1 %2856 }
 0x46f   : > { %v2861_v13 = vadd.f32 %v2857_v45, %v2840_v17  ;;  %v3063_v46 = vadd.f32 %v3061_v48, %v2860_v36 }
 0x470   : > { %v5401_v24 = vpop.permute.xlu0 %5400 }
 0x471   : > { %v5406_v28 = vadd.f32 %v5401_v24, %v5387_v25  ;;  %v3064_v44 = vadd.f32 %v3062_v51, %v2861_v13 }
 0x472   : > { %v5403_v33 = vpop.permute.xlu1 %5402 }
 0x473   : > { %v5407_v16 = vadd.f32 %v5403_v33, %v5388_v57  ;;  %v5587_v3 = vadd.f32 %v5585_v40, %v5406_v28  ;;  %v3212_v28 = vstv %s3211_s22  ;;  %s7949_s22 = scalar_lea.vmem %s13000_s24, 256 }
 0x474   : > { %v3072_v49 = vpop.permute.xlu0 %3071  ;;  %p7950_p3 = scmp.ne.s32.totalorder %s13000_s24, %s7949_s22 }
 0x475   : > { %v5588_v56 = vadd.f32 %v5586_v15, %v5407_v16  ;;  %v3077_v39 = vadd.f32 %v3072_v49, %v3063_v46 }
 0x476   : > { %v3074_v22 = vpop.permute.xlu1 %3073  ;;  %p7951_p2 = pnand %p7950_p3, %p13837_p4 }
 0x477   : > { %v3078_v10 = vadd.f32 %v3074_v22, %v3064_v44 }
 0x478   : > { %v5594_v12 = vpop.permute.xlu0 %5593  ;;  %p7952_p9 = pneg %p7951_p2 }
 0x479   : > { %v5599_v0 = vadd.f32 %v5594_v12, %v5587_v3 }
 0x47a   : > { %v5596_v23 = vpop.permute.xlu1 %5595 }
 0x47b   : > { %v5600_v2 = vadd.f32 %v5596_v23, %v5588_v56 }
 0x47c   : > { %v3086_v53 = vpop.permute.xlu0 %3085 }
 0x47d   : > { %v3091_v5 = vadd.f32 %v3086_v53, %v3077_v39 }
 0x47e   : > { %v3088_v18 = vpop.permute.xlu1 %3087 }
 0x47f   : > { %v3092_v58 = vadd.f32 %v3088_v18, %v3078_v10  ;;  %v3108_v31 = vadd.f32 %v12589_v42, %v3091_v5 }
 0x480   : > { %v5606_v6 = vpop.permute.xlu0 %5605 }
 0x481   : > { %v5611_v54 = vadd.f32 %v5606_v6, %v5599_v0  ;;  %v3109_v43 = vadd.f32 %v12671_v19, %v3092_v58 }
 0x482   : > { %v5608_v9 = vpop.permute.xlu1 %5607 }
 0x483   : > { %v5612_v61 = vadd.f32 %v5608_v9, %v5600_v2  ;;  %v5626_v63 = vadd.f32 %v12600_v14, %v5611_v54 }
 0x484   : > { %v3124_v1 = vpop.permute.xlu0 %3123 }
 0x485   : > { %v5627_v7 = vadd.f32 %v12700_v11, %v5612_v61  ;;  %v3129_v62 = vadd.f32 %v3124_v1, %v3108_v31 }
 0x486   : > { %v3126_v26 = vpop.permute.xlu1 %3125 }
 0x487   : > { %v3130_v55 = vadd.f32 %v3126_v26, %v3109_v43 }
 0x488   : > { %v5640_v8 = vpop.permute.xlu0 %5639 }
 0x489   : > { %v5645_v47 = vadd.f32 %v5640_v8, %v5626_v63 }
 0x48a   : > { %v5642_v35 = vpop.permute.xlu1 %5641 }
 0x48b   : > { %v5646_v29 = vadd.f32 %v5642_v35, %v5627_v7 }
 0x48c   : > { %v3145_v30 = vpop.permute.xlu0 %3144 }
 0x48d   : > { %v3150_v59 = vadd.f32 %v3145_v30, %v3129_v62 }
 0x48e   : > { %v3147_v42 = vpop.permute.xlu1 %3146 }
 0x48f   : > { %v3151_v41 = vadd.f32 %v3147_v42, %v3130_v55  ;;  %v3167_v21 = vadd.f32 %v12622_v4, %v3150_v59 }
 0x490   : > { %v5659_v19 = vpop.permute.xlu0 %5658 }
 0x491   : > { %v5664_v50 = vadd.f32 %v5659_v19, %v5645_v47  ;;  %v3168_v14 = vadd.f32 %v12692_v37, %v3151_v41 }
 0x492   : > { %v5661_v60 = vpop.permute.xlu1 %5660 }
 0x493   : > { %v5665_v20 = vadd.f32 %v5661_v60, %v5646_v29  ;;  %v5679_v11 = vadd.f32 %v12695_v52, %v5664_v50  ;;  %v5761_v60 = vld [vmem:[%s13071_s6 + $0x8] sm:$0xff] }
 0x494   : > { %v3183_v34 = vpop.permute.xlu0 %3182 }
 0x495   : > { %v5680_v17 = vadd.f32 %v12704_v32, %v5665_v20  ;;  %v3188_v46 = vadd.f32 %v3183_v34, %v3167_v21 }
 0x496   : > { %v3185_v36 = vpop.permute.xlu1 %3184 }
 0x497   : > { %v3189_v51 = vadd.f32 %v3185_v36, %v3168_v14 }
 0x498   : > { %v5693_v48 = vpop.permute.xlu0 %5692 }
 0x499   : > { %v5698_v24 = vadd.f32 %v5693_v48, %v5679_v11 }
 0x49a   : > { %v5695_v45 = vpop.permute.xlu1 %5694 }
 0x49b   : > { %v5699_v44 = vadd.f32 %v5695_v45, %v5680_v17 }
 0x49c   : > { %v3204_v25 = vpop.permute.xlu0 %3203 }
 0x49d   : > { %v3209_v57 = vadd.f32 %v3204_v25, %v3188_v46 }
 0x49e   : > { %v3206_v13 = vpop.permute.xlu1 %3205 }
 0x49f   : > { %v3210_v40 = vadd.f32 %v3206_v13, %v3189_v51  ;;  %v3213_v16 = vadd.f32 %v3212_v28, %v3209_v57 }
 0x4a0   : > { %v5712_v4 = vpop.permute.xlu0 %5711 }
 0x4a1   : > { %v5717_v33 = vadd.f32 %v5712_v4, %v5698_v24  ;;  %v3214_v15 = vadd.f32 %v3212_v28, %v3210_v40 }
 0x4a2   : > { %v5714_v37 = vpop.permute.xlu1 %5713 }
 0x4a3   : > { %v5718_v32 = vadd.f32 %v5714_v37, %v5699_v44  ;;  %v5719_v49 = vadd.f32 %v5717_v33, %v3212_v28 }
 0x4a4   : > { %v12912_v52 = vpop.permute.xlu0 %3223 }
 0x4a5   : > { %v3229_v56 = vadd.f32 %v12912_v52, %v3213_v16  ;;  %v5720_v12 = vadd.f32 %v5718_v32, %v3212_v28 }
 0x4a6   : > { %v12914_v3 = vpop.permute.xlu1 %3225 }
 0x4a7   : > { %v3230_v23 = vadd.f32 %v12914_v3, %v3214_v15  ;;  %v5737_v10 = vmul.f32 %v3229_v56, %v3229_v56  ;;  %v7732_v25 = vpack.c.bf16 %v12914_v3, %v12912_v52 }
 0x4a8   : > { %v5730_v22 = vpop.permute.xlu0 %5729 }
 0x4a9   : > { %v5735_v39 = vadd.f32 %v5730_v22, %v5719_v49  ;;  %v5738_v0 = vmul.f32 %v3230_v23, %v3230_v23 }
 0x4aa   : > { %v5732_v53 = vpop.permute.xlu1 %5731 }
 0x4ab   : > { %v5739_v5 = vmul.f32 %v5735_v39, %v5735_v39  ;;  %v5736_v18 = vadd.f32 %v5732_v53, %v5720_v12  ;;  %v7708_v34 = vpack.c.bf16 %v5732_v53, %v5730_v22 }
 0x4ac   : > { %v7848_v19 = vpop.permute.xlu0 %7847 }
 0x4ad   : > { %v5741_v58 = vadd.f32 %v5739_v5, %v5737_v10  ;;  %v5740_v31 = vmul.f32 %v5736_v18, %v5736_v18  ;;  %v7850_v20 = vunpack.i.h.bf16 %v7848_v19  ;;  %v7849_v11 = vunpack.i.l.bf16 %v7848_v19 }
 0x4ae   : > { %v7853_v36 = vpop.permute.xlu1 %7852 }
 0x4af   : > { %7856 = vrcp.f32 %v5741_v58  ;;  %v5742_v6 = vadd.f32 %v5740_v31, %v5738_v0  ;;  %v7716_v17 = vpack.c.bf16 %v7850_v20, %v7849_v11  ;;  %v7855_v48 = vunpack.i.h.bf16 %v7853_v36 }
 0x4b0   : > { %v7854_v45 = vunpack.i.l.bf16 %v7853_v36 }
 0x4b1   : > { %7858 = vrcp.f32 %v5742_v6 }
 0x4b2   : > { %v7740_v13 = vpack.c.bf16 %v7855_v48, %v7854_v45 }
 0x4b9   : > { %v7857_v2 = vpop.eup %7856 }
 0x4ba   : > { %v5747_v54 = vmul.f32 %v7857_v2, %v5737_v10  ;;  %v5749_v43 = vmul.f32 %v7857_v2, %v5739_v5 }
 0x4bb   : > { %v7859_v9 = vpop.eup %7858 }
 0x4bc   : > { %v5751_v61 = vmul.f32 %v5747_v54, %v12912_v52  ;;  %v5753_v63 = vmul.f32 %v5749_v43, %v5730_v22  ;;  %v5748_v1 = vmul.f32 %v7859_v9, %v5738_v0  ;;  %v5750_v7 = vmul.f32 %v7859_v9, %v5740_v31 }
 0x4be   : > { %v5755_v26 = vadd.f32 %v5753_v63, %v5751_v61  ;;  %v5752_v8 = vmul.f32 %v5748_v1, %v12914_v3  ;;  %v5754_v35 = vmul.f32 %v5750_v7, %v5732_v53 }
 0x4c0   : > { %v5756_v62 = vadd.f32 %v5754_v35, %v5752_v8  ;;  %5758 = vst.msk [vmem:[%s12923_s27] sm:$0xff] %vm5757_vm9, %v5755_v26  ;;  %v6423_v30 = vmul.f32 %v5755_v26, %v5730_v22  ;;  %v5928_v55 = vmul.f32 %v5755_v26, %v5755_v26  ;;  %v6957_v59 = vmul.f32 %v5755_v26, %v12912_v52 }
 0x4c2   : > { %v6424_v42 = vmul.f32 %v5756_v62, %v5732_v53  ;;  %v7692_v47 = vpack.c.bf16 %v5756_v62, %v5755_v26  ;;  %v5929_v41 = vmul.f32 %v5756_v62, %v5756_v62  ;;  %v6958_v21 = vmul.f32 %v5756_v62, %v12914_v3  ;;  %5759 = vst.msk [vmem:[%s12923_s27 + $0x8] sm:$0xff] %vm5757_vm9, %v5756_v62  ;;  %s7953_s27 = sshll.u32 %s8043_s26, 4  ;;  %s7954_s27 = int_to_ptr.vmem [resolvable:$false] %s7953_s27 }
 0x4c3   : > { %s7955_s28 = scalar_lea.vmem %s7954_s27, 512  ;;  %p7956_p7 = scmp.lt.s32.totalorder %s13000_s24, %s7954_s27 }
 0x4c4   : > { %7693 = vmatprep.subr.bf16.mxu0 %v7692_v47  ;;  %v7700_v29 = vpack.c.bf16 %v5929_v41, %v5928_v55  ;;  %v7724_v50 = vpack.c.bf16 %v6424_v42, %v6423_v30  ;;  %v7748_v14 = vpack.c.bf16 %v6958_v21, %v6957_v59  ;;  %p7957_p5 = scmp.lt.s32.totalorder %s7955_s28, %s7949_s22 }
 0x4c5   : > { %7695 = vmatpush3.bf16.msra.mxu0 %v7692_v47 }
 0x4c6   : > { %7701 = vmatprep.subr.bf16.mxu0 %v7700_v29  ;;  %p7958_p6 = por %p7957_p5, %p7956_p7 }
 0x4c8   : > { %7585 = vmatmul.mubr.msk.f32.vlgmr.msra.gmra.mrb[0].mxu0 %vm5757_vm9, %v5761_v60  ;;  %p7959_p10 = pnand %p7958_p6, %p7952_p9 }
 0x4c9   : > { %7703 = vmatpush3.bf16.msra.mxu0 %v7700_v29  ;;  %7598 = vmatprep.mubr.msk.f32.mxu0 %vm5757_vm9, %v12877_v38 }
 0x4ca   : > { %7709 = vmatprep.subr.bf16.mxu0 %v7708_v34 }
 0x4cc   : > { %7599 = vmatmul.mubr.msk.f32.vlgmr.msra.gmra.mrb[2].mxu0 %vm5757_vm9, %v5761_v60 }
 0x4cd   : > { %7711 = vmatpush3.bf16.msra.mxu0 %v7708_v34  ;;  %7612 = vmatprep.mubr.msk.f32.mxu0 %vm5757_vm9, %v12877_v38 }
 0x4ce   : > { %7717 = vmatprep.subr.bf16.mxu0 %v7716_v17 }
 0x4d0   : > { %7613 = vmatmul.mubr.msk.f32.vlgmr.msra.gmra.mrb[4].mxu0 %vm5757_vm9, %v5761_v60 }
 0x4d1   : > { %7719 = vmatpush3.bf16.msra.mxu0 %v7716_v17  ;;  %7626 = vmatprep.mubr.msk.f32.mxu0 %vm5757_vm9, %v12877_v38 }
 0x4d2   : > { %7725 = vmatprep.subr.bf16.mxu0 %v7724_v50 }
 0x4d4   : > { %7627 = vmatmul.mubr.msk.f32.vlgmr.msra.gmra.mrb[6].mxu0 %vm5757_vm9, %v5761_v60 }
 0x4d5   : > { %7727 = vmatpush3.bf16.msra.mxu0 %v7724_v50  ;;  %7640 = vmatprep.mubr.msk.f32.mxu0 %vm5757_vm9, %v12877_v38 }
 0x4d6   : > { %7733 = vmatprep.subr.bf16.mxu0 %v7732_v25 }
 0x4d8   : > { %7641 = vmatmul.mubr.msk.f32.vlgmr.msra.gmra.mrb[8].mxu0 %vm5757_vm9, %v5761_v60 }
 0x4d9   : > { %7735 = vmatpush3.bf16.msra.mxu0 %v7732_v25  ;;  %7654 = vmatprep.mubr.msk.f32.mxu0 %vm5757_vm9, %v12877_v38 }
 0x4da   : > { %7741 = vmatprep.subr.bf16.mxu0 %v7740_v13 }
 0x4dc   : > { %7655 = vmatmul.mubr.msk.f32.vlgmr.msra.gmra.mrb[10].mxu0 %vm5757_vm9, %v5761_v60 }
 0x4dd   : > { %7743 = vmatpush3.bf16.msra.mxu0 %v7740_v13  ;;  %7668 = vmatprep.mubr.msk.f32.mxu0 %vm5757_vm9, %v12877_v38 }
 0x4de   : > { %7749 = vmatprep.subr.bf16.mxu0 %v7748_v14 }
 0x4e0   : > { %7669 = vmatmul.mubr.msk.f32.vlgmr.msra.gmra.mrb[12].mxu0 %vm5757_vm9, %v5761_v60 }
 0x4e1   : > { %7751 = vmatpush3.bf16.msra.mxu0 %v7748_v14  ;;  %7682 = vmatprep.mubr.msk.f32.mxu0 %vm5757_vm9, %v12877_v38 }
 0x4e4   : > { %7683 = vmatmul.mubr.msk.f32.vlgmr.msra.gmra.mrb[14].mxu0 %vm5757_vm9, %v5761_v60 }
 0x59b   : > { %v7586_v46 = vpop.f32.mrb[0].mxu0 }
 0x59c   : > { %v5836_v4 = vpop.f32.mrb[1].mxu0 }
 0x59d   : > { %7591 = vmatprep.mubr.msk.f32.mxu1 %vm5757_vm9, %v5836_v4 }
 0x59e   : > { %7592 = vmatmul.mubr.msk.f32.vlgmr.msra.gmra.mrb[0].mxu1 %vm5757_vm9, %v7586_v46 }
 0x59f   : > { %v7600_v51 = vpop.f32.mrb[2].mxu0  ;;  %7707 = vmatpush3.bf16.msra.mxu1 %v12895_v27 }
 0x5a0   : > { %v5996_v24 = vpop.f32.mrb[3].mxu0  ;;  %7713 = vmatprep.subr.bf16.mxu1 %v12895_v27 }
 0x5a1   : > { %7605 = vmatprep.mubr.msk.f32.mxu1 %vm5757_vm9, %v5996_v24 }
 0x5a2   : > { %7606 = vmatmul.mubr.msk.f32.vlgmr.msra.gmra.mrb[2].mxu1 %vm5757_vm9, %v7600_v51 }
 0x5a3   : > { %v7614_v57 = vpop.f32.mrb[4].mxu0  ;;  %7715 = vmatpush3.bf16.msra.mxu1 %v12895_v27 }
 0x5a4   : > { %v6154_v38 = vpop.f32.mrb[5].mxu0  ;;  %7721 = vmatprep.subr.bf16.mxu1 %v12895_v27 }
 0x5a5   : > { %7619 = vmatprep.mubr.msk.f32.mxu1 %vm5757_vm9, %v6154_v38 }
 0x5a6   : > { %7620 = vmatmul.mubr.msk.f32.vlgmr.msra.gmra.mrb[4].mxu1 %vm5757_vm9, %v7614_v57 }
 0x5a7   : > { %v7628_v28 = vpop.f32.mrb[6].mxu0  ;;  %7723 = vmatpush3.bf16.msra.mxu1 %v12895_v27 }
 0x5a8   : > { %v6331_v37 = vpop.f32.mrb[7].mxu0  ;;  %7729 = vmatprep.subr.bf16.mxu1 %v12895_v27 }
 0x5a9   : > { %7633 = vmatprep.mubr.msk.f32.mxu1 %vm5757_vm9, %v6331_v37 }
 0x5aa   : > { %7634 = vmatmul.mubr.msk.f32.vlgmr.msra.gmra.mrb[6].mxu1 %vm5757_vm9, %v7628_v28 }
 0x5ab   : > { %v7642_v44 = vpop.f32.mrb[8].mxu0  ;;  %7731 = vmatpush3.bf16.msra.mxu1 %v12895_v27 }
 0x5ac   : > { %v6491_v40 = vpop.f32.mrb[9].mxu0  ;;  %7737 = vmatprep.subr.bf16.mxu1 %v12895_v27 }
 0x5ad   : > { %7647 = vmatprep.mubr.msk.f32.mxu1 %vm5757_vm9, %v6491_v40 }
 0x5ae   : > { %7648 = vmatmul.mubr.msk.f32.vlgmr.msra.gmra.mrb[8].mxu1 %vm5757_vm9, %v7642_v44 }
 0x5af   : > { %v7656_v33 = vpop.f32.mrb[10].mxu0  ;;  %7739 = vmatpush3.bf16.msra.mxu1 %v12895_v27 }
 0x5b0   : > { %v6688_v52 = vpop.f32.mrb[11].mxu0  ;;  %7745 = vmatprep.subr.bf16.mxu1 %v12895_v27 }
 0x5b1   : > { %7661 = vmatprep.mubr.msk.f32.mxu1 %vm5757_vm9, %v6688_v52 }
 0x5b2   : > { %7662 = vmatmul.mubr.msk.f32.vlgmr.msra.gmra.mrb[10].mxu1 %vm5757_vm9, %v7656_v33 }
 0x5b3   : > { %v7670_v16 = vpop.f32.mrb[12].mxu0  ;;  %7747 = vmatpush3.bf16.msra.mxu1 %v12895_v27 }
 0x5b4   : > { %v6865_v32 = vpop.f32.mrb[13].mxu0  ;;  %7753 = vmatprep.subr.bf16.mxu1 %v12895_v27 }
 0x5b5   : > { %7675 = vmatprep.mubr.msk.f32.mxu1 %vm5757_vm9, %v6865_v32 }
 0x5b6   : > { %7676 = vmatmul.mubr.msk.f32.vlgmr.msra.gmra.mrb[12].mxu1 %vm5757_vm9, %v7670_v16 }
 0x5b7   : > { %v7684_v3 = vpop.f32.mrb[14].mxu0  ;;  %7755 = vmatpush3.bf16.msra.mxu1 %v12895_v27 }
 0x5b8   : > { %v7025_v15 = vpop.f32.mrb[15].mxu0 }
 0x5b9   : > { %7689 = vmatprep.mubr.msk.f32.mxu1 %vm5757_vm9, %v7025_v15 }
 0x5ba   : > { %7690 = vmatmul.mubr.msk.f32.vlgmr.msra.gmra.mrb[14].mxu1 %vm5757_vm9, %v7684_v3 }
 0x671   : > { %v7593_v49 = vpop.f32.mrb[0].mxu1 }
 0x672   : > { %v5917_v56 = vpop.f32.mrb[1].mxu1  ;;  %v5927_v22 = vmul.f32 %v7593_v49, %v7593_v49 }
 0x673   : > { %v5926_v12 = vmul.f32 %v5917_v56, %v5917_v56 }
 0x675   : > { %v7607_v23 = vpop.f32.mrb[2].mxu1 }
 0x676   : > { %v6087_v39 = vsub.f32 %v7607_v23, %v5927_v22  ;;  %v6077_v53 = vpop.f32.mrb[3].mxu1 }
 0x677   : > { %v6086_v10 = vsub.f32 %v6077_v53, %v5926_v12 }
 0x679   : > { %v7621_v5 = vpop.f32.mrb[4].mxu1 }
 0x67a   : > { %v6245_v18 = vmul.f32 %v7621_v5, %v7621_v5  ;;  %v6247_v0 = vmul.f32 %v7621_v5, %v7593_v49  ;;  %v6235_v58 = vpop.f32.mrb[5].mxu1 }
 0x67b   : > { %v6244_v31 = vmul.f32 %v6235_v58, %v6235_v58  ;;  %v6246_v6 = vmul.f32 %v6235_v58, %v5917_v56 }
 0x67c   : > { %v6594_v27 = vadd.f32 %v6245_v18, %v5927_v22  ;;  %v6584_v1 = vmul.f32 2.0, %v6247_v0 }
 0x67d   : > { %v6593_v2 = vadd.f32 %v6244_v31, %v5926_v12  ;;  %v7635_v54 = vpop.f32.mrb[6].mxu1  ;;  %v6583_v7 = vmul.f32 2.0, %v6246_v6 }
 0x67e   : > { %v6422_v43 = vsub.f32 %v7635_v54, %v6245_v18  ;;  %v6412_v9 = vpop.f32.mrb[7].mxu1  ;;  %v6596_v35 = vadd.f32 0.0001, %v6594_v27  ;;  %v6586_v19 = vadd.f32 0.0001, %v6584_v1 }
 0x67f   : > { %v6421_v61 = vsub.f32 %v6412_v9, %v6244_v31  ;;  %v6595_v59 = vadd.f32 0.0001, %v6593_v2  ;;  %v6585_v29 = vadd.f32 0.0001, %v6583_v7 }
 0x680   : > { %v6598_v63 = vadd.f32 %v6422_v43, %v6087_v39 }
 0x681   : > { %v6597_v26 = vadd.f32 %v6421_v61, %v6086_v10  ;;  %v7649_v8 = vpop.f32.mrb[8].mxu1 }
 0x682   : > { %v6600_v62 = vadd.f32 0.0009, %v6598_v63  ;;  %v6582_v30 = vsub.f32 %v7649_v8, %v6247_v0  ;;  %v6572_v55 = vpop.f32.mrb[9].mxu1 }
 0x683   : > { %v6599_v42 = vadd.f32 0.0009, %v6597_v26  ;;  %v6581_v47 = vsub.f32 %v6572_v55, %v6246_v6 }
 0x684   : > { %v6602_v41 = vmul.f32 %v6600_v62, %v6596_v35  ;;  %v6588_v21 = vmul.f32 2.0, %v6582_v30 }
 0x685   : > { %v6601_v50 = vmul.f32 %v6599_v42, %v6595_v59  ;;  %v6587_v14 = vmul.f32 2.0, %v6581_v47  ;;  %v7663_v60 = vpop.f32.mrb[10].mxu1 }
 0x686   : > { %7860 = vrcp.f32 %v6602_v41  ;;  %v6590_v20 = vadd.f32 0.0009, %v6588_v21  ;;  %v6779_v11 = vmul.f32 %v7663_v60, %v7663_v60  ;;  %v6781_v34 = vmul.f32 %v7663_v60, %v7593_v49  ;;  %v6769_v17 = vpop.f32.mrb[11].mxu1 }
 0x687   : > { %7862 = vrcp.f32 %v6601_v50  ;;  %v6589_v36 = vadd.f32 0.0009, %v6587_v14  ;;  %v6778_v48 = vmul.f32 %v6769_v17, %v6769_v17  ;;  %v6780_v45 = vmul.f32 %v6769_v17, %v5917_v56 }
 0x688   : > { %v6592_v25 = vmul.f32 %v6590_v20, %v6586_v19  ;;  %v7128_v13 = vadd.f32 %v6779_v11, %v5927_v22  ;;  %v7118_v40 = vmul.f32 2.0, %v6781_v34 }
 0x689   : > { %v6591_v46 = vmul.f32 %v6589_v36, %v6585_v29  ;;  %v7127_v4 = vadd.f32 %v6778_v48, %v5926_v12  ;;  %v7677_v51 = vpop.f32.mrb[12].mxu1  ;;  %v7117_v3 = vmul.f32 2.0, %v6780_v45 }
 0x68a   : > { %v6956_v24 = vsub.f32 %v7677_v51, %v6779_v11  ;;  %v6946_v57 = vpop.f32.mrb[13].mxu1  ;;  %v7130_v33 = vadd.f32 0.0001, %v7128_v13 }
 0x68b   : > { %v6955_v38 = vsub.f32 %v6946_v57, %v6778_v48  ;;  %v7129_v15 = vadd.f32 0.0001, %v7127_v4  ;;  %v7119_v31 = vadd.f32 0.0001, %v7117_v3 }
 0x68c   : > { %v7132_v28 = vadd.f32 %v6956_v24, %v6087_v39  ;;  %v7120_v39 = vadd.f32 0.0001, %v7118_v40 }
 0x68d   : > { %v7131_v37 = vadd.f32 %v6955_v38, %v6086_v10  ;;  %v7691_v44 = vpop.f32.mrb[14].mxu1 }
 0x68e   : > { %v7134_v52 = vadd.f32 0.0009, %v7132_v28  ;;  %v7116_v16 = vsub.f32 %v7691_v44, %v6781_v34  ;;  %v7106_v32 = vpop.f32.mrb[15].mxu1 }
 0x68f   : > { %v7133_v49 = vadd.f32 0.0009, %v7131_v37  ;;  %v7115_v56 = vsub.f32 %v7106_v32, %v6780_v45 }
 0x690   : > { %v7861_v23 = vpop.eup %7860  ;;  %v7136_v22 = vmul.f32 %v7134_v52, %v7130_v33  ;;  %v7122_v53 = vmul.f32 2.0, %v7116_v16 }
 0x691   : > { %v7863_v12 = vpop.eup %7862  ;;  %v6606_v5 = vmul.f32 %v7861_v23, %v6592_v25  ;;  %v7135_v18 = vmul.f32 %v7133_v49, %v7129_v15  ;;  %v7121_v0 = vmul.f32 2.0, %v7115_v56 }
 0x692   : > { %v6604_v58 = vmul.f32 %v7863_v12, %v6591_v46  ;;  %7864 = vrcp.f32 %v7136_v22  ;;  %v7124_v10 = vadd.f32 0.0009, %v7122_v53 }
 0x693   : > { %7866 = vrcp.f32 %v7135_v18  ;;  %v7123_v6 = vadd.f32 0.0009, %v7121_v0  ;;  %v6608_v27 = vsel %vm5757_vm9, %v6606_v5, 0.0 }
 0x694   : > { %v7126_v2 = vmul.f32 %v7124_v10, %v7120_v39  ;;  %v6607_v54 = vsel %vm5757_vm9, %v6604_v58, 0.0 }
 0x695   : > { %v7125_v43 = vmul.f32 %v7123_v6, %v7119_v31  ;;  %v6609_v9 = vadd.f32 %v6608_v27, %v6607_v54 }
 0x697   : > { %6610 = vadd.xlane.f32.xlu0 %v6609_v9 }
 0x69c   : > { %v7865_v61 = vpop.eup %7864 }
 0x69d   : > { %v7867_v63 = vpop.eup %7866  ;;  %v7140_v1 = vmul.f32 %v7865_v61, %v7126_v2 }
 0x69e   : > { %v7138_v7 = vmul.f32 %v7867_v63, %v7125_v43 }
 0x69f   : > { %v7142_v26 = vsel %vm5757_vm9, %v7140_v1, 0.0 }
 0x6a0   : > { %v7141_v8 = vsel %vm5757_vm9, %v7138_v7, 0.0 }
 0x6a1   : > { %v7143_v35 = vadd.f32 %v7142_v26, %v7141_v8 }
 0x6a3   : > { %7144 = vadd.xlane.f32.xlu1 %v7143_v35 }
 0x6a4   : > { %7962 = shalt.err (!%p7959_p10)
}
 0x6a5   : > { %s7963_s30 = scalar_lea.hbm %s12998_s15, 256  ;;  %s7967_s25 = scalar_lea.hbm %s13073_s8, 512 }
 0x6a6   : > { %p7964_p8 = scmp.ne.s32.totalorder %s12998_s15, %s7963_s30  ;;  %p7968_p13 = scmp.lt.u32.totalorder %s12998_s15, %s13073_s8 }
 0x6a7   : > { %p7969_p1 = scmp.lt.u32.totalorder %s7967_s25, %s7963_s30  ;;  %p7971_p3 = scmp.lt.u32.totalorder %s7963_s30, %s12998_s15 }
 0x6a8   : > { %p7965_p0 = pnand %p7964_p8, %p13837_p4 }
 0x6a9   : > { %p7970_p12 = por %p7969_p1, %p7968_p13 }
 0x6aa   : > { %p7966_p11 = pneg %p7965_p0 }
 0x6ab   : > { %p7972_p2 = por %p7971_p3, %p7970_p12 }
 0x6ad   : > { %p7973_p9 = pnand %p7972_p2, %p7966_p11 }
 0x6af   : > { %7976 = shalt.err (!%p7973_p9)
}
 0x6b0   : > { %s8044_s22 = smov 128   ;;  %s8045_s26 = smov 8  }
 0x6b1   : > { %7775 = dma.vmem_to_hbm [thread:$0]  (%p13837_p4), %s13000_s24, 256, %s12998_s15, %s13004_s17, %s8044_s22, %s8044_s22, %s8045_s26  }
 0x6b2   : > { %s7164_s20 = sld [smem:[#allocation2]]  ;;  %s7977_s29 = scalar_lea.hbm %s13074_s9, 16 }
 0x6b3   : > { %p7978_p4 = scmp.ne.s32.totalorder %s13074_s9, %s7977_s29  ;;  %p13838_p7 = scmp.eq.s32.totalorder %s8121_s5, 1 }
 0x6b4   : > { %p7983_p10 = scmp.lt.u32.totalorder %s7977_s29, %s13074_s9 }
 0x6b5   : > { %p7979_p5 = pnand %p7978_p4, %p13838_p7 }
 0x6b7   : > { %p7980_p6 = pneg %p7979_p5 }
 0x6b9   : > { %p7985_p8 = pnand %p7983_p10, %p7980_p6 }
 0x724   : > { %v6611_v62 = vpop.xlane.xlu0 %6610 }
 0x725   : > { %v6612_v30 = vrot.slane %v6611_v62, 4 }
 0x727   : > { %v6613_v55 = vadd.f32 %v6612_v30, %v6611_v62 }
 0x729   : > { %v6614_v59 = vrot.slane %v6613_v55, 2 }
 0x72b   : > { %v6615_v42 = vadd.f32 %v6614_v59, %v6613_v55 }
 0x72d   : > { %v6616_v47 = vrot.slane %v6615_v42, 1 }
 0x72f   : > { %v6617_v41 = vadd.f32 %v6616_v47, %v6615_v42 }
 0x730   : > { %v7145_v21 = vpop.xlane.xlu1 %7144 }
 0x731   : > { %v7146_v19 = vrot.slane %v7145_v21, 4  ;;  %7757 = vpush %v6617_v41 }
 0x733   : > { %v7147_v29 = vadd.f32 %v7146_v19, %v7145_v21 }
 0x735   : > { %v7148_v50 = vrot.slane %v7147_v29, 2 }
 0x737   : > { %v7149_v14 = vadd.f32 %v7148_v50, %v7147_v29 }
 0x739   : > { %v7150_v60 = vrot.slane %v7149_v14, 1 }
 0x73b   : > { %v7151_v20 = vadd.f32 %v7150_v60, %v7149_v14 }
 0x73d   : > { %7759 = vpush %v7151_v20 }
 0x762   : > { %s7758_s27 = spop %7757 }
 0x763   : > { %s6621_s24 = smul.f32 0.00390625, %s7758_s27 }
 0x76e   : > { %s7760_s15 = spop %7759 }
 0x76f   : > { %s7155_s17 = smul.f32 0.00390625, %s7760_s15 }
 0x771   : > { %s7156_s28 = sadd.f32 %s7155_s17, %s6621_s24 }
 0x773   : > { %s7157_s30 = smul.f32 0.5, %s7156_s28 }
 0x775   : > { %s7165_s18 = sadd.f32 %s7164_s20, %s7157_s30 }
 0x777   : > { %7167 = sst [smem:[#allocation2]] %s7165_s18 }
 0x778   : > { %7170 = sst [smem:[#allocation12]] %s7165_s18 }
 0x779   : > { %7988 = shalt.err (!%p7985_p8)
}
 0x77a   : > { %s8046_s20 = smov [#allocation12]   ;;  %p13839_p0 = pmov %p13838_p7 }
 0x77c   : > { %7777 = dma.smem_to_hbm (%p13839_p0), %s8046_s20, 16, %s13074_s9, [#allocation6]  }
 0x77d   : > { %p13840_p11 = pmov %p13839_p0 }
 0x77e   : > { %p13841_p13 = pmov %p13839_p0 }
 0x77f   : > { %8014 = dma.done.wait (%p13840_p11), [#allocation6], 16  }
 0x780   : > { %8016 = vsyncadd (%p13841_p13), [#allocation6], 4294967280 }
 0x781   : > { %7205 = sfence }
 0x782 PF: > { %p7804_p1 = scmp.ge.s32.totalorder %s8035_s14, 2  ;;  %s7214_s17 = sand.u32 1, %s8023_s11  }
 0x783   : > { %p13842_p12 = scmp.ne.s32.totalorder %s13270_s21, 0  ;;  %s7215_s28 = scalar_lea.sflag [#allocation5], %s7214_s17 }
 0x785   : > { %p7792_p3 = pnand %p7804_p1, %p13842_p12 }
 0x787   : > { %8018 = dma.done.wait (!%p7792_p3), %s7215_s28, 256  }
 0x788   : > { %8020 = vsyncadd (!%p7792_p3), %s7215_s28, 4294967040  ;;  %p24_p2 = scmp.ge.s32.totalorder %s8125_s16, 4   ;;  %s13843_s11 = smov %s8027_s12 }
 0x789   : > { %s13844_s12 = smov %s8031_s13  ;;  %s13845_s13 = smov %s8136_s19 }
 0x78a   : > { %s13846_s14 = smov %s8125_s16  ;;  %26 = sbr.rel (!%p24_p2) target bundleno = 8 (0x8), region = 119 }
 0x791   :  { %7220 = vsyncpa [#allocation5], 1 }
 0x792   :  { %7222 = vsyncpa [#allocation5 + $0x1], 1 }
 0x793   :  { %7223 = vsyncpa [#allocation6], 1 }
 0x794   :  { %7225 = vsyncpa [#allocation6 + $0x1], 1 }
 0x795   :  { %7226 = vsyncpa [#allocation7], 1 }
 0x796   :  { %7228 = vsyncpa [#allocation7 + $0x1], 1 }
 0x797   :  { %7229 = vsyncpa [#allocation9], 1 }

</bundles_post_ra>
